<compile_context>
chip_gen: v6e
topology: v6e:2x2x1
jax: 0.10.0
libtpu: 0.0.40
codegen_flags: <defaults>
</compile_context>

<pallas_src>
import math
import jax
import jax.numpy as jnp
from jax.experimental import pallas as pl
from jax.experimental.pallas import tpu as pltpu

# ---- small hyperparameters consistent with the module structure ----
NUM_SUB = 2                       # num_subsequences U
SEQ_LEN = 4                       # sequence_length (per subsequence)
MAX_SEQ = NUM_SUB * SEQ_LEN       # max_sequence_length T
INPUT_SIZE = 13                   # encoder_input_size = decoder_input_size
ENC_HIDDEN = 32
DEC_HIDDEN = 32
LATENT = 16
ENC_LAYERS = 2
DEC_LAYERS = 2
BATCH = 2

_F32 = jnp.float32


# ----------------------------- Pallas kernels -------------------------------

def encoder_kernel(x_ref, da_ref, eps_ref,
                   wih0_ref, whhf0_ref, whhb0_ref, b0_ref,
                   wih1_ref, whhf1_ref, whhb1_ref, b1_ref,
                   wmsf_ref, wmsb_ref, bms_ref,
                   wz_ref, wzda_ref, bz_ref,
                   mu_ref, sigma_ref, z_ref,
                   hs_scr):
    """Fused stacked bidirectional LSTM encoder + mu/sigma heads + reparameterize
    + z_embedding.  Single invocation; time loops fully unrolled; weights in VMEM."""
    H = ENC_HIDDEN
    G = 4 * H
    L = LATENT
    B = mu_ref.shape[0]
    T = x_ref.shape[0] // B

    def lstm_cell(g, c):
        i = jax.nn.sigmoid(g[:, 0:H])
        f = jax.nn.sigmoid(g[:, H:2 * H])
        cand = jnp.tanh(g[:, 2 * H:3 * H])
        o = jax.nn.sigmoid(g[:, 3 * H:4 * H])
        c_new = f * c + i * cand
        return o * jnp.tanh(c_new), c_new

    def bilstm(gin, whh_f, whh_b, store):
        # gin: (T*B, 2G), fwd gates in [:, :G], bwd gates in [:, G:2G] (input matmul hoisted)
        h_f = jnp.zeros((B, H), _F32)
        c_f = jnp.zeros((B, H), _F32)
        h_b = jnp.zeros((B, H), _F32)
        c_b = jnp.zeros((B, H), _F32)
        for s in range(T):
            tb = T - 1 - s
            gf = gin[s * B:(s + 1) * B, 0:G] + jnp.dot(
                h_f, whh_f, preferred_element_type=_F32)
            gb = gin[tb * B:(tb + 1) * B, G:2 * G] + jnp.dot(
                h_b, whh_b, preferred_element_type=_F32)
            h_f, c_f = lstm_cell(gf, c_f)
            h_b, c_b = lstm_cell(gb, c_b)
            if store:
                hs_scr[s * B:(s + 1) * B, 0:H] = h_f
                hs_scr[tb * B:(tb + 1) * B, H:2 * H] = h_b
        return h_f, h_b

    # layer 0: one whole-sequence input matmul (fwd+bwd fused along N)
    gin0 = jnp.dot(x_ref[...], wih0_ref[...], preferred_element_type=_F32) + b0_ref[...]
    bilstm(gin0, whhf0_ref[...], whhb0_ref[...], store=True)

    # layer 1: input is the (T*B, 2H) lane-dense activation slab built in scratch
    gin1 = jnp.dot(hs_scr[...], wih1_ref[...], preferred_element_type=_F32) + b1_ref[...]
    hf_fin, hb_fin = bilstm(gin1, whhf1_ref[...], whhb1_ref[...], store=False)

    # mu / sigma heads fused along N (split per direction to avoid an in-kernel concat)
    y = (jnp.dot(hf_fin, wmsf_ref[...], preferred_element_type=_F32)
         + jnp.dot(hb_fin, wmsb_ref[...], preferred_element_type=_F32)
         + bms_ref[...])
    mu0 = y[:, 0:L]
    sigma0 = jax.nn.softplus(y[:, L:2 * L])

    # reparameterize + z_embedding (Linear(latent+1 -> latent) + Tanh).
    # The appended danceability column of mu has sigma = 0, so it only enters through wzda.
    z_in = mu0 + sigma0 * eps_ref[...]
    z_pre = (jnp.dot(z_in, wz_ref[...], preferred_element_type=_F32)
             + da_ref[...] * wzda_ref[...]
             + bz_ref[...])

    mu_ref[...] = mu0
    sigma_ref[...] = sigma0
    z_ref[...] = jnp.tanh(z_pre)


def decoder_kernel(prev_ref, z_ref,
                   wci_ref, bci_ref,
                   c0_wih_ref, c0_whh_ref, c0_bih_ref, c0_bhh_ref,
                   c1_wih_ref, c1_whh_ref, c1_bih_ref, c1_bhh_ref,
                   wdi_ref, bdi_ref,
                   d0_wx_ref, d0_wc_ref, d0_whh_ref, d0_bih_ref, d0_bhh_ref,
                   d1_wih_ref, d1_whh_ref, d1_bih_ref, d1_bhh_ref,
                   wout_ref, bout_ref,
                   out_ref,
                   c_scr, bot0_scr, bot1_scr):
    """Fused hierarchical GRU decoder (conductor + bottom GRU batched over the U
    subsequences + output projection), teacher-forced."""
    Hd = DEC_HIDDEN
    U = NUM_SUB
    S = SEQ_LEN
    B = z_ref.shape[0]
    UB = U * B

    def gru_cell(gi, gh, h):
        r = jax.nn.sigmoid(gi[:, 0:Hd] + gh[:, 0:Hd])
        u = jax.nn.sigmoid(gi[:, Hd:2 * Hd] + gh[:, Hd:2 * Hd])
        n = jnp.tanh(gi[:, 2 * Hd:3 * Hd] + r * gh[:, 2 * Hd:3 * Hd])
        return (1.0 - u) * n + u * h

    z = z_ref[...]

    # initial hidden states of both conductor layers (init linears fused along N)
    h0c = jnp.tanh(jnp.dot(z, wci_ref[...], preferred_element_type=_F32) + bci_ref[...])

    # conductor layer 0: input is z at every step -> input gates are constant (hoisted)
    c0_whh = c0_whh_ref[...]
    c0_bhh = c0_bhh_ref[...]
    gi0 = jnp.dot(z, c0_wih_ref[...], preferred_element_type=_F32) + c0_bih_ref[...]
    h = h0c[:, 0:Hd]
    cond0 = []
    for _ in range(U):
        gh = jnp.dot(h, c0_whh, preferred_element_type=_F32) + c0_bhh
        h = gru_cell(gi0, gh, h)
        cond0.append(h)

    # conductor layer 1
    c1_wih = c1_wih_ref[...]
    c1_whh = c1_whh_ref[...]
    c1_bih = c1_bih_ref[...]
    c1_bhh = c1_bhh_ref[...]
    h = h0c[:, Hd:2 * Hd]
    for u in range(U):
        gi = jnp.dot(cond0[u], c1_wih, preferred_element_type=_F32) + c1_bih
        gh = jnp.dot(h, c1_whh, preferred_element_type=_F32) + c1_bhh
        h = gru_cell(gi, gh, h)
        c_scr[u * B:(u + 1) * B, :] = h
    c_all = c_scr[...]                                            # (U*B, Hd), u-major

    # bottom decoder: all U subsequences batched along rows (teacher forcing).
    # Init linears fused along N; the token part and the conductor part of W_ih are
    # applied separately so the conductor contribution is computed once per segment.
    h0b = jnp.tanh(jnp.dot(c_all, wdi_ref[...], preferred_element_type=_F32)
                   + bdi_ref[...])                                # (U*B, 2Hd)
    gi_x = jnp.dot(prev_ref[...], d0_wx_ref[...],
                   preferred_element_type=_F32) + d0_bih_ref[...]  # (S*UB, 3Hd)
    gi_c = jnp.dot(c_all, d0_wc_ref[...], preferred_element_type=_F32)  # (UB, 3Hd)

    d0_whh = d0_whh_ref[...]
    d0_bhh = d0_bhh_ref[...]
    h = h0b[:, 0:Hd]
    for s in range(S):
        gi = gi_x[s * UB:(s + 1) * UB, :] + gi_c
        gh = jnp.dot(h, d0_whh, preferred_element_type=_F32) + d0_bhh
        h = gru_cell(gi, gh, h)
        bot0_scr[s * UB:(s + 1) * UB, :] = h

    gi1 = jnp.dot(bot0_scr[...], d1_wih_ref[...],
                  preferred_element_type=_F32) + d1_bih_ref[...]
    d1_whh = d1_whh_ref[...]
    d1_bhh = d1_bhh_ref[...]
    h = h0b[:, Hd:2 * Hd]
    for s in range(S):
        gh = jnp.dot(h, d1_whh, preferred_element_type=_F32) + d1_bhh
        h = gru_cell(gi1[s * UB:(s + 1) * UB, :], gh, h)
        bot1_scr[s * UB:(s + 1) * UB, :] = h

    # output projection over the whole batched sequence at once
    out_ref[...] = (jnp.dot(bot1_scr[...], wout_ref[...], preferred_element_type=_F32)
                    + bout_ref[...])


# ----------------------------- Pallas wrappers -------------------------------

def _vmem_specs(n):
    return [pl.BlockSpec(memory_space=pltpu.MemorySpace.VMEM) for _ in range(n)]


def run_encoder(q, data, da, eps):
    T, B, V = data.shape
    x2d = data.reshape(T * B, V)
    args = (x2d, da, eps[:, :LATENT],
            q["enc0_wih"], q["enc0_whh_f"], q["enc0_whh_b"], q["enc0_b"],
            q["enc1_wih"], q["enc1_whh_f"], q["enc1_whh_b"], q["enc1_b"],
            q["wms_f"], q["wms_b"], q["bms"],
            q["wz"], q["wz_da"], q["bz"])
    mu0, sigma0, z = pl.pallas_call(
        encoder_kernel,
        out_shape=[jax.ShapeDtypeStruct((B, LATENT), _F32) for _ in range(3)],
        in_specs=_vmem_specs(len(args)),
        out_specs=_vmem_specs(3),
        scratch_shapes=[pltpu.VMEM((T * B, 2 * ENC_HIDDEN), _F32)],
    )(*args)
    return mu0, sigma0, z


def run_decoder(q, prev2d, z):
    B = z.shape[0]
    UB = NUM_SUB * B
    V = prev2d.shape[1]
    args = (prev2d, z,
            q["wci"], q["bci"],
            q["cond0_wih"], q["cond0_whh"], q["cond0_bih"], q["cond0_bhh"],
            q["cond1_wih"], q["cond1_whh"], q["cond1_bih"], q["cond1_bhh"],
            q["wdi"], q["bdi"],
            q["dec0_wih_x"], q["dec0_wih_c"], q["dec0_whh"], q["dec0_bih"], q["dec0_bhh"],
            q["dec1_wih"], q["dec1_whh"], q["dec1_bih"], q["dec1_bhh"],
            q["wout"], q["bout"])
    return pl.pallas_call(
        decoder_kernel,
        out_shape=jax.ShapeDtypeStruct((SEQ_LEN * UB, V), _F32),
        in_specs=_vmem_specs(len(args)),
        out_specs=pl.BlockSpec(memory_space=pltpu.MemorySpace.VMEM),
        scratch_shapes=[pltpu.VMEM((UB, DEC_HIDDEN), _F32),
                        pltpu.VMEM((SEQ_LEN * UB, DEC_HIDDEN), _F32),
                        pltpu.VMEM((SEQ_LEN * UB, DEC_HIDDEN), _F32)],
    )(*args)


# ----------------------------- Model forward ---------------------------------

def mudance_vae_forward(q, data, use_teacher_forcing, da, epsilon):
    # TODO(synk): non-teacher-forcing (autoregressive sampling) decoder path not implemented.
    assert use_teacher_forcing
    T, B, V = data.shape

    # encoder + reparameterize + z_embedding, fused in one kernel
    mu0, sigma0, z = run_encoder(q, data, da, epsilon)
    # TODO(synk): MuDanceVAE_Encoder source not given; danceability `da` is appended so
    # that mu/sigma have dim latent_dim+1 as required by z_embedding (sigma row = 0).
    mu = jnp.concatenate([mu0, da], axis=-1)
    sigma = jnp.concatenate([sigma0, jnp.zeros_like(da)], axis=-1)

    # teacher-forcing inputs for the bottom decoder, batched over the U subsequences
    data_r = data.reshape(NUM_SUB, SEQ_LEN, B, V)
    prev = jnp.concatenate(
        [jnp.zeros((NUM_SUB, 1, B, V), data.dtype), data_r[:, :-1]], axis=1)
    prev2d = prev.transpose(1, 0, 2, 3).reshape(SEQ_LEN * NUM_SUB * B, V)

    out2d = run_decoder(q, prev2d, z)                              # (S*U*B, V)
    out = (out2d.reshape(SEQ_LEN, NUM_SUB, B, V)
           .transpose(1, 0, 2, 3).reshape(T, B, V))
    return out, mu, sigma, z


# ----------------------------- Parameters ------------------------------------

def _uniform(key, shape, fan_in):
    bound = 1.0 / math.sqrt(fan_in)
    return jax.random.uniform(key, shape, _F32, -bound, bound)


def init_params(key):
    """PyTorch-like per-tensor parameter structure (LSTM gate order i,f,g,o; GRU r,z,n)."""
    keys = iter(jax.random.split(key, 64))
    p = {}
    # encoder bidirectional stacked LSTM
    in_sz = INPUT_SIZE
    for l in range(ENC_LAYERS):
        for d in ("fwd", "bwd"):
            p[f"enc_l{l}_{d}"] = (
                _uniform(next(keys), (in_sz, 4 * ENC_HIDDEN), ENC_HIDDEN),
                _uniform(next(keys), (ENC_HIDDEN, 4 * ENC_HIDDEN), ENC_HIDDEN),
                _uniform(next(keys), (1, 4 * ENC_HIDDEN), ENC_HIDDEN),   # merged b_ih + b_hh
            )
        in_sz = 2 * ENC_HIDDEN
    p["w_mu"] = _uniform(next(keys), (2 * ENC_HIDDEN, LATENT), 2 * ENC_HIDDEN)
    p["b_mu"] = _uniform(next(keys), (LATENT,), 2 * ENC_HIDDEN)
    p["w_sigma"] = _uniform(next(keys), (2 * ENC_HIDDEN, LATENT), 2 * ENC_HIDDEN)
    p["b_sigma"] = _uniform(next(keys), (LATENT,), 2 * ENC_HIDDEN)
    # z_embedding: Linear(latent+1 -> latent) + Tanh
    p["w_zemb"] = _uniform(next(keys), (LATENT + 1, LATENT), LATENT + 1)
    p["b_zemb"] = _uniform(next(keys), (LATENT,), LATENT + 1)
    # conductor GRU
    in_sz = LATENT
    for l in range(DEC_LAYERS):
        p[f"cond_l{l}"] = (
            _uniform(next(keys), (in_sz, 3 * DEC_HIDDEN), DEC_HIDDEN),
            _uniform(next(keys), (DEC_HIDDEN, 3 * DEC_HIDDEN), DEC_HIDDEN),
            _uniform(next(keys), (1, 3 * DEC_HIDDEN), DEC_HIDDEN),
            _uniform(next(keys), (1, 3 * DEC_HIDDEN), DEC_HIDDEN),
        )
        p[f"cond_init_w{l}"] = _uniform(next(keys), (LATENT, DEC_HIDDEN), LATENT)
        p[f"cond_init_b{l}"] = _uniform(next(keys), (DEC_HIDDEN,), LATENT)
        in_sz = DEC_HIDDEN
    # bottom decoder GRU
    in_sz = INPUT_SIZE + DEC_HIDDEN
    for l in range(DEC_LAYERS):
        p[f"dec_l{l}"] = (
            _uniform(next(keys), (in_sz, 3 * DEC_HIDDEN), DEC_HIDDEN),
            _uniform(next(keys), (DEC_HIDDEN, 3 * DEC_HIDDEN), DEC_HIDDEN),
            _uniform(next(keys), (1, 3 * DEC_HIDDEN), DEC_HIDDEN),
            _uniform(next(keys), (1, 3 * DEC_HIDDEN), DEC_HIDDEN),
        )
        p[f"dec_init_w{l}"] = _uniform(next(keys), (DEC_HIDDEN, DEC_HIDDEN), DEC_HIDDEN)
        p[f"dec_init_b{l}"] = _uniform(next(keys), (DEC_HIDDEN,), DEC_HIDDEN)
        in_sz = DEC_HIDDEN
    # output projection
    p["w_out"] = _uniform(next(keys), (DEC_HIDDEN, INPUT_SIZE), DEC_HIDDEN)
    p["b_out"] = _uniform(next(keys), (INPUT_SIZE,), DEC_HIDDEN)
    return p


def pack_params(p):
    """Pack / fuse parameters for the two fused kernels (pure layout, no math change)."""
    H = ENC_HIDDEN
    q = {}
    # encoder: fuse fwd+bwd input weights along N, keep recurrent weights per direction
    for l in range(ENC_LAYERS):
        wf, whf, bf = p[f"enc_l{l}_fwd"]
        wb, whb, bb = p[f"enc_l{l}_bwd"]
        q[f"enc{l}_wih"] = jnp.concatenate([wf, wb], axis=1)
        q[f"enc{l}_whh_f"] = whf
        q[f"enc{l}_whh_b"] = whb
        q[f"enc{l}_b"] = jnp.concatenate([bf, bb], axis=1)
    # mu/sigma heads fused along N, split per direction (rows) to avoid in-kernel concat
    q["wms_f"] = jnp.concatenate([p["w_mu"][:H], p["w_sigma"][:H]], axis=1)
    q["wms_b"] = jnp.concatenate([p["w_mu"][H:], p["w_sigma"][H:]], axis=1)
    q["bms"] = jnp.concatenate([p["b_mu"], p["b_sigma"]]).reshape(1, 2 * LATENT)
    # z_embedding split: latent rows + danceability row
    q["wz"] = p["w_zemb"][:LATENT]
    q["wz_da"] = p["w_zemb"][LATENT:LATENT + 1]
    q["bz"] = p["b_zemb"].reshape(1, LATENT)
    # conductor init linears fused along N
    q["wci"] = jnp.concatenate(
        [p[f"cond_init_w{l}"] for l in range(DEC_LAYERS)], axis=1)
    q["bci"] = jnp.concatenate(
        [p[f"cond_init_b{l}"] for l in range(DEC_LAYERS)]).reshape(1, DEC_LAYERS * DEC_HIDDEN)
    for l in range(DEC_LAYERS):
        wih, whh, bih, bhh = p[f"cond_l{l}"]
        q[f"cond{l}_wih"] = wih
        q[f"cond{l}_whh"] = whh
        q[f"cond{l}_bih"] = bih
        q[f"cond{l}_bhh"] = bhh
    # bottom-decoder init linears fused along N
    q["wdi"] = jnp.concatenate(
        [p[f"dec_init_w{l}"] for l in range(DEC_LAYERS)], axis=1)
    q["bdi"] = jnp.concatenate(
        [p[f"dec_init_b{l}"] for l in range(DEC_LAYERS)]).reshape(1, DEC_LAYERS * DEC_HIDDEN)
    # bottom decoder layer 0: split W_ih into token part and conductor part
    wih0, whh0, bih0, bhh0 = p["dec_l0"]
    q["dec0_wih_x"] = wih0[:INPUT_SIZE]
    q["dec0_wih_c"] = wih0[INPUT_SIZE:]
    q["dec0_whh"] = whh0
    q["dec0_bih"] = bih0
    q["dec0_bhh"] = bhh0
    wih1, whh1, bih1, bhh1 = p["dec_l1"]
    q["dec1_wih"] = wih1
    q["dec1_whh"] = whh1
    q["dec1_bih"] = bih1
    q["dec1_bhh"] = bhh1
    q["wout"] = p["w_out"]
    q["bout"] = p["b_out"].reshape(1, INPUT_SIZE)
    return q


# ----------------------------- Main -------------------------------------------

if __name__ == "__main__":
    key = jax.random.PRNGKey(0)
    k_param, k_tok, k_da, k_eps = jax.random.split(key, 4)

    params = init_params(k_param)
    packed = pack_params(params)

    tokens = jax.random.randint(k_tok, (MAX_SEQ, BATCH), 0, INPUT_SIZE)
    data = jax.nn.one_hot(tokens, INPUT_SIZE, dtype=_F32)          # (T, B, V)
    da = jax.random.uniform(k_da, (BATCH, 1), _F32)                # danceability
    epsilon = jax.random.normal(k_eps, (BATCH, LATENT + 1), _F32)  # randn_like(mu)

    fwd = jax.jit(mudance_vae_forward, static_argnums=2)
    out, mu, sigma, z = fwd(packed, data, True, da, epsilon)
    jax.block_until_ready((out, mu, sigma, z))

    assert out.shape == (MAX_SEQ, BATCH, INPUT_SIZE)
    assert mu.shape == (BATCH, LATENT + 1)
    assert sigma.shape == (BATCH, LATENT + 1)
    assert z.shape == (BATCH, LATENT)
    print("KERNEL_OK")
</pallas_src>

<mosaic_0001>
module attributes {stable_mosaic.version = 11 : i64} {
  func.func @encoder_kernel(%arg0: memref<16x13xf32, #tpu.memory_space<vmem>>, %arg1: memref<2x1xf32, #tpu.memory_space<vmem>>, %arg2: memref<2x16xf32, #tpu.memory_space<vmem>>, %arg3: memref<13x256xf32, #tpu.memory_space<vmem>>, %arg4: memref<32x128xf32, #tpu.memory_space<vmem>>, %arg5: memref<32x128xf32, #tpu.memory_space<vmem>>, %arg6: memref<1x256xf32, #tpu.memory_space<vmem>>, %arg7: memref<64x256xf32, #tpu.memory_space<vmem>>, %arg8: memref<32x128xf32, #tpu.memory_space<vmem>>, %arg9: memref<32x128xf32, #tpu.memory_space<vmem>>, %arg10: memref<1x256xf32, #tpu.memory_space<vmem>>, %arg11: memref<32x32xf32, #tpu.memory_space<vmem>>, %arg12: memref<32x32xf32, #tpu.memory_space<vmem>>, %arg13: memref<1x32xf32, #tpu.memory_space<vmem>>, %arg14: memref<16x16xf32, #tpu.memory_space<vmem>>, %arg15: memref<1x16xf32, #tpu.memory_space<vmem>>, %arg16: memref<1x16xf32, #tpu.memory_space<vmem>>, %arg17: memref<2x16xf32, #tpu.memory_space<vmem>>, %arg18: memref<2x16xf32, #tpu.memory_space<vmem>>, %arg19: memref<2x16xf32, #tpu.memory_space<vmem>>, %arg20: memref<16x64xf32, #tpu.memory_space<vmem>>) attributes {dimension_semantics = [], scalar_prefetch = 0 : i64, scratch_operands = 1 : i64, tpu.core_type = #tpu.core_type<tc>} {
    %c0 = arith.constant 0 : index
    %c0_0 = arith.constant 0 : index
    %0 = vector.load %arg0[%c0, %c0_0] : memref<16x13xf32, #tpu.memory_space<vmem>>, vector<16x13xf32>
    %c0_1 = arith.constant 0 : index
    %c0_2 = arith.constant 0 : index
    %1 = vector.load %arg3[%c0_1, %c0_2] : memref<13x256xf32, #tpu.memory_space<vmem>>, vector<13x256xf32>
    %cst = arith.constant dense<0.000000e+00> : vector<16x256xf32>
    %2 = tpu.matmul %0, %1, %cst {dimension_numbers = #tpu.dot_dimension_numbers<[1], [0], [0], [1], [0, 0, 1, 1], [], []>} : vector<16x13xf32>, vector<13x256xf32>, vector<16x256xf32> -> vector<16x256xf32>
    %c0_3 = arith.constant 0 : index
    %c0_4 = arith.constant 0 : index
    %3 = vector.load %arg6[%c0_3, %c0_4] : memref<1x256xf32, #tpu.memory_space<vmem>>, vector<1x256xf32>
    %4 = vector.broadcast %3 : vector<1x256xf32> to vector<16x256xf32>
    %5 = arith.addf %2, %4 : vector<16x256xf32>
    %c0_5 = arith.constant 0 : index
    %c0_6 = arith.constant 0 : index
    %6 = vector.load %arg4[%c0_5, %c0_6] : memref<32x128xf32, #tpu.memory_space<vmem>>, vector<32x128xf32>
    %c0_7 = arith.constant 0 : index
    %c0_8 = arith.constant 0 : index
    %7 = vector.load %arg5[%c0_7, %c0_8] : memref<32x128xf32, #tpu.memory_space<vmem>>, vector<32x128xf32>
    %cst_9 = arith.constant 0.000000e+00 : f32
    %8 = vector.broadcast %cst_9 : f32 to vector<2x32xf32>
    %cst_10 = arith.constant 0.000000e+00 : f32
    %9 = vector.broadcast %cst_10 : f32 to vector<2x32xf32>
    %cst_11 = arith.constant 0.000000e+00 : f32
    %10 = vector.broadcast %cst_11 : f32 to vector<2x32xf32>
    %cst_12 = arith.constant 0.000000e+00 : f32
    %11 = vector.broadcast %cst_12 : f32 to vector<2x32xf32>
    %12 = vector.extract_strided_slice %5 {offsets = [0, 0], sizes = [2, 128], strides = [1, 1]} : vector<16x256xf32> to vector<2x128xf32>
    %cst_13 = arith.constant dense<0.000000e+00> : vector<2x128xf32>
    %13 = tpu.matmul %8, %6, %cst_13 {dimension_numbers = #tpu.dot_dimension_numbers<[1], [0], [0], [1], [0, 0, 1, 1], [], []>} : vector<2x32xf32>, vector<32x128xf32>, vector<2x128xf32> -> vector<2x128xf32>
    %14 = arith.addf %12, %13 : vector<2x128xf32>
    %15 = vector.extract_strided_slice %5 {offsets = [14, 128], sizes = [2, 128], strides = [1, 1]} : vector<16x256xf32> to vector<2x128xf32>
    %cst_14 = arith.constant dense<0.000000e+00> : vector<2x128xf32>
    %16 = tpu.matmul %10, %7, %cst_14 {dimension_numbers = #tpu.dot_dimension_numbers<[1], [0], [0], [1], [0, 0, 1, 1], [], []>} : vector<2x32xf32>, vector<32x128xf32>, vector<2x128xf32> -> vector<2x128xf32>
    %17 = arith.addf %15, %16 : vector<2x128xf32>
    %18 = vector.extract_strided_slice %14 {offsets = [0, 0], sizes = [2, 32], strides = [1, 1]} : vector<2x128xf32> to vector<2x32xf32>
    %19 = arith.negf %18 : vector<2x32xf32>
    %20 = math.exp %19 : vector<2x32xf32>
    %cst_15 = arith.constant 1.000000e+00 : f32
    %21 = vector.broadcast %cst_15 : f32 to vector<2x32xf32>
    %22 = arith.addf %21, %20 : vector<2x32xf32>
    %23 = arith.divf %21, %22 : vector<2x32xf32>
    %24 = vector.extract_strided_slice %14 {offsets = [0, 32], sizes = [2, 32], strides = [1, 1]} : vector<2x128xf32> to vector<2x32xf32>
    %25 = arith.negf %24 : vector<2x32xf32>
    %26 = math.exp %25 : vector<2x32xf32>
    %cst_16 = arith.constant 1.000000e+00 : f32
    %27 = vector.broadcast %cst_16 : f32 to vector<2x32xf32>
    %28 = arith.addf %27, %26 : vector<2x32xf32>
    %29 = arith.divf %27, %28 : vector<2x32xf32>
    %30 = vector.extract_strided_slice %14 {offsets = [0, 64], sizes = [2, 32], strides = [1, 1]} : vector<2x128xf32> to vector<2x32xf32>
    %31 = math.tanh %30 : vector<2x32xf32>
    %32 = vector.extract_strided_slice %14 {offsets = [0, 96], sizes = [2, 32], strides = [1, 1]} : vector<2x128xf32> to vector<2x32xf32>
    %33 = arith.negf %32 : vector<2x32xf32>
    %34 = math.exp %33 : vector<2x32xf32>
    %cst_17 = arith.constant 1.000000e+00 : f32
    %35 = vector.broadcast %cst_17 : f32 to vector<2x32xf32>
    %36 = arith.addf %35, %34 : vector<2x32xf32>
    %37 = arith.divf %35, %36 : vector<2x32xf32>
    %38 = arith.mulf %29, %9 : vector<2x32xf32>
    %39 = arith.mulf %23, %31 : vector<2x32xf32>
    %40 = arith.addf %38, %39 : vector<2x32xf32>
    %41 = math.tanh %40 : vector<2x32xf32>
    %42 = arith.mulf %37, %41 : vector<2x32xf32>
    %43 = vector.extract_strided_slice %17 {offsets = [0, 0], sizes = [2, 32], strides = [1, 1]} : vector<2x128xf32> to vector<2x32xf32>
    %44 = arith.negf %43 : vector<2x32xf32>
    %45 = math.exp %44 : vector<2x32xf32>
    %cst_18 = arith.constant 1.000000e+00 : f32
    %46 = vector.broadcast %cst_18 : f32 to vector<2x32xf32>
    %47 = arith.addf %46, %45 : vector<2x32xf32>
    %48 = arith.divf %46, %47 : vector<2x32xf32>
    %49 = vector.extract_strided_slice %17 {offsets = [0, 32], sizes = [2, 32], strides = [1, 1]} : vector<2x128xf32> to vector<2x32xf32>
    %50 = arith.negf %49 : vector<2x32xf32>
    %51 = math.exp %50 : vector<2x32xf32>
    %cst_19 = arith.constant 1.000000e+00 : f32
    %52 = vector.broadcast %cst_19 : f32 to vector<2x32xf32>
    %53 = arith.addf %52, %51 : vector<2x32xf32>
    %54 = arith.divf %52, %53 : vector<2x32xf32>
    %55 = vector.extract_strided_slice %17 {offsets = [0, 64], sizes = [2, 32], strides = [1, 1]} : vector<2x128xf32> to vector<2x32xf32>
    %56 = math.tanh %55 : vector<2x32xf32>
    %57 = vector.extract_strided_slice %17 {offsets = [0, 96], sizes = [2, 32], strides = [1, 1]} : vector<2x128xf32> to vector<2x32xf32>
    %58 = arith.negf %57 : vector<2x32xf32>
    %59 = math.exp %58 : vector<2x32xf32>
    %cst_20 = arith.constant 1.000000e+00 : f32
    %60 = vector.broadcast %cst_20 : f32 to vector<2x32xf32>
    %61 = arith.addf %60, %59 : vector<2x32xf32>
    %62 = arith.divf %60, %61 : vector<2x32xf32>
    %63 = arith.mulf %54, %11 : vector<2x32xf32>
    %64 = arith.mulf %48, %56 : vector<2x32xf32>
    %65 = arith.addf %63, %64 : vector<2x32xf32>
    %66 = math.tanh %65 : vector<2x32xf32>
    %67 = arith.mulf %62, %66 : vector<2x32xf32>
    %c0_21 = arith.constant 0 : index
    %c0_22 = arith.constant 0 : index
    %68 = vector.load %arg20[%c0_21, %c0_22] : memref<16x64xf32, #tpu.memory_space<vmem>>, vector<2x32xf32>
    tpu.vector_store %arg20[%c0_21, %c0_22], %42 {strides = array<i32>} : memref<16x64xf32, #tpu.memory_space<vmem>>, vector<2x32xf32>,
    %c14 = arith.constant 14 : index
    %c32 = arith.constant 32 : index
    %69 = vector.load %arg20[%c14, %c32] : memref<16x64xf32, #tpu.memory_space<vmem>>, vector<2x32xf32>
    tpu.vector_store %arg20[%c14, %c32], %67 {strides = array<i32>} : memref<16x64xf32, #tpu.memory_space<vmem>>, vector<2x32xf32>,
    %70 = vector.extract_strided_slice %5 {offsets = [2, 0], sizes = [2, 128], strides = [1, 1]} : vector<16x256xf32> to vector<2x128xf32>
    %cst_23 = arith.constant dense<0.000000e+00> : vector<2x128xf32>
    %71 = tpu.matmul %42, %6, %cst_23 {dimension_numbers = #tpu.dot_dimension_numbers<[1], [0], [0], [1], [0, 0, 1, 1], [], []>} : vector<2x32xf32>, vector<32x128xf32>, vector<2x128xf32> -> vector<2x128xf32>
    %72 = arith.addf %70, %71 : vector<2x128xf32>
    %73 = vector.extract_strided_slice %5 {offsets = [12, 128], sizes = [2, 128], strides = [1, 1]} : vector<16x256xf32> to vector<2x128xf32>
    %cst_24 = arith.constant dense<0.000000e+00> : vector<2x128xf32>
    %74 = tpu.matmul %67, %7, %cst_24 {dimension_numbers = #tpu.dot_dimension_numbers<[1], [0], [0], [1], [0, 0, 1, 1], [], []>} : vector<2x32xf32>, vector<32x128xf32>, vector<2x128xf32> -> vector<2x128xf32>
    %75 = arith.addf %73, %74 : vector<2x128xf32>
    %76 = vector.extract_strided_slice %72 {offsets = [0, 0], sizes = [2, 32], strides = [1, 1]} : vector<2x128xf32> to vector<2x32xf32>
    %77 = arith.negf %76 : vector<2x32xf32>
    %78 = math.exp %77 : vector<2x32xf32>
    %cst_25 = arith.constant 1.000000e+00 : f32
    %79 = vector.broadcast %cst_25 : f32 to vector<2x32xf32>
    %80 = arith.addf %79, %78 : vector<2x32xf32>
    %81 = arith.divf %79, %80 : vector<2x32xf32>
    %82 = vector.extract_strided_slice %72 {offsets = [0, 32], sizes = [2, 32], strides = [1, 1]} : vector<2x128xf32> to vector<2x32xf32>
    %83 = arith.negf %82 : vector<2x32xf32>
    %84 = math.exp %83 : vector<2x32xf32>
    %cst_26 = arith.constant 1.000000e+00 : f32
    %85 = vector.broadcast %cst_26 : f32 to vector<2x32xf32>
    %86 = arith.addf %85, %84 : vector<2x32xf32>
    %87 = arith.divf %85, %86 : vector<2x32xf32>
    %88 = vector.extract_strided_slice %72 {offsets = [0, 64], sizes = [2, 32], strides = [1, 1]} : vector<2x128xf32> to vector<2x32xf32>
    %89 = math.tanh %88 : vector<2x32xf32>
    %90 = vector.extract_strided_slice %72 {offsets = [0, 96], sizes = [2, 32], strides = [1, 1]} : vector<2x128xf32> to vector<2x32xf32>
    %91 = arith.negf %90 : vector<2x32xf32>
    %92 = math.exp %91 : vector<2x32xf32>
    %cst_27 = arith.constant 1.000000e+00 : f32
    %93 = vector.broadcast %cst_27 : f32 to vector<2x32xf32>
    %94 = arith.addf %93, %92 : vector<2x32xf32>
    %95 = arith.divf %93, %94 : vector<2x32xf32>
    %96 = arith.mulf %87, %40 : vector<2x32xf32>
    %97 = arith.mulf %81, %89 : vector<2x32xf32>
    %98 = arith.addf %96, %97 : vector<2x32xf32>
    %99 = math.tanh %98 : vector<2x32xf32>
    %100 = arith.mulf %95, %99 : vector<2x32xf32>
    %101 = vector.extract_strided_slice %75 {offsets = [0, 0], sizes = [2, 32], strides = [1, 1]} : vector<2x128xf32> to vector<2x32xf32>
    %102 = arith.negf %101 : vector<2x32xf32>
    %103 = math.exp %102 : vector<2x32xf32>
    %cst_28 = arith.constant 1.000000e+00 : f32
    %104 = vector.broadcast %cst_28 : f32 to vector<2x32xf32>
    %105 = arith.addf %104, %103 : vector<2x32xf32>
    %106 = arith.divf %104, %105 : vector<2x32xf32>
    %107 = vector.extract_strided_slice %75 {offsets = [0, 32], sizes = [2, 32], strides = [1, 1]} : vector<2x128xf32> to vector<2x32xf32>
    %108 = arith.negf %107 : vector<2x32xf32>
    %109 = math.exp %108 : vector<2x32xf32>
    %cst_29 = arith.constant 1.000000e+00 : f32
    %110 = vector.broadcast %cst_29 : f32 to vector<2x32xf32>
    %111 = arith.addf %110, %109 : vector<2x32xf32>
    %112 = arith.divf %110, %111 : vector<2x32xf32>
    %113 = vector.extract_strided_slice %75 {offsets = [0, 64], sizes = [2, 32], strides = [1, 1]} : vector<2x128xf32> to vector<2x32xf32>
    %114 = math.tanh %113 : vector<2x32xf32>
    %115 = vector.extract_strided_slice %75 {offsets = [0, 96], sizes = [2, 32], strides = [1, 1]} : vector<2x128xf32> to vector<2x32xf32>
    %116 = arith.negf %115 : vector<2x32xf32>
    %117 = math.exp %116 : vector<2x32xf32>
    %cst_30 = arith.constant 1.000000e+00 : f32
    %118 = vector.broadcast %cst_30 : f32 to vector<2x32xf32>
    %119 = arith.addf %118, %117 : vector<2x32xf32>
    %120 = arith.divf %118, %119 : vector<2x32xf32>
    %121 = arith.mulf %112, %65 : vector<2x32xf32>
    %122 = arith.mulf %106, %114 : vector<2x32xf32>
    %123 = arith.addf %121, %122 : vector<2x32xf32>
    %124 = math.tanh %123 : vector<2x32xf32>
    %125 = arith.mulf %120, %124 : vector<2x32xf32>
    %c2 = arith.constant 2 : index
    %c0_31 = arith.constant 0 : index
    %126 = vector.load %arg20[%c2, %c0_31] : memref<16x64xf32, #tpu.memory_space<vmem>>, vector<2x32xf32>
    tpu.vector_store %arg20[%c2, %c0_31], %100 {strides = array<i32>} : memref<16x64xf32, #tpu.memory_space<vmem>>, vector<2x32xf32>,
    %c12 = arith.constant 12 : index
    %c32_32 = arith.constant 32 : index
    %127 = vector.load %arg20[%c12, %c32_32] : memref<16x64xf32, #tpu.memory_space<vmem>>, vector<2x32xf32>
    tpu.vector_store %arg20[%c12, %c32_32], %125 {strides = array<i32>} : memref<16x64xf32, #tpu.memory_space<vmem>>, vector<2x32xf32>,
    %128 = vector.extract_strided_slice %5 {offsets = [4, 0], sizes = [2, 128], strides = [1, 1]} : vector<16x256xf32> to vector<2x128xf32>
    %cst_33 = arith.constant dense<0.000000e+00> : vector<2x128xf32>
    %129 = tpu.matmul %100, %6, %cst_33 {dimension_numbers = #tpu.dot_dimension_numbers<[1], [0], [0], [1], [0, 0, 1, 1], [], []>} : vector<2x32xf32>, vector<32x128xf32>, vector<2x128xf32> -> vector<2x128xf32>
    %130 = arith.addf %128, %129 : vector<2x128xf32>
    %131 = vector.extract_strided_slice %5 {offsets = [10, 128], sizes = [2, 128], strides = [1, 1]} : vector<16x256xf32> to vector<2x128xf32>
    %cst_34 = arith.constant dense<0.000000e+00> : vector<2x128xf32>
    %132 = tpu.matmul %125, %7, %cst_34 {dimension_numbers = #tpu.dot_dimension_numbers<[1], [0], [0], [1], [0, 0, 1, 1], [], []>} : vector<2x32xf32>, vector<32x128xf32>, vector<2x128xf32> -> vector<2x128xf32>
    %133 = arith.addf %131, %132 : vector<2x128xf32>
    %134 = vector.extract_strided_slice %130 {offsets = [0, 0], sizes = [2, 32], strides = [1, 1]} : vector<2x128xf32> to vector<2x32xf32>
    %135 = arith.negf %134 : vector<2x32xf32>
    %136 = math.exp %135 : vector<2x32xf32>
    %cst_35 = arith.constant 1.000000e+00 : f32
    %137 = vector.broadcast %cst_35 : f32 to vector<2x32xf32>
    %138 = arith.addf %137, %136 : vector<2x32xf32>
    %139 = arith.divf %137, %138 : vector<2x32xf32>
    %140 = vector.extract_strided_slice %130 {offsets = [0, 32], sizes = [2, 32], strides = [1, 1]} : vector<2x128xf32> to vector<2x32xf32>
    %141 = arith.negf %140 : vector<2x32xf32>
    %142 = math.exp %141 : vector<2x32xf32>
    %cst_36 = arith.constant 1.000000e+00 : f32
    %143 = vector.broadcast %cst_36 : f32 to vector<2x32xf32>
    %144 = arith.addf %143, %142 : vector<2x32xf32>
    %145 = arith.divf %143, %144 : vector<2x32xf32>
    %146 = vector.extract_strided_slice %130 {offsets = [0, 64], sizes = [2, 32], strides = [1, 1]} : vector<2x128xf32> to vector<2x32xf32>
    %147 = math.tanh %146 : vector<2x32xf32>
    %148 = vector.extract_strided_slice %130 {offsets = [0, 96], sizes = [2, 32], strides = [1, 1]} : vector<2x128xf32> to vector<2x32xf32>
    %149 = arith.negf %148 : vector<2x32xf32>
    %150 = math.exp %149 : vector<2x32xf32>
    %cst_37 = arith.constant 1.000000e+00 : f32
    %151 = vector.broadcast %cst_37 : f32 to vector<2x32xf32>
    %152 = arith.addf %151, %150 : vector<2x32xf32>
    %153 = arith.divf %151, %152 : vector<2x32xf32>
    %154 = arith.mulf %145, %98 : vector<2x32xf32>
    %155 = arith.mulf %139, %147 : vector<2x32xf32>
    %156 = arith.addf %154, %155 : vector<2x32xf32>
    %157 = math.tanh %156 : vector<2x32xf32>
    %158 = arith.mulf %153, %157 : vector<2x32xf32>
    %159 = vector.extract_strided_slice %133 {offsets = [0, 0], sizes = [2, 32], strides = [1, 1]} : vector<2x128xf32> to vector<2x32xf32>
    %160 = arith.negf %159 : vector<2x32xf32>
    %161 = math.exp %160 : vector<2x32xf32>
    %cst_38 = arith.constant 1.000000e+00 : f32
    %162 = vector.broadcast %cst_38 : f32 to vector<2x32xf32>
    %163 = arith.addf %162, %161 : vector<2x32xf32>
    %164 = arith.divf %162, %163 : vector<2x32xf32>
    %165 = vector.extract_strided_slice %133 {offsets = [0, 32], sizes = [2, 32], strides = [1, 1]} : vector<2x128xf32> to vector<2x32xf32>
    %166 = arith.negf %165 : vector<2x32xf32>
    %167 = math.exp %166 : vector<2x32xf32>
    %cst_39 = arith.constant 1.000000e+00 : f32
    %168 = vector.broadcast %cst_39 : f32 to vector<2x32xf32>
    %169 = arith.addf %168, %167 : vector<2x32xf32>
    %170 = arith.divf %168, %169 : vector<2x32xf32>
    %171 = vector.extract_strided_slice %133 {offsets = [0, 64], sizes = [2, 32], strides = [1, 1]} : vector<2x128xf32> to vector<2x32xf32>
    %172 = math.tanh %171 : vector<2x32xf32>
    %173 = vector.extract_strided_slice %133 {offsets = [0, 96], sizes = [2, 32], strides = [1, 1]} : vector<2x128xf32> to vector<2x32xf32>
    %174 = arith.negf %173 : vector<2x32xf32>
    %175 = math.exp %174 : vector<2x32xf32>
    %cst_40 = arith.constant 1.000000e+00 : f32
    %176 = vector.broadcast %cst_40 : f32 to vector<2x32xf32>
    %177 = arith.addf %176, %175 : vector<2x32xf32>
    %178 = arith.divf %176, %177 : vector<2x32xf32>
    %179 = arith.mulf %170, %123 : vector<2x32xf32>
    %180 = arith.mulf %164, %172 : vector<2x32xf32>
    %181 = arith.addf %179, %180 : vector<2x32xf32>
    %182 = math.tanh %181 : vector<2x32xf32>
    %183 = arith.mulf %178, %182 : vector<2x32xf32>
    %c4 = arith.constant 4 : index
    %c0_41 = arith.constant 0 : index
    %184 = vector.load %arg20[%c4, %c0_41] : memref<16x64xf32, #tpu.memory_space<vmem>>, vector<2x32xf32>
    tpu.vector_store %arg20[%c4, %c0_41], %158 {strides = array<i32>} : memref<16x64xf32, #tpu.memory_space<vmem>>, vector<2x32xf32>,
    %c10 = arith.constant 10 : index
    %c32_42 = arith.constant 32 : index
    %185 = vector.load %arg20[%c10, %c32_42] : memref<16x64xf32, #tpu.memory_space<vmem>>, vector<2x32xf32>
    tpu.vector_store %arg20[%c10, %c32_42], %183 {strides = array<i32>} : memref<16x64xf32, #tpu.memory_space<vmem>>, vector<2x32xf32>,
    %186 = vector.extract_strided_slice %5 {offsets = [6, 0], sizes = [2, 128], strides = [1, 1]} : vector<16x256xf32> to vector<2x128xf32>
    %cst_43 = arith.constant dense<0.000000e+00> : vector<2x128xf32>
    %187 = tpu.matmul %158, %6, %cst_43 {dimension_numbers = #tpu.dot_dimension_numbers<[1], [0], [0], [1], [0, 0, 1, 1], [], []>} : vector<2x32xf32>, vector<32x128xf32>, vector<2x128xf32> -> vector<2x128xf32>
    %188 = arith.addf %186, %187 : vector<2x128xf32>
    %189 = vector.extract_strided_slice %5 {offsets = [8, 128], sizes = [2, 128], strides = [1, 1]} : vector<16x256xf32> to vector<2x128xf32>
    %cst_44 = arith.constant dense<0.000000e+00> : vector<2x128xf32>
    %190 = tpu.matmul %183, %7, %cst_44 {dimension_numbers = #tpu.dot_dimension_numbers<[1], [0], [0], [1], [0, 0, 1, 1], [], []>} : vector<2x32xf32>, vector<32x128xf32>, vector<2x128xf32> -> vector<2x128xf32>
    %191 = arith.addf %189, %190 : vector<2x128xf32>
    %192 = vector.extract_strided_slice %188 {offsets = [0, 0], sizes = [2, 32], strides = [1, 1]} : vector<2x128xf32> to vector<2x32xf32>
    %193 = arith.negf %192 : vector<2x32xf32>
    %194 = math.exp %193 : vector<2x32xf32>
    %cst_45 = arith.constant 1.000000e+00 : f32
    %195 = vector.broadcast %cst_45 : f32 to vector<2x32xf32>
    %196 = arith.addf %195, %194 : vector<2x32xf32>
    %197 = arith.divf %195, %196 : vector<2x32xf32>
    %198 = vector.extract_strided_slice %188 {offsets = [0, 32], sizes = [2, 32], strides = [1, 1]} : vector<2x128xf32> to vector<2x32xf32>
    %199 = arith.negf %198 : vector<2x32xf32>
    %200 = math.exp %199 : vector<2x32xf32>
    %cst_46 = arith.constant 1.000000e+00 : f32
    %201 = vector.broadcast %cst_46 : f32 to vector<2x32xf32>
    %202 = arith.addf %201, %200 : vector<2x32xf32>
    %203 = arith.divf %201, %202 : vector<2x32xf32>
    %204 = vector.extract_strided_slice %188 {offsets = [0, 64], sizes = [2, 32], strides = [1, 1]} : vector<2x128xf32> to vector<2x32xf32>
    %205 = math.tanh %204 : vector<2x32xf32>
    %206 = vector.extract_strided_slice %188 {offsets = [0, 96], sizes = [2, 32], strides = [1, 1]} : vector<2x128xf32> to vector<2x32xf32>
    %207 = arith.negf %206 : vector<2x32xf32>
    %208 = math.exp %207 : vector<2x32xf32>
    %cst_47 = arith.constant 1.000000e+00 : f32
    %209 = vector.broadcast %cst_47 : f32 to vector<2x32xf32>
    %210 = arith.addf %209, %208 : vector<2x32xf32>
    %211 = arith.divf %209, %210 : vector<2x32xf32>
    %212 = arith.mulf %203, %156 : vector<2x32xf32>
    %213 = arith.mulf %197, %205 : vector<2x32xf32>
    %214 = arith.addf %212, %213 : vector<2x32xf32>
    %215 = math.tanh %214 : vector<2x32xf32>
    %216 = arith.mulf %211, %215 : vector<2x32xf32>
    %217 = vector.extract_strided_slice %191 {offsets = [0, 0], sizes = [2, 32], strides = [1, 1]} : vector<2x128xf32> to vector<2x32xf32>
    %218 = arith.negf %217 : vector<2x32xf32>
    %219 = math.exp %218 : vector<2x32xf32>
    %cst_48 = arith.constant 1.000000e+00 : f32
    %220 = vector.broadcast %cst_48 : f32 to vector<2x32xf32>
    %221 = arith.addf %220, %219 : vector<2x32xf32>
    %222 = arith.divf %220, %221 : vector<2x32xf32>
    %223 = vector.extract_strided_slice %191 {offsets = [0, 32], sizes = [2, 32], strides = [1, 1]} : vector<2x128xf32> to vector<2x32xf32>
    %224 = arith.negf %223 : vector<2x32xf32>
    %225 = math.exp %224 : vector<2x32xf32>
    %cst_49 = arith.constant 1.000000e+00 : f32
    %226 = vector.broadcast %cst_49 : f32 to vector<2x32xf32>
    %227 = arith.addf %226, %225 : vector<2x32xf32>
    %228 = arith.divf %226, %227 : vector<2x32xf32>
    %229 = vector.extract_strided_slice %191 {offsets = [0, 64], sizes = [2, 32], strides = [1, 1]} : vector<2x128xf32> to vector<2x32xf32>
    %230 = math.tanh %229 : vector<2x32xf32>
    %231 = vector.extract_strided_slice %191 {offsets = [0, 96], sizes = [2, 32], strides = [1, 1]} : vector<2x128xf32> to vector<2x32xf32>
    %232 = arith.negf %231 : vector<2x32xf32>
    %233 = math.exp %232 : vector<2x32xf32>
    %cst_50 = arith.constant 1.000000e+00 : f32
    %234 = vector.broadcast %cst_50 : f32 to vector<2x32xf32>
    %235 = arith.addf %234, %233 : vector<2x32xf32>
    %236 = arith.divf %234, %235 : vector<2x32xf32>
    %237 = arith.mulf %228, %181 : vector<2x32xf32>
    %238 = arith.mulf %222, %230 : vector<2x32xf32>
    %239 = arith.addf %237, %238 : vector<2x32xf32>
    %240 = math.tanh %239 : vector<2x32xf32>
    %241 = arith.mulf %236, %240 : vector<2x32xf32>
    %c6 = arith.constant 6 : index
    %c0_51 = arith.constant 0 : index
    %242 = vector.load %arg20[%c6, %c0_51] : memref<16x64xf32, #tpu.memory_space<vmem>>, vector<2x32xf32>
    tpu.vector_store %arg20[%c6, %c0_51], %216 {strides = array<i32>} : memref<16x64xf32, #tpu.memory_space<vmem>>, vector<2x32xf32>,
    %c8 = arith.constant 8 : index
    %c32_52 = arith.constant 32 : index
    %243 = vector.load %arg20[%c8, %c32_52] : memref<16x64xf32, #tpu.memory_space<vmem>>, vector<2x32xf32>
    tpu.vector_store %arg20[%c8, %c32_52], %241 {strides = array<i32>} : memref<16x64xf32, #tpu.memory_space<vmem>>, vector<2x32xf32>,
    %244 = vector.extract_strided_slice %5 {offsets = [8, 0], sizes = [2, 128], strides = [1, 1]} : vector<16x256xf32> to vector<2x128xf32>
    %cst_53 = arith.constant dense<0.000000e+00> : vector<2x128xf32>
    %245 = tpu.matmul %216, %6, %cst_53 {dimension_numbers = #tpu.dot_dimension_numbers<[1], [0], [0], [1], [0, 0, 1, 1], [], []>} : vector<2x32xf32>, vector<32x128xf32>, vector<2x128xf32> -> vector<2x128xf32>
    %246 = arith.addf %244, %245 : vector<2x128xf32>
    %247 = vector.extract_strided_slice %5 {offsets = [6, 128], sizes = [2, 128], strides = [1, 1]} : vector<16x256xf32> to vector<2x128xf32>
    %cst_54 = arith.constant dense<0.000000e+00> : vector<2x128xf32>
    %248 = tpu.matmul %241, %7, %cst_54 {dimension_numbers = #tpu.dot_dimension_numbers<[1], [0], [0], [1], [0, 0, 1, 1], [], []>} : vector<2x32xf32>, vector<32x128xf32>, vector<2x128xf32> -> vector<2x128xf32>
    %249 = arith.addf %247, %248 : vector<2x128xf32>
    %250 = vector.extract_strided_slice %246 {offsets = [0, 0], sizes = [2, 32], strides = [1, 1]} : vector<2x128xf32> to vector<2x32xf32>
    %251 = arith.negf %250 : vector<2x32xf32>
    %252 = math.exp %251 : vector<2x32xf32>
    %cst_55 = arith.constant 1.000000e+00 : f32
    %253 = vector.broadcast %cst_55 : f32 to vector<2x32xf32>
    %254 = arith.addf %253, %252 : vector<2x32xf32>
    %255 = arith.divf %253, %254 : vector<2x32xf32>
    %256 = vector.extract_strided_slice %246 {offsets = [0, 32], sizes = [2, 32], strides = [1, 1]} : vector<2x128xf32> to vector<2x32xf32>
    %257 = arith.negf %256 : vector<2x32xf32>
    %258 = math.exp %257 : vector<2x32xf32>
    %cst_56 = arith.constant 1.000000e+00 : f32
    %259 = vector.broadcast %cst_56 : f32 to vector<2x32xf32>
    %260 = arith.addf %259, %258 : vector<2x32xf32>
    %261 = arith.divf %259, %260 : vector<2x32xf32>
    %262 = vector.extract_strided_slice %246 {offsets = [0, 64], sizes = [2, 32], strides = [1, 1]} : vector<2x128xf32> to vector<2x32xf32>
    %263 = math.tanh %262 : vector<2x32xf32>
    %264 = vector.extract_strided_slice %246 {offsets = [0, 96], sizes = [2, 32], strides = [1, 1]} : vector<2x128xf32> to vector<2x32xf32>
    %265 = arith.negf %264 : vector<2x32xf32>
    %266 = math.exp %265 : vector<2x32xf32>
    %cst_57 = arith.constant 1.000000e+00 : f32
    %267 = vector.broadcast %cst_57 : f32 to vector<2x32xf32>
    %268 = arith.addf %267, %266 : vector<2x32xf32>
    %269 = arith.divf %267, %268 : vector<2x32xf32>
    %270 = arith.mulf %261, %214 : vector<2x32xf32>
    %271 = arith.mulf %255, %263 : vector<2x32xf32>
    %272 = arith.addf %270, %271 : vector<2x32xf32>
    %273 = math.tanh %272 : vector<2x32xf32>
    %274 = arith.mulf %269, %273 : vector<2x32xf32>
    %275 = vector.extract_strided_slice %249 {offsets = [0, 0], sizes = [2, 32], strides = [1, 1]} : vector<2x128xf32> to vector<2x32xf32>
    %276 = arith.negf %275 : vector<2x32xf32>
    %277 = math.exp %276 : vector<2x32xf32>
    %cst_58 = arith.constant 1.000000e+00 : f32
    %278 = vector.broadcast %cst_58 : f32 to vector<2x32xf32>
    %279 = arith.addf %278, %277 : vector<2x32xf32>
    %280 = arith.divf %278, %279 : vector<2x32xf32>
    %281 = vector.extract_strided_slice %249 {offsets = [0, 32], sizes = [2, 32], strides = [1, 1]} : vector<2x128xf32> to vector<2x32xf32>
    %282 = arith.negf %281 : vector<2x32xf32>
    %283 = math.exp %282 : vector<2x32xf32>
    %cst_59 = arith.constant 1.000000e+00 : f32
    %284 = vector.broadcast %cst_59 : f32 to vector<2x32xf32>
    %285 = arith.addf %284, %283 : vector<2x32xf32>
    %286 = arith.divf %284, %285 : vector<2x32xf32>
    %287 = vector.extract_strided_slice %249 {offsets = [0, 64], sizes = [2, 32], strides = [1, 1]} : vector<2x128xf32> to vector<2x32xf32>
    %288 = math.tanh %287 : vector<2x32xf32>
    %289 = vector.extract_strided_slice %249 {offsets = [0, 96], sizes = [2, 32], strides = [1, 1]} : vector<2x128xf32> to vector<2x32xf32>
    %290 = arith.negf %289 : vector<2x32xf32>
    %291 = math.exp %290 : vector<2x32xf32>
    %cst_60 = arith.constant 1.000000e+00 : f32
    %292 = vector.broadcast %cst_60 : f32 to vector<2x32xf32>
    %293 = arith.addf %292, %291 : vector<2x32xf32>
    %294 = arith.divf %292, %293 : vector<2x32xf32>
    %295 = arith.mulf %286, %239 : vector<2x32xf32>
    %296 = arith.mulf %280, %288 : vector<2x32xf32>
    %297 = arith.addf %295, %296 : vector<2x32xf32>
    %298 = math.tanh %297 : vector<2x32xf32>
    %299 = arith.mulf %294, %298 : vector<2x32xf32>
    %c8_61 = arith.constant 8 : index
    %c0_62 = arith.constant 0 : index
    %300 = vector.load %arg20[%c8_61, %c0_62] : memref<16x64xf32, #tpu.memory_space<vmem>>, vector<2x32xf32>
    tpu.vector_store %arg20[%c8_61, %c0_62], %274 {strides = array<i32>} : memref<16x64xf32, #tpu.memory_space<vmem>>, vector<2x32xf32>,
    %c6_63 = arith.constant 6 : index
    %c32_64 = arith.constant 32 : index
    %301 = vector.load %arg20[%c6_63, %c32_64] : memref<16x64xf32, #tpu.memory_space<vmem>>, vector<2x32xf32>
    tpu.vector_store %arg20[%c6_63, %c32_64], %299 {strides = array<i32>} : memref<16x64xf32, #tpu.memory_space<vmem>>, vector<2x32xf32>,
    %302 = vector.extract_strided_slice %5 {offsets = [10, 0], sizes = [2, 128], strides = [1, 1]} : vector<16x256xf32> to vector<2x128xf32>
    %cst_65 = arith.constant dense<0.000000e+00> : vector<2x128xf32>
    %303 = tpu.matmul %274, %6, %cst_65 {dimension_numbers = #tpu.dot_dimension_numbers<[1], [0], [0], [1], [0, 0, 1, 1], [], []>} : vector<2x32xf32>, vector<32x128xf32>, vector<2x128xf32> -> vector<2x128xf32>
    %304 = arith.addf %302, %303 : vector<2x128xf32>
    %305 = vector.extract_strided_slice %5 {offsets = [4, 128], sizes = [2, 128], strides = [1, 1]} : vector<16x256xf32> to vector<2x128xf32>
    %cst_66 = arith.constant dense<0.000000e+00> : vector<2x128xf32>
    %306 = tpu.matmul %299, %7, %cst_66 {dimension_numbers = #tpu.dot_dimension_numbers<[1], [0], [0], [1], [0, 0, 1, 1], [], []>} : vector<2x32xf32>, vector<32x128xf32>, vector<2x128xf32> -> vector<2x128xf32>
    %307 = arith.addf %305, %306 : vector<2x128xf32>
    %308 = vector.extract_strided_slice %304 {offsets = [0, 0], sizes = [2, 32], strides = [1, 1]} : vector<2x128xf32> to vector<2x32xf32>
    %309 = arith.negf %308 : vector<2x32xf32>
    %310 = math.exp %309 : vector<2x32xf32>
    %cst_67 = arith.constant 1.000000e+00 : f32
    %311 = vector.broadcast %cst_67 : f32 to vector<2x32xf32>
    %312 = arith.addf %311, %310 : vector<2x32xf32>
    %313 = arith.divf %311, %312 : vector<2x32xf32>
    %314 = vector.extract_strided_slice %304 {offsets = [0, 32], sizes = [2, 32], strides = [1, 1]} : vector<2x128xf32> to vector<2x32xf32>
    %315 = arith.negf %314 : vector<2x32xf32>
    %316 = math.exp %315 : vector<2x32xf32>
    %cst_68 = arith.constant 1.000000e+00 : f32
    %317 = vector.broadcast %cst_68 : f32 to vector<2x32xf32>
    %318 = arith.addf %317, %316 : vector<2x32xf32>
    %319 = arith.divf %317, %318 : vector<2x32xf32>
    %320 = vector.extract_strided_slice %304 {offsets = [0, 64], sizes = [2, 32], strides = [1, 1]} : vector<2x128xf32> to vector<2x32xf32>
    %321 = math.tanh %320 : vector<2x32xf32>
    %322 = vector.extract_strided_slice %304 {offsets = [0, 96], sizes = [2, 32], strides = [1, 1]} : vector<2x128xf32> to vector<2x32xf32>
    %323 = arith.negf %322 : vector<2x32xf32>
    %324 = math.exp %323 : vector<2x32xf32>
    %cst_69 = arith.constant 1.000000e+00 : f32
    %325 = vector.broadcast %cst_69 : f32 to vector<2x32xf32>
    %326 = arith.addf %325, %324 : vector<2x32xf32>
    %327 = arith.divf %325, %326 : vector<2x32xf32>
    %328 = arith.mulf %319, %272 : vector<2x32xf32>
    %329 = arith.mulf %313, %321 : vector<2x32xf32>
    %330 = arith.addf %328, %329 : vector<2x32xf32>
    %331 = math.tanh %330 : vector<2x32xf32>
    %332 = arith.mulf %327, %331 : vector<2x32xf32>
    %333 = vector.extract_strided_slice %307 {offsets = [0, 0], sizes = [2, 32], strides = [1, 1]} : vector<2x128xf32> to vector<2x32xf32>
    %334 = arith.negf %333 : vector<2x32xf32>
    %335 = math.exp %334 : vector<2x32xf32>
    %cst_70 = arith.constant 1.000000e+00 : f32
    %336 = vector.broadcast %cst_70 : f32 to vector<2x32xf32>
    %337 = arith.addf %336, %335 : vector<2x32xf32>
    %338 = arith.divf %336, %337 : vector<2x32xf32>
    %339 = vector.extract_strided_slice %307 {offsets = [0, 32], sizes = [2, 32], strides = [1, 1]} : vector<2x128xf32> to vector<2x32xf32>
    %340 = arith.negf %339 : vector<2x32xf32>
    %341 = math.exp %340 : vector<2x32xf32>
    %cst_71 = arith.constant 1.000000e+00 : f32
    %342 = vector.broadcast %cst_71 : f32 to vector<2x32xf32>
    %343 = arith.addf %342, %341 : vector<2x32xf32>
    %344 = arith.divf %342, %343 : vector<2x32xf32>
    %345 = vector.extract_strided_slice %307 {offsets = [0, 64], sizes = [2, 32], strides = [1, 1]} : vector<2x128xf32> to vector<2x32xf32>
    %346 = math.tanh %345 : vector<2x32xf32>
    %347 = vector.extract_strided_slice %307 {offsets = [0, 96], sizes = [2, 32], strides = [1, 1]} : vector<2x128xf32> to vector<2x32xf32>
    %348 = arith.negf %347 : vector<2x32xf32>
    %349 = math.exp %348 : vector<2x32xf32>
    %cst_72 = arith.constant 1.000000e+00 : f32
    %350 = vector.broadcast %cst_72 : f32 to vector<2x32xf32>
    %351 = arith.addf %350, %349 : vector<2x32xf32>
    %352 = arith.divf %350, %351 : vector<2x32xf32>
    %353 = arith.mulf %344, %297 : vector<2x32xf32>
    %354 = arith.mulf %338, %346 : vector<2x32xf32>
    %355 = arith.addf %353, %354 : vector<2x32xf32>
    %356 = math.tanh %355 : vector<2x32xf32>
    %357 = arith.mulf %352, %356 : vector<2x32xf32>
    %c10_73 = arith.constant 10 : index
    %c0_74 = arith.constant 0 : index
    %358 = vector.load %arg20[%c10_73, %c0_74] : memref<16x64xf32, #tpu.memory_space<vmem>>, vector<2x32xf32>
    tpu.vector_store %arg20[%c10_73, %c0_74], %332 {strides = array<i32>} : memref<16x64xf32, #tpu.memory_space<vmem>>, vector<2x32xf32>,
    %c4_75 = arith.constant 4 : index
    %c32_76 = arith.constant 32 : index
    %359 = vector.load %arg20[%c4_75, %c32_76] : memref<16x64xf32, #tpu.memory_space<vmem>>, vector<2x32xf32>
    tpu.vector_store %arg20[%c4_75, %c32_76], %357 {strides = array<i32>} : memref<16x64xf32, #tpu.memory_space<vmem>>, vector<2x32xf32>,
    %360 = vector.extract_strided_slice %5 {offsets = [12, 0], sizes = [2, 128], strides = [1, 1]} : vector<16x256xf32> to vector<2x128xf32>
    %cst_77 = arith.constant dense<0.000000e+00> : vector<2x128xf32>
    %361 = tpu.matmul %332, %6, %cst_77 {dimension_numbers = #tpu.dot_dimension_numbers<[1], [0], [0], [1], [0, 0, 1, 1], [], []>} : vector<2x32xf32>, vector<32x128xf32>, vector<2x128xf32> -> vector<2x128xf32>
    %362 = arith.addf %360, %361 : vector<2x128xf32>
    %363 = vector.extract_strided_slice %5 {offsets = [2, 128], sizes = [2, 128], strides = [1, 1]} : vector<16x256xf32> to vector<2x128xf32>
    %cst_78 = arith.constant dense<0.000000e+00> : vector<2x128xf32>
    %364 = tpu.matmul %357, %7, %cst_78 {dimension_numbers = #tpu.dot_dimension_numbers<[1], [0], [0], [1], [0, 0, 1, 1], [], []>} : vector<2x32xf32>, vector<32x128xf32>, vector<2x128xf32> -> vector<2x128xf32>
    %365 = arith.addf %363, %364 : vector<2x128xf32>
    %366 = vector.extract_strided_slice %362 {offsets = [0, 0], sizes = [2, 32], strides = [1, 1]} : vector<2x128xf32> to vector<2x32xf32>
    %367 = arith.negf %366 : vector<2x32xf32>
    %368 = math.exp %367 : vector<2x32xf32>
    %cst_79 = arith.constant 1.000000e+00 : f32
    %369 = vector.broadcast %cst_79 : f32 to vector<2x32xf32>
    %370 = arith.addf %369, %368 : vector<2x32xf32>
    %371 = arith.divf %369, %370 : vector<2x32xf32>
    %372 = vector.extract_strided_slice %362 {offsets = [0, 32], sizes = [2, 32], strides = [1, 1]} : vector<2x128xf32> to vector<2x32xf32>
    %373 = arith.negf %372 : vector<2x32xf32>
    %374 = math.exp %373 : vector<2x32xf32>
    %cst_80 = arith.constant 1.000000e+00 : f32
    %375 = vector.broadcast %cst_80 : f32 to vector<2x32xf32>
    %376 = arith.addf %375, %374 : vector<2x32xf32>
    %377 = arith.divf %375, %376 : vector<2x32xf32>
    %378 = vector.extract_strided_slice %362 {offsets = [0, 64], sizes = [2, 32], strides = [1, 1]} : vector<2x128xf32> to vector<2x32xf32>
    %379 = math.tanh %378 : vector<2x32xf32>
    %380 = vector.extract_strided_slice %362 {offsets = [0, 96], sizes = [2, 32], strides = [1, 1]} : vector<2x128xf32> to vector<2x32xf32>
    %381 = arith.negf %380 : vector<2x32xf32>
    %382 = math.exp %381 : vector<2x32xf32>
    %cst_81 = arith.constant 1.000000e+00 : f32
    %383 = vector.broadcast %cst_81 : f32 to vector<2x32xf32>
    %384 = arith.addf %383, %382 : vector<2x32xf32>
    %385 = arith.divf %383, %384 : vector<2x32xf32>
    %386 = arith.mulf %377, %330 : vector<2x32xf32>
    %387 = arith.mulf %371, %379 : vector<2x32xf32>
    %388 = arith.addf %386, %387 : vector<2x32xf32>
    %389 = math.tanh %388 : vector<2x32xf32>
    %390 = arith.mulf %385, %389 : vector<2x32xf32>
    %391 = vector.extract_strided_slice %365 {offsets = [0, 0], sizes = [2, 32], strides = [1, 1]} : vector<2x128xf32> to vector<2x32xf32>
    %392 = arith.negf %391 : vector<2x32xf32>
    %393 = math.exp %392 : vector<2x32xf32>
    %cst_82 = arith.constant 1.000000e+00 : f32
    %394 = vector.broadcast %cst_82 : f32 to vector<2x32xf32>
    %395 = arith.addf %394, %393 : vector<2x32xf32>
    %396 = arith.divf %394, %395 : vector<2x32xf32>
    %397 = vector.extract_strided_slice %365 {offsets = [0, 32], sizes = [2, 32], strides = [1, 1]} : vector<2x128xf32> to vector<2x32xf32>
    %398 = arith.negf %397 : vector<2x32xf32>
    %399 = math.exp %398 : vector<2x32xf32>
    %cst_83 = arith.constant 1.000000e+00 : f32
    %400 = vector.broadcast %cst_83 : f32 to vector<2x32xf32>
    %401 = arith.addf %400, %399 : vector<2x32xf32>
    %402 = arith.divf %400, %401 : vector<2x32xf32>
    %403 = vector.extract_strided_slice %365 {offsets = [0, 64], sizes = [2, 32], strides = [1, 1]} : vector<2x128xf32> to vector<2x32xf32>
    %404 = math.tanh %403 : vector<2x32xf32>
    %405 = vector.extract_strided_slice %365 {offsets = [0, 96], sizes = [2, 32], strides = [1, 1]} : vector<2x128xf32> to vector<2x32xf32>
    %406 = arith.negf %405 : vector<2x32xf32>
    %407 = math.exp %406 : vector<2x32xf32>
    %cst_84 = arith.constant 1.000000e+00 : f32
    %408 = vector.broadcast %cst_84 : f32 to vector<2x32xf32>
    %409 = arith.addf %408, %407 : vector<2x32xf32>
    %410 = arith.divf %408, %409 : vector<2x32xf32>
    %411 = arith.mulf %402, %355 : vector<2x32xf32>
    %412 = arith.mulf %396, %404 : vector<2x32xf32>
    %413 = arith.addf %411, %412 : vector<2x32xf32>
    %414 = math.tanh %413 : vector<2x32xf32>
    %415 = arith.mulf %410, %414 : vector<2x32xf32>
    %c12_85 = arith.constant 12 : index
    %c0_86 = arith.constant 0 : index
    %416 = vector.load %arg20[%c12_85, %c0_86] : memref<16x64xf32, #tpu.memory_space<vmem>>, vector<2x32xf32>
    tpu.vector_store %arg20[%c12_85, %c0_86], %390 {strides = array<i32>} : memref<16x64xf32, #tpu.memory_space<vmem>>, vector<2x32xf32>,
    %c2_87 = arith.constant 2 : index
    %c32_88 = arith.constant 32 : index
    %417 = vector.load %arg20[%c2_87, %c32_88] : memref<16x64xf32, #tpu.memory_space<vmem>>, vector<2x32xf32>
    tpu.vector_store %arg20[%c2_87, %c32_88], %415 {strides = array<i32>} : memref<16x64xf32, #tpu.memory_space<vmem>>, vector<2x32xf32>,
    %418 = vector.extract_strided_slice %5 {offsets = [14, 0], sizes = [2, 128], strides = [1, 1]} : vector<16x256xf32> to vector<2x128xf32>
    %cst_89 = arith.constant dense<0.000000e+00> : vector<2x128xf32>
    %419 = tpu.matmul %390, %6, %cst_89 {dimension_numbers = #tpu.dot_dimension_numbers<[1], [0], [0], [1], [0, 0, 1, 1], [], []>} : vector<2x32xf32>, vector<32x128xf32>, vector<2x128xf32> -> vector<2x128xf32>
    %420 = arith.addf %418, %419 : vector<2x128xf32>
    %421 = vector.extract_strided_slice %5 {offsets = [0, 128], sizes = [2, 128], strides = [1, 1]} : vector<16x256xf32> to vector<2x128xf32>
    %cst_90 = arith.constant dense<0.000000e+00> : vector<2x128xf32>
    %422 = tpu.matmul %415, %7, %cst_90 {dimension_numbers = #tpu.dot_dimension_numbers<[1], [0], [0], [1], [0, 0, 1, 1], [], []>} : vector<2x32xf32>, vector<32x128xf32>, vector<2x128xf32> -> vector<2x128xf32>
    %423 = arith.addf %421, %422 : vector<2x128xf32>
    %424 = vector.extract_strided_slice %420 {offsets = [0, 0], sizes = [2, 32], strides = [1, 1]} : vector<2x128xf32> to vector<2x32xf32>
    %425 = arith.negf %424 : vector<2x32xf32>
    %426 = math.exp %425 : vector<2x32xf32>
    %cst_91 = arith.constant 1.000000e+00 : f32
    %427 = vector.broadcast %cst_91 : f32 to vector<2x32xf32>
    %428 = arith.addf %427, %426 : vector<2x32xf32>
    %429 = arith.divf %427, %428 : vector<2x32xf32>
    %430 = vector.extract_strided_slice %420 {offsets = [0, 32], sizes = [2, 32], strides = [1, 1]} : vector<2x128xf32> to vector<2x32xf32>
    %431 = arith.negf %430 : vector<2x32xf32>
    %432 = math.exp %431 : vector<2x32xf32>
    %cst_92 = arith.constant 1.000000e+00 : f32
    %433 = vector.broadcast %cst_92 : f32 to vector<2x32xf32>
    %434 = arith.addf %433, %432 : vector<2x32xf32>
    %435 = arith.divf %433, %434 : vector<2x32xf32>
    %436 = vector.extract_strided_slice %420 {offsets = [0, 64], sizes = [2, 32], strides = [1, 1]} : vector<2x128xf32> to vector<2x32xf32>
    %437 = math.tanh %436 : vector<2x32xf32>
    %438 = vector.extract_strided_slice %420 {offsets = [0, 96], sizes = [2, 32], strides = [1, 1]} : vector<2x128xf32> to vector<2x32xf32>
    %439 = arith.negf %438 : vector<2x32xf32>
    %440 = math.exp %439 : vector<2x32xf32>
    %cst_93 = arith.constant 1.000000e+00 : f32
    %441 = vector.broadcast %cst_93 : f32 to vector<2x32xf32>
    %442 = arith.addf %441, %440 : vector<2x32xf32>
    %443 = arith.divf %441, %442 : vector<2x32xf32>
    %444 = arith.mulf %435, %388 : vector<2x32xf32>
    %445 = arith.mulf %429, %437 : vector<2x32xf32>
    %446 = arith.addf %444, %445 : vector<2x32xf32>
    %447 = math.tanh %446 : vector<2x32xf32>
    %448 = arith.mulf %443, %447 : vector<2x32xf32>
    %449 = vector.extract_strided_slice %423 {offsets = [0, 0], sizes = [2, 32], strides = [1, 1]} : vector<2x128xf32> to vector<2x32xf32>
    %450 = arith.negf %449 : vector<2x32xf32>
    %451 = math.exp %450 : vector<2x32xf32>
    %cst_94 = arith.constant 1.000000e+00 : f32
    %452 = vector.broadcast %cst_94 : f32 to vector<2x32xf32>
    %453 = arith.addf %452, %451 : vector<2x32xf32>
    %454 = arith.divf %452, %453 : vector<2x32xf32>
    %455 = vector.extract_strided_slice %423 {offsets = [0, 32], sizes = [2, 32], strides = [1, 1]} : vector<2x128xf32> to vector<2x32xf32>
    %456 = arith.negf %455 : vector<2x32xf32>
    %457 = math.exp %456 : vector<2x32xf32>
    %cst_95 = arith.constant 1.000000e+00 : f32
    %458 = vector.broadcast %cst_95 : f32 to vector<2x32xf32>
    %459 = arith.addf %458, %457 : vector<2x32xf32>
    %460 = arith.divf %458, %459 : vector<2x32xf32>
    %461 = vector.extract_strided_slice %423 {offsets = [0, 64], sizes = [2, 32], strides = [1, 1]} : vector<2x128xf32> to vector<2x32xf32>
    %462 = math.tanh %461 : vector<2x32xf32>
    %463 = vector.extract_strided_slice %423 {offsets = [0, 96], sizes = [2, 32], strides = [1, 1]} : vector<2x128xf32> to vector<2x32xf32>
    %464 = arith.negf %463 : vector<2x32xf32>
    %465 = math.exp %464 : vector<2x32xf32>
    %cst_96 = arith.constant 1.000000e+00 : f32
    %466 = vector.broadcast %cst_96 : f32 to vector<2x32xf32>
    %467 = arith.addf %466, %465 : vector<2x32xf32>
    %468 = arith.divf %466, %467 : vector<2x32xf32>
    %469 = arith.mulf %460, %413 : vector<2x32xf32>
    %470 = arith.mulf %454, %462 : vector<2x32xf32>
    %471 = arith.addf %469, %470 : vector<2x32xf32>
    %472 = math.tanh %471 : vector<2x32xf32>
    %473 = arith.mulf %468, %472 : vector<2x32xf32>
    %c14_97 = arith.constant 14 : index
    %c0_98 = arith.constant 0 : index
    %474 = vector.load %arg20[%c14_97, %c0_98] : memref<16x64xf32, #tpu.memory_space<vmem>>, vector<2x32xf32>
    tpu.vector_store %arg20[%c14_97, %c0_98], %448 {strides = array<i32>} : memref<16x64xf32, #tpu.memory_space<vmem>>, vector<2x32xf32>,
    %c0_99 = arith.constant 0 : index
    %c32_100 = arith.constant 32 : index
    %475 = vector.load %arg20[%c0_99, %c32_100] : memref<16x64xf32, #tpu.memory_space<vmem>>, vector<2x32xf32>
    tpu.vector_store %arg20[%c0_99, %c32_100], %473 {strides = array<i32>} : memref<16x64xf32, #tpu.memory_space<vmem>>, vector<2x32xf32>,
    %c0_101 = arith.constant 0 : index
    %c0_102 = arith.constant 0 : index
    %476 = vector.load %arg20[%c0_101, %c0_102] : memref<16x64xf32, #tpu.memory_space<vmem>>, vector<16x64xf32>
    %c0_103 = arith.constant 0 : index
    %c0_104 = arith.constant 0 : index
    %477 = vector.load %arg7[%c0_103, %c0_104] : memref<64x256xf32, #tpu.memory_space<vmem>>, vector<64x256xf32>
    %cst_105 = arith.constant dense<0.000000e+00> : vector<16x256xf32>
    %478 = tpu.matmul %476, %477, %cst_105 {dimension_numbers = #tpu.dot_dimension_numbers<[1], [0], [0], [1], [0, 0, 1, 1], [], []>} : vector<16x64xf32>, vector<64x256xf32>, vector<16x256xf32> -> vector<16x256xf32>
    %c0_106 = arith.constant 0 : index
    %c0_107 = arith.constant 0 : index
    %479 = vector.load %arg10[%c0_106, %c0_107] : memref<1x256xf32, #tpu.memory_space<vmem>>, vector<1x256xf32>
    %480 = vector.broadcast %479 : vector<1x256xf32> to vector<16x256xf32>
    %481 = arith.addf %478, %480 : vector<16x256xf32>
    %c0_108 = arith.constant 0 : index
    %c0_109 = arith.constant 0 : index
    %482 = vector.load %arg8[%c0_108, %c0_109] : memref<32x128xf32, #tpu.memory_space<vmem>>, vector<32x128xf32>
    %c0_110 = arith.constant 0 : index
    %c0_111 = arith.constant 0 : index
    %483 = vector.load %arg9[%c0_110, %c0_111] : memref<32x128xf32, #tpu.memory_space<vmem>>, vector<32x128xf32>
    %cst_112 = arith.constant 0.000000e+00 : f32
    %484 = vector.broadcast %cst_112 : f32 to vector<2x32xf32>
    %cst_113 = arith.constant 0.000000e+00 : f32
    %485 = vector.broadcast %cst_113 : f32 to vector<2x32xf32>
    %cst_114 = arith.constant 0.000000e+00 : f32
    %486 = vector.broadcast %cst_114 : f32 to vector<2x32xf32>
    %cst_115 = arith.constant 0.000000e+00 : f32
    %487 = vector.broadcast %cst_115 : f32 to vector<2x32xf32>
    %488 = vector.extract_strided_slice %481 {offsets = [0, 0], sizes = [2, 128], strides = [1, 1]} : vector<16x256xf32> to vector<2x128xf32>
    %cst_116 = arith.constant dense<0.000000e+00> : vector<2x128xf32>
    %489 = tpu.matmul %484, %482, %cst_116 {dimension_numbers = #tpu.dot_dimension_numbers<[1], [0], [0], [1], [0, 0, 1, 1], [], []>} : vector<2x32xf32>, vector<32x128xf32>, vector<2x128xf32> -> vector<2x128xf32>
    %490 = arith.addf %488, %489 : vector<2x128xf32>
    %491 = vector.extract_strided_slice %481 {offsets = [14, 128], sizes = [2, 128], strides = [1, 1]} : vector<16x256xf32> to vector<2x128xf32>
    %cst_117 = arith.constant dense<0.000000e+00> : vector<2x128xf32>
    %492 = tpu.matmul %486, %483, %cst_117 {dimension_numbers = #tpu.dot_dimension_numbers<[1], [0], [0], [1], [0, 0, 1, 1], [], []>} : vector<2x32xf32>, vector<32x128xf32>, vector<2x128xf32> -> vector<2x128xf32>
    %493 = arith.addf %491, %492 : vector<2x128xf32>
    %494 = vector.extract_strided_slice %490 {offsets = [0, 0], sizes = [2, 32], strides = [1, 1]} : vector<2x128xf32> to vector<2x32xf32>
    %495 = arith.negf %494 : vector<2x32xf32>
    %496 = math.exp %495 : vector<2x32xf32>
    %cst_118 = arith.constant 1.000000e+00 : f32
    %497 = vector.broadcast %cst_118 : f32 to vector<2x32xf32>
    %498 = arith.addf %497, %496 : vector<2x32xf32>
    %499 = arith.divf %497, %498 : vector<2x32xf32>
    %500 = vector.extract_strided_slice %490 {offsets = [0, 32], sizes = [2, 32], strides = [1, 1]} : vector<2x128xf32> to vector<2x32xf32>
    %501 = arith.negf %500 : vector<2x32xf32>
    %502 = math.exp %501 : vector<2x32xf32>
    %cst_119 = arith.constant 1.000000e+00 : f32
    %503 = vector.broadcast %cst_119 : f32 to vector<2x32xf32>
    %504 = arith.addf %503, %502 : vector<2x32xf32>
    %505 = arith.divf %503, %504 : vector<2x32xf32>
    %506 = vector.extract_strided_slice %490 {offsets = [0, 64], sizes = [2, 32], strides = [1, 1]} : vector<2x128xf32> to vector<2x32xf32>
    %507 = math.tanh %506 : vector<2x32xf32>
    %508 = vector.extract_strided_slice %490 {offsets = [0, 96], sizes = [2, 32], strides = [1, 1]} : vector<2x128xf32> to vector<2x32xf32>
    %509 = arith.negf %508 : vector<2x32xf32>
    %510 = math.exp %509 : vector<2x32xf32>
    %cst_120 = arith.constant 1.000000e+00 : f32
    %511 = vector.broadcast %cst_120 : f32 to vector<2x32xf32>
    %512 = arith.addf %511, %510 : vector<2x32xf32>
    %513 = arith.divf %511, %512 : vector<2x32xf32>
    %514 = arith.mulf %505, %485 : vector<2x32xf32>
    %515 = arith.mulf %499, %507 : vector<2x32xf32>
    %516 = arith.addf %514, %515 : vector<2x32xf32>
    %517 = math.tanh %516 : vector<2x32xf32>
    %518 = arith.mulf %513, %517 : vector<2x32xf32>
    %519 = vector.extract_strided_slice %493 {offsets = [0, 0], sizes = [2, 32], strides = [1, 1]} : vector<2x128xf32> to vector<2x32xf32>
    %520 = arith.negf %519 : vector<2x32xf32>
    %521 = math.exp %520 : vector<2x32xf32>
    %cst_121 = arith.constant 1.000000e+00 : f32
    %522 = vector.broadcast %cst_121 : f32 to vector<2x32xf32>
    %523 = arith.addf %522, %521 : vector<2x32xf32>
    %524 = arith.divf %522, %523 : vector<2x32xf32>
    %525 = vector.extract_strided_slice %493 {offsets = [0, 32], sizes = [2, 32], strides = [1, 1]} : vector<2x128xf32> to vector<2x32xf32>
    %526 = arith.negf %525 : vector<2x32xf32>
    %527 = math.exp %526 : vector<2x32xf32>
    %cst_122 = arith.constant 1.000000e+00 : f32
    %528 = vector.broadcast %cst_122 : f32 to vector<2x32xf32>
    %529 = arith.addf %528, %527 : vector<2x32xf32>
    %530 = arith.divf %528, %529 : vector<2x32xf32>
    %531 = vector.extract_strided_slice %493 {offsets = [0, 64], sizes = [2, 32], strides = [1, 1]} : vector<2x128xf32> to vector<2x32xf32>
    %532 = math.tanh %531 : vector<2x32xf32>
    %533 = vector.extract_strided_slice %493 {offsets = [0, 96], sizes = [2, 32], strides = [1, 1]} : vector<2x128xf32> to vector<2x32xf32>
    %534 = arith.negf %533 : vector<2x32xf32>
    %535 = math.exp %534 : vector<2x32xf32>
    %cst_123 = arith.constant 1.000000e+00 : f32
    %536 = vector.broadcast %cst_123 : f32 to vector<2x32xf32>
    %537 = arith.addf %536, %535 : vector<2x32xf32>
    %538 = arith.divf %536, %537 : vector<2x32xf32>
    %539 = arith.mulf %530, %487 : vector<2x32xf32>
    %540 = arith.mulf %524, %532 : vector<2x32xf32>
    %541 = arith.addf %539, %540 : vector<2x32xf32>
    %542 = math.tanh %541 : vector<2x32xf32>
    %543 = arith.mulf %538, %542 : vector<2x32xf32>
    %544 = vector.extract_strided_slice %481 {offsets = [2, 0], sizes = [2, 128], strides = [1, 1]} : vector<16x256xf32> to vector<2x128xf32>
    %cst_124 = arith.constant dense<0.000000e+00> : vector<2x128xf32>
    %545 = tpu.matmul %518, %482, %cst_124 {dimension_numbers = #tpu.dot_dimension_numbers<[1], [0], [0], [1], [0, 0, 1, 1], [], []>} : vector<2x32xf32>, vector<32x128xf32>, vector<2x128xf32> -> vector<2x128xf32>
    %546 = arith.addf %544, %545 : vector<2x128xf32>
    %547 = vector.extract_strided_slice %481 {offsets = [12, 128], sizes = [2, 128], strides = [1, 1]} : vector<16x256xf32> to vector<2x128xf32>
    %cst_125 = arith.constant dense<0.000000e+00> : vector<2x128xf32>
    %548 = tpu.matmul %543, %483, %cst_125 {dimension_numbers = #tpu.dot_dimension_numbers<[1], [0], [0], [1], [0, 0, 1, 1], [], []>} : vector<2x32xf32>, vector<32x128xf32>, vector<2x128xf32> -> vector<2x128xf32>
    %549 = arith.addf %547, %548 : vector<2x128xf32>
    %550 = vector.extract_strided_slice %546 {offsets = [0, 0], sizes = [2, 32], strides = [1, 1]} : vector<2x128xf32> to vector<2x32xf32>
    %551 = arith.negf %550 : vector<2x32xf32>
    %552 = math.exp %551 : vector<2x32xf32>
    %cst_126 = arith.constant 1.000000e+00 : f32
    %553 = vector.broadcast %cst_126 : f32 to vector<2x32xf32>
    %554 = arith.addf %553, %552 : vector<2x32xf32>
    %555 = arith.divf %553, %554 : vector<2x32xf32>
    %556 = vector.extract_strided_slice %546 {offsets = [0, 32], sizes = [2, 32], strides = [1, 1]} : vector<2x128xf32> to vector<2x32xf32>
    %557 = arith.negf %556 : vector<2x32xf32>
    %558 = math.exp %557 : vector<2x32xf32>
    %cst_127 = arith.constant 1.000000e+00 : f32
    %559 = vector.broadcast %cst_127 : f32 to vector<2x32xf32>
    %560 = arith.addf %559, %558 : vector<2x32xf32>
    %561 = arith.divf %559, %560 : vector<2x32xf32>
    %562 = vector.extract_strided_slice %546 {offsets = [0, 64], sizes = [2, 32], strides = [1, 1]} : vector<2x128xf32> to vector<2x32xf32>
    %563 = math.tanh %562 : vector<2x32xf32>
    %564 = vector.extract_strided_slice %546 {offsets = [0, 96], sizes = [2, 32], strides = [1, 1]} : vector<2x128xf32> to vector<2x32xf32>
    %565 = arith.negf %564 : vector<2x32xf32>
    %566 = math.exp %565 : vector<2x32xf32>
    %cst_128 = arith.constant 1.000000e+00 : f32
    %567 = vector.broadcast %cst_128 : f32 to vector<2x32xf32>
    %568 = arith.addf %567, %566 : vector<2x32xf32>
    %569 = arith.divf %567, %568 : vector<2x32xf32>
    %570 = arith.mulf %561, %516 : vector<2x32xf32>
    %571 = arith.mulf %555, %563 : vector<2x32xf32>
    %572 = arith.addf %570, %571 : vector<2x32xf32>
    %573 = math.tanh %572 : vector<2x32xf32>
    %574 = arith.mulf %569, %573 : vector<2x32xf32>
    %575 = vector.extract_strided_slice %549 {offsets = [0, 0], sizes = [2, 32], strides = [1, 1]} : vector<2x128xf32> to vector<2x32xf32>
    %576 = arith.negf %575 : vector<2x32xf32>
    %577 = math.exp %576 : vector<2x32xf32>
    %cst_129 = arith.constant 1.000000e+00 : f32
    %578 = vector.broadcast %cst_129 : f32 to vector<2x32xf32>
    %579 = arith.addf %578, %577 : vector<2x32xf32>
    %580 = arith.divf %578, %579 : vector<2x32xf32>
    %581 = vector.extract_strided_slice %549 {offsets = [0, 32], sizes = [2, 32], strides = [1, 1]} : vector<2x128xf32> to vector<2x32xf32>
    %582 = arith.negf %581 : vector<2x32xf32>
    %583 = math.exp %582 : vector<2x32xf32>
    %cst_130 = arith.constant 1.000000e+00 : f32
    %584 = vector.broadcast %cst_130 : f32 to vector<2x32xf32>
    %585 = arith.addf %584, %583 : vector<2x32xf32>
    %586 = arith.divf %584, %585 : vector<2x32xf32>
    %587 = vector.extract_strided_slice %549 {offsets = [0, 64], sizes = [2, 32], strides = [1, 1]} : vector<2x128xf32> to vector<2x32xf32>
    %588 = math.tanh %587 : vector<2x32xf32>
    %589 = vector.extract_strided_slice %549 {offsets = [0, 96], sizes = [2, 32], strides = [1, 1]} : vector<2x128xf32> to vector<2x32xf32>
    %590 = arith.negf %589 : vector<2x32xf32>
    %591 = math.exp %590 : vector<2x32xf32>
    %cst_131 = arith.constant 1.000000e+00 : f32
    %592 = vector.broadcast %cst_131 : f32 to vector<2x32xf32>
    %593 = arith.addf %592, %591 : vector<2x32xf32>
    %594 = arith.divf %592, %593 : vector<2x32xf32>
    %595 = arith.mulf %586, %541 : vector<2x32xf32>
    %596 = arith.mulf %580, %588 : vector<2x32xf32>
    %597 = arith.addf %595, %596 : vector<2x32xf32>
    %598 = math.tanh %597 : vector<2x32xf32>
    %599 = arith.mulf %594, %598 : vector<2x32xf32>
    %600 = vector.extract_strided_slice %481 {offsets = [4, 0], sizes = [2, 128], strides = [1, 1]} : vector<16x256xf32> to vector<2x128xf32>
    %cst_132 = arith.constant dense<0.000000e+00> : vector<2x128xf32>
    %601 = tpu.matmul %574, %482, %cst_132 {dimension_numbers = #tpu.dot_dimension_numbers<[1], [0], [0], [1], [0, 0, 1, 1], [], []>} : vector<2x32xf32>, vector<32x128xf32>, vector<2x128xf32> -> vector<2x128xf32>
    %602 = arith.addf %600, %601 : vector<2x128xf32>
    %603 = vector.extract_strided_slice %481 {offsets = [10, 128], sizes = [2, 128], strides = [1, 1]} : vector<16x256xf32> to vector<2x128xf32>
    %cst_133 = arith.constant dense<0.000000e+00> : vector<2x128xf32>
    %604 = tpu.matmul %599, %483, %cst_133 {dimension_numbers = #tpu.dot_dimension_numbers<[1], [0], [0], [1], [0, 0, 1, 1], [], []>} : vector<2x32xf32>, vector<32x128xf32>, vector<2x128xf32> -> vector<2x128xf32>
    %605 = arith.addf %603, %604 : vector<2x128xf32>
    %606 = vector.extract_strided_slice %602 {offsets = [0, 0], sizes = [2, 32], strides = [1, 1]} : vector<2x128xf32> to vector<2x32xf32>
    %607 = arith.negf %606 : vector<2x32xf32>
    %608 = math.exp %607 : vector<2x32xf32>
    %cst_134 = arith.constant 1.000000e+00 : f32
    %609 = vector.broadcast %cst_134 : f32 to vector<2x32xf32>
    %610 = arith.addf %609, %608 : vector<2x32xf32>
    %611 = arith.divf %609, %610 : vector<2x32xf32>
    %612 = vector.extract_strided_slice %602 {offsets = [0, 32], sizes = [2, 32], strides = [1, 1]} : vector<2x128xf32> to vector<2x32xf32>
    %613 = arith.negf %612 : vector<2x32xf32>
    %614 = math.exp %613 : vector<2x32xf32>
    %cst_135 = arith.constant 1.000000e+00 : f32
    %615 = vector.broadcast %cst_135 : f32 to vector<2x32xf32>
    %616 = arith.addf %615, %614 : vector<2x32xf32>
    %617 = arith.divf %615, %616 : vector<2x32xf32>
    %618 = vector.extract_strided_slice %602 {offsets = [0, 64], sizes = [2, 32], strides = [1, 1]} : vector<2x128xf32> to vector<2x32xf32>
    %619 = math.tanh %618 : vector<2x32xf32>
    %620 = vector.extract_strided_slice %602 {offsets = [0, 96], sizes = [2, 32], strides = [1, 1]} : vector<2x128xf32> to vector<2x32xf32>
    %621 = arith.negf %620 : vector<2x32xf32>
    %622 = math.exp %621 : vector<2x32xf32>
    %cst_136 = arith.constant 1.000000e+00 : f32
    %623 = vector.broadcast %cst_136 : f32 to vector<2x32xf32>
    %624 = arith.addf %623, %622 : vector<2x32xf32>
    %625 = arith.divf %623, %624 : vector<2x32xf32>
    %626 = arith.mulf %617, %572 : vector<2x32xf32>
    %627 = arith.mulf %611, %619 : vector<2x32xf32>
    %628 = arith.addf %626, %627 : vector<2x32xf32>
    %629 = math.tanh %628 : vector<2x32xf32>
    %630 = arith.mulf %625, %629 : vector<2x32xf32>
    %631 = vector.extract_strided_slice %605 {offsets = [0, 0], sizes = [2, 32], strides = [1, 1]} : vector<2x128xf32> to vector<2x32xf32>
    %632 = arith.negf %631 : vector<2x32xf32>
    %633 = math.exp %632 : vector<2x32xf32>
    %cst_137 = arith.constant 1.000000e+00 : f32
    %634 = vector.broadcast %cst_137 : f32 to vector<2x32xf32>
    %635 = arith.addf %634, %633 : vector<2x32xf32>
    %636 = arith.divf %634, %635 : vector<2x32xf32>
    %637 = vector.extract_strided_slice %605 {offsets = [0, 32], sizes = [2, 32], strides = [1, 1]} : vector<2x128xf32> to vector<2x32xf32>
    %638 = arith.negf %637 : vector<2x32xf32>
    %639 = math.exp %638 : vector<2x32xf32>
    %cst_138 = arith.constant 1.000000e+00 : f32
    %640 = vector.broadcast %cst_138 : f32 to vector<2x32xf32>
    %641 = arith.addf %640, %639 : vector<2x32xf32>
    %642 = arith.divf %640, %641 : vector<2x32xf32>
    %643 = vector.extract_strided_slice %605 {offsets = [0, 64], sizes = [2, 32], strides = [1, 1]} : vector<2x128xf32> to vector<2x32xf32>
    %644 = math.tanh %643 : vector<2x32xf32>
    %645 = vector.extract_strided_slice %605 {offsets = [0, 96], sizes = [2, 32], strides = [1, 1]} : vector<2x128xf32> to vector<2x32xf32>
    %646 = arith.negf %645 : vector<2x32xf32>
    %647 = math.exp %646 : vector<2x32xf32>
    %cst_139 = arith.constant 1.000000e+00 : f32
    %648 = vector.broadcast %cst_139 : f32 to vector<2x32xf32>
    %649 = arith.addf %648, %647 : vector<2x32xf32>
    %650 = arith.divf %648, %649 : vector<2x32xf32>
    %651 = arith.mulf %642, %597 : vector<2x32xf32>
    %652 = arith.mulf %636, %644 : vector<2x32xf32>
    %653 = arith.addf %651, %652 : vector<2x32xf32>
    %654 = math.tanh %653 : vector<2x32xf32>
    %655 = arith.mulf %650, %654 : vector<2x32xf32>
    %656 = vector.extract_strided_slice %481 {offsets = [6, 0], sizes = [2, 128], strides = [1, 1]} : vector<16x256xf32> to vector<2x128xf32>
    %cst_140 = arith.constant dense<0.000000e+00> : vector<2x128xf32>
    %657 = tpu.matmul %630, %482, %cst_140 {dimension_numbers = #tpu.dot_dimension_numbers<[1], [0], [0], [1], [0, 0, 1, 1], [], []>} : vector<2x32xf32>, vector<32x128xf32>, vector<2x128xf32> -> vector<2x128xf32>
    %658 = arith.addf %656, %657 : vector<2x128xf32>
    %659 = vector.extract_strided_slice %481 {offsets = [8, 128], sizes = [2, 128], strides = [1, 1]} : vector<16x256xf32> to vector<2x128xf32>
    %cst_141 = arith.constant dense<0.000000e+00> : vector<2x128xf32>
    %660 = tpu.matmul %655, %483, %cst_141 {dimension_numbers = #tpu.dot_dimension_numbers<[1], [0], [0], [1], [0, 0, 1, 1], [], []>} : vector<2x32xf32>, vector<32x128xf32>, vector<2x128xf32> -> vector<2x128xf32>
    %661 = arith.addf %659, %660 : vector<2x128xf32>
    %662 = vector.extract_strided_slice %658 {offsets = [0, 0], sizes = [2, 32], strides = [1, 1]} : vector<2x128xf32> to vector<2x32xf32>
    %663 = arith.negf %662 : vector<2x32xf32>
    %664 = math.exp %663 : vector<2x32xf32>
    %cst_142 = arith.constant 1.000000e+00 : f32
    %665 = vector.broadcast %cst_142 : f32 to vector<2x32xf32>
    %666 = arith.addf %665, %664 : vector<2x32xf32>
    %667 = arith.divf %665, %666 : vector<2x32xf32>
    %668 = vector.extract_strided_slice %658 {offsets = [0, 32], sizes = [2, 32], strides = [1, 1]} : vector<2x128xf32> to vector<2x32xf32>
    %669 = arith.negf %668 : vector<2x32xf32>
    %670 = math.exp %669 : vector<2x32xf32>
    %cst_143 = arith.constant 1.000000e+00 : f32
    %671 = vector.broadcast %cst_143 : f32 to vector<2x32xf32>
    %672 = arith.addf %671, %670 : vector<2x32xf32>
    %673 = arith.divf %671, %672 : vector<2x32xf32>
    %674 = vector.extract_strided_slice %658 {offsets = [0, 64], sizes = [2, 32], strides = [1, 1]} : vector<2x128xf32> to vector<2x32xf32>
    %675 = math.tanh %674 : vector<2x32xf32>
    %676 = vector.extract_strided_slice %658 {offsets = [0, 96], sizes = [2, 32], strides = [1, 1]} : vector<2x128xf32> to vector<2x32xf32>
    %677 = arith.negf %676 : vector<2x32xf32>
    %678 = math.exp %677 : vector<2x32xf32>
    %cst_144 = arith.constant 1.000000e+00 : f32
    %679 = vector.broadcast %cst_144 : f32 to vector<2x32xf32>
    %680 = arith.addf %679, %678 : vector<2x32xf32>
    %681 = arith.divf %679, %680 : vector<2x32xf32>
    %682 = arith.mulf %673, %628 : vector<2x32xf32>
    %683 = arith.mulf %667, %675 : vector<2x32xf32>
    %684 = arith.addf %682, %683 : vector<2x32xf32>
    %685 = math.tanh %684 : vector<2x32xf32>
    %686 = arith.mulf %681, %685 : vector<2x32xf32>
    %687 = vector.extract_strided_slice %661 {offsets = [0, 0], sizes = [2, 32], strides = [1, 1]} : vector<2x128xf32> to vector<2x32xf32>
    %688 = arith.negf %687 : vector<2x32xf32>
    %689 = math.exp %688 : vector<2x32xf32>
    %cst_145 = arith.constant 1.000000e+00 : f32
    %690 = vector.broadcast %cst_145 : f32 to vector<2x32xf32>
    %691 = arith.addf %690, %689 : vector<2x32xf32>
    %692 = arith.divf %690, %691 : vector<2x32xf32>
    %693 = vector.extract_strided_slice %661 {offsets = [0, 32], sizes = [2, 32], strides = [1, 1]} : vector<2x128xf32> to vector<2x32xf32>
    %694 = arith.negf %693 : vector<2x32xf32>
    %695 = math.exp %694 : vector<2x32xf32>
    %cst_146 = arith.constant 1.000000e+00 : f32
    %696 = vector.broadcast %cst_146 : f32 to vector<2x32xf32>
    %697 = arith.addf %696, %695 : vector<2x32xf32>
    %698 = arith.divf %696, %697 : vector<2x32xf32>
    %699 = vector.extract_strided_slice %661 {offsets = [0, 64], sizes = [2, 32], strides = [1, 1]} : vector<2x128xf32> to vector<2x32xf32>
    %700 = math.tanh %699 : vector<2x32xf32>
    %701 = vector.extract_strided_slice %661 {offsets = [0, 96], sizes = [2, 32], strides = [1, 1]} : vector<2x128xf32> to vector<2x32xf32>
    %702 = arith.negf %701 : vector<2x32xf32>
    %703 = math.exp %702 : vector<2x32xf32>
    %cst_147 = arith.constant 1.000000e+00 : f32
    %704 = vector.broadcast %cst_147 : f32 to vector<2x32xf32>
    %705 = arith.addf %704, %703 : vector<2x32xf32>
    %706 = arith.divf %704, %705 : vector<2x32xf32>
    %707 = arith.mulf %698, %653 : vector<2x32xf32>
    %708 = arith.mulf %692, %700 : vector<2x32xf32>
    %709 = arith.addf %707, %708 : vector<2x32xf32>
    %710 = math.tanh %709 : vector<2x32xf32>
    %711 = arith.mulf %706, %710 : vector<2x32xf32>
    %712 = vector.extract_strided_slice %481 {offsets = [8, 0], sizes = [2, 128], strides = [1, 1]} : vector<16x256xf32> to vector<2x128xf32>
    %cst_148 = arith.constant dense<0.000000e+00> : vector<2x128xf32>
    %713 = tpu.matmul %686, %482, %cst_148 {dimension_numbers = #tpu.dot_dimension_numbers<[1], [0], [0], [1], [0, 0, 1, 1], [], []>} : vector<2x32xf32>, vector<32x128xf32>, vector<2x128xf32> -> vector<2x128xf32>
    %714 = arith.addf %712, %713 : vector<2x128xf32>
    %715 = vector.extract_strided_slice %481 {offsets = [6, 128], sizes = [2, 128], strides = [1, 1]} : vector<16x256xf32> to vector<2x128xf32>
    %cst_149 = arith.constant dense<0.000000e+00> : vector<2x128xf32>
    %716 = tpu.matmul %711, %483, %cst_149 {dimension_numbers = #tpu.dot_dimension_numbers<[1], [0], [0], [1], [0, 0, 1, 1], [], []>} : vector<2x32xf32>, vector<32x128xf32>, vector<2x128xf32> -> vector<2x128xf32>
    %717 = arith.addf %715, %716 : vector<2x128xf32>
    %718 = vector.extract_strided_slice %714 {offsets = [0, 0], sizes = [2, 32], strides = [1, 1]} : vector<2x128xf32> to vector<2x32xf32>
    %719 = arith.negf %718 : vector<2x32xf32>
    %720 = math.exp %719 : vector<2x32xf32>
    %cst_150 = arith.constant 1.000000e+00 : f32
    %721 = vector.broadcast %cst_150 : f32 to vector<2x32xf32>
    %722 = arith.addf %721, %720 : vector<2x32xf32>
    %723 = arith.divf %721, %722 : vector<2x32xf32>
    %724 = vector.extract_strided_slice %714 {offsets = [0, 32], sizes = [2, 32], strides = [1, 1]} : vector<2x128xf32> to vector<2x32xf32>
    %725 = arith.negf %724 : vector<2x32xf32>
    %726 = math.exp %725 : vector<2x32xf32>
    %cst_151 = arith.constant 1.000000e+00 : f32
    %727 = vector.broadcast %cst_151 : f32 to vector<2x32xf32>
    %728 = arith.addf %727, %726 : vector<2x32xf32>
    %729 = arith.divf %727, %728 : vector<2x32xf32>
    %730 = vector.extract_strided_slice %714 {offsets = [0, 64], sizes = [2, 32], strides = [1, 1]} : vector<2x128xf32> to vector<2x32xf32>
    %731 = math.tanh %730 : vector<2x32xf32>
    %732 = vector.extract_strided_slice %714 {offsets = [0, 96], sizes = [2, 32], strides = [1, 1]} : vector<2x128xf32> to vector<2x32xf32>
    %733 = arith.negf %732 : vector<2x32xf32>
    %734 = math.exp %733 : vector<2x32xf32>
    %cst_152 = arith.constant 1.000000e+00 : f32
    %735 = vector.broadcast %cst_152 : f32 to vector<2x32xf32>
    %736 = arith.addf %735, %734 : vector<2x32xf32>
    %737 = arith.divf %735, %736 : vector<2x32xf32>
    %738 = arith.mulf %729, %684 : vector<2x32xf32>
    %739 = arith.mulf %723, %731 : vector<2x32xf32>
    %740 = arith.addf %738, %739 : vector<2x32xf32>
    %741 = math.tanh %740 : vector<2x32xf32>
    %742 = arith.mulf %737, %741 : vector<2x32xf32>
    %743 = vector.extract_strided_slice %717 {offsets = [0, 0], sizes = [2, 32], strides = [1, 1]} : vector<2x128xf32> to vector<2x32xf32>
    %744 = arith.negf %743 : vector<2x32xf32>
    %745 = math.exp %744 : vector<2x32xf32>
    %cst_153 = arith.constant 1.000000e+00 : f32
    %746 = vector.broadcast %cst_153 : f32 to vector<2x32xf32>
    %747 = arith.addf %746, %745 : vector<2x32xf32>
    %748 = arith.divf %746, %747 : vector<2x32xf32>
    %749 = vector.extract_strided_slice %717 {offsets = [0, 32], sizes = [2, 32], strides = [1, 1]} : vector<2x128xf32> to vector<2x32xf32>
    %750 = arith.negf %749 : vector<2x32xf32>
    %751 = math.exp %750 : vector<2x32xf32>
    %cst_154 = arith.constant 1.000000e+00 : f32
    %752 = vector.broadcast %cst_154 : f32 to vector<2x32xf32>
    %753 = arith.addf %752, %751 : vector<2x32xf32>
    %754 = arith.divf %752, %753 : vector<2x32xf32>
    %755 = vector.extract_strided_slice %717 {offsets = [0, 64], sizes = [2, 32], strides = [1, 1]} : vector<2x128xf32> to vector<2x32xf32>
    %756 = math.tanh %755 : vector<2x32xf32>
    %757 = vector.extract_strided_slice %717 {offsets = [0, 96], sizes = [2, 32], strides = [1, 1]} : vector<2x128xf32> to vector<2x32xf32>
    %758 = arith.negf %757 : vector<2x32xf32>
    %759 = math.exp %758 : vector<2x32xf32>
    %cst_155 = arith.constant 1.000000e+00 : f32
    %760 = vector.broadcast %cst_155 : f32 to vector<2x32xf32>
    %761 = arith.addf %760, %759 : vector<2x32xf32>
    %762 = arith.divf %760, %761 : vector<2x32xf32>
    %763 = arith.mulf %754, %709 : vector<2x32xf32>
    %764 = arith.mulf %748, %756 : vector<2x32xf32>
    %765 = arith.addf %763, %764 : vector<2x32xf32>
    %766 = math.tanh %765 : vector<2x32xf32>
    %767 = arith.mulf %762, %766 : vector<2x32xf32>
    %768 = vector.extract_strided_slice %481 {offsets = [10, 0], sizes = [2, 128], strides = [1, 1]} : vector<16x256xf32> to vector<2x128xf32>
    %cst_156 = arith.constant dense<0.000000e+00> : vector<2x128xf32>
    %769 = tpu.matmul %742, %482, %cst_156 {dimension_numbers = #tpu.dot_dimension_numbers<[1], [0], [0], [1], [0, 0, 1, 1], [], []>} : vector<2x32xf32>, vector<32x128xf32>, vector<2x128xf32> -> vector<2x128xf32>
    %770 = arith.addf %768, %769 : vector<2x128xf32>
    %771 = vector.extract_strided_slice %481 {offsets = [4, 128], sizes = [2, 128], strides = [1, 1]} : vector<16x256xf32> to vector<2x128xf32>
    %cst_157 = arith.constant dense<0.000000e+00> : vector<2x128xf32>
    %772 = tpu.matmul %767, %483, %cst_157 {dimension_numbers = #tpu.dot_dimension_numbers<[1], [0], [0], [1], [0, 0, 1, 1], [], []>} : vector<2x32xf32>, vector<32x128xf32>, vector<2x128xf32> -> vector<2x128xf32>
    %773 = arith.addf %771, %772 : vector<2x128xf32>
    %774 = vector.extract_strided_slice %770 {offsets = [0, 0], sizes = [2, 32], strides = [1, 1]} : vector<2x128xf32> to vector<2x32xf32>
    %775 = arith.negf %774 : vector<2x32xf32>
    %776 = math.exp %775 : vector<2x32xf32>
    %cst_158 = arith.constant 1.000000e+00 : f32
    %777 = vector.broadcast %cst_158 : f32 to vector<2x32xf32>
    %778 = arith.addf %777, %776 : vector<2x32xf32>
    %779 = arith.divf %777, %778 : vector<2x32xf32>
    %780 = vector.extract_strided_slice %770 {offsets = [0, 32], sizes = [2, 32], strides = [1, 1]} : vector<2x128xf32> to vector<2x32xf32>
    %781 = arith.negf %780 : vector<2x32xf32>
    %782 = math.exp %781 : vector<2x32xf32>
    %cst_159 = arith.constant 1.000000e+00 : f32
    %783 = vector.broadcast %cst_159 : f32 to vector<2x32xf32>
    %784 = arith.addf %783, %782 : vector<2x32xf32>
    %785 = arith.divf %783, %784 : vector<2x32xf32>
    %786 = vector.extract_strided_slice %770 {offsets = [0, 64], sizes = [2, 32], strides = [1, 1]} : vector<2x128xf32> to vector<2x32xf32>
    %787 = math.tanh %786 : vector<2x32xf32>
    %788 = vector.extract_strided_slice %770 {offsets = [0, 96], sizes = [2, 32], strides = [1, 1]} : vector<2x128xf32> to vector<2x32xf32>
    %789 = arith.negf %788 : vector<2x32xf32>
    %790 = math.exp %789 : vector<2x32xf32>
    %cst_160 = arith.constant 1.000000e+00 : f32
    %791 = vector.broadcast %cst_160 : f32 to vector<2x32xf32>
    %792 = arith.addf %791, %790 : vector<2x32xf32>
    %793 = arith.divf %791, %792 : vector<2x32xf32>
    %794 = arith.mulf %785, %740 : vector<2x32xf32>
    %795 = arith.mulf %779, %787 : vector<2x32xf32>
    %796 = arith.addf %794, %795 : vector<2x32xf32>
    %797 = math.tanh %796 : vector<2x32xf32>
    %798 = arith.mulf %793, %797 : vector<2x32xf32>
    %799 = vector.extract_strided_slice %773 {offsets = [0, 0], sizes = [2, 32], strides = [1, 1]} : vector<2x128xf32> to vector<2x32xf32>
    %800 = arith.negf %799 : vector<2x32xf32>
    %801 = math.exp %800 : vector<2x32xf32>
    %cst_161 = arith.constant 1.000000e+00 : f32
    %802 = vector.broadcast %cst_161 : f32 to vector<2x32xf32>
    %803 = arith.addf %802, %801 : vector<2x32xf32>
    %804 = arith.divf %802, %803 : vector<2x32xf32>
    %805 = vector.extract_strided_slice %773 {offsets = [0, 32], sizes = [2, 32], strides = [1, 1]} : vector<2x128xf32> to vector<2x32xf32>
    %806 = arith.negf %805 : vector<2x32xf32>
    %807 = math.exp %806 : vector<2x32xf32>
    %cst_162 = arith.constant 1.000000e+00 : f32
    %808 = vector.broadcast %cst_162 : f32 to vector<2x32xf32>
    %809 = arith.addf %808, %807 : vector<2x32xf32>
    %810 = arith.divf %808, %809 : vector<2x32xf32>
    %811 = vector.extract_strided_slice %773 {offsets = [0, 64], sizes = [2, 32], strides = [1, 1]} : vector<2x128xf32> to vector<2x32xf32>
    %812 = math.tanh %811 : vector<2x32xf32>
    %813 = vector.extract_strided_slice %773 {offsets = [0, 96], sizes = [2, 32], strides = [1, 1]} : vector<2x128xf32> to vector<2x32xf32>
    %814 = arith.negf %813 : vector<2x32xf32>
    %815 = math.exp %814 : vector<2x32xf32>
    %cst_163 = arith.constant 1.000000e+00 : f32
    %816 = vector.broadcast %cst_163 : f32 to vector<2x32xf32>
    %817 = arith.addf %816, %815 : vector<2x32xf32>
    %818 = arith.divf %816, %817 : vector<2x32xf32>
    %819 = arith.mulf %810, %765 : vector<2x32xf32>
    %820 = arith.mulf %804, %812 : vector<2x32xf32>
    %821 = arith.addf %819, %820 : vector<2x32xf32>
    %822 = math.tanh %821 : vector<2x32xf32>
    %823 = arith.mulf %818, %822 : vector<2x32xf32>
    %824 = vector.extract_strided_slice %481 {offsets = [12, 0], sizes = [2, 128], strides = [1, 1]} : vector<16x256xf32> to vector<2x128xf32>
    %cst_164 = arith.constant dense<0.000000e+00> : vector<2x128xf32>
    %825 = tpu.matmul %798, %482, %cst_164 {dimension_numbers = #tpu.dot_dimension_numbers<[1], [0], [0], [1], [0, 0, 1, 1], [], []>} : vector<2x32xf32>, vector<32x128xf32>, vector<2x128xf32> -> vector<2x128xf32>
    %826 = arith.addf %824, %825 : vector<2x128xf32>
    %827 = vector.extract_strided_slice %481 {offsets = [2, 128], sizes = [2, 128], strides = [1, 1]} : vector<16x256xf32> to vector<2x128xf32>
    %cst_165 = arith.constant dense<0.000000e+00> : vector<2x128xf32>
    %828 = tpu.matmul %823, %483, %cst_165 {dimension_numbers = #tpu.dot_dimension_numbers<[1], [0], [0], [1], [0, 0, 1, 1], [], []>} : vector<2x32xf32>, vector<32x128xf32>, vector<2x128xf32> -> vector<2x128xf32>
    %829 = arith.addf %827, %828 : vector<2x128xf32>
    %830 = vector.extract_strided_slice %826 {offsets = [0, 0], sizes = [2, 32], strides = [1, 1]} : vector<2x128xf32> to vector<2x32xf32>
    %831 = arith.negf %830 : vector<2x32xf32>
    %832 = math.exp %831 : vector<2x32xf32>
    %cst_166 = arith.constant 1.000000e+00 : f32
    %833 = vector.broadcast %cst_166 : f32 to vector<2x32xf32>
    %834 = arith.addf %833, %832 : vector<2x32xf32>
    %835 = arith.divf %833, %834 : vector<2x32xf32>
    %836 = vector.extract_strided_slice %826 {offsets = [0, 32], sizes = [2, 32], strides = [1, 1]} : vector<2x128xf32> to vector<2x32xf32>
    %837 = arith.negf %836 : vector<2x32xf32>
    %838 = math.exp %837 : vector<2x32xf32>
    %cst_167 = arith.constant 1.000000e+00 : f32
    %839 = vector.broadcast %cst_167 : f32 to vector<2x32xf32>
    %840 = arith.addf %839, %838 : vector<2x32xf32>
    %841 = arith.divf %839, %840 : vector<2x32xf32>
    %842 = vector.extract_strided_slice %826 {offsets = [0, 64], sizes = [2, 32], strides = [1, 1]} : vector<2x128xf32> to vector<2x32xf32>
    %843 = math.tanh %842 : vector<2x32xf32>
    %844 = vector.extract_strided_slice %826 {offsets = [0, 96], sizes = [2, 32], strides = [1, 1]} : vector<2x128xf32> to vector<2x32xf32>
    %845 = arith.negf %844 : vector<2x32xf32>
    %846 = math.exp %845 : vector<2x32xf32>
    %cst_168 = arith.constant 1.000000e+00 : f32
    %847 = vector.broadcast %cst_168 : f32 to vector<2x32xf32>
    %848 = arith.addf %847, %846 : vector<2x32xf32>
    %849 = arith.divf %847, %848 : vector<2x32xf32>
    %850 = arith.mulf %841, %796 : vector<2x32xf32>
    %851 = arith.mulf %835, %843 : vector<2x32xf32>
    %852 = arith.addf %850, %851 : vector<2x32xf32>
    %853 = math.tanh %852 : vector<2x32xf32>
    %854 = arith.mulf %849, %853 : vector<2x32xf32>
    %855 = vector.extract_strided_slice %829 {offsets = [0, 0], sizes = [2, 32], strides = [1, 1]} : vector<2x128xf32> to vector<2x32xf32>
    %856 = arith.negf %855 : vector<2x32xf32>
    %857 = math.exp %856 : vector<2x32xf32>
    %cst_169 = arith.constant 1.000000e+00 : f32
    %858 = vector.broadcast %cst_169 : f32 to vector<2x32xf32>
    %859 = arith.addf %858, %857 : vector<2x32xf32>
    %860 = arith.divf %858, %859 : vector<2x32xf32>
    %861 = vector.extract_strided_slice %829 {offsets = [0, 32], sizes = [2, 32], strides = [1, 1]} : vector<2x128xf32> to vector<2x32xf32>
    %862 = arith.negf %861 : vector<2x32xf32>
    %863 = math.exp %862 : vector<2x32xf32>
    %cst_170 = arith.constant 1.000000e+00 : f32
    %864 = vector.broadcast %cst_170 : f32 to vector<2x32xf32>
    %865 = arith.addf %864, %863 : vector<2x32xf32>
    %866 = arith.divf %864, %865 : vector<2x32xf32>
    %867 = vector.extract_strided_slice %829 {offsets = [0, 64], sizes = [2, 32], strides = [1, 1]} : vector<2x128xf32> to vector<2x32xf32>
    %868 = math.tanh %867 : vector<2x32xf32>
    %869 = vector.extract_strided_slice %829 {offsets = [0, 96], sizes = [2, 32], strides = [1, 1]} : vector<2x128xf32> to vector<2x32xf32>
    %870 = arith.negf %869 : vector<2x32xf32>
    %871 = math.exp %870 : vector<2x32xf32>
    %cst_171 = arith.constant 1.000000e+00 : f32
    %872 = vector.broadcast %cst_171 : f32 to vector<2x32xf32>
    %873 = arith.addf %872, %871 : vector<2x32xf32>
    %874 = arith.divf %872, %873 : vector<2x32xf32>
    %875 = arith.mulf %866, %821 : vector<2x32xf32>
    %876 = arith.mulf %860, %868 : vector<2x32xf32>
    %877 = arith.addf %875, %876 : vector<2x32xf32>
    %878 = math.tanh %877 : vector<2x32xf32>
    %879 = arith.mulf %874, %878 : vector<2x32xf32>
    %880 = vector.extract_strided_slice %481 {offsets = [14, 0], sizes = [2, 128], strides = [1, 1]} : vector<16x256xf32> to vector<2x128xf32>
    %cst_172 = arith.constant dense<0.000000e+00> : vector<2x128xf32>
    %881 = tpu.matmul %854, %482, %cst_172 {dimension_numbers = #tpu.dot_dimension_numbers<[1], [0], [0], [1], [0, 0, 1, 1], [], []>} : vector<2x32xf32>, vector<32x128xf32>, vector<2x128xf32> -> vector<2x128xf32>
    %882 = arith.addf %880, %881 : vector<2x128xf32>
    %883 = vector.extract_strided_slice %481 {offsets = [0, 128], sizes = [2, 128], strides = [1, 1]} : vector<16x256xf32> to vector<2x128xf32>
    %cst_173 = arith.constant dense<0.000000e+00> : vector<2x128xf32>
    %884 = tpu.matmul %879, %483, %cst_173 {dimension_numbers = #tpu.dot_dimension_numbers<[1], [0], [0], [1], [0, 0, 1, 1], [], []>} : vector<2x32xf32>, vector<32x128xf32>, vector<2x128xf32> -> vector<2x128xf32>
    %885 = arith.addf %883, %884 : vector<2x128xf32>
    %886 = vector.extract_strided_slice %882 {offsets = [0, 0], sizes = [2, 32], strides = [1, 1]} : vector<2x128xf32> to vector<2x32xf32>
    %887 = arith.negf %886 : vector<2x32xf32>
    %888 = math.exp %887 : vector<2x32xf32>
    %cst_174 = arith.constant 1.000000e+00 : f32
    %889 = vector.broadcast %cst_174 : f32 to vector<2x32xf32>
    %890 = arith.addf %889, %888 : vector<2x32xf32>
    %891 = arith.divf %889, %890 : vector<2x32xf32>
    %892 = vector.extract_strided_slice %882 {offsets = [0, 32], sizes = [2, 32], strides = [1, 1]} : vector<2x128xf32> to vector<2x32xf32>
    %893 = arith.negf %892 : vector<2x32xf32>
    %894 = math.exp %893 : vector<2x32xf32>
    %cst_175 = arith.constant 1.000000e+00 : f32
    %895 = vector.broadcast %cst_175 : f32 to vector<2x32xf32>
    %896 = arith.addf %895, %894 : vector<2x32xf32>
    %897 = arith.divf %895, %896 : vector<2x32xf32>
    %898 = vector.extract_strided_slice %882 {offsets = [0, 64], sizes = [2, 32], strides = [1, 1]} : vector<2x128xf32> to vector<2x32xf32>
    %899 = math.tanh %898 : vector<2x32xf32>
    %900 = vector.extract_strided_slice %882 {offsets = [0, 96], sizes = [2, 32], strides = [1, 1]} : vector<2x128xf32> to vector<2x32xf32>
    %901 = arith.negf %900 : vector<2x32xf32>
    %902 = math.exp %901 : vector<2x32xf32>
    %cst_176 = arith.constant 1.000000e+00 : f32
    %903 = vector.broadcast %cst_176 : f32 to vector<2x32xf32>
    %904 = arith.addf %903, %902 : vector<2x32xf32>
    %905 = arith.divf %903, %904 : vector<2x32xf32>
    %906 = arith.mulf %897, %852 : vector<2x32xf32>
    %907 = arith.mulf %891, %899 : vector<2x32xf32>
    %908 = arith.addf %906, %907 : vector<2x32xf32>
    %909 = math.tanh %908 : vector<2x32xf32>
    %910 = arith.mulf %905, %909 : vector<2x32xf32>
    %911 = vector.extract_strided_slice %885 {offsets = [0, 0], sizes = [2, 32], strides = [1, 1]} : vector<2x128xf32> to vector<2x32xf32>
    %912 = arith.negf %911 : vector<2x32xf32>
    %913 = math.exp %912 : vector<2x32xf32>
    %cst_177 = arith.constant 1.000000e+00 : f32
    %914 = vector.broadcast %cst_177 : f32 to vector<2x32xf32>
    %915 = arith.addf %914, %913 : vector<2x32xf32>
    %916 = arith.divf %914, %915 : vector<2x32xf32>
    %917 = vector.extract_strided_slice %885 {offsets = [0, 32], sizes = [2, 32], strides = [1, 1]} : vector<2x128xf32> to vector<2x32xf32>
    %918 = arith.negf %917 : vector<2x32xf32>
    %919 = math.exp %918 : vector<2x32xf32>
    %cst_178 = arith.constant 1.000000e+00 : f32
    %920 = vector.broadcast %cst_178 : f32 to vector<2x32xf32>
    %921 = arith.addf %920, %919 : vector<2x32xf32>
    %922 = arith.divf %920, %921 : vector<2x32xf32>
    %923 = vector.extract_strided_slice %885 {offsets = [0, 64], sizes = [2, 32], strides = [1, 1]} : vector<2x128xf32> to vector<2x32xf32>
    %924 = math.tanh %923 : vector<2x32xf32>
    %925 = vector.extract_strided_slice %885 {offsets = [0, 96], sizes = [2, 32], strides = [1, 1]} : vector<2x128xf32> to vector<2x32xf32>
    %926 = arith.negf %925 : vector<2x32xf32>
    %927 = math.exp %926 : vector<2x32xf32>
    %cst_179 = arith.constant 1.000000e+00 : f32
    %928 = vector.broadcast %cst_179 : f32 to vector<2x32xf32>
    %929 = arith.addf %928, %927 : vector<2x32xf32>
    %930 = arith.divf %928, %929 : vector<2x32xf32>
    %931 = arith.mulf %922, %877 : vector<2x32xf32>
    %932 = arith.mulf %916, %924 : vector<2x32xf32>
    %933 = arith.addf %931, %932 : vector<2x32xf32>
    %934 = math.tanh %933 : vector<2x32xf32>
    %935 = arith.mulf %930, %934 : vector<2x32xf32>
    %c0_180 = arith.constant 0 : index
    %c0_181 = arith.constant 0 : index
    %936 = vector.load %arg11[%c0_180, %c0_181] : memref<32x32xf32, #tpu.memory_space<vmem>>, vector<32x32xf32>
    %cst_182 = arith.constant dense<0.000000e+00> : vector<2x32xf32>
    %937 = tpu.matmul %910, %936, %cst_182 {dimension_numbers = #tpu.dot_dimension_numbers<[1], [0], [0], [1], [0, 0, 1, 1], [], []>} : vector<2x32xf32>, vector<32x32xf32>, vector<2x32xf32> -> vector<2x32xf32>
    %c0_183 = arith.constant 0 : index
    %c0_184 = arith.constant 0 : index
    %938 = vector.load %arg12[%c0_183, %c0_184] : memref<32x32xf32, #tpu.memory_space<vmem>>, vector<32x32xf32>
    %cst_185 = arith.constant dense<0.000000e+00> : vector<2x32xf32>
    %939 = tpu.matmul %935, %938, %cst_185 {dimension_numbers = #tpu.dot_dimension_numbers<[1], [0], [0], [1], [0, 0, 1, 1], [], []>} : vector<2x32xf32>, vector<32x32xf32>, vector<2x32xf32> -> vector<2x32xf32>
    %940 = arith.addf %937, %939 : vector<2x32xf32>
    %c0_186 = arith.constant 0 : index
    %c0_187 = arith.constant 0 : index
    %941 = vector.load %arg13[%c0_186, %c0_187] : memref<1x32xf32, #tpu.memory_space<vmem>>, vector<1x32xf32>
    %942 = vector.broadcast %941 : vector<1x32xf32> to vector<2x32xf32>
    %943 = arith.addf %940, %942 : vector<2x32xf32>
    %944 = vector.extract_strided_slice %943 {offsets = [0, 0], sizes = [2, 16], strides = [1, 1]} : vector<2x32xf32> to vector<2x16xf32>
    %945 = vector.extract_strided_slice %943 {offsets = [0, 16], sizes = [2, 16], strides = [1, 1]} : vector<2x32xf32> to vector<2x16xf32>
    %cst_188 = arith.constant 0.000000e+00 : f32
    %946 = vector.broadcast %cst_188 : f32 to vector<2x16xf32>
    %947 = arith.maximumf %945, %946 : vector<2x16xf32>
    %948 = vector.broadcast %cst_188 : f32 to vector<2x16xf32>
    %949 = arith.subf %945, %948 : vector<2x16xf32>
    %950 = arith.cmpf one, %949, %949 : vector<2x16xf32>
    %951 = vector.broadcast %cst_188 : f32 to vector<2x16xf32>
    %952 = arith.addf %945, %951 : vector<2x16xf32>
    %953 = math.absf %949 : vector<2x16xf32>
    %cst_189 = arith.constant 0.000000e+00 : f32
    %954 = vector.broadcast %cst_189 : f32 to vector<2x16xf32>
    %955 = arith.subf %954, %953 : vector<2x16xf32>
    %956 = math.exp %955 : vector<2x16xf32>
    %957 = math.log1p %956 : vector<2x16xf32>
    %958 = arith.addf %947, %957 : vector<2x16xf32>
    %959 = arith.select %950, %952, %958 : vector<2x16xi1>, vector<2x16xf32>
    %c0_190 = arith.constant 0 : index
    %c0_191 = arith.constant 0 : index
    %960 = vector.load %arg2[%c0_190, %c0_191] : memref<2x16xf32, #tpu.memory_space<vmem>>, vector<2x16xf32>
    %961 = arith.mulf %959, %960 : vector<2x16xf32>
    %962 = arith.addf %944, %961 : vector<2x16xf32>
    %c0_192 = arith.constant 0 : index
    %c0_193 = arith.constant 0 : index
    %963 = vector.load %arg14[%c0_192, %c0_193] : memref<16x16xf32, #tpu.memory_space<vmem>>, vector<16x16xf32>
    %cst_194 = arith.constant dense<0.000000e+00> : vector<2x16xf32>
    %964 = tpu.matmul %962, %963, %cst_194 {dimension_numbers = #tpu.dot_dimension_numbers<[1], [0], [0], [1], [0, 0, 1, 1], [], []>} : vector<2x16xf32>, vector<16x16xf32>, vector<2x16xf32> -> vector<2x16xf32>
    %c0_195 = arith.constant 0 : index
    %c0_196 = arith.constant 0 : index
    %965 = vector.load %arg1[%c0_195, %c0_196] : memref<2x1xf32, #tpu.memory_space<vmem>>, vector<2x1xf32>
    %c0_197 = arith.constant 0 : index
    %c0_198 = arith.constant 0 : index
    %966 = vector.load %arg15[%c0_197, %c0_198] : memref<1x16xf32, #tpu.memory_space<vmem>>, vector<1x16xf32>
    %967 = vector.broadcast %965 : vector<2x1xf32> to vector<2x16xf32>
    %968 = vector.broadcast %966 : vector<1x16xf32> to vector<2x16xf32>
    %969 = arith.mulf %967, %968 : vector<2x16xf32>
    %970 = arith.addf %964, %969 : vector<2x16xf32>
    %c0_199 = arith.constant 0 : index
    %c0_200 = arith.constant 0 : index
    %971 = vector.load %arg16[%c0_199, %c0_200] : memref<1x16xf32, #tpu.memory_space<vmem>>, vector<1x16xf32>
    %972 = vector.broadcast %971 : vector<1x16xf32> to vector<2x16xf32>
    %973 = arith.addf %970, %972 : vector<2x16xf32>
    %c0_201 = arith.constant 0 : index
    %c0_202 = arith.constant 0 : index
    %974 = vector.load %arg17[%c0_201, %c0_202] : memref<2x16xf32, #tpu.memory_space<vmem>>, vector<2x16xf32>
    tpu.vector_store %arg17[%c0_201, %c0_202], %944 {strides = array<i32>} : memref<2x16xf32, #tpu.memory_space<vmem>>, vector<2x16xf32>,
    %c0_203 = arith.constant 0 : index
    %c0_204 = arith.constant 0 : index
    %975 = vector.load %arg18[%c0_203, %c0_204] : memref<2x16xf32, #tpu.memory_space<vmem>>, vector<2x16xf32>
    tpu.vector_store %arg18[%c0_203, %c0_204], %959 {strides = array<i32>} : memref<2x16xf32, #tpu.memory_space<vmem>>, vector<2x16xf32>,
    %976 = math.tanh %973 : vector<2x16xf32>
    %c0_205 = arith.constant 0 : index
    %c0_206 = arith.constant 0 : index
    %977 = vector.load %arg19[%c0_205, %c0_206] : memref<2x16xf32, #tpu.memory_space<vmem>>, vector<2x16xf32>
    tpu.vector_store %arg19[%c0_205, %c0_206], %976 {strides = array<i32>} : memref<2x16xf32, #tpu.memory_space<vmem>>, vector<2x16xf32>,
    return
  }
}

module attributes {stable_mosaic.version = 11 : i64} {
  func.func @decoder_kernel(%arg0: memref<16x13xf32, #tpu.memory_space<vmem>>, %arg1: memref<2x16xf32, #tpu.memory_space<vmem>>, %arg2: memref<16x64xf32, #tpu.memory_space<vmem>>, %arg3: memref<1x64xf32, #tpu.memory_space<vmem>>, %arg4: memref<16x96xf32, #tpu.memory_space<vmem>>, %arg5: memref<32x96xf32, #tpu.memory_space<vmem>>, %arg6: memref<1x96xf32, #tpu.memory_space<vmem>>, %arg7: memref<1x96xf32, #tpu.memory_space<vmem>>, %arg8: memref<32x96xf32, #tpu.memory_space<vmem>>, %arg9: memref<32x96xf32, #tpu.memory_space<vmem>>, %arg10: memref<1x96xf32, #tpu.memory_space<vmem>>, %arg11: memref<1x96xf32, #tpu.memory_space<vmem>>, %arg12: memref<32x64xf32, #tpu.memory_space<vmem>>, %arg13: memref<1x64xf32, #tpu.memory_space<vmem>>, %arg14: memref<13x96xf32, #tpu.memory_space<vmem>>, %arg15: memref<32x96xf32, #tpu.memory_space<vmem>>, %arg16: memref<32x96xf32, #tpu.memory_space<vmem>>, %arg17: memref<1x96xf32, #tpu.memory_space<vmem>>, %arg18: memref<1x96xf32, #tpu.memory_space<vmem>>, %arg19: memref<32x96xf32, #tpu.memory_space<vmem>>, %arg20: memref<32x96xf32, #tpu.memory_space<vmem>>, %arg21: memref<1x96xf32, #tpu.memory_space<vmem>>, %arg22: memref<1x96xf32, #tpu.memory_space<vmem>>, %arg23: memref<32x13xf32, #tpu.memory_space<vmem>>, %arg24: memref<1x13xf32, #tpu.memory_space<vmem>>, %arg25: memref<16x13xf32, #tpu.memory_space<vmem>>, %arg26: memref<4x32xf32, #tpu.memory_space<vmem>>, %arg27: memref<16x32xf32, #tpu.memory_space<vmem>>, %arg28: memref<16x32xf32, #tpu.memory_space<vmem>>) attributes {dimension_semantics = [], scalar_prefetch = 0 : i64, scratch_operands = 3 : i64, tpu.core_type = #tpu.core_type<tc>} {
    %c0 = arith.constant 0 : index
    %c0_0 = arith.constant 0 : index
    %0 = vector.load %arg1[%c0, %c0_0] : memref<2x16xf32, #tpu.memory_space<vmem>>, vector<2x16xf32>
    %c0_1 = arith.constant 0 : index
    %c0_2 = arith.constant 0 : index
    %1 = vector.load %arg2[%c0_1, %c0_2] : memref<16x64xf32, #tpu.memory_space<vmem>>, vector<16x64xf32>
    %cst = arith.constant dense<0.000000e+00> : vector<2x64xf32>
    %2 = tpu.matmul %0, %1, %cst {dimension_numbers = #tpu.dot_dimension_numbers<[1], [0], [0], [1], [0, 0, 1, 1], [], []>} : vector<2x16xf32>, vector<16x64xf32>, vector<2x64xf32> -> vector<2x64xf32>
    %c0_3 = arith.constant 0 : index
    %c0_4 = arith.constant 0 : index
    %3 = vector.load %arg3[%c0_3, %c0_4] : memref<1x64xf32, #tpu.memory_space<vmem>>, vector<1x64xf32>
    %4 = vector.broadcast %3 : vector<1x64xf32> to vector<2x64xf32>
    %5 = arith.addf %2, %4 : vector<2x64xf32>
    %6 = math.tanh %5 : vector<2x64xf32>
    %c0_5 = arith.constant 0 : index
    %c0_6 = arith.constant 0 : index
    %7 = vector.load %arg5[%c0_5, %c0_6] : memref<32x96xf32, #tpu.memory_space<vmem>>, vector<32x96xf32>
    %c0_7 = arith.constant 0 : index
    %c0_8 = arith.constant 0 : index
    %8 = vector.load %arg7[%c0_7, %c0_8] : memref<1x96xf32, #tpu.memory_space<vmem>>, vector<1x96xf32>
    %c0_9 = arith.constant 0 : index
    %c0_10 = arith.constant 0 : index
    %9 = vector.load %arg4[%c0_9, %c0_10] : memref<16x96xf32, #tpu.memory_space<vmem>>, vector<16x96xf32>
    %cst_11 = arith.constant dense<0.000000e+00> : vector<2x96xf32>
    %10 = tpu.matmul %0, %9, %cst_11 {dimension_numbers = #tpu.dot_dimension_numbers<[1], [0], [0], [1], [0, 0, 1, 1], [], []>} : vector<2x16xf32>, vector<16x96xf32>, vector<2x96xf32> -> vector<2x96xf32>
    %c0_12 = arith.constant 0 : index
    %c0_13 = arith.constant 0 : index
    %11 = vector.load %arg6[%c0_12, %c0_13] : memref<1x96xf32, #tpu.memory_space<vmem>>, vector<1x96xf32>
    %12 = vector.broadcast %11 : vector<1x96xf32> to vector<2x96xf32>
    %13 = arith.addf %10, %12 : vector<2x96xf32>
    %14 = vector.extract_strided_slice %6 {offsets = [0, 0], sizes = [2, 32], strides = [1, 1]} : vector<2x64xf32> to vector<2x32xf32>
    %cst_14 = arith.constant dense<0.000000e+00> : vector<2x96xf32>
    %15 = tpu.matmul %14, %7, %cst_14 {dimension_numbers = #tpu.dot_dimension_numbers<[1], [0], [0], [1], [0, 0, 1, 1], [], []>} : vector<2x32xf32>, vector<32x96xf32>, vector<2x96xf32> -> vector<2x96xf32>
    %16 = vector.broadcast %8 : vector<1x96xf32> to vector<2x96xf32>
    %17 = arith.addf %15, %16 : vector<2x96xf32>
    %18 = vector.extract_strided_slice %13 {offsets = [0, 0], sizes = [2, 32], strides = [1, 1]} : vector<2x96xf32> to vector<2x32xf32>
    %19 = vector.extract_strided_slice %17 {offsets = [0, 0], sizes = [2, 32], strides = [1, 1]} : vector<2x96xf32> to vector<2x32xf32>
    %20 = arith.addf %18, %19 : vector<2x32xf32>
    %21 = arith.negf %20 : vector<2x32xf32>
    %22 = math.exp %21 : vector<2x32xf32>
    %cst_15 = arith.constant 1.000000e+00 : f32
    %23 = vector.broadcast %cst_15 : f32 to vector<2x32xf32>
    %24 = arith.addf %23, %22 : vector<2x32xf32>
    %25 = arith.divf %23, %24 : vector<2x32xf32>
    %26 = vector.extract_strided_slice %13 {offsets = [0, 32], sizes = [2, 32], strides = [1, 1]} : vector<2x96xf32> to vector<2x32xf32>
    %27 = vector.extract_strided_slice %17 {offsets = [0, 32], sizes = [2, 32], strides = [1, 1]} : vector<2x96xf32> to vector<2x32xf32>
    %28 = arith.addf %26, %27 : vector<2x32xf32>
    %29 = arith.negf %28 : vector<2x32xf32>
    %30 = math.exp %29 : vector<2x32xf32>
    %cst_16 = arith.constant 1.000000e+00 : f32
    %31 = vector.broadcast %cst_16 : f32 to vector<2x32xf32>
    %32 = arith.addf %31, %30 : vector<2x32xf32>
    %33 = arith.divf %31, %32 : vector<2x32xf32>
    %34 = vector.extract_strided_slice %13 {offsets = [0, 64], sizes = [2, 32], strides = [1, 1]} : vector<2x96xf32> to vector<2x32xf32>
    %35 = vector.extract_strided_slice %17 {offsets = [0, 64], sizes = [2, 32], strides = [1, 1]} : vector<2x96xf32> to vector<2x32xf32>
    %36 = arith.mulf %25, %35 : vector<2x32xf32>
    %37 = arith.addf %34, %36 : vector<2x32xf32>
    %38 = math.tanh %37 : vector<2x32xf32>
    %cst_17 = arith.constant 1.000000e+00 : f32
    %39 = vector.broadcast %cst_17 : f32 to vector<2x32xf32>
    %40 = arith.subf %39, %33 : vector<2x32xf32>
    %41 = arith.mulf %40, %38 : vector<2x32xf32>
    %42 = arith.mulf %33, %14 : vector<2x32xf32>
    %43 = arith.addf %41, %42 : vector<2x32xf32>
    %cst_18 = arith.constant dense<0.000000e+00> : vector<2x96xf32>
    %44 = tpu.matmul %43, %7, %cst_18 {dimension_numbers = #tpu.dot_dimension_numbers<[1], [0], [0], [1], [0, 0, 1, 1], [], []>} : vector<2x32xf32>, vector<32x96xf32>, vector<2x96xf32> -> vector<2x96xf32>
    %45 = vector.broadcast %8 : vector<1x96xf32> to vector<2x96xf32>
    %46 = arith.addf %44, %45 : vector<2x96xf32>
    %47 = vector.extract_strided_slice %13 {offsets = [0, 0], sizes = [2, 32], strides = [1, 1]} : vector<2x96xf32> to vector<2x32xf32>
    %48 = vector.extract_strided_slice %46 {offsets = [0, 0], sizes = [2, 32], strides = [1, 1]} : vector<2x96xf32> to vector<2x32xf32>
    %49 = arith.addf %47, %48 : vector<2x32xf32>
    %50 = arith.negf %49 : vector<2x32xf32>
    %51 = math.exp %50 : vector<2x32xf32>
    %cst_19 = arith.constant 1.000000e+00 : f32
    %52 = vector.broadcast %cst_19 : f32 to vector<2x32xf32>
    %53 = arith.addf %52, %51 : vector<2x32xf32>
    %54 = arith.divf %52, %53 : vector<2x32xf32>
    %55 = vector.extract_strided_slice %13 {offsets = [0, 32], sizes = [2, 32], strides = [1, 1]} : vector<2x96xf32> to vector<2x32xf32>
    %56 = vector.extract_strided_slice %46 {offsets = [0, 32], sizes = [2, 32], strides = [1, 1]} : vector<2x96xf32> to vector<2x32xf32>
    %57 = arith.addf %55, %56 : vector<2x32xf32>
    %58 = arith.negf %57 : vector<2x32xf32>
    %59 = math.exp %58 : vector<2x32xf32>
    %cst_20 = arith.constant 1.000000e+00 : f32
    %60 = vector.broadcast %cst_20 : f32 to vector<2x32xf32>
    %61 = arith.addf %60, %59 : vector<2x32xf32>
    %62 = arith.divf %60, %61 : vector<2x32xf32>
    %63 = vector.extract_strided_slice %13 {offsets = [0, 64], sizes = [2, 32], strides = [1, 1]} : vector<2x96xf32> to vector<2x32xf32>
    %64 = vector.extract_strided_slice %46 {offsets = [0, 64], sizes = [2, 32], strides = [1, 1]} : vector<2x96xf32> to vector<2x32xf32>
    %65 = arith.mulf %54, %64 : vector<2x32xf32>
    %66 = arith.addf %63, %65 : vector<2x32xf32>
    %67 = math.tanh %66 : vector<2x32xf32>
    %cst_21 = arith.constant 1.000000e+00 : f32
    %68 = vector.broadcast %cst_21 : f32 to vector<2x32xf32>
    %69 = arith.subf %68, %62 : vector<2x32xf32>
    %70 = arith.mulf %69, %67 : vector<2x32xf32>
    %71 = arith.mulf %62, %43 : vector<2x32xf32>
    %72 = arith.addf %70, %71 : vector<2x32xf32>
    %c0_22 = arith.constant 0 : index
    %c0_23 = arith.constant 0 : index
    %73 = vector.load %arg8[%c0_22, %c0_23] : memref<32x96xf32, #tpu.memory_space<vmem>>, vector<32x96xf32>
    %c0_24 = arith.constant 0 : index
    %c0_25 = arith.constant 0 : index
    %74 = vector.load %arg9[%c0_24, %c0_25] : memref<32x96xf32, #tpu.memory_space<vmem>>, vector<32x96xf32>
    %c0_26 = arith.constant 0 : index
    %c0_27 = arith.constant 0 : index
    %75 = vector.load %arg10[%c0_26, %c0_27] : memref<1x96xf32, #tpu.memory_space<vmem>>, vector<1x96xf32>
    %c0_28 = arith.constant 0 : index
    %c0_29 = arith.constant 0 : index
    %76 = vector.load %arg11[%c0_28, %c0_29] : memref<1x96xf32, #tpu.memory_space<vmem>>, vector<1x96xf32>
    %77 = vector.extract_strided_slice %6 {offsets = [0, 32], sizes = [2, 32], strides = [1, 1]} : vector<2x64xf32> to vector<2x32xf32>
    %cst_30 = arith.constant dense<0.000000e+00> : vector<2x96xf32>
    %78 = tpu.matmul %43, %73, %cst_30 {dimension_numbers = #tpu.dot_dimension_numbers<[1], [0], [0], [1], [0, 0, 1, 1], [], []>} : vector<2x32xf32>, vector<32x96xf32>, vector<2x96xf32> -> vector<2x96xf32>
    %79 = vector.broadcast %75 : vector<1x96xf32> to vector<2x96xf32>
    %80 = arith.addf %78, %79 : vector<2x96xf32>
    %cst_31 = arith.constant dense<0.000000e+00> : vector<2x96xf32>
    %81 = tpu.matmul %77, %74, %cst_31 {dimension_numbers = #tpu.dot_dimension_numbers<[1], [0], [0], [1], [0, 0, 1, 1], [], []>} : vector<2x32xf32>, vector<32x96xf32>, vector<2x96xf32> -> vector<2x96xf32>
    %82 = vector.broadcast %76 : vector<1x96xf32> to vector<2x96xf32>
    %83 = arith.addf %81, %82 : vector<2x96xf32>
    %84 = vector.extract_strided_slice %80 {offsets = [0, 0], sizes = [2, 32], strides = [1, 1]} : vector<2x96xf32> to vector<2x32xf32>
    %85 = vector.extract_strided_slice %83 {offsets = [0, 0], sizes = [2, 32], strides = [1, 1]} : vector<2x96xf32> to vector<2x32xf32>
    %86 = arith.addf %84, %85 : vector<2x32xf32>
    %87 = arith.negf %86 : vector<2x32xf32>
    %88 = math.exp %87 : vector<2x32xf32>
    %cst_32 = arith.constant 1.000000e+00 : f32
    %89 = vector.broadcast %cst_32 : f32 to vector<2x32xf32>
    %90 = arith.addf %89, %88 : vector<2x32xf32>
    %91 = arith.divf %89, %90 : vector<2x32xf32>
    %92 = vector.extract_strided_slice %80 {offsets = [0, 32], sizes = [2, 32], strides = [1, 1]} : vector<2x96xf32> to vector<2x32xf32>
    %93 = vector.extract_strided_slice %83 {offsets = [0, 32], sizes = [2, 32], strides = [1, 1]} : vector<2x96xf32> to vector<2x32xf32>
    %94 = arith.addf %92, %93 : vector<2x32xf32>
    %95 = arith.negf %94 : vector<2x32xf32>
    %96 = math.exp %95 : vector<2x32xf32>
    %cst_33 = arith.constant 1.000000e+00 : f32
    %97 = vector.broadcast %cst_33 : f32 to vector<2x32xf32>
    %98 = arith.addf %97, %96 : vector<2x32xf32>
    %99 = arith.divf %97, %98 : vector<2x32xf32>
    %100 = vector.extract_strided_slice %80 {offsets = [0, 64], sizes = [2, 32], strides = [1, 1]} : vector<2x96xf32> to vector<2x32xf32>
    %101 = vector.extract_strided_slice %83 {offsets = [0, 64], sizes = [2, 32], strides = [1, 1]} : vector<2x96xf32> to vector<2x32xf32>
    %102 = arith.mulf %91, %101 : vector<2x32xf32>
    %103 = arith.addf %100, %102 : vector<2x32xf32>
    %104 = math.tanh %103 : vector<2x32xf32>
    %cst_34 = arith.constant 1.000000e+00 : f32
    %105 = vector.broadcast %cst_34 : f32 to vector<2x32xf32>
    %106 = arith.subf %105, %99 : vector<2x32xf32>
    %107 = arith.mulf %106, %104 : vector<2x32xf32>
    %108 = arith.mulf %99, %77 : vector<2x32xf32>
    %109 = arith.addf %107, %108 : vector<2x32xf32>
    %c0_35 = arith.constant 0 : index
    %c0_36 = arith.constant 0 : index
    %110 = vector.load %arg26[%c0_35, %c0_36] : memref<4x32xf32, #tpu.memory_space<vmem>>, vector<2x32xf32>
    tpu.vector_store %arg26[%c0_35, %c0_36], %109 {strides = array<i32>} : memref<4x32xf32, #tpu.memory_space<vmem>>, vector<2x32xf32>,
    %cst_37 = arith.constant dense<0.000000e+00> : vector<2x96xf32>
    %111 = tpu.matmul %72, %73, %cst_37 {dimension_numbers = #tpu.dot_dimension_numbers<[1], [0], [0], [1], [0, 0, 1, 1], [], []>} : vector<2x32xf32>, vector<32x96xf32>, vector<2x96xf32> -> vector<2x96xf32>
    %112 = vector.broadcast %75 : vector<1x96xf32> to vector<2x96xf32>
    %113 = arith.addf %111, %112 : vector<2x96xf32>
    %cst_38 = arith.constant dense<0.000000e+00> : vector<2x96xf32>
    %114 = tpu.matmul %109, %74, %cst_38 {dimension_numbers = #tpu.dot_dimension_numbers<[1], [0], [0], [1], [0, 0, 1, 1], [], []>} : vector<2x32xf32>, vector<32x96xf32>, vector<2x96xf32> -> vector<2x96xf32>
    %115 = vector.broadcast %76 : vector<1x96xf32> to vector<2x96xf32>
    %116 = arith.addf %114, %115 : vector<2x96xf32>
    %117 = vector.extract_strided_slice %113 {offsets = [0, 0], sizes = [2, 32], strides = [1, 1]} : vector<2x96xf32> to vector<2x32xf32>
    %118 = vector.extract_strided_slice %116 {offsets = [0, 0], sizes = [2, 32], strides = [1, 1]} : vector<2x96xf32> to vector<2x32xf32>
    %119 = arith.addf %117, %118 : vector<2x32xf32>
    %120 = arith.negf %119 : vector<2x32xf32>
    %121 = math.exp %120 : vector<2x32xf32>
    %cst_39 = arith.constant 1.000000e+00 : f32
    %122 = vector.broadcast %cst_39 : f32 to vector<2x32xf32>
    %123 = arith.addf %122, %121 : vector<2x32xf32>
    %124 = arith.divf %122, %123 : vector<2x32xf32>
    %125 = vector.extract_strided_slice %113 {offsets = [0, 32], sizes = [2, 32], strides = [1, 1]} : vector<2x96xf32> to vector<2x32xf32>
    %126 = vector.extract_strided_slice %116 {offsets = [0, 32], sizes = [2, 32], strides = [1, 1]} : vector<2x96xf32> to vector<2x32xf32>
    %127 = arith.addf %125, %126 : vector<2x32xf32>
    %128 = arith.negf %127 : vector<2x32xf32>
    %129 = math.exp %128 : vector<2x32xf32>
    %cst_40 = arith.constant 1.000000e+00 : f32
    %130 = vector.broadcast %cst_40 : f32 to vector<2x32xf32>
    %131 = arith.addf %130, %129 : vector<2x32xf32>
    %132 = arith.divf %130, %131 : vector<2x32xf32>
    %133 = vector.extract_strided_slice %113 {offsets = [0, 64], sizes = [2, 32], strides = [1, 1]} : vector<2x96xf32> to vector<2x32xf32>
    %134 = vector.extract_strided_slice %116 {offsets = [0, 64], sizes = [2, 32], strides = [1, 1]} : vector<2x96xf32> to vector<2x32xf32>
    %135 = arith.mulf %124, %134 : vector<2x32xf32>
    %136 = arith.addf %133, %135 : vector<2x32xf32>
    %137 = math.tanh %136 : vector<2x32xf32>
    %cst_41 = arith.constant 1.000000e+00 : f32
    %138 = vector.broadcast %cst_41 : f32 to vector<2x32xf32>
    %139 = arith.subf %138, %132 : vector<2x32xf32>
    %140 = arith.mulf %139, %137 : vector<2x32xf32>
    %141 = arith.mulf %132, %109 : vector<2x32xf32>
    %142 = arith.addf %140, %141 : vector<2x32xf32>
    %c2 = arith.constant 2 : index
    %c0_42 = arith.constant 0 : index
    %143 = vector.load %arg26[%c2, %c0_42] : memref<4x32xf32, #tpu.memory_space<vmem>>, vector<2x32xf32>
    tpu.vector_store %arg26[%c2, %c0_42], %142 {strides = array<i32>} : memref<4x32xf32, #tpu.memory_space<vmem>>, vector<2x32xf32>,
    %c0_43 = arith.constant 0 : index
    %c0_44 = arith.constant 0 : index
    %144 = vector.load %arg26[%c0_43, %c0_44] : memref<4x32xf32, #tpu.memory_space<vmem>>, vector<4x32xf32>
    %c0_45 = arith.constant 0 : index
    %c0_46 = arith.constant 0 : index
    %145 = vector.load %arg12[%c0_45, %c0_46] : memref<32x64xf32, #tpu.memory_space<vmem>>, vector<32x64xf32>
    %cst_47 = arith.constant dense<0.000000e+00> : vector<4x64xf32>
    %146 = tpu.matmul %144, %145, %cst_47 {dimension_numbers = #tpu.dot_dimension_numbers<[1], [0], [0], [1], [0, 0, 1, 1], [], []>} : vector<4x32xf32>, vector<32x64xf32>, vector<4x64xf32> -> vector<4x64xf32>
    %c0_48 = arith.constant 0 : index
    %c0_49 = arith.constant 0 : index
    %147 = vector.load %arg13[%c0_48, %c0_49] : memref<1x64xf32, #tpu.memory_space<vmem>>, vector<1x64xf32>
    %148 = vector.broadcast %147 : vector<1x64xf32> to vector<4x64xf32>
    %149 = arith.addf %146, %148 : vector<4x64xf32>
    %150 = math.tanh %149 : vector<4x64xf32>
    %c0_50 = arith.constant 0 : index
    %c0_51 = arith.constant 0 : index
    %151 = vector.load %arg0[%c0_50, %c0_51] : memref<16x13xf32, #tpu.memory_space<vmem>>, vector<16x13xf32>
    %c0_52 = arith.constant 0 : index
    %c0_53 = arith.constant 0 : index
    %152 = vector.load %arg14[%c0_52, %c0_53] : memref<13x96xf32, #tpu.memory_space<vmem>>, vector<13x96xf32>
    %cst_54 = arith.constant dense<0.000000e+00> : vector<16x96xf32>
    %153 = tpu.matmul %151, %152, %cst_54 {dimension_numbers = #tpu.dot_dimension_numbers<[1], [0], [0], [1], [0, 0, 1, 1], [], []>} : vector<16x13xf32>, vector<13x96xf32>, vector<16x96xf32> -> vector<16x96xf32>
    %c0_55 = arith.constant 0 : index
    %c0_56 = arith.constant 0 : index
    %154 = vector.load %arg17[%c0_55, %c0_56] : memref<1x96xf32, #tpu.memory_space<vmem>>, vector<1x96xf32>
    %155 = vector.broadcast %154 : vector<1x96xf32> to vector<16x96xf32>
    %156 = arith.addf %153, %155 : vector<16x96xf32>
    %c0_57 = arith.constant 0 : index
    %c0_58 = arith.constant 0 : index
    %157 = vector.load %arg15[%c0_57, %c0_58] : memref<32x96xf32, #tpu.memory_space<vmem>>, vector<32x96xf32>
    %cst_59 = arith.constant dense<0.000000e+00> : vector<4x96xf32>
    %158 = tpu.matmul %144, %157, %cst_59 {dimension_numbers = #tpu.dot_dimension_numbers<[1], [0], [0], [1], [0, 0, 1, 1], [], []>} : vector<4x32xf32>, vector<32x96xf32>, vector<4x96xf32> -> vector<4x96xf32>
    %c0_60 = arith.constant 0 : index
    %c0_61 = arith.constant 0 : index
    %159 = vector.load %arg16[%c0_60, %c0_61] : memref<32x96xf32, #tpu.memory_space<vmem>>, vector<32x96xf32>
    %c0_62 = arith.constant 0 : index
    %c0_63 = arith.constant 0 : index
    %160 = vector.load %arg18[%c0_62, %c0_63] : memref<1x96xf32, #tpu.memory_space<vmem>>, vector<1x96xf32>
    %161 = vector.extract_strided_slice %150 {offsets = [0, 0], sizes = [4, 32], strides = [1, 1]} : vector<4x64xf32> to vector<4x32xf32>
    %162 = vector.extract_strided_slice %156 {offsets = [0, 0], sizes = [4, 96], strides = [1, 1]} : vector<16x96xf32> to vector<4x96xf32>
    %163 = arith.addf %162, %158 : vector<4x96xf32>
    %cst_64 = arith.constant dense<0.000000e+00> : vector<4x96xf32>
    %164 = tpu.matmul %161, %159, %cst_64 {dimension_numbers = #tpu.dot_dimension_numbers<[1], [0], [0], [1], [0, 0, 1, 1], [], []>} : vector<4x32xf32>, vector<32x96xf32>, vector<4x96xf32> -> vector<4x96xf32>
    %165 = vector.broadcast %160 : vector<1x96xf32> to vector<4x96xf32>
    %166 = arith.addf %164, %165 : vector<4x96xf32>
    %167 = vector.extract_strided_slice %163 {offsets = [0, 0], sizes = [4, 32], strides = [1, 1]} : vector<4x96xf32> to vector<4x32xf32>
    %168 = vector.extract_strided_slice %166 {offsets = [0, 0], sizes = [4, 32], strides = [1, 1]} : vector<4x96xf32> to vector<4x32xf32>
    %169 = arith.addf %167, %168 : vector<4x32xf32>
    %170 = arith.negf %169 : vector<4x32xf32>
    %171 = math.exp %170 : vector<4x32xf32>
    %cst_65 = arith.constant 1.000000e+00 : f32
    %172 = vector.broadcast %cst_65 : f32 to vector<4x32xf32>
    %173 = arith.addf %172, %171 : vector<4x32xf32>
    %174 = arith.divf %172, %173 : vector<4x32xf32>
    %175 = vector.extract_strided_slice %163 {offsets = [0, 32], sizes = [4, 32], strides = [1, 1]} : vector<4x96xf32> to vector<4x32xf32>
    %176 = vector.extract_strided_slice %166 {offsets = [0, 32], sizes = [4, 32], strides = [1, 1]} : vector<4x96xf32> to vector<4x32xf32>
    %177 = arith.addf %175, %176 : vector<4x32xf32>
    %178 = arith.negf %177 : vector<4x32xf32>
    %179 = math.exp %178 : vector<4x32xf32>
    %cst_66 = arith.constant 1.000000e+00 : f32
    %180 = vector.broadcast %cst_66 : f32 to vector<4x32xf32>
    %181 = arith.addf %180, %179 : vector<4x32xf32>
    %182 = arith.divf %180, %181 : vector<4x32xf32>
    %183 = vector.extract_strided_slice %163 {offsets = [0, 64], sizes = [4, 32], strides = [1, 1]} : vector<4x96xf32> to vector<4x32xf32>
    %184 = vector.extract_strided_slice %166 {offsets = [0, 64], sizes = [4, 32], strides = [1, 1]} : vector<4x96xf32> to vector<4x32xf32>
    %185 = arith.mulf %174, %184 : vector<4x32xf32>
    %186 = arith.addf %183, %185 : vector<4x32xf32>
    %187 = math.tanh %186 : vector<4x32xf32>
    %cst_67 = arith.constant 1.000000e+00 : f32
    %188 = vector.broadcast %cst_67 : f32 to vector<4x32xf32>
    %189 = arith.subf %188, %182 : vector<4x32xf32>
    %190 = arith.mulf %189, %187 : vector<4x32xf32>
    %191 = arith.mulf %182, %161 : vector<4x32xf32>
    %192 = arith.addf %190, %191 : vector<4x32xf32>
    %c0_68 = arith.constant 0 : index
    %c0_69 = arith.constant 0 : index
    %193 = vector.load %arg27[%c0_68, %c0_69] : memref<16x32xf32, #tpu.memory_space<vmem>>, vector<4x32xf32>
    tpu.vector_store %arg27[%c0_68, %c0_69], %192 {strides = array<i32>} : memref<16x32xf32, #tpu.memory_space<vmem>>, vector<4x32xf32>,
    %194 = vector.extract_strided_slice %156 {offsets = [4, 0], sizes = [4, 96], strides = [1, 1]} : vector<16x96xf32> to vector<4x96xf32>
    %195 = arith.addf %194, %158 : vector<4x96xf32>
    %cst_70 = arith.constant dense<0.000000e+00> : vector<4x96xf32>
    %196 = tpu.matmul %192, %159, %cst_70 {dimension_numbers = #tpu.dot_dimension_numbers<[1], [0], [0], [1], [0, 0, 1, 1], [], []>} : vector<4x32xf32>, vector<32x96xf32>, vector<4x96xf32> -> vector<4x96xf32>
    %197 = vector.broadcast %160 : vector<1x96xf32> to vector<4x96xf32>
    %198 = arith.addf %196, %197 : vector<4x96xf32>
    %199 = vector.extract_strided_slice %195 {offsets = [0, 0], sizes = [4, 32], strides = [1, 1]} : vector<4x96xf32> to vector<4x32xf32>
    %200 = vector.extract_strided_slice %198 {offsets = [0, 0], sizes = [4, 32], strides = [1, 1]} : vector<4x96xf32> to vector<4x32xf32>
    %201 = arith.addf %199, %200 : vector<4x32xf32>
    %202 = arith.negf %201 : vector<4x32xf32>
    %203 = math.exp %202 : vector<4x32xf32>
    %cst_71 = arith.constant 1.000000e+00 : f32
    %204 = vector.broadcast %cst_71 : f32 to vector<4x32xf32>
    %205 = arith.addf %204, %203 : vector<4x32xf32>
    %206 = arith.divf %204, %205 : vector<4x32xf32>
    %207 = vector.extract_strided_slice %195 {offsets = [0, 32], sizes = [4, 32], strides = [1, 1]} : vector<4x96xf32> to vector<4x32xf32>
    %208 = vector.extract_strided_slice %198 {offsets = [0, 32], sizes = [4, 32], strides = [1, 1]} : vector<4x96xf32> to vector<4x32xf32>
    %209 = arith.addf %207, %208 : vector<4x32xf32>
    %210 = arith.negf %209 : vector<4x32xf32>
    %211 = math.exp %210 : vector<4x32xf32>
    %cst_72 = arith.constant 1.000000e+00 : f32
    %212 = vector.broadcast %cst_72 : f32 to vector<4x32xf32>
    %213 = arith.addf %212, %211 : vector<4x32xf32>
    %214 = arith.divf %212, %213 : vector<4x32xf32>
    %215 = vector.extract_strided_slice %195 {offsets = [0, 64], sizes = [4, 32], strides = [1, 1]} : vector<4x96xf32> to vector<4x32xf32>
    %216 = vector.extract_strided_slice %198 {offsets = [0, 64], sizes = [4, 32], strides = [1, 1]} : vector<4x96xf32> to vector<4x32xf32>
    %217 = arith.mulf %206, %216 : vector<4x32xf32>
    %218 = arith.addf %215, %217 : vector<4x32xf32>
    %219 = math.tanh %218 : vector<4x32xf32>
    %cst_73 = arith.constant 1.000000e+00 : f32
    %220 = vector.broadcast %cst_73 : f32 to vector<4x32xf32>
    %221 = arith.subf %220, %214 : vector<4x32xf32>
    %222 = arith.mulf %221, %219 : vector<4x32xf32>
    %223 = arith.mulf %214, %192 : vector<4x32xf32>
    %224 = arith.addf %222, %223 : vector<4x32xf32>
    %c4 = arith.constant 4 : index
    %c0_74 = arith.constant 0 : index
    %225 = vector.load %arg27[%c4, %c0_74] : memref<16x32xf32, #tpu.memory_space<vmem>>, vector<4x32xf32>
    tpu.vector_store %arg27[%c4, %c0_74], %224 {strides = array<i32>} : memref<16x32xf32, #tpu.memory_space<vmem>>, vector<4x32xf32>,
    %226 = vector.extract_strided_slice %156 {offsets = [8, 0], sizes = [4, 96], strides = [1, 1]} : vector<16x96xf32> to vector<4x96xf32>
    %227 = arith.addf %226, %158 : vector<4x96xf32>
    %cst_75 = arith.constant dense<0.000000e+00> : vector<4x96xf32>
    %228 = tpu.matmul %224, %159, %cst_75 {dimension_numbers = #tpu.dot_dimension_numbers<[1], [0], [0], [1], [0, 0, 1, 1], [], []>} : vector<4x32xf32>, vector<32x96xf32>, vector<4x96xf32> -> vector<4x96xf32>
    %229 = vector.broadcast %160 : vector<1x96xf32> to vector<4x96xf32>
    %230 = arith.addf %228, %229 : vector<4x96xf32>
    %231 = vector.extract_strided_slice %227 {offsets = [0, 0], sizes = [4, 32], strides = [1, 1]} : vector<4x96xf32> to vector<4x32xf32>
    %232 = vector.extract_strided_slice %230 {offsets = [0, 0], sizes = [4, 32], strides = [1, 1]} : vector<4x96xf32> to vector<4x32xf32>
    %233 = arith.addf %231, %232 : vector<4x32xf32>
    %234 = arith.negf %233 : vector<4x32xf32>
    %235 = math.exp %234 : vector<4x32xf32>
    %cst_76 = arith.constant 1.000000e+00 : f32
    %236 = vector.broadcast %cst_76 : f32 to vector<4x32xf32>
    %237 = arith.addf %236, %235 : vector<4x32xf32>
    %238 = arith.divf %236, %237 : vector<4x32xf32>
    %239 = vector.extract_strided_slice %227 {offsets = [0, 32], sizes = [4, 32], strides = [1, 1]} : vector<4x96xf32> to vector<4x32xf32>
    %240 = vector.extract_strided_slice %230 {offsets = [0, 32], sizes = [4, 32], strides = [1, 1]} : vector<4x96xf32> to vector<4x32xf32>
    %241 = arith.addf %239, %240 : vector<4x32xf32>
    %242 = arith.negf %241 : vector<4x32xf32>
    %243 = math.exp %242 : vector<4x32xf32>
    %cst_77 = arith.constant 1.000000e+00 : f32
    %244 = vector.broadcast %cst_77 : f32 to vector<4x32xf32>
    %245 = arith.addf %244, %243 : vector<4x32xf32>
    %246 = arith.divf %244, %245 : vector<4x32xf32>
    %247 = vector.extract_strided_slice %227 {offsets = [0, 64], sizes = [4, 32], strides = [1, 1]} : vector<4x96xf32> to vector<4x32xf32>
    %248 = vector.extract_strided_slice %230 {offsets = [0, 64], sizes = [4, 32], strides = [1, 1]} : vector<4x96xf32> to vector<4x32xf32>
    %249 = arith.mulf %238, %248 : vector<4x32xf32>
    %250 = arith.addf %247, %249 : vector<4x32xf32>
    %251 = math.tanh %250 : vector<4x32xf32>
    %cst_78 = arith.constant 1.000000e+00 : f32
    %252 = vector.broadcast %cst_78 : f32 to vector<4x32xf32>
    %253 = arith.subf %252, %246 : vector<4x32xf32>
    %254 = arith.mulf %253, %251 : vector<4x32xf32>
    %255 = arith.mulf %246, %224 : vector<4x32xf32>
    %256 = arith.addf %254, %255 : vector<4x32xf32>
    %c8 = arith.constant 8 : index
    %c0_79 = arith.constant 0 : index
    %257 = vector.load %arg27[%c8, %c0_79] : memref<16x32xf32, #tpu.memory_space<vmem>>, vector<4x32xf32>
    tpu.vector_store %arg27[%c8, %c0_79], %256 {strides = array<i32>} : memref<16x32xf32, #tpu.memory_space<vmem>>, vector<4x32xf32>,
    %258 = vector.extract_strided_slice %156 {offsets = [12, 0], sizes = [4, 96], strides = [1, 1]} : vector<16x96xf32> to vector<4x96xf32>
    %259 = arith.addf %258, %158 : vector<4x96xf32>
    %cst_80 = arith.constant dense<0.000000e+00> : vector<4x96xf32>
    %260 = tpu.matmul %256, %159, %cst_80 {dimension_numbers = #tpu.dot_dimension_numbers<[1], [0], [0], [1], [0, 0, 1, 1], [], []>} : vector<4x32xf32>, vector<32x96xf32>, vector<4x96xf32> -> vector<4x96xf32>
    %261 = vector.broadcast %160 : vector<1x96xf32> to vector<4x96xf32>
    %262 = arith.addf %260, %261 : vector<4x96xf32>
    %263 = vector.extract_strided_slice %259 {offsets = [0, 0], sizes = [4, 32], strides = [1, 1]} : vector<4x96xf32> to vector<4x32xf32>
    %264 = vector.extract_strided_slice %262 {offsets = [0, 0], sizes = [4, 32], strides = [1, 1]} : vector<4x96xf32> to vector<4x32xf32>
    %265 = arith.addf %263, %264 : vector<4x32xf32>
    %266 = arith.negf %265 : vector<4x32xf32>
    %267 = math.exp %266 : vector<4x32xf32>
    %cst_81 = arith.constant 1.000000e+00 : f32
    %268 = vector.broadcast %cst_81 : f32 to vector<4x32xf32>
    %269 = arith.addf %268, %267 : vector<4x32xf32>
    %270 = arith.divf %268, %269 : vector<4x32xf32>
    %271 = vector.extract_strided_slice %259 {offsets = [0, 32], sizes = [4, 32], strides = [1, 1]} : vector<4x96xf32> to vector<4x32xf32>
    %272 = vector.extract_strided_slice %262 {offsets = [0, 32], sizes = [4, 32], strides = [1, 1]} : vector<4x96xf32> to vector<4x32xf32>
    %273 = arith.addf %271, %272 : vector<4x32xf32>
    %274 = arith.negf %273 : vector<4x32xf32>
    %275 = math.exp %274 : vector<4x32xf32>
    %cst_82 = arith.constant 1.000000e+00 : f32
    %276 = vector.broadcast %cst_82 : f32 to vector<4x32xf32>
    %277 = arith.addf %276, %275 : vector<4x32xf32>
    %278 = arith.divf %276, %277 : vector<4x32xf32>
    %279 = vector.extract_strided_slice %259 {offsets = [0, 64], sizes = [4, 32], strides = [1, 1]} : vector<4x96xf32> to vector<4x32xf32>
    %280 = vector.extract_strided_slice %262 {offsets = [0, 64], sizes = [4, 32], strides = [1, 1]} : vector<4x96xf32> to vector<4x32xf32>
    %281 = arith.mulf %270, %280 : vector<4x32xf32>
    %282 = arith.addf %279, %281 : vector<4x32xf32>
    %283 = math.tanh %282 : vector<4x32xf32>
    %cst_83 = arith.constant 1.000000e+00 : f32
    %284 = vector.broadcast %cst_83 : f32 to vector<4x32xf32>
    %285 = arith.subf %284, %278 : vector<4x32xf32>
    %286 = arith.mulf %285, %283 : vector<4x32xf32>
    %287 = arith.mulf %278, %256 : vector<4x32xf32>
    %288 = arith.addf %286, %287 : vector<4x32xf32>
    %c12 = arith.constant 12 : index
    %c0_84 = arith.constant 0 : index
    %289 = vector.load %arg27[%c12, %c0_84] : memref<16x32xf32, #tpu.memory_space<vmem>>, vector<4x32xf32>
    tpu.vector_store %arg27[%c12, %c0_84], %288 {strides = array<i32>} : memref<16x32xf32, #tpu.memory_space<vmem>>, vector<4x32xf32>,
    %c0_85 = arith.constant 0 : index
    %c0_86 = arith.constant 0 : index
    %290 = vector.load %arg27[%c0_85, %c0_86] : memref<16x32xf32, #tpu.memory_space<vmem>>, vector<16x32xf32>
    %c0_87 = arith.constant 0 : index
    %c0_88 = arith.constant 0 : index
    %291 = vector.load %arg19[%c0_87, %c0_88] : memref<32x96xf32, #tpu.memory_space<vmem>>, vector<32x96xf32>
    %cst_89 = arith.constant dense<0.000000e+00> : vector<16x96xf32>
    %292 = tpu.matmul %290, %291, %cst_89 {dimension_numbers = #tpu.dot_dimension_numbers<[1], [0], [0], [1], [0, 0, 1, 1], [], []>} : vector<16x32xf32>, vector<32x96xf32>, vector<16x96xf32> -> vector<16x96xf32>
    %c0_90 = arith.constant 0 : index
    %c0_91 = arith.constant 0 : index
    %293 = vector.load %arg21[%c0_90, %c0_91] : memref<1x96xf32, #tpu.memory_space<vmem>>, vector<1x96xf32>
    %294 = vector.broadcast %293 : vector<1x96xf32> to vector<16x96xf32>
    %295 = arith.addf %292, %294 : vector<16x96xf32>
    %c0_92 = arith.constant 0 : index
    %c0_93 = arith.constant 0 : index
    %296 = vector.load %arg20[%c0_92, %c0_93] : memref<32x96xf32, #tpu.memory_space<vmem>>, vector<32x96xf32>
    %c0_94 = arith.constant 0 : index
    %c0_95 = arith.constant 0 : index
    %297 = vector.load %arg22[%c0_94, %c0_95] : memref<1x96xf32, #tpu.memory_space<vmem>>, vector<1x96xf32>
    %298 = vector.extract_strided_slice %150 {offsets = [0, 32], sizes = [4, 32], strides = [1, 1]} : vector<4x64xf32> to vector<4x32xf32>
    %cst_96 = arith.constant dense<0.000000e+00> : vector<4x96xf32>
    %299 = tpu.matmul %298, %296, %cst_96 {dimension_numbers = #tpu.dot_dimension_numbers<[1], [0], [0], [1], [0, 0, 1, 1], [], []>} : vector<4x32xf32>, vector<32x96xf32>, vector<4x96xf32> -> vector<4x96xf32>
    %300 = vector.broadcast %297 : vector<1x96xf32> to vector<4x96xf32>
    %301 = arith.addf %299, %300 : vector<4x96xf32>
    %302 = vector.extract_strided_slice %295 {offsets = [0, 0], sizes = [4, 96], strides = [1, 1]} : vector<16x96xf32> to vector<4x96xf32>
    %303 = vector.extract_strided_slice %302 {offsets = [0, 0], sizes = [4, 32], strides = [1, 1]} : vector<4x96xf32> to vector<4x32xf32>
    %304 = vector.extract_strided_slice %301 {offsets = [0, 0], sizes = [4, 32], strides = [1, 1]} : vector<4x96xf32> to vector<4x32xf32>
    %305 = arith.addf %303, %304 : vector<4x32xf32>
    %306 = arith.negf %305 : vector<4x32xf32>
    %307 = math.exp %306 : vector<4x32xf32>
    %cst_97 = arith.constant 1.000000e+00 : f32
    %308 = vector.broadcast %cst_97 : f32 to vector<4x32xf32>
    %309 = arith.addf %308, %307 : vector<4x32xf32>
    %310 = arith.divf %308, %309 : vector<4x32xf32>
    %311 = vector.extract_strided_slice %302 {offsets = [0, 32], sizes = [4, 32], strides = [1, 1]} : vector<4x96xf32> to vector<4x32xf32>
    %312 = vector.extract_strided_slice %301 {offsets = [0, 32], sizes = [4, 32], strides = [1, 1]} : vector<4x96xf32> to vector<4x32xf32>
    %313 = arith.addf %311, %312 : vector<4x32xf32>
    %314 = arith.negf %313 : vector<4x32xf32>
    %315 = math.exp %314 : vector<4x32xf32>
    %cst_98 = arith.constant 1.000000e+00 : f32
    %316 = vector.broadcast %cst_98 : f32 to vector<4x32xf32>
    %317 = arith.addf %316, %315 : vector<4x32xf32>
    %318 = arith.divf %316, %317 : vector<4x32xf32>
    %319 = vector.extract_strided_slice %302 {offsets = [0, 64], sizes = [4, 32], strides = [1, 1]} : vector<4x96xf32> to vector<4x32xf32>
    %320 = vector.extract_strided_slice %301 {offsets = [0, 64], sizes = [4, 32], strides = [1, 1]} : vector<4x96xf32> to vector<4x32xf32>
    %321 = arith.mulf %310, %320 : vector<4x32xf32>
    %322 = arith.addf %319, %321 : vector<4x32xf32>
    %323 = math.tanh %322 : vector<4x32xf32>
    %cst_99 = arith.constant 1.000000e+00 : f32
    %324 = vector.broadcast %cst_99 : f32 to vector<4x32xf32>
    %325 = arith.subf %324, %318 : vector<4x32xf32>
    %326 = arith.mulf %325, %323 : vector<4x32xf32>
    %327 = arith.mulf %318, %298 : vector<4x32xf32>
    %328 = arith.addf %326, %327 : vector<4x32xf32>
    %c0_100 = arith.constant 0 : index
    %c0_101 = arith.constant 0 : index
    %329 = vector.load %arg28[%c0_100, %c0_101] : memref<16x32xf32, #tpu.memory_space<vmem>>, vector<4x32xf32>
    tpu.vector_store %arg28[%c0_100, %c0_101], %328 {strides = array<i32>} : memref<16x32xf32, #tpu.memory_space<vmem>>, vector<4x32xf32>,
    %cst_102 = arith.constant dense<0.000000e+00> : vector<4x96xf32>
    %330 = tpu.matmul %328, %296, %cst_102 {dimension_numbers = #tpu.dot_dimension_numbers<[1], [0], [0], [1], [0, 0, 1, 1], [], []>} : vector<4x32xf32>, vector<32x96xf32>, vector<4x96xf32> -> vector<4x96xf32>
    %331 = vector.broadcast %297 : vector<1x96xf32> to vector<4x96xf32>
    %332 = arith.addf %330, %331 : vector<4x96xf32>
    %333 = vector.extract_strided_slice %295 {offsets = [4, 0], sizes = [4, 96], strides = [1, 1]} : vector<16x96xf32> to vector<4x96xf32>
    %334 = vector.extract_strided_slice %333 {offsets = [0, 0], sizes = [4, 32], strides = [1, 1]} : vector<4x96xf32> to vector<4x32xf32>
    %335 = vector.extract_strided_slice %332 {offsets = [0, 0], sizes = [4, 32], strides = [1, 1]} : vector<4x96xf32> to vector<4x32xf32>
    %336 = arith.addf %334, %335 : vector<4x32xf32>
    %337 = arith.negf %336 : vector<4x32xf32>
    %338 = math.exp %337 : vector<4x32xf32>
    %cst_103 = arith.constant 1.000000e+00 : f32
    %339 = vector.broadcast %cst_103 : f32 to vector<4x32xf32>
    %340 = arith.addf %339, %338 : vector<4x32xf32>
    %341 = arith.divf %339, %340 : vector<4x32xf32>
    %342 = vector.extract_strided_slice %333 {offsets = [0, 32], sizes = [4, 32], strides = [1, 1]} : vector<4x96xf32> to vector<4x32xf32>
    %343 = vector.extract_strided_slice %332 {offsets = [0, 32], sizes = [4, 32], strides = [1, 1]} : vector<4x96xf32> to vector<4x32xf32>
    %344 = arith.addf %342, %343 : vector<4x32xf32>
    %345 = arith.negf %344 : vector<4x32xf32>
    %346 = math.exp %345 : vector<4x32xf32>
    %cst_104 = arith.constant 1.000000e+00 : f32
    %347 = vector.broadcast %cst_104 : f32 to vector<4x32xf32>
    %348 = arith.addf %347, %346 : vector<4x32xf32>
    %349 = arith.divf %347, %348 : vector<4x32xf32>
    %350 = vector.extract_strided_slice %333 {offsets = [0, 64], sizes = [4, 32], strides = [1, 1]} : vector<4x96xf32> to vector<4x32xf32>
    %351 = vector.extract_strided_slice %332 {offsets = [0, 64], sizes = [4, 32], strides = [1, 1]} : vector<4x96xf32> to vector<4x32xf32>
    %352 = arith.mulf %341, %351 : vector<4x32xf32>
    %353 = arith.addf %350, %352 : vector<4x32xf32>
    %354 = math.tanh %353 : vector<4x32xf32>
    %cst_105 = arith.constant 1.000000e+00 : f32
    %355 = vector.broadcast %cst_105 : f32 to vector<4x32xf32>
    %356 = arith.subf %355, %349 : vector<4x32xf32>
    %357 = arith.mulf %356, %354 : vector<4x32xf32>
    %358 = arith.mulf %349, %328 : vector<4x32xf32>
    %359 = arith.addf %357, %358 : vector<4x32xf32>
    %c4_106 = arith.constant 4 : index
    %c0_107 = arith.constant 0 : index
    %360 = vector.load %arg28[%c4_106, %c0_107] : memref<16x32xf32, #tpu.memory_space<vmem>>, vector<4x32xf32>
    tpu.vector_store %arg28[%c4_106, %c0_107], %359 {strides = array<i32>} : memref<16x32xf32, #tpu.memory_space<vmem>>, vector<4x32xf32>,
    %cst_108 = arith.constant dense<0.000000e+00> : vector<4x96xf32>
    %361 = tpu.matmul %359, %296, %cst_108 {dimension_numbers = #tpu.dot_dimension_numbers<[1], [0], [0], [1], [0, 0, 1, 1], [], []>} : vector<4x32xf32>, vector<32x96xf32>, vector<4x96xf32> -> vector<4x96xf32>
    %362 = vector.broadcast %297 : vector<1x96xf32> to vector<4x96xf32>
    %363 = arith.addf %361, %362 : vector<4x96xf32>
    %364 = vector.extract_strided_slice %295 {offsets = [8, 0], sizes = [4, 96], strides = [1, 1]} : vector<16x96xf32> to vector<4x96xf32>
    %365 = vector.extract_strided_slice %364 {offsets = [0, 0], sizes = [4, 32], strides = [1, 1]} : vector<4x96xf32> to vector<4x32xf32>
    %366 = vector.extract_strided_slice %363 {offsets = [0, 0], sizes = [4, 32], strides = [1, 1]} : vector<4x96xf32> to vector<4x32xf32>
    %367 = arith.addf %365, %366 : vector<4x32xf32>
    %368 = arith.negf %367 : vector<4x32xf32>
    %369 = math.exp %368 : vector<4x32xf32>
    %cst_109 = arith.constant 1.000000e+00 : f32
    %370 = vector.broadcast %cst_109 : f32 to vector<4x32xf32>
    %371 = arith.addf %370, %369 : vector<4x32xf32>
    %372 = arith.divf %370, %371 : vector<4x32xf32>
    %373 = vector.extract_strided_slice %364 {offsets = [0, 32], sizes = [4, 32], strides = [1, 1]} : vector<4x96xf32> to vector<4x32xf32>
    %374 = vector.extract_strided_slice %363 {offsets = [0, 32], sizes = [4, 32], strides = [1, 1]} : vector<4x96xf32> to vector<4x32xf32>
    %375 = arith.addf %373, %374 : vector<4x32xf32>
    %376 = arith.negf %375 : vector<4x32xf32>
    %377 = math.exp %376 : vector<4x32xf32>
    %cst_110 = arith.constant 1.000000e+00 : f32
    %378 = vector.broadcast %cst_110 : f32 to vector<4x32xf32>
    %379 = arith.addf %378, %377 : vector<4x32xf32>
    %380 = arith.divf %378, %379 : vector<4x32xf32>
    %381 = vector.extract_strided_slice %364 {offsets = [0, 64], sizes = [4, 32], strides = [1, 1]} : vector<4x96xf32> to vector<4x32xf32>
    %382 = vector.extract_strided_slice %363 {offsets = [0, 64], sizes = [4, 32], strides = [1, 1]} : vector<4x96xf32> to vector<4x32xf32>
    %383 = arith.mulf %372, %382 : vector<4x32xf32>
    %384 = arith.addf %381, %383 : vector<4x32xf32>
    %385 = math.tanh %384 : vector<4x32xf32>
    %cst_111 = arith.constant 1.000000e+00 : f32
    %386 = vector.broadcast %cst_111 : f32 to vector<4x32xf32>
    %387 = arith.subf %386, %380 : vector<4x32xf32>
    %388 = arith.mulf %387, %385 : vector<4x32xf32>
    %389 = arith.mulf %380, %359 : vector<4x32xf32>
    %390 = arith.addf %388, %389 : vector<4x32xf32>
    %c8_112 = arith.constant 8 : index
    %c0_113 = arith.constant 0 : index
    %391 = vector.load %arg28[%c8_112, %c0_113] : memref<16x32xf32, #tpu.memory_space<vmem>>, vector<4x32xf32>
    tpu.vector_store %arg28[%c8_112, %c0_113], %390 {strides = array<i32>} : memref<16x32xf32, #tpu.memory_space<vmem>>, vector<4x32xf32>,
    %cst_114 = arith.constant dense<0.000000e+00> : vector<4x96xf32>
    %392 = tpu.matmul %390, %296, %cst_114 {dimension_numbers = #tpu.dot_dimension_numbers<[1], [0], [0], [1], [0, 0, 1, 1], [], []>} : vector<4x32xf32>, vector<32x96xf32>, vector<4x96xf32> -> vector<4x96xf32>
    %393 = vector.broadcast %297 : vector<1x96xf32> to vector<4x96xf32>
    %394 = arith.addf %392, %393 : vector<4x96xf32>
    %395 = vector.extract_strided_slice %295 {offsets = [12, 0], sizes = [4, 96], strides = [1, 1]} : vector<16x96xf32> to vector<4x96xf32>
    %396 = vector.extract_strided_slice %395 {offsets = [0, 0], sizes = [4, 32], strides = [1, 1]} : vector<4x96xf32> to vector<4x32xf32>
    %397 = vector.extract_strided_slice %394 {offsets = [0, 0], sizes = [4, 32], strides = [1, 1]} : vector<4x96xf32> to vector<4x32xf32>
    %398 = arith.addf %396, %397 : vector<4x32xf32>
    %399 = arith.negf %398 : vector<4x32xf32>
    %400 = math.exp %399 : vector<4x32xf32>
    %cst_115 = arith.constant 1.000000e+00 : f32
    %401 = vector.broadcast %cst_115 : f32 to vector<4x32xf32>
    %402 = arith.addf %401, %400 : vector<4x32xf32>
    %403 = arith.divf %401, %402 : vector<4x32xf32>
    %404 = vector.extract_strided_slice %395 {offsets = [0, 32], sizes = [4, 32], strides = [1, 1]} : vector<4x96xf32> to vector<4x32xf32>
    %405 = vector.extract_strided_slice %394 {offsets = [0, 32], sizes = [4, 32], strides = [1, 1]} : vector<4x96xf32> to vector<4x32xf32>
    %406 = arith.addf %404, %405 : vector<4x32xf32>
    %407 = arith.negf %406 : vector<4x32xf32>
    %408 = math.exp %407 : vector<4x32xf32>
    %cst_116 = arith.constant 1.000000e+00 : f32
    %409 = vector.broadcast %cst_116 : f32 to vector<4x32xf32>
    %410 = arith.addf %409, %408 : vector<4x32xf32>
    %411 = arith.divf %409, %410 : vector<4x32xf32>
    %412 = vector.extract_strided_slice %395 {offsets = [0, 64], sizes = [4, 32], strides = [1, 1]} : vector<4x96xf32> to vector<4x32xf32>
    %413 = vector.extract_strided_slice %394 {offsets = [0, 64], sizes = [4, 32], strides = [1, 1]} : vector<4x96xf32> to vector<4x32xf32>
    %414 = arith.mulf %403, %413 : vector<4x32xf32>
    %415 = arith.addf %412, %414 : vector<4x32xf32>
    %416 = math.tanh %415 : vector<4x32xf32>
    %cst_117 = arith.constant 1.000000e+00 : f32
    %417 = vector.broadcast %cst_117 : f32 to vector<4x32xf32>
    %418 = arith.subf %417, %411 : vector<4x32xf32>
    %419 = arith.mulf %418, %416 : vector<4x32xf32>
    %420 = arith.mulf %411, %390 : vector<4x32xf32>
    %421 = arith.addf %419, %420 : vector<4x32xf32>
    %c12_118 = arith.constant 12 : index
    %c0_119 = arith.constant 0 : index
    %422 = vector.load %arg28[%c12_118, %c0_119] : memref<16x32xf32, #tpu.memory_space<vmem>>, vector<4x32xf32>
    tpu.vector_store %arg28[%c12_118, %c0_119], %421 {strides = array<i32>} : memref<16x32xf32, #tpu.memory_space<vmem>>, vector<4x32xf32>,
    %c0_120 = arith.constant 0 : index
    %c0_121 = arith.constant 0 : index
    %423 = vector.load %arg28[%c0_120, %c0_121] : memref<16x32xf32, #tpu.memory_space<vmem>>, vector<16x32xf32>
    %c0_122 = arith.constant 0 : index
    %c0_123 = arith.constant 0 : index
    %424 = vector.load %arg23[%c0_122, %c0_123] : memref<32x13xf32, #tpu.memory_space<vmem>>, vector<32x13xf32>
    %cst_124 = arith.constant dense<0.000000e+00> : vector<16x13xf32>
    %425 = tpu.matmul %423, %424, %cst_124 {dimension_numbers = #tpu.dot_dimension_numbers<[1], [0], [0], [1], [0, 0, 1, 1], [], []>} : vector<16x32xf32>, vector<32x13xf32>, vector<16x13xf32> -> vector<16x13xf32>
    %c0_125 = arith.constant 0 : index
    %c0_126 = arith.constant 0 : index
    %426 = vector.load %arg24[%c0_125, %c0_126] : memref<1x13xf32, #tpu.memory_space<vmem>>, vector<1x13xf32>
    %427 = vector.broadcast %426 : vector<1x13xf32> to vector<16x13xf32>
    %428 = arith.addf %425, %427 : vector<16x13xf32>
    %c0_127 = arith.constant 0 : index
    %c0_128 = arith.constant 0 : index
    %429 = vector.load %arg25[%c0_127, %c0_128] : memref<16x13xf32, #tpu.memory_space<vmem>>, vector<16x13xf32>
    tpu.vector_store %arg25[%c0_127, %c0_128], %428 {strides = array<i32>} : memref<16x13xf32, #tpu.memory_space<vmem>>, vector<16x13xf32>,
    return
  }
}

</mosaic_0001>

<bundles_post_ra>
// kernel: mudance_vae_forward.3
= control target key start
LH: loop header
LB: loop body
LE: loop exit
PB: predicated region body
PF: predicated region fallthrough
CT: control target
= control target key end

     0   :  { %v2621_v0 = vmov 0.0   ;;  %vm2622_vm0 = vmmov 0   ;;  %vm90_vm1 = vcmask 130048   ;;  %vm255_vm2 = vcmask 261120   ;;  %s3240_s2 = inlined_call_operand.vmem [shape: f32[16,64], index: 2, kind: input, shape index: {}]   ;;  %s3241_s1 = inlined_call_operand.vmem [shape: f32[2,16], index: 1, kind: input, shape index: {}]   ;;  %s3242_s5 = inlined_call_operand.vmem [shape: f32[32,96], index: 5, kind: input, shape index: {}]   ;;  %s3243_s4 = inlined_call_operand.vmem [shape: f32[16,96], index: 4, kind: input, shape index: {}]   ;;  %s3244_s3 = inlined_call_operand.vmem [shape: f32[1,64], index: 3, kind: input, shape index: {}]   ;;  %s3245_s7 = inlined_call_operand.vmem [shape: f32[1,96], index: 7, kind: input, shape index: {}]   ;;  %s3246_s6 = inlined_call_operand.vmem [shape: f32[1,96], index: 6, kind: input, shape index: {}]   ;;  %s3247_s8 = inlined_call_operand.vmem [shape: f32[32,96], index: 8, kind: input, shape index: {}]   ;;  %s3248_s9 = inlined_call_operand.vmem [shape: f32[32,96], index: 9, kind: input, shape index: {}]   ;;  %s3249_s11 = inlined_call_operand.vmem [shape: f32[1,96], index: 11, kind: input, shape index: {}]   ;;  %s3250_s10 = inlined_call_operand.vmem [shape: f32[1,96], index: 10, kind: input, shape index: {}]   ;;  %s3251_s14 = inlined_call_operand.vmem [shape: f32[13,96], index: 14, kind: input, shape index: {}]   ;;  %s3252_s0 = inlined_call_operand.vmem [shape: f32[16,13], index: 0, kind: input, shape index: {}]   ;;  %s3253_s12 = inlined_call_operand.vmem [shape: f32[32,64], index: 12, kind: input, shape index: {}]   ;;  %s3254_s15 = inlined_call_operand.vmem [shape: f32[32,96], index: 15, kind: input, shape index: {}]   ;;  %s3255_s17 = inlined_call_operand.vmem [shape: f32[1,96], index: 17, kind: input, shape index: {}]   ;;  %s3256_s16 = inlined_call_operand.vmem [shape: f32[32,96], index: 16, kind: input, shape index: {}]   ;;  %s3257_s13 = inlined_call_operand.vmem [shape: f32[1,64], index: 13, kind: input, shape index: {}]   ;;  %s3258_s18 = inlined_call_operand.vmem [shape: f32[1,96], index: 18, kind: input, shape index: {}]   ;;  %s3259_s20 = inlined_call_operand.vmem [shape: f32[32,96], index: 20, kind: input, shape index: {}]   ;;  %s3260_s19 = inlined_call_operand.vmem [shape: f32[32,96], index: 19, kind: input, shape index: {}]   ;;  %s3261_s22 = inlined_call_operand.vmem [shape: f32[1,96], index: 22, kind: input, shape index: {}]   ;;  %s3262_s21 = inlined_call_operand.vmem [shape: f32[1,96], index: 21, kind: input, shape index: {}]   ;;  %s3263_s23 = inlined_call_operand.vmem [shape: f32[32,13], index: 23, kind: input, shape index: {}]   ;;  %s3264_s24 = inlined_call_operand.vmem [shape: f32[1,13], index: 24, kind: input, shape index: {}]   ;;  %s3265_s25 = inlined_call_operand.vmem [shape: f32[16,13], index: 25, kind: output, shape index: {}]  }
   0x1   :  { %3271 = sst [smem:[#allocation5_spill]] %s3240_s2  ;;  %2321 = vmatprep.subr.mxu0 %v2621_v0  ;;  %2325 = vmatprep.mubr.msk.f32.mxu0 %vm2622_vm0, %v2621_v0  ;;  %v2180_v59 = vld [vmem:[%s3250_s10] ss:$0 sm:$0xff]  ;;  %vm655_vm3 = vcmask 254976   ;;  %vm939_vm4 = vcmask 1044480   ;;  %vm932_vm5 = vcmask 105472  }
   0x2   :  { %3272 = sst [smem:[#allocation6_spill]] %s3241_s1  ;;  %2328 = vmatprep.subr.mxu1 %v2621_v0  ;;  %2332 = vmatprep.mubr.msk.f32.mxu1 %vm2622_vm0, %v2621_v0  ;;  %vm1210_vm6 = vcmask 257024   ;;  %vm1322_vm7 = vcmask 261124  }
   0x3   :  { %3273 = sst [smem:[#allocation7_spill]] %s3242_s5 }
   0x4   :  { %3274 = sst [smem:[#allocation8_spill]] %s3243_s4 }
   0x5   :  { %3275 = sst [smem:[#allocation9_spill]] %s3244_s3 }
   0x6   :  { %3276 = sst [smem:[#allocation10_spill]] %s3245_s7  ;;  %s2623_s7 = smov 64  }
   0x7   :  { %3277 = sst [smem:[#allocation11_spill]] %s3246_s6 }
   0x8   :  { %3278 = sst [smem:[#allocation12_spill]] %s3247_s8 }
   0x9   :  { %3279 = sst [smem:[#allocation13_spill]] %s3248_s9 }
   0xa   :  { %3280 = sst [smem:[#allocation14_spill]] %s3249_s11 }
   0xb   :  { %s3281_s6 = sld [smem:[#allocation5_spill]] }
   0xc   :  { %s3282_s1 = sld [smem:[#allocation6_spill]] }
   0xd   :  { %s3283_s3 = sld [smem:[#allocation7_spill]] }
   0xe   :  { %s3284_s29 = sld [smem:[#allocation8_spill]] }
   0xf   :  { %s3285_s27 = sld [smem:[#allocation9_spill]] }
  0x10   :  { %s3286_s11 = sld [smem:[#allocation10_spill]] }
  0x11   :  { %v82_v1 = vld [vmem:[%s3281_s6 + $0x8] sm:$0xff]  ;;  %v81_v2 = vld [vmem:[%s3281_s6] sm:$0xff]  ;;  %s3287_s5 = sld [smem:[#allocation11_spill]] }
  0x12   :  { %2322 = vmatpush3.msra.mxu0 %v82_v1  ;;  %v80_v3 = vld [vmem:[%s3282_s1] sm:$0x3]  ;;  %s3288_s8 = sld [smem:[#allocation12_spill]] }
  0x13   :  { %2323 = vmatprep.subr.mxu0 %v2621_v0  ;;  %v168_v4 = vld [vmem:[%s3283_s3 + $0x18] sm:$0xff]  ;;  %v167_v5 = vld [vmem:[%s3283_s3 + $0x10] sm:$0xff]  ;;  %v166_v8 = vld [vmem:[%s3283_s3 + $0x8] sm:$0xff]  ;;  %s3290_s28 = sld [smem:[#allocation14_spill]] }
  0x14   :  { %2324 = vmatpush3.msra.mxu0 %v81_v2  ;;  %v171_v6 = vld [vmem:[%s3284_s29 + $0x8] sm:$0xff]  ;;  %v170_v7 = vld [vmem:[%s3284_s29] sm:$0xff] }
  0x15   :  { %2326 = vmatmul.mubr.msk.f32.vlgmr.msra.gmra.mxu0 %vm90_vm1, %v80_v3  ;;  %2335 = vmatprep.subr.mxu0 %v2621_v0  ;;  %v165_v9 = vld [vmem:[%s3283_s3] sm:$0xff] }
  0x16   :  { %2343 = vmatprep.mubr.msk.f32.mxu0 %vm2622_vm0, %v2621_v0  ;;  %2336 = vmatpush3.msra.mxu0 %v168_v4  ;;  %v2171_v10 = vld [vmem:[%s3285_s27] ss:$0 sm:$0xff]  ;;  %s2624_s27 = smov 96  }
  0x17   :  { %2329 = vmatpush3.msra.mxu1 %v171_v6  ;;  %2337 = vmatprep.subr.mxu0 %v2621_v0  ;;  %v2819_v17 = vld [vmem:[%s3286_s11] ss:$0 sm:$0xff]  ;;  %s2625_s11 = smov 32  }
  0x18   :  { %2330 = vmatprep.subr.mxu1 %v2621_v0  ;;  %2338 = vmatpush3.msra.mxu0 %v167_v5  ;;  %v2173_v21 = vld [vmem:[%s3287_s5] ss:$0 sm:$0xff]  ;;  %v462_v32 = vld [vmem:[%s3288_s8 + $0x18] sm:$0xff]  ;;  %v461_v33 = vld [vmem:[%s3288_s8 + $0x10] sm:$0xff]  ;;  %s3289_s5 = sld [smem:[#allocation13_spill]] }
  0x19   :  { %2331 = vmatpush3.msra.mxu1 %v170_v7  ;;  %2339 = vmatprep.subr.mxu0 %v2621_v0  ;;  %v460_v34 = vld [vmem:[%s3288_s8 + $0x8] sm:$0xff]  ;;  %v459_v36 = vld [vmem:[%s3288_s8] sm:$0xff] }
  0x1a   :  { %2333 = vmatmul.mubr.msk.f32.vlgmr.msra.gmra.mxu1 %vm90_vm1, %v80_v3  ;;  %2340 = vmatpush3.msra.mxu0 %v166_v8  ;;  %v2182_v54 = vld [vmem:[%s3290_s28] ss:$0 sm:$0xff] }
  0x1b   :  { %2346 = vmatprep.subr.mxu1 %v2621_v0  ;;  %2341 = vmatprep.subr.mxu0 %v2621_v0 }
  0x1c   :  { %2347 = vmatpush3.msra.mxu1 %v168_v4  ;;  %2342 = vmatpush3.msra.mxu0 %v165_v9 }
  0x1d   :  { %2348 = vmatprep.subr.mxu1 %v2621_v0  ;;  %2357 = vmatprep.subr.mxu0 %v2621_v0 }
  0x1e   :  { %2349 = vmatpush3.msra.mxu1 %v167_v5  ;;  %2354 = vmatprep.mubr.msk.f32.mxu1 %vm2622_vm0, %v2621_v0  ;;  %v466_v43 = vld [vmem:[%s3289_s5 + $0x18] sm:$0xff]  ;;  %v465_v45 = vld [vmem:[%s3289_s5 + $0x10] sm:$0xff]  ;;  %v464_v46 = vld [vmem:[%s3289_s5 + $0x8] sm:$0xff] }
  0x1f   :  { %2350 = vmatprep.subr.mxu1 %v2621_v0  ;;  %v463_v47 = vld [vmem:[%s3289_s5] sm:$0xff] }
  0x20   :  { %2351 = vmatpush3.msra.mxu1 %v166_v8 }
  0x21   :  { %2352 = vmatprep.subr.mxu1 %v2621_v0 }
  0x22   :  { %2353 = vmatpush3.msra.mxu1 %v165_v9 }
  0x23   :  { %2368 = vmatprep.subr.mxu1 %v2621_v0 }
  0xd5   :  { %v160_v11 = vpop.f32.mrf.mxu0 }
  0xd6   :  { %v161_v12 = vadd.f32 %v2171_v10, %v160_v11 }
  0xd7   :  { %v2327_v13 = vpop.f32.mrf.mxu0 }
  0xd8   :  { %2545 = vtanh.f32 %v161_v12 }
  0xda   :  { %v245_v15 = vpop.f32.mrf.mxu1 }
  0xdb   :  { %v2826_v22 = vadd.f32 %v2173_v21, %v245_v15 }
  0xdc   :  { %v2334_v16 = vpop.f32.mrf.mxu1 }
  0xe5   :  { %v2810_v14 = vpop.eup %2545 }
  0xe6   :  { %2344 = vmatmul.mubr.msk.f32.vlgmr.msra.gmra.mxu0 %vm255_vm2, %v2810_v14 }
  0xe7   :  { %2365 = vmatprep.mubr.msk.f32.mxu0 %vm2622_vm0, %v2621_v0  ;;  %2358 = vmatpush3.msra.mxu0 %v462_v32 }
  0xe8   :  { %2359 = vmatprep.subr.mxu0 %v2621_v0 }
  0xe9   :  { %2360 = vmatpush3.msra.mxu0 %v461_v33 }
  0xea   :  { %2361 = vmatprep.subr.mxu0 %v2621_v0 }
  0xeb   :  { %2362 = vmatpush3.msra.mxu0 %v460_v34 }
  0xec   :  { %2363 = vmatprep.subr.mxu0 %v2621_v0 }
  0xed   :  { %2364 = vmatpush3.msra.mxu0 %v459_v36 }
  0xee   :  { %2379 = vmatprep.subr.mxu0 %v2621_v0 }
 0x1a6   :  { %v325_v18 = vpop.f32.mrf.mxu0 }
 0x1a7   :  { %v326_v19 = vadd.f32 %v2819_v17, %v325_v18 }
 0x1a8   :  { %v2345_v20 = vpop.f32.mrf.mxu0 }
 0x1a9   :  { %337 = vrot.lane.b32.xlu0 %v326_v19, %s2623_s7  ;;  %v329_v23 = vadd.f32 %v326_v19, %v2826_v22 }
 0x1ab   :  { %v2177_v24 = vmul.f32 -1.442695, %v329_v23 }
 0x1ad   :  { %2547 = vpow2.f32 %v2177_v24 }
 0x1ba   :  { %v2548_v25 = vpop.eup %2547 }
 0x1bb   :  { %v333_v26 = vadd.f32 1.0, %v2548_v25 }
 0x1bd   :  { %2549 = vrcp.f32 %v333_v26 }
 0x1ca   :  { %v2550_v27 = vpop.eup %2549 }
 0x1cb   :  { %v347_v38 = vsub.f32 1.0, %v2550_v27 }
 0x21b   :  { %v338_v28 = vpop.permute.xlu0 %337 }
 0x21c   :  { %v340_v29 = vmul.f32 %v2550_v27, %v338_v28 }
 0x21e   :  { %342 = vrot.lane.b32.xlu0 %v340_v29, %s2623_s7 }
 0x290   :  { %v343_v30 = vpop.permute.xlu0 %342 }
 0x291   :  { %v345_v31 = vadd.f32 %v343_v30, %v2826_v22 }
 0x293   :  { %2551 = vtanh.f32 %v345_v31 }
 0x2a0   :  { %v2552_v35 = vpop.eup %2551 }
 0x2a1   :  { %349 = vrot.lane.b32.xlu1 %v2552_v35, %s2624_s27 }
 0x2a5   :  { %353 = vrot.lane.b32.xlu1 %v2810_v14, %s2625_s11 }
 0x2a9   :  { %551 = vrot.lane.b32.xlu1 %v2810_v14, %s2624_s27 }
 0x313   :  { %v350_v37 = vpop.permute.xlu1 %349 }
 0x314   :  { %v352_v40 = vmul.f32 %v350_v37, %v347_v38 }
 0x317   :  { %v354_v39 = vpop.permute.xlu1 %353 }
 0x318   :  { %v356_v41 = vmul.f32 %v2550_v27, %v354_v39 }
 0x31a   :  { %v2852_v42 = vadd.f32 %v356_v41, %v352_v40 }
 0x31b   :  { %v552_v48 = vpop.permute.xlu1 %551 }
 0x31c   :  { %359 = vrot.lane.b32.xlu0 %v2852_v42, %s2624_s27 }
 0x38e   :  { %v360_v44 = vpop.permute.xlu0 %359 }
 0x38f   :  { %2355 = vmatmul.mubr.msk.f32.vlgmr.msra.gmra.mxu1 %vm255_vm2, %v360_v44  ;;  %2366 = vmatmul.mubr.msk.f32.vlgmr.msra.gmra.mxu0 %vm255_vm2, %v360_v44  ;;  %v924_v44 = vld [vmem:[%s3251_s14 + $0x8] sm:$0x1f] }
 0x390   :  { %2369 = vmatpush3.msra.mxu1 %v466_v43  ;;  %2376 = vmatprep.mubr.msk.f32.mxu1 %vm2622_vm0, %v2621_v0 }
 0x391   :  { %2370 = vmatprep.subr.mxu1 %v2621_v0  ;;  %2380 = vmatpush3.msra.mxu0 %v462_v32 }
 0x392   :  { %2371 = vmatpush3.msra.mxu1 %v465_v45  ;;  %2381 = vmatprep.subr.mxu0 %v2621_v0 }
 0x393   :  { %2372 = vmatprep.subr.mxu1 %v2621_v0  ;;  %2382 = vmatpush3.msra.mxu0 %v461_v33 }
 0x394   :  { %2373 = vmatpush3.msra.mxu1 %v464_v46  ;;  %2383 = vmatprep.subr.mxu0 %v2621_v0 }
 0x395   :  { %2374 = vmatprep.subr.mxu1 %v2621_v0  ;;  %2384 = vmatpush3.msra.mxu0 %v460_v34 }
 0x396   :  { %2375 = vmatpush3.msra.mxu1 %v463_v47  ;;  %2385 = vmatprep.subr.mxu0 %v2621_v0 }
 0x397   :  { %2377 = vmatmul.mubr.msk.f32.vlgmr.msra.gmra.mxu1 %vm255_vm2, %v552_v48  ;;  %2386 = vmatpush3.msra.mxu0 %v459_v36  ;;  %v922_v48 = vld [vmem:[%s3252_s0 + $0x8] sm:$0xff] }
 0x398   :  { %2387 = vmatprep.mubr.msk.f32.mxu0 %vm2622_vm0, %v2621_v0  ;;  %2390 = vmatprep.subr.mxu1 %v2621_v0 }
 0x399   :  { %2391 = vmatpush3.msra.mxu1 %v466_v43  ;;  %2398 = vmatprep.mubr.msk.f32.mxu1 %vm2622_vm0, %v2621_v0 }
 0x39a   :  { %2392 = vmatprep.subr.mxu1 %v2621_v0  ;;  %2401 = vmatprep.subr.mxu0 %v2621_v0 }
 0x39b   :  { %2393 = vmatpush3.msra.mxu1 %v465_v45  ;;  %v923_v45 = vld [vmem:[%s3251_s14] sm:$0xff] }
 0x39c   :  { %2394 = vmatprep.subr.mxu1 %v2621_v0 }
 0x39d   :  { %2395 = vmatpush3.msra.mxu1 %v464_v46 }
 0x39e   :  { %2396 = vmatprep.subr.mxu1 %v2621_v0 }
 0x39f   :  { %2397 = vmatpush3.msra.mxu1 %v463_v47  ;;  %v921_v47 = vld [vmem:[%s3252_s0] sm:$0xff] }
 0x3a0   :  { %2412 = vmatprep.subr.msk.mxu1 %vm939_vm4, %v924_v44 }
 0x44f   :  { %v429_v49 = vpop.f32.mrf.mxu1  ;;  %v541_v50 = vpop.f32.mrf.mxu0 }
 0x450   :  { %v430_v51 = vadd.f32 %v2819_v17, %v429_v49  ;;  %v542_v61 = vadd.f32 %v2180_v59, %v541_v50  ;;  %v839_v49 = vld [vmem:[%s3253_s12 + $0x18] sm:$0xff] }
 0x451   :  { %v2356_v52 = vpop.f32.mrf.mxu1  ;;  %v2367_v53 = vpop.f32.mrf.mxu0  ;;  %v1021_v50 = vld [vmem:[%s3254_s15 + $0x18] sm:$0xff] }
 0x452   :  { %441 = vrot.lane.b32.xlu1 %v430_v51, %s2623_s7  ;;  %v433_v58 = vadd.f32 %v430_v51, %v2826_v22  ;;  %v838_v51 = vld [vmem:[%s3253_s12 + $0x10] sm:$0xff]  ;;  %v837_v53 = vld [vmem:[%s3253_s12 + $0x8] sm:$0xff] }
 0x453   :  { %v1020_v52 = vld [vmem:[%s3254_s15 + $0x10] sm:$0xff] }
 0x454   :  { %v2179_v60 = vmul.f32 -1.442695, %v433_v58 }
 0x456   :  { %2553 = vpow2.f32 %v2179_v60 }
 0x457   :  { %v621_v55 = vpop.f32.mrf.mxu1 }
 0x458   :  { %v622_v56 = vadd.f32 %v2182_v54, %v621_v55  ;;  %v836_v55 = vld [vmem:[%s3253_s12] sm:$0xff] }
 0x459   :  { %v2378_v57 = vpop.f32.mrf.mxu1 }
 0x45a   :  { %633 = vrot.lane.b32.xlu0 %v622_v56, %s2623_s7  ;;  %v625_v62 = vadd.f32 %v622_v56, %v542_v61  ;;  %v1018_v56 = vld [vmem:[%s3254_s15] sm:$0xff] }
 0x45c   :  { %v2184_v63 = vmul.f32 -1.442695, %v625_v62 }
 0x45e   :  { %2555 = vpow2.f32 %v2184_v63 }
 0x463   :  { %v2554_v1 = vpop.eup %2553 }
 0x464   :  { %v437_v2 = vadd.f32 1.0, %v2554_v1  ;;  %v2190_v1 = vld [vmem:[%s3255_s17] ss:$0 sm:$0xff] }
 0x466   :  { %2557 = vrcp.f32 %v437_v2 }
 0x46b   :  { %v2556_v3 = vpop.eup %2555 }
 0x46c   :  { %v629_v4 = vadd.f32 1.0, %v2556_v3 }
 0x46e   :  { %2559 = vrcp.f32 %v629_v4  ;;  %v2982_v4 = vld [vmem:[%s3256_s16 + $0x18] sm:$0xff] }
 0x473   :  { %v2558_v5 = vpop.eup %2557 }
 0x474   :  { %v451_v18 = vsub.f32 1.0, %v2558_v5  ;;  %v457_v20 = vmul.f32 %v2558_v5, %v2852_v42 }
 0x47b   :  { %v2560_v8 = vpop.eup %2559 }
 0x47c   :  { %v643_v24 = vsub.f32 1.0, %v2560_v8  ;;  %v649_v25 = vmul.f32 %v2560_v8, %v2810_v14 }
 0x4c4   :  { %v442_v6 = vpop.permute.xlu1 %441 }
 0x4c5   :  { %v444_v7 = vmul.f32 %v2558_v5, %v442_v6  ;;  %v2987_v5 = vld [vmem:[%s3256_s16 + $0x10] sm:$0xff]  ;;  %v2995_v6 = vld [vmem:[%s3256_s16 + $0x8] sm:$0xff] }
 0x4c7   :  { %446 = vrot.lane.b32.xlu1 %v444_v7, %s2623_s7  ;;  %v3004_v7 = vld [vmem:[%s3256_s16] sm:$0xff] }
 0x4cc   :  { %v634_v9 = vpop.permute.xlu0 %633 }
 0x4cd   :  { %v636_v10 = vmul.f32 %v2560_v8, %v634_v9  ;;  %v2188_v9 = vld [vmem:[%s3257_s13] ss:$0 sm:$0xff] }
 0x4cf   :  { %638 = vrot.lane.b32.xlu0 %v636_v10, %s2623_s7 }
 0x539   :  { %v447_v11 = vpop.permute.xlu1 %446 }
 0x53a   :  { %v449_v12 = vadd.f32 %v447_v11, %v2826_v22 }
 0x53c   :  { %2561 = vtanh.f32 %v449_v12 }
 0x541   :  { %v639_v13 = vpop.permute.xlu0 %638 }
 0x542   :  { %v641_v15 = vadd.f32 %v639_v13, %v542_v61 }
 0x544   :  { %2563 = vtanh.f32 %v641_v15 }
 0x549   :  { %v2562_v16 = vpop.eup %2561 }
 0x54a   :  { %453 = vrot.lane.b32.xlu1 %v2562_v16, %s2624_s27 }
 0x551   :  { %v2564_v17 = vpop.eup %2563 }
 0x552   :  { %645 = vrot.lane.b32.xlu0 %v2564_v17, %s2624_s27 }
 0x5bc   :  { %v454_v19 = vpop.permute.xlu1 %453 }
 0x5bd   :  { %v456_v21 = vmul.f32 %v454_v19, %v451_v18 }
 0x5bf   :  { %v458_v23 = vadd.f32 %v457_v20, %v456_v21 }
 0x5c1   :  { %658 = vrot.lane.b32.xlu1 %v458_v23, %s2624_s27  ;;  %v3040_v23 = vld [vmem:[%s3258_s18] ss:$0 sm:$0xff] }
 0x5c4   :  { %v646_v22 = vpop.permute.xlu0 %645 }
 0x5c5   :  { %v648_v26 = vmul.f32 %v646_v22, %v643_v24 }
 0x5c7   :  { %v2906_v27 = vadd.f32 %v649_v25, %v648_v26 }
 0x5c9   :  { %652 = vrot.lane.b32.xlu0 %v2906_v27, %s2624_s27 }
 0x633   :  { %v659_v28 = vpop.permute.xlu1 %658 }
 0x634   :  { %2388 = vmatmul.mubr.msk.f32.vlgmr.msra.gmra.mxu0 %vm255_vm2, %v659_v28 }
 0x635   :  { %2409 = vmatprep.mubr.msk.f32.mxu0 %vm2622_vm0, %v2621_v0  ;;  %2402 = vmatpush3.msra.mxu0 %v839_v49 }
 0x636   :  { %2403 = vmatprep.subr.mxu0 %v2621_v0 }
 0x637   :  { %2404 = vmatpush3.msra.mxu0 %v838_v51 }
 0x638   :  { %2405 = vmatprep.subr.mxu0 %v2621_v0 }
 0x639   :  { %2406 = vmatpush3.msra.mxu0 %v837_v53 }
 0x63a   :  { %2407 = vmatprep.subr.mxu0 %v2621_v0 }
 0x63b   :  { %v653_v29 = vpop.permute.xlu0 %652  ;;  %2408 = vmatpush3.msra.mxu0 %v836_v55 }
 0x63c   :  { %2399 = vmatmul.mubr.msk.f32.vlgmr.msra.gmra.mxu1 %vm255_vm2, %v653_v29  ;;  %656 = vst.msk [vmem:[#allocation2] sm:$0x3] %vm655_vm3, %v653_v29  ;;  %2430 = vmatprep.subr.mxu0 %v2621_v0 }
 0x63d   :  { %2413 = vmatpush3.msk.msra.mxu1 %vm939_vm4, %v924_v44  ;;  %2416 = vmatprep.mubr.msk.f32.mxu1 %vm932_vm5, %v921_v47 }
 0x63e   :  { %2414 = vmatprep.subr.mxu1 %v923_v45 }
 0x63f   :  { %2415 = vmatpush3.msra.mxu1 %v923_v45 }
 0x640   :  { %2419 = vmatprep.subr.mxu1 %v2621_v0  ;;  %2417 = vmatmul.mubr.msk.f32.vlgmr.msra.gmra.mxu1 %vm932_vm5, %v922_v48 }
 0x641   :  { %2420 = vmatpush3.msra.mxu1 %v1021_v50  ;;  %2427 = vmatprep.mubr.msk.f32.mxu1 %vm2622_vm0, %v2621_v0 }
 0x642   :  { %2421 = vmatprep.subr.mxu1 %v2621_v0 }
 0x643   :  { %2422 = vmatpush3.msra.mxu1 %v1020_v52 }
 0x644   :  { %2423 = vmatprep.subr.mxu1 %v2621_v0 }
 0x6f4   :  { %v728_v30 = vpop.f32.mrf.mxu0 }
 0x6f5   :  { %v729_v34 = vadd.f32 %v2180_v59, %v728_v30 }
 0x6f6   :  { %v2389_v14 = vpop.f32.mrf.mxu0 }
 0x6fc   :  { %v800_v31 = vpop.f32.mrf.mxu1 }
 0x6fd   :  { %v801_v32 = vadd.f32 %v2182_v54, %v800_v31  ;;  %v1019_v54 = vld [vmem:[%s3254_s15 + $0x8] sm:$0xff] }
 0x6fe   :  { %v2400_v33 = vpop.f32.mrf.mxu1  ;;  %2424 = vmatpush3.msra.mxu1 %v1019_v54 }
 0x6ff   :  { %812 = vrot.lane.b32.xlu0 %v801_v32, %s2623_s7  ;;  %v804_v35 = vadd.f32 %v801_v32, %v729_v34  ;;  %2425 = vmatprep.subr.mxu1 %v2621_v0 }
 0x700   :  { %2426 = vmatpush3.msra.mxu1 %v1018_v56  ;;  %v2418_v2 = vpop.f32.mrf.mxu1 }
 0x701   :  { %v2187_v36 = vmul.f32 -1.442695, %v804_v35  ;;  %2441 = vmatprep.subr.mxu1 %v2621_v0  ;;  %v1015_v3 = vadd.f32 %v2418_v2, %v2190_v1 }
 0x702   :  { %v1009_v8 = vpop.f32.mrf.mxu1 }
 0x703   :  { %2565 = vpow2.f32 %v2187_v36  ;;  %v1010_v12 = vadd.f32 %v2190_v1, %v1009_v8 }
 0x710   :  { %v2566_v37 = vpop.eup %2565 }
 0x711   :  { %v808_v38 = vadd.f32 1.0, %v2566_v37 }
 0x713   :  { %2567 = vrcp.f32 %v808_v38 }
 0x720   :  { %v2568_v39 = vpop.eup %2567 }
 0x721   :  { %v822_v57 = vsub.f32 1.0, %v2568_v39  ;;  %v828_v59 = vmul.f32 %v2568_v39, %v2906_v27 }
 0x771   :  { %v813_v40 = vpop.permute.xlu0 %812 }
 0x772   :  { %v815_v41 = vmul.f32 %v2568_v39, %v813_v40 }
 0x774   :  { %817 = vrot.lane.b32.xlu1 %v815_v41, %s2623_s7 }
 0x7e6   :  { %v818_v42 = vpop.permute.xlu1 %817 }
 0x7e7   :  { %v820_v43 = vadd.f32 %v818_v42, %v729_v34 }
 0x7e9   :  { %2569 = vtanh.f32 %v820_v43 }
 0x7f6   :  { %v2570_v46 = vpop.eup %2569 }
 0x7f7   :  { %824 = vrot.lane.b32.xlu0 %v2570_v46, %s2624_s27 }
 0x869   :  { %v825_v58 = vpop.permute.xlu0 %824 }
 0x86a   :  { %v827_v60 = vmul.f32 %v825_v58, %v822_v57 }
 0x86c   :  { %v829_v61 = vadd.f32 %v828_v59, %v827_v60 }
 0x86e   :  { %831 = vrot.lane.b32.xlu1 %v829_v61, %s2624_s27 }
 0x8e0   :  { %v832_v62 = vpop.permute.xlu1 %831 }
 0x8e1   :  { %834 = vst.msk [vmem:[#allocation2 + $0x2] sm:$0x3] %vm655_vm3, %v832_v62 }
 0x8e8   :  { %v835_v63 = vld [vmem:[#allocation2] sm:$0xf] }
 0x8e9   :  { %2410 = vmatmul.mubr.msk.f32.vlgmr.msra.gmra.mxu0 %vm255_vm2, %v835_v63  ;;  %2428 = vmatmul.mubr.msk.f32.vlgmr.msra.gmra.mxu1 %vm255_vm2, %v835_v63 }
 0x8ea   :  { %2438 = vmatprep.mubr.msk.f32.mxu0 %vm2622_vm0, %v2621_v0  ;;  %2449 = vmatprep.mubr.msk.f32.mxu1 %vm2622_vm0, %v2621_v0 }
 0x8eb   :  { %2431 = vmatpush3.msra.mxu0 %v2982_v4  ;;  %2442 = vmatpush3.msra.mxu1 %v2982_v4 }
 0x8ec   :  { %2432 = vmatprep.subr.mxu0 %v2621_v0  ;;  %2443 = vmatprep.subr.mxu1 %v2621_v0 }
 0x8ed   :  { %2433 = vmatpush3.msra.mxu0 %v2987_v5  ;;  %2444 = vmatpush3.msra.mxu1 %v2987_v5 }
 0x8ee   :  { %2434 = vmatprep.subr.mxu0 %v2621_v0  ;;  %2445 = vmatprep.subr.mxu1 %v2621_v0 }
 0x8ef   :  { %2435 = vmatpush3.msra.mxu0 %v2995_v6  ;;  %2446 = vmatpush3.msra.mxu1 %v2995_v6 }
 0x8f0   :  { %2436 = vmatprep.subr.mxu0 %v2621_v0  ;;  %2447 = vmatprep.subr.mxu1 %v2621_v0 }
 0x8f1   :  { %2437 = vmatpush3.msra.mxu0 %v3004_v7  ;;  %2448 = vmatpush3.msra.mxu1 %v3004_v7 }
 0x8f2   :  { %2452 = vmatprep.subr.mxu0 %v2621_v0  ;;  %2463 = vmatprep.subr.mxu1 %v2621_v0 }
 0x9a9   :  { %v916_v10 = vpop.f32.mrf.mxu0  ;;  %v1088_v11 = vpop.f32.mrf.mxu1 }
 0x9aa   :  { %v917_v13 = vadd.f32 %v2188_v9, %v916_v10  ;;  %v1213_v15 = vrot.slane %v1088_v11, 4  ;;  %v3018_v16 = vadd.f32 %v1088_v11, %v1015_v3  ;;  %v1097_v26 = vadd.f32 %v1088_v11, %v1010_v12 }
 0x9ab   :  { %v2411_v17 = vpop.f32.mrf.mxu0  ;;  %v2429_v18 = vpop.f32.mrf.mxu1 }
 0x9ac   :  { %2571 = vtanh.f32 %v917_v13  ;;  %v3020_v19 = vadd.f32 %v1213_v15, %v1010_v12  ;;  %v3022_v20 = vadd.f32 %v1213_v15, %v1015_v3 }
 0x9b9   :  { %v3024_v21 = vpop.eup %2571 }
 0x9ba   :  { %2439 = vmatmul.mubr.msk.f32.vlgmr.msra.gmra.mxu0 %vm255_vm2, %v3024_v21 }
 0x9bb   :  { %2453 = vmatpush3.msra.mxu0 %v2982_v4  ;;  %2460 = vmatprep.mubr.msk.f32.mxu0 %vm2622_vm0, %v2621_v0 }
 0x9bc   :  { %2454 = vmatprep.subr.mxu0 %v2621_v0 }
 0x9bd   :  { %2455 = vmatpush3.msra.mxu0 %v2987_v5 }
 0x9be   :  { %2456 = vmatprep.subr.mxu0 %v2621_v0 }
 0x9bf   :  { %2457 = vmatpush3.msra.mxu0 %v2995_v6 }
 0x9c0   :  { %2458 = vmatprep.subr.mxu0 %v2621_v0 }
 0x9c1   :  { %2459 = vmatpush3.msra.mxu0 %v3004_v7 }
 0xa7a   :  { %v1173_v24 = vpop.f32.mrf.mxu0 }
 0xa7b   :  { %v1174_v22 = vadd.f32 %v3040_v23, %v1173_v24 }
 0xa7c   :  { %v2440_v25 = vpop.f32.mrf.mxu0 }
 0xa7d   :  { %1185 = vrot.lane.b32.xlu0 %v1174_v22, %s2623_s7  ;;  %v1177_v27 = vadd.f32 %v1174_v22, %v1097_v26 }
 0xa7f   :  { %v2197_v28 = vmul.f32 -1.442695, %v1177_v27 }
 0xa81   :  { %2573 = vpow2.f32 %v2197_v28 }
 0xa8e   :  { %v2574_v29 = vpop.eup %2573 }
 0xa8f   :  { %v1181_v30 = vadd.f32 1.0, %v2574_v29 }
 0xa91   :  { %2575 = vrcp.f32 %v1181_v30 }
 0xa9e   :  { %v2576_v14 = vpop.eup %2575 }
 0xa9f   :  { %v1195_v37 = vsub.f32 1.0, %v2576_v14 }
 0xaef   :  { %v1186_v31 = vpop.permute.xlu0 %1185 }
 0xaf0   :  { %v1188_v32 = vmul.f32 %v2576_v14, %v1186_v31 }
 0xaf2   :  { %1190 = vrot.lane.b32.xlu1 %v1188_v32, %s2623_s7 }
 0xaf6   :  { %1201 = vrot.lane.b32.xlu1 %v3024_v21, %s2625_s11 }
 0xb64   :  { %v1191_v33 = vpop.permute.xlu1 %1190 }
 0xb65   :  { %v1193_v34 = vadd.f32 %v1191_v33, %v1097_v26  ;;  %v3094_v26 = vld [vmem:[%s3259_s20 + $0x10] sm:$0xff] }
 0xb67   :  { %2577 = vtanh.f32 %v1193_v34  ;;  %v3113_v34 = vld [vmem:[%s3259_s20] sm:$0xff] }
 0xb68   :  { %v1202_v36 = vpop.permute.xlu1 %1201 }
 0xb69   :  { %v1204_v39 = vmul.f32 %v2576_v14, %v1202_v36 }
 0xb74   :  { %v2578_v35 = vpop.eup %2577 }
 0xb75   :  { %1197 = vrot.lane.b32.xlu0 %v2578_v35, %s2624_s27 }
 0xbe7   :  { %v1198_v38 = vpop.permute.xlu0 %1197 }
 0xbe8   :  { %v1200_v40 = vmul.f32 %v1198_v38, %v1195_v37 }
 0xbea   :  { %v1205_v41 = vadd.f32 %v1204_v39, %v1200_v40 }
 0xbec   :  { %1207 = vrot.lane.b32.xlu0 %v1205_v41, %s2624_s27  ;;  %v1314_v57 = vrot.slane %v1205_v41, 4  ;;  %v1545_v41 = vld [vmem:[%s3260_s19 + $0x18] sm:$0xff] }
 0xbed   :  { %2474 = vmatprep.subr.mxu0 %v1545_v41 }
 0xc5e   :  { %v1208_v42 = vpop.permute.xlu0 %1207 }
 0xc5f   :  { %1211 = vst.msk [vmem:[#allocation3] sm:$0xf] %vm1210_vm6, %v1208_v42  ;;  %2450 = vmatmul.mubr.msk.f32.vlgmr.msra.gmra.mxu1 %vm255_vm2, %v1208_v42  ;;  %v1544_v42 = vld [vmem:[%s3260_s19 + $0x10] sm:$0xff] }
 0xc60   :  { %2464 = vmatpush3.msra.mxu1 %v2982_v4  ;;  %2471 = vmatprep.mubr.msk.f32.mxu1 %vm2622_vm0, %v2621_v0 }
 0xc61   :  { %2465 = vmatprep.subr.mxu1 %v2621_v0 }
 0xc62   :  { %2466 = vmatpush3.msra.mxu1 %v2987_v5 }
 0xc63   :  { %2467 = vmatprep.subr.mxu1 %v2621_v0 }
 0xc64   :  { %2468 = vmatpush3.msra.mxu1 %v2995_v6 }
 0xc65   :  { %2469 = vmatprep.subr.mxu1 %v2621_v0 }
 0xc66   :  { %2470 = vmatpush3.msra.mxu1 %v3004_v7 }
 0xc67   :  { %2485 = vmatprep.subr.mxu1 %v2621_v0 }
 0xd1f   :  { %v1284_v43 = vpop.f32.mrf.mxu1 }
 0xd20   :  { %v1285_v44 = vadd.f32 %v3040_v23, %v1284_v43  ;;  %v1543_v43 = vld [vmem:[%s3260_s19 + $0x8] sm:$0xff] }
 0xd21   :  { %v2451_v45 = vpop.f32.mrf.mxu1 }
 0xd22   :  { %v1289_v46 = vrot.slane %v1285_v44, 4  ;;  %v1542_v44 = vld [vmem:[%s3260_s19] sm:$0xff] }
 0xd24   :  { %1298 = vrot.lane.b32.xlu1 %v1289_v46, %s2623_s7  ;;  %v1291_v47 = vadd.f32 %v1289_v46, %v3020_v19 }
 0xd26   :  { %v2199_v48 = vmul.f32 -1.442695, %v1291_v47 }
 0xd28   :  { %2579 = vpow2.f32 %v2199_v48 }
 0xd35   :  { %v2580_v49 = vpop.eup %2579 }
 0xd36   :  { %v1295_v50 = vadd.f32 1.0, %v2580_v49 }
 0xd38   :  { %2581 = vrcp.f32 %v1295_v50 }
 0xd45   :  { %v2582_v51 = vpop.eup %2581 }
 0xd46   :  { %v1308_v58 = vsub.f32 1.0, %v2582_v51  ;;  %v1316_v61 = vmul.f32 %v2582_v51, %v1314_v57 }
 0xd96   :  { %v1299_v52 = vpop.permute.xlu1 %1298 }
 0xd97   :  { %v1301_v53 = vmul.f32 %v2582_v51, %v1299_v52 }
 0xd99   :  { %1303 = vrot.lane.b32.xlu0 %v1301_v53, %s2623_s7  ;;  %v3154_v53 = vld [vmem:[%s3261_s22] ss:$0 sm:$0xff] }
 0xe0b   :  { %v1304_v54 = vpop.permute.xlu0 %1303 }
 0xe0c   :  { %v1306_v55 = vadd.f32 %v1304_v54, %v3020_v19 }
 0xe0e   :  { %2583 = vtanh.f32 %v1306_v55 }
 0xe1b   :  { %v2584_v56 = vpop.eup %2583 }
 0xe1c   :  { %1310 = vrot.lane.b32.xlu1 %v2584_v56, %s2624_s27 }
 0xe8e   :  { %v1311_v59 = vpop.permute.xlu1 %1310 }
 0xe8f   :  { %v1313_v60 = vmul.f32 %v1311_v59, %v1308_v58  ;;  %v2204_v59 = vld [vmem:[%s3262_s21] ss:$0 sm:$0xff] }
 0xe91   :  { %v3067_v62 = vadd.f32 %v1316_v61, %v1313_v60 }
 0xe93   :  { %v1325_v63 = vrot.slane %v3067_v62, 4 }
 0xe95   :  { %1326 = vrot.lane.b32.xlu0 %v1325_v63, %s2624_s27 }
 0xf07   :  { %v1327_v1 = vpop.permute.xlu0 %1326 }
 0xf08   :  { %2461 = vmatmul.mubr.msk.f32.vlgmr.msra.gmra.mxu0 %vm255_vm2, %v1327_v1 }
 0xf09   :  { %2475 = vmatpush3.msra.mxu0 %v1545_v41 }
 0xf0a   :  { %2476 = vmatprep.subr.mxu0 %v1544_v42 }
 0xf0b   :  { %2477 = vmatpush3.msra.mxu0 %v1544_v42 }
 0xf0c   :  { %2478 = vmatprep.subr.mxu0 %v1543_v43 }
 0xf0d   :  { %2479 = vmatpush3.msra.mxu0 %v1543_v43 }
 0xf0e   :  { %2480 = vmatprep.subr.mxu0 %v1542_v44 }
 0xf0f   :  { %2481 = vmatpush3.msra.mxu0 %v1542_v44 }
 0xf10   :  { %2496 = vmatprep.subr.mxu0 %v2621_v0 }
 0xfc8   :  { %v1396_v2 = vpop.f32.mrf.mxu0 }
 0xfc9   :  { %v1397_v3 = vadd.f32 %v3040_v23, %v1396_v2 }
 0xfca   :  { %v2462_v4 = vpop.f32.mrf.mxu0 }
 0xfcb   :  { %1408 = vrot.lane.b32.xlu1 %v1397_v3, %s2623_s7  ;;  %v1400_v5 = vadd.f32 %v1397_v3, %v3018_v16 }
 0xfcd   :  { %v2201_v6 = vmul.f32 -1.442695, %v1400_v5 }
 0xfcf   :  { %2585 = vpow2.f32 %v2201_v6 }
 0xfdc   :  { %v2586_v7 = vpop.eup %2585 }
 0xfdd   :  { %v1404_v8 = vadd.f32 1.0, %v2586_v7 }
 0xfdf   :  { %2587 = vrcp.f32 %v1404_v8 }
 0xfec   :  { %v2588_v9 = vpop.eup %2587 }
 0xfed   :  { %v1418_v17 = vsub.f32 1.0, %v2588_v9  ;;  %v1425_v19 = vmul.f32 %v2588_v9, %v1325_v63 }
0x103d   :  { %v1409_v10 = vpop.permute.xlu1 %1408 }
0x103e   :  { %v1411_v11 = vmul.f32 %v2588_v9, %v1409_v10 }
0x1040   :  { %1413 = vrot.lane.b32.xlu0 %v1411_v11, %s2623_s7 }
0x10b2   :  { %v1414_v12 = vpop.permute.xlu0 %1413 }
0x10b3   :  { %v1416_v13 = vadd.f32 %v1414_v12, %v3018_v16  ;;  %v3089_v16 = vld [vmem:[%s3259_s20 + $0x18] sm:$0xff] }
0x10b5   :  { %2589 = vtanh.f32 %v1416_v13 }
0x10c2   :  { %v2590_v15 = vpop.eup %2589 }
0x10c3   :  { %1420 = vrot.lane.b32.xlu1 %v2590_v15, %s2624_s27 }
0x1135   :  { %v1421_v18 = vpop.permute.xlu1 %1420 }
0x1136   :  { %v1423_v24 = vmul.f32 %v1421_v18, %v1418_v17 }
0x1138   :  { %v3078_v22 = vadd.f32 %v1425_v19, %v1423_v24 }
0x113a   :  { %1428 = vrot.lane.b32.xlu0 %v3078_v22, %s2624_s27  ;;  %v1531_v45 = vrot.slane %v3078_v22, 4 }
0x11ac   :  { %v1429_v25 = vpop.permute.xlu0 %1428 }
0x11ad   :  { %1431 = vst.msk [vmem:[#allocation3 + $0x8] sm:$0xf] %vm1210_vm6, %v1429_v25  ;;  %2472 = vmatmul.mubr.msk.f32.vlgmr.msra.gmra.mxu1 %vm255_vm2, %v1429_v25 }
0x11ae   :  { %2493 = vmatprep.mubr.msk.f32.mxu1 %vm2622_vm0, %v2621_v0  ;;  %2486 = vmatpush3.msra.mxu1 %v3089_v16 }
0x11af   :  { %2487 = vmatprep.subr.mxu1 %v2621_v0 }
0x11b0   :  { %2488 = vmatpush3.msra.mxu1 %v3094_v26 }
0x11b1   :  { %2489 = vmatprep.subr.mxu1 %v2621_v0 }
0x126d   :  { %v1501_v27 = vpop.f32.mrf.mxu1 }
0x126e   :  { %v1502_v28 = vadd.f32 %v3040_v23, %v1501_v27  ;;  %v3106_v23 = vld [vmem:[%s3259_s20 + $0x8] sm:$0xff] }
0x126f   :  { %v2473_v29 = vpop.f32.mrf.mxu1  ;;  %2490 = vmatpush3.msra.mxu1 %v3106_v23 }
0x1270   :  { %v1506_v30 = vrot.slane %v1502_v28, 4  ;;  %2491 = vmatprep.subr.mxu1 %v2621_v0 }
0x1271   :  { %2492 = vmatpush3.msra.mxu1 %v3113_v34 }
0x1272   :  { %1515 = vrot.lane.b32.xlu1 %v1506_v30, %s2623_s7  ;;  %v1508_v14 = vadd.f32 %v1506_v30, %v3022_v20  ;;  %2507 = vmatprep.subr.mxu1 %v2621_v0 }
0x1274   :  { %v2203_v31 = vmul.f32 -1.442695, %v1508_v14 }
0x1276   :  { %2591 = vpow2.f32 %v2203_v31 }
0x1283   :  { %v2592_v32 = vpop.eup %2591 }
0x1284   :  { %v1512_v33 = vadd.f32 1.0, %v2592_v32 }
0x1286   :  { %2593 = vrcp.f32 %v1512_v33 }
0x1293   :  { %v2594_v35 = vpop.eup %2593 }
0x1294   :  { %v1525_v46 = vsub.f32 1.0, %v2594_v35  ;;  %v1533_v49 = vmul.f32 %v2594_v35, %v1531_v45 }
0x12e4   :  { %v1516_v36 = vpop.permute.xlu1 %1515 }
0x12e5   :  { %v1518_v37 = vmul.f32 %v2594_v35, %v1516_v36 }
0x12e7   :  { %1520 = vrot.lane.b32.xlu0 %v1518_v37, %s2623_s7 }
0x12eb   :  { %1645 = vrot.lane.b32.xlu0 %v3024_v21, %s2624_s27 }
0x1359   :  { %v1521_v38 = vpop.permute.xlu0 %1520 }
0x135a   :  { %v1523_v39 = vadd.f32 %v1521_v38, %v3022_v20 }
0x135c   :  { %2595 = vtanh.f32 %v1523_v39 }
0x135d   :  { %v1646_v40 = vpop.permute.xlu0 %1645 }
0x135e   :  { %2494 = vmatmul.mubr.msk.f32.vlgmr.msra.gmra.mxu1 %vm255_vm2, %v1646_v40 }
0x135f   :  { %2508 = vmatpush3.msra.mxu1 %v3089_v16  ;;  %2515 = vmatprep.mubr.msk.f32.mxu1 %vm2622_vm0, %v2621_v0 }
0x1360   :  { %2509 = vmatprep.subr.mxu1 %v2621_v0 }
0x1361   :  { %2510 = vmatpush3.msra.mxu1 %v3094_v26 }
0x1362   :  { %2511 = vmatprep.subr.mxu1 %v2621_v0 }
0x1363   :  { %2512 = vmatpush3.msra.mxu1 %v3106_v23 }
0x1364   :  { %2513 = vmatprep.subr.mxu1 %v2621_v0 }
0x1365   :  { %2514 = vmatpush3.msra.mxu1 %v3113_v34 }
0x1369   :  { %v2596_v20 = vpop.eup %2595 }
0x136a   :  { %1527 = vrot.lane.b32.xlu1 %v2596_v20, %s2624_s27 }
0x136e   :  { %1319 = vrot.lane.b32.xlu1 %v3067_v62, %s2624_s27 }
0x13dc   :  { %v1528_v47 = vpop.permute.xlu1 %1527 }
0x13dd   :  { %v1530_v48 = vmul.f32 %v1528_v47, %v1525_v46 }
0x13df   :  { %v1534_v50 = vadd.f32 %v1533_v49, %v1530_v48 }
0x13e0   :  { %v1320_v51 = vpop.permute.xlu1 %1319 }
0x13e1   :  { %1323 = vst.msk [vmem:[#allocation3] sm:$0xf0] %vm1322_vm7, %v1320_v51  ;;  %1536 = vrot.lane.b32.xlu0 %v1534_v50, %s2624_s27 }
0x13e8   :  { %v1540_v52 = vld [vmem:[#allocation3] sm:$0xff] }
0x13e9   :  { %2482 = vmatprep.mubr.msk.f32.mxu0 %vm255_vm2, %v1540_v52 }
0x141e   :  { %v1715_v54 = vpop.f32.mrf.mxu1 }
0x141f   :  { %v1716_v55 = vadd.f32 %v3154_v53, %v1715_v54 }
0x1420   :  { %v2495_v56 = vpop.f32.mrf.mxu1 }
0x1421   :  { %1727 = vrot.lane.b32.xlu1 %v1716_v55, %s2623_s7 }
0x1453   :  { %v1537_v57 = vpop.permute.xlu0 %1536 }
0x1454   :  { %1539 = vst.msk [vmem:[#allocation3 + $0x8] sm:$0xf0] %vm1322_vm7, %v1537_v57 }
0x145b   :  { %v1541_v58 = vld [vmem:[#allocation3 + $0x8] sm:$0xff] }
0x145c   :  { %2483 = vmatmul.mubr.msk.f32.vlgmr.msra.gmra.mxu0 %vm255_vm2, %v1541_v58 }
0x145d   :  { %2497 = vmatpush3.msra.mxu0 %v3089_v16  ;;  %2504 = vmatprep.mubr.msk.f32.mxu0 %vm2622_vm0, %v2621_v0 }
0x145e   :  { %2498 = vmatprep.subr.mxu0 %v2621_v0 }
0x145f   :  { %2499 = vmatpush3.msra.mxu0 %v3094_v26 }
0x1460   :  { %2500 = vmatprep.subr.mxu0 %v2621_v0 }
0x1461   :  { %2501 = vmatpush3.msra.mxu0 %v3106_v23 }
0x1462   :  { %2502 = vmatprep.subr.mxu0 %v2621_v0 }
0x1463   :  { %2503 = vmatpush3.msra.mxu0 %v3113_v34 }
0x1464   :  { %2518 = vmatprep.subr.mxu0 %v2621_v0 }
0x1493   :  { %v1728_v6 = vpop.permute.xlu1 %1727 }
0x151c   :  { %v2484_v60 = vpop.f32.mrf.mxu0 }
0x151d   :  { %v3173_v61 = vadd.f32 %v2484_v60, %v2204_v59 }
0x151e   :  { %v1625_v62 = vpop.f32.mrf.mxu0 }
0x151f   :  { %v1626_v63 = vadd.f32 %v2204_v59, %v1625_v62 }
0x1521   :  { %v1719_v1 = vadd.f32 %v1716_v55, %v1626_v63 }
0x1523   :  { %v2209_v2 = vmul.f32 -1.442695, %v1719_v1 }
0x1525   :  { %2597 = vpow2.f32 %v2209_v2 }
0x1532   :  { %v2598_v3 = vpop.eup %2597 }
0x1533   :  { %v1723_v4 = vadd.f32 1.0, %v2598_v3 }
0x1535   :  { %2599 = vrcp.f32 %v1723_v4 }
0x1542   :  { %v2600_v5 = vpop.eup %2599 }
0x1543   :  { %v1730_v7 = vmul.f32 %v2600_v5, %v1728_v6  ;;  %v1737_v11 = vsub.f32 1.0, %v2600_v5  ;;  %v1743_v13 = vmul.f32 %v2600_v5, %v3024_v21 }
0x1545   :  { %1732 = vrot.lane.b32.xlu0 %v1730_v7, %s2623_s7 }
0x15b7   :  { %v1733_v8 = vpop.permute.xlu0 %1732 }
0x15b8   :  { %v1735_v9 = vadd.f32 %v1733_v8, %v1626_v63 }
0x15ba   :  { %2601 = vtanh.f32 %v1735_v9 }
0x15c7   :  { %v2602_v10 = vpop.eup %2601 }
0x15c8   :  { %1739 = vrot.lane.b32.xlu1 %v2602_v10, %s2624_s27 }
0x163a   :  { %v1740_v12 = vpop.permute.xlu1 %1739 }
0x163b   :  { %v1742_v15 = vmul.f32 %v1740_v12, %v1737_v11  ;;  %v2076_v11 = vld [vmem:[%s3263_s23 + $0x18] sm:$0xff]  ;;  %v2075_v12 = vld [vmem:[%s3263_s23 + $0x10] sm:$0xff] }
0x163c   :  { %2529 = vmatprep.subr.mxu1 %v2076_v11 }
0x163d   :  { %v1744_v17 = vadd.f32 %v1743_v13, %v1742_v15  ;;  %v2073_v13 = vld [vmem:[%s3263_s23] sm:$0xff] }
0x163f   :  { %1746 = vrot.lane.b32.xlu0 %v1744_v17, %s2624_s27  ;;  %v1848_v32 = vrot.slane %v1744_v17, 4 }
0x16b1   :  { %v1747_v18 = vpop.permute.xlu0 %1746 }
0x16b2   :  { %1749 = vst.msk [vmem:[#allocation4] sm:$0xf] %vm1210_vm6, %v1747_v18  ;;  %2505 = vmatmul.mubr.msk.f32.vlgmr.msra.gmra.mxu0 %vm255_vm2, %v1747_v18 }
0x16b3   :  { %2519 = vmatpush3.msra.mxu0 %v3089_v16  ;;  %2526 = vmatprep.mubr.msk.f32.mxu0 %vm2622_vm0, %v2621_v0 }
0x16b4   :  { %2520 = vmatprep.subr.mxu0 %v2621_v0 }
0x16b5   :  { %2521 = vmatpush3.msra.mxu0 %v3094_v26 }
0x16b6   :  { %2522 = vmatprep.subr.mxu0 %v2621_v0 }
0x16b7   :  { %2523 = vmatpush3.msra.mxu0 %v3106_v23 }
0x16b8   :  { %2524 = vmatprep.subr.mxu0 %v2621_v0 }
0x16b9   :  { %2525 = vmatpush3.msra.mxu0 %v3113_v34 }
0x1772   :  { %v1818_v21 = vpop.f32.mrf.mxu0 }
0x1773   :  { %v1819_v19 = vadd.f32 %v3154_v53, %v1818_v21 }
0x1774   :  { %v2506_v24 = vpop.f32.mrf.mxu0 }
0x1775   :  { %v1823_v22 = vrot.slane %v1819_v19, 4 }
0x1777   :  { %1832 = vrot.lane.b32.xlu1 %v1823_v22, %s2623_s7  ;;  %v1825_v25 = vadd.f32 %v1823_v22, %v1626_v63 }
0x1779   :  { %v2211_v16 = vmul.f32 -1.442695, %v1825_v25 }
0x177b   :  { %2603 = vpow2.f32 %v2211_v16  ;;  %v2216_v16 = vld [vmem:[%s3264_s24] ss:$0 sm:$0xff] }
0x1788   :  { %v2604_v27 = vpop.eup %2603 }
0x1789   :  { %v1829_v26 = vadd.f32 1.0, %v2604_v27 }
0x178b   :  { %2605 = vrcp.f32 %v1829_v26 }
0x1798   :  { %v2606_v28 = vpop.eup %2605 }
0x1799   :  { %v1842_v33 = vsub.f32 1.0, %v2606_v28  ;;  %v1850_v35 = vmul.f32 %v2606_v28, %v1848_v32 }
0x17e9   :  { %v1833_v29 = vpop.permute.xlu1 %1832 }
0x17ea   :  { %v1835_v30 = vmul.f32 %v2606_v28, %v1833_v29 }
0x17ec   :  { %1837 = vrot.lane.b32.xlu0 %v1835_v30, %s2623_s7 }
0x185e   :  { %v1838_v0 = vpop.permute.xlu0 %1837 }
0x185f   :  { %v1840_v14 = vadd.f32 %v1838_v0, %v1626_v63 }
0x1861   :  { %2607 = vtanh.f32 %v1840_v14 }
0x186e   :  { %v2608_v31 = vpop.eup %2607 }
0x186f   :  { %1844 = vrot.lane.b32.xlu1 %v2608_v31, %s2624_s27 }
0x18e1   :  { %v1845_v23 = vpop.permute.xlu1 %1844 }
0x18e2   :  { %v1847_v34 = vmul.f32 %v1845_v23, %v1842_v33 }
0x18e4   :  { %v1851_v36 = vadd.f32 %v1850_v35, %v1847_v34 }
0x18e6   :  { %v1857_v37 = vrot.slane %v1851_v36, 4 }
0x18e8   :  { %1858 = vrot.lane.b32.xlu0 %v1857_v37, %s2624_s27 }
0x195a   :  { %v1859_v38 = vpop.permute.xlu0 %1858 }
0x195b   :  { %2516 = vmatmul.mubr.msk.f32.vlgmr.msra.gmra.mxu1 %vm255_vm2, %v1859_v38 }
0x195c   :  { %2530 = vmatpush3.msra.mxu1 %v2076_v11 }
0x195d   :  { %2531 = vmatprep.subr.mxu1 %v2075_v12 }
0x195e   :  { %2532 = vmatpush3.msra.mxu1 %v2075_v12 }
0x1a1b   :  { %v1928_v39 = vpop.f32.mrf.mxu1 }
0x1a1c   :  { %v1929_v40 = vadd.f32 %v3154_v53, %v1928_v39 }
0x1a1d   :  { %v2517_v20 = vpop.f32.mrf.mxu1 }
0x1a1e   :  { %1940 = vrot.lane.b32.xlu1 %v1929_v40, %s2623_s7  ;;  %v1932_v41 = vadd.f32 %v1929_v40, %v3173_v61 }
0x1a20   :  { %v2213_v42 = vmul.f32 -1.442695, %v1932_v41 }
0x1a22   :  { %2609 = vpow2.f32 %v2213_v42 }
0x1a2f   :  { %v2610_v43 = vpop.eup %2609 }
0x1a30   :  { %v1936_v44 = vadd.f32 1.0, %v2610_v43 }
0x1a32   :  { %2611 = vrcp.f32 %v1936_v44 }
0x1a3f   :  { %v2612_v45 = vpop.eup %2611 }
0x1a40   :  { %v1950_v51 = vsub.f32 1.0, %v2612_v45  ;;  %v1957_v54 = vmul.f32 %v2612_v45, %v1857_v37 }
0x1a90   :  { %v1941_v46 = vpop.permute.xlu1 %1940 }
0x1a91   :  { %v1943_v47 = vmul.f32 %v2612_v45, %v1941_v46 }
0x1a93   :  { %1945 = vrot.lane.b32.xlu0 %v1943_v47, %s2623_s7 }
0x1b05   :  { %v1946_v48 = vpop.permute.xlu0 %1945 }
0x1b06   :  { %v1948_v49 = vadd.f32 %v1946_v48, %v3173_v61 }
0x1b08   :  { %2613 = vtanh.f32 %v1948_v49 }
0x1b15   :  { %v2614_v50 = vpop.eup %2613 }
0x1b16   :  { %1952 = vrot.lane.b32.xlu1 %v2614_v50, %s2624_s27 }
0x1b88   :  { %v1953_v52 = vpop.permute.xlu1 %1952 }
0x1b89   :  { %v1955_v55 = vmul.f32 %v1953_v52, %v1950_v51 }
0x1b8b   :  { %v1958_v56 = vadd.f32 %v1957_v54, %v1955_v55 }
0x1b8d   :  { %1960 = vrot.lane.b32.xlu0 %v1958_v56, %s2624_s27  ;;  %v2062_v15 = vrot.slane %v1958_v56, 4 }
0x1bff   :  { %v1961_v57 = vpop.permute.xlu0 %1960 }
0x1c00   :  { %1963 = vst.msk [vmem:[#allocation4 + $0x8] sm:$0xf] %vm1210_vm6, %v1961_v57  ;;  %2527 = vmatmul.mubr.msk.f32.vlgmr.msra.gmra.mxu0 %vm255_vm2, %v1961_v57 }
0x1cc0   :  { %v2032_v58 = vpop.f32.mrf.mxu0 }
0x1cc1   :  { %v2033_v59 = vadd.f32 %v3154_v53, %v2032_v58 }
0x1cc2   :  { %v2528_v60 = vpop.f32.mrf.mxu0 }
0x1cc3   :  { %v2037_v62 = vrot.slane %v2033_v59, 4 }
0x1cc5   :  { %2046 = vrot.lane.b32.xlu1 %v2037_v62, %s2623_s7  ;;  %v2039_v63 = vadd.f32 %v2037_v62, %v3173_v61 }
0x1cc7   :  { %v2215_v1 = vmul.f32 -1.442695, %v2039_v63 }
0x1cc9   :  { %2615 = vpow2.f32 %v2215_v1 }
0x1cd6   :  { %v2616_v2 = vpop.eup %2615 }
0x1cd7   :  { %v2043_v3 = vadd.f32 1.0, %v2616_v2 }
0x1cd9   :  { %2617 = vrcp.f32 %v2043_v3 }
0x1ce6   :  { %v2618_v4 = vpop.eup %2617 }
0x1ce7   :  { %v2056_v17 = vsub.f32 1.0, %v2618_v4  ;;  %v2064_v19 = vmul.f32 %v2618_v4, %v2062_v15 }
0x1d37   :  { %v2047_v5 = vpop.permute.xlu1 %2046 }
0x1d38   :  { %v2049_v6 = vmul.f32 %v2618_v4, %v2047_v5 }
0x1d3a   :  { %2051 = vrot.lane.b32.xlu0 %v2049_v6, %s2623_s7 }
0x1d3e   :  { %1853 = vrot.lane.b32.xlu0 %v1851_v36, %s2624_s27 }
0x1dac   :  { %v2052_v7 = vpop.permute.xlu0 %2051 }
0x1dad   :  { %v2054_v53 = vadd.f32 %v2052_v7, %v3173_v61  ;;  %v2074_v61 = vld [vmem:[%s3263_s23 + $0x8] sm:$0xff] }
0x1dae   :  { %2533 = vmatprep.subr.mxu1 %v2074_v61 }
0x1daf   :  { %2619 = vtanh.f32 %v2054_v53  ;;  %2534 = vmatpush3.msra.mxu1 %v2074_v61 }
0x1db0   :  { %v1854_v8 = vpop.permute.xlu0 %1853  ;;  %2535 = vmatprep.subr.mxu1 %v2073_v13 }
0x1db1   :  { %1856 = vst.msk [vmem:[#allocation4] sm:$0xf0] %vm1322_vm7, %v1854_v8  ;;  %2536 = vmatpush3.msra.mxu1 %v2073_v13 }
0x1db8   :  { %v2071_v9 = vld [vmem:[#allocation4] sm:$0xff] }
0x1db9   :  { %2537 = vmatprep.mubr.msk.f32.mxu1 %vm255_vm2, %v2071_v9 }
0x1dbc   :  { %v2620_v10 = vpop.eup %2619 }
0x1dbd   :  { %2058 = vrot.lane.b32.xlu1 %v2620_v10, %s2624_s27 }
0x1e2f   :  { %v2059_v18 = vpop.permute.xlu1 %2058 }
0x1e30   :  { %v2061_v21 = vmul.f32 %v2059_v18, %v2056_v17 }
0x1e32   :  { %v2065_v24 = vadd.f32 %v2064_v19, %v2061_v21 }
0x1e34   :  { %2067 = vrot.lane.b32.xlu1 %v2065_v24, %s2624_s27 }
0x1ea6   :  { %v2068_v22 = vpop.permute.xlu1 %2067 }
0x1ea7   :  { %2070 = vst.msk [vmem:[#allocation4 + $0x8] sm:$0xf0] %vm1322_vm7, %v2068_v22 }
0x1eae   :  { %v2072_v25 = vld [vmem:[#allocation4 + $0x8] sm:$0xff] }
0x1eaf   :  { %2538 = vmatmul.mubr.msk.f32.vlgmr.msra.gmra.mxu1 %vm255_vm2, %v2072_v25 }
0x1f6f   :  { %v2539_v27 = vpop.f32.mrf.mxu1 }
0x1f70   :  { %v2162_v26 = vadd.f32 %v2539_v27, %v2216_v16 }
0x1f71   :  { %v2156_v28 = vpop.f32.mrf.mxu1 }
0x1f72   :  { %2166 = vst.msk [vmem:[%s3265_s25 + $0x8] sm:$0xff] %vm932_vm5, %v2162_v26  ;;  %v2157_v29 = vadd.f32 %v2216_v16, %v2156_v28 }
0x1f74   :  { %2165 = vst.msk [vmem:[%s3265_s25] sm:$0xff] %vm932_vm5, %v2157_v29 }

// kernel: mudance_vae_forward.2
= control target key start
LH: loop header
LB: loop body
LE: loop exit
PB: predicated region body
PF: predicated region fallthrough
CT: control target
= control target key end

     0   :  { %s6329_s0 = inlined_call_operand.vmem [shape: f32[16,13], index: 0, kind: input, shape index: {}]   ;;  %s6330_s1 = inlined_call_operand.vmem [shape: f32[2,1], index: 1, kind: input, shape index: {}]   ;;  %s6331_s2 = inlined_call_operand.vmem [shape: f32[2,16], index: 2, kind: input, shape index: {}]   ;;  %s6332_s3 = inlined_call_operand.vmem [shape: f32[13,256], index: 3, kind: input, shape index: {}]   ;;  %s6333_s4 = inlined_call_operand.hbm [shape: f32[32,128], index: 4, kind: input, shape index: {}]   ;;  %s6334_s5 = inlined_call_operand.hbm [shape: f32[32,128], index: 5, kind: input, shape index: {}]   ;;  %s6335_s6 = inlined_call_operand.hbm [shape: f32[1,256], index: 6, kind: input, shape index: {}]   ;;  %s6336_s7 = inlined_call_operand.hbm [shape: f32[64,256], index: 7, kind: input, shape index: {}]   ;;  %s6337_s8 = inlined_call_operand.hbm [shape: f32[32,128], index: 8, kind: input, shape index: {}]   ;;  %s6338_s9 = inlined_call_operand.hbm [shape: f32[32,128], index: 9, kind: input, shape index: {}]   ;;  %s6339_s10 = inlined_call_operand.hbm [shape: f32[1,256], index: 10, kind: input, shape index: {}]   ;;  %s6340_s11 = inlined_call_operand.hbm [shape: f32[32,32], index: 11, kind: input, shape index: {}]   ;;  %s6341_s12 = inlined_call_operand.hbm [shape: f32[32,32], index: 12, kind: input, shape index: {}]   ;;  %s6342_s13 = inlined_call_operand.hbm [shape: f32[1,32], index: 13, kind: input, shape index: {}]   ;;  %s6343_s14 = inlined_call_operand.vmem [shape: f32[16,16], index: 14, kind: input, shape index: {}]   ;;  %s6344_s15 = inlined_call_operand.vmem [shape: f32[1,16], index: 15, kind: input, shape index: {}]   ;;  %s6345_s16 = inlined_call_operand.hbm [shape: f32[1,16], index: 16, kind: input, shape index: {}]   ;;  %s6346_s17 = inlined_call_operand.vmem [shape: f32[2,16], index: 17, kind: output, shape index: {0}]   ;;  %s6347_s18 = inlined_call_operand.vmem [shape: f32[2,16], index: 18, kind: output, shape index: {1}]   ;;  %s6348_s19 = inlined_call_operand.vmem [shape: f32[2,16], index: 19, kind: output, shape index: {2}]  }
   0x1   :  { %6351 = sst [smem:[#allocation26_spill]] %s6329_s0 }
   0x2   :  { %6352 = sst [smem:[#allocation27_spill]] %s6330_s1 }
   0x3   :  { %6353 = sst [smem:[#allocation28_spill]] %s6331_s2 }
   0x4   :  { %6354 = sst [smem:[#allocation29_spill]] %s6332_s3 }
   0x5   :  { %25 = vsyncpa [#allocation4], 0 }
   0x6   :  { %26 = vsyncpa [#allocation6], 0 }
   0x7   :  { %27 = vsyncpa [#allocation9], 0 }
   0x8   :  { %28 = vsyncpa [#allocation12], 0 }
   0x9   :  { %29 = vsyncpa [#allocation15], 0 }
   0xa   :  { %30 = vsyncpa [#allocation18], 0  ;;  %s5344_s0 = smov [#allocation5]   ;;  %s5345_s20 = smov [#allocation8]  }
   0xb   :  { %s56_s30 = sshll.u32 %s5344_s0, 4  ;;  %s78_s21 = sshll.u32 %s5345_s20, 4  ;;  %s57_s30 = int_to_ptr.vmem [resolvable:$true] %s56_s30  ;;  %s79_s21 = int_to_ptr.vmem [resolvable:$true] %s78_s21 }
   0xc   :  { %s5120_s1 = scalar_lea.vmem %s57_s30, 512  ;;  %p5125_p1 = scmp.lt.s32.totalorder %s57_s30, %s57_s30 }
   0xd   :  { %p5121_p0 = scmp.ne.s32.totalorder %s57_s30, %s5120_s1  ;;  %p5126_p2 = scmp.lt.s32.totalorder %s5120_s1, %s5120_s1 }
   0xf   :  { %p5127_p3 = por %p5126_p2, %p5125_p1 }
  0x11   :  { %p5128_p4 = pnand %p5127_p3, %p5121_p0 }
  0x13   :  { %5131 = shalt.err (!%p5128_p4)
}
  0x14   :  { %s5346_s22 = smov 128   ;;  %s5347_s2 = smov 8  }
  0x15   :  { %62 = dma.hbm_to_vmem [thread:$0]  %s6334_s5, 512, %s57_s30, [#allocation6], %s5346_s22, %s5346_s22, %s5347_s2  }
  0x16   :  { %s5140_s25 = scalar_lea.vmem %s79_s21, 2048  ;;  %p5145_p6 = scmp.lt.s32.totalorder %s79_s21, %s79_s21 }
  0x17   :  { %p5141_p5 = scmp.ne.s32.totalorder %s79_s21, %s5140_s25  ;;  %p5146_p7 = scmp.lt.s32.totalorder %s5140_s25, %s5140_s25 }
  0x19   :  { %p5147_p8 = por %p5146_p7, %p5145_p6 }
  0x1b   :  { %p5148_p9 = pnand %p5147_p8, %p5141_p5 }
  0x1d   :  { %5151 = shalt.err (!%p5148_p9)
}
  0x1e   :  { %s5348_s3 = smov 256   ;;  %s5349_s26 = smov 16  }
  0x1f   :  { %84 = dma.hbm_to_vmem [thread:$0]  %s6336_s7, 2048, %s79_s21, [#allocation9], %s5348_s3, %s5348_s3, %s5349_s26  }
  0x20   :  { %s5350_s29 = smov [#allocation11]   ;;  %s5351_s20 = smov [#allocation14]  }
  0x21   :  { %s102_s0 = sshll.u32 %s5350_s29, 4  ;;  %s124_s1 = sshll.u32 %s5351_s20, 4  ;;  %s103_s0 = int_to_ptr.vmem [resolvable:$true] %s102_s0  ;;  %s125_s1 = int_to_ptr.vmem [resolvable:$true] %s124_s1 }
  0x22   :  { %s5160_s5 = scalar_lea.vmem %s103_s0, 512  ;;  %p5165_p11 = scmp.lt.s32.totalorder %s103_s0, %s103_s0 }
  0x23   :  { %p5161_p10 = scmp.ne.s32.totalorder %s103_s0, %s5160_s5  ;;  %p5166_p12 = scmp.lt.s32.totalorder %s5160_s5, %s5160_s5 }
  0x25   :  { %p5167_p13 = por %p5166_p12, %p5165_p11 }
  0x27   :  { %p5168_p0 = pnand %p5167_p13, %p5161_p10 }
  0x29   :  { %5171 = shalt.err (!%p5168_p0)
}
  0x2a   :  { %108 = dma.hbm_to_vmem [thread:$0]  %s6338_s9, 512, %s103_s0, [#allocation12], %s5346_s22, %s5346_s22, %s5347_s2  }
  0x2b   :  { %s5180_s7 = scalar_lea.vmem %s125_s1, 512  ;;  %p5185_p2 = scmp.lt.s32.totalorder %s125_s1, %s125_s1 }
  0x2c   :  { %p5181_p1 = scmp.ne.s32.totalorder %s125_s1, %s5180_s7  ;;  %p5186_p3 = scmp.lt.s32.totalorder %s5180_s7, %s5180_s7 }
  0x2e   :  { %p5187_p4 = por %p5186_p3, %p5185_p2 }
  0x30   :  { %p5188_p5 = pnand %p5187_p4, %p5181_p1 }
  0x32   :  { %5191 = shalt.err (!%p5188_p5)
}
  0x33   :  { %130 = dma.hbm_to_vmem [thread:$0]  %s6340_s11, 512, %s125_s1, [#allocation15], %s5346_s22, %s5346_s22, %s5347_s2  }
  0x34   :  { %s5352_s25 = smov [#allocation17]   ;;  %s5353_s27 = smov [#allocation3]  }
  0x35   :  { %s149_s3 = sshll.u32 %s5352_s25, 4  ;;  %s44_s28 = sshll.u32 %s5353_s27, 4  ;;  %s150_s3 = int_to_ptr.vmem [resolvable:$true] %s149_s3  ;;  %s45_s28 = int_to_ptr.vmem [resolvable:$true] %s44_s28 }
  0x36   :  { %s5200_s9 = scalar_lea.vmem %s150_s3, 16  ;;  %s5204_s29 = scalar_lea.vmem %s150_s3, 32 }
  0x37   :  { %p5201_p6 = scmp.ne.s32.totalorder %s150_s3, %s5200_s9  ;;  %p5205_p7 = scmp.lt.s32.totalorder %s150_s3, %s150_s3 }
  0x38   :  { %p5206_p8 = scmp.lt.s32.totalorder %s5204_s29, %s5200_s9 }
  0x3a   :  { %p5207_p9 = por %p5206_p8, %p5205_p7 }
  0x3c   :  { %p5208_p10 = pnand %p5207_p9, %p5201_p6 }
  0x3e   :  { %5211 = shalt.err (!%p5208_p10)
}
  0x3f   :  { %152 = dma.hbm_to_vmem [thread:$0]  %s6342_s13, 16, %s150_s3, [#allocation18]  }
  0x40   :  { %s5220_s5 = scalar_lea.vmem %s45_s28, 512  ;;  %p5225_p12 = scmp.lt.s32.totalorder %s45_s28, %s45_s28 }
  0x41   :  { %p5221_p11 = scmp.ne.s32.totalorder %s45_s28, %s5220_s5  ;;  %p5226_p13 = scmp.lt.s32.totalorder %s5220_s5, %s5220_s5 }
  0x43   :  { %p5227_p0 = por %p5226_p13, %p5225_p12 }
  0x45   :  { %p5228_p1 = pnand %p5227_p0, %p5221_p11 }
  0x47   :  { %5231 = shalt.err (!%p5228_p1)
}
  0x48   :  { %50 = dma.hbm_to_vmem [thread:$0]  %s6333_s4, 512, %s45_s28, [#allocation4], %s5346_s22, %s5346_s22, %s5347_s2  }
  0x49   :  { %s5354_s30 = smov [#allocation7]   ;;  %s5355_s7 = smov [#allocation10]  }
  0x4a   :  { %s69_s23 = sshll.u32 %s5354_s30, 4  ;;  %s90_s21 = sshll.u32 %s5355_s7, 4  ;;  %s70_s23 = int_to_ptr.vmem [resolvable:$true] %s69_s23  ;;  %s91_s21 = int_to_ptr.vmem [resolvable:$true] %s90_s21 }
  0x4b   :  { %s5240_s13 = scalar_lea.vmem %s70_s23, 32  ;;  %p5245_p3 = scmp.lt.s32.totalorder %s70_s23, %s70_s23 }
  0x4c   :  { %p5241_p2 = scmp.ne.s32.totalorder %s70_s23, %s5240_s13  ;;  %p5246_p4 = scmp.lt.s32.totalorder %s5240_s13, %s5240_s13 }
  0x4e   :  { %p5247_p5 = por %p5246_p4, %p5245_p3 }
  0x50   :  { %p5248_p6 = pnand %p5247_p5, %p5241_p2 }
  0x52   :  { %5251 = shalt.err (!%p5248_p6)
}
  0x53   :  { %72 = dma.hbm_to_vmem [thread:$0]  %s6335_s6, 32, %s70_s23, [#allocation6]  }
  0x54   :  { %s5260_s3 = scalar_lea.vmem %s91_s21, 512  ;;  %p5265_p8 = scmp.lt.s32.totalorder %s91_s21, %s91_s21 }
  0x55   :  { %p5261_p7 = scmp.ne.s32.totalorder %s91_s21, %s5260_s3  ;;  %p5266_p9 = scmp.lt.s32.totalorder %s5260_s3, %s5260_s3 }
  0x57   :  { %p5267_p10 = por %p5266_p9, %p5265_p8 }
  0x59   :  { %p5268_p11 = pnand %p5267_p10, %p5261_p7 }
  0x5b   :  { %5271 = shalt.err (!%p5268_p11)
}
  0x5c   :  { %96 = dma.hbm_to_vmem [thread:$0]  %s6337_s8, 512, %s91_s21, [#allocation9], %s5346_s22, %s5346_s22, %s5347_s2  }
  0x5d   :  { %s5356_s28 = smov [#allocation13]   ;;  %s5357_s29 = smov [#allocation16]  }
  0x5e   :  { %s115_s9 = sshll.u32 %s5356_s28, 4  ;;  %s136_s0 = sshll.u32 %s5357_s29, 4  ;;  %s116_s9 = int_to_ptr.vmem [resolvable:$true] %s115_s9  ;;  %s137_s0 = int_to_ptr.vmem [resolvable:$true] %s136_s0 }
  0x5f   :  { %s5280_s6 = scalar_lea.vmem %s116_s9, 32  ;;  %p5285_p13 = scmp.lt.s32.totalorder %s116_s9, %s116_s9 }
  0x60   :  { %p5281_p12 = scmp.ne.s32.totalorder %s116_s9, %s5280_s6  ;;  %p5286_p0 = scmp.lt.s32.totalorder %s5280_s6, %s5280_s6 }
  0x62   :  { %p5287_p1 = por %p5286_p0, %p5285_p13 }
  0x64   :  { %p5288_p2 = pnand %p5287_p1, %p5281_p12 }
  0x66   :  { %5291 = shalt.err (!%p5288_p2)
}
  0x67   :  { %118 = dma.hbm_to_vmem [thread:$0]  %s6339_s10, 32, %s116_s9, [#allocation12]  }
  0x68   :  { %s5300_s11 = scalar_lea.vmem %s137_s0, 512  ;;  %p5305_p4 = scmp.lt.s32.totalorder %s137_s0, %s137_s0 }
  0x69   :  { %p5301_p3 = scmp.ne.s32.totalorder %s137_s0, %s5300_s11  ;;  %p5306_p5 = scmp.lt.s32.totalorder %s5300_s11, %s5300_s11 }
  0x6b   :  { %p5307_p6 = por %p5306_p5, %p5305_p4 }
  0x6d   :  { %p5308_p7 = pnand %p5307_p6, %p5301_p3 }
  0x6f   :  { %5311 = shalt.err (!%p5308_p7)
}
  0x70   :  { %142 = dma.hbm_to_vmem [thread:$0]  %s6341_s12, 512, %s137_s0, [#allocation15], %s5346_s22, %s5346_s22, %s5347_s2  }
  0x71   :  { %s5358_s30 = smov [#allocation19]  }
  0x72   :  { %s163_s23 = sshll.u32 %s5358_s30, 4  ;;  %s164_s23 = int_to_ptr.vmem [resolvable:$true] %s163_s23 }
  0x73   :  { %s5320_s7 = scalar_lea.vmem %s164_s23, 16  ;;  %s5324_s10 = scalar_lea.vmem %s164_s23, 32 }
  0x74   :  { %p5321_p8 = scmp.ne.s32.totalorder %s164_s23, %s5320_s7  ;;  %p5325_p9 = scmp.lt.s32.totalorder %s164_s23, %s164_s23 }
  0x75   :  { %p5326_p10 = scmp.lt.s32.totalorder %s5324_s10, %s5320_s7 }
  0x77   :  { %p5327_p11 = por %p5326_p10, %p5325_p9 }
  0x79   :  { %p5328_p12 = pnand %p5327_p11, %p5321_p8 }
  0x7b   :  { %5331 = shalt.err (!%p5328_p12)
}
  0x7c   :  { %166 = dma.hbm_to_vmem [thread:$0]  %s6345_s16, 16, %s164_s23, [#allocation18]  }
  0x7d   :  { %5332 = dma.done.wait [#allocation4], 512  }
  0x7e   :  { %5333 = vsyncadd [#allocation4], 4294966784 }
  0x7f   :  { %5334 = dma.done.wait [#allocation6], 544  }
  0x80   :  { %5335 = vsyncadd [#allocation6], 4294966752 }
  0x81   :  { %5336 = dma.done.wait [#allocation9], 2560  }
  0x82   :  { %5337 = vsyncadd [#allocation9], 4294964736 }
  0x83   :  { %5338 = dma.done.wait [#allocation12], 544  }
  0x84   :  { %5339 = vsyncadd [#allocation12], 4294966752 }
  0x85   :  { %5340 = dma.done.wait [#allocation15], 1024  }
  0x86   :  { %5341 = vsyncadd [#allocation15], 4294966272 }
  0x87   :  { %5342 = dma.done.wait [#allocation18], 32  }
  0x88   :  { %5343 = vsyncadd [#allocation18], 4294967264  ;;  %v5359_v0 = vmov 0.0   ;;  %vm5360_vm0 = vmmov 0   ;;  %vm225_vm1 = vcmask 1044480   ;;  %s6355_s22 = sld [smem:[#allocation29_spill]]  ;;  %v208_v15 = vlaneseq }
  0x89   :  { %4437 = vmatprep.subr.mxu1 %v5359_v0  ;;  %296 = vmatprep.mubr.f32.mxu0 %v5359_v0  ;;  %v5524_v2 = vld [vmem:[#allocation3 + $0x18] sm:$0xff]  ;;  %v5533_v5 = vld [vmem:[#allocation3 + $0x10] sm:$0xff]  ;;  %s6356_s29 = sld [smem:[#allocation26_spill]]  ;;  %vm218_vm2 = vcmask 105472   ;;  %v5542_v8 = vld [vmem:[#allocation3 + $0x8] sm:$0xff]  ;;  %s5361_s20 = smov 64  }
  0x8a   :  { %4445 = vmatprep.mubr.msk.f32.mxu1 %vm5360_vm0, %v5359_v0  ;;  %4438 = vmatpush3.msra.mxu1 %v5524_v2  ;;  %v5546_v9 = vld [vmem:[#allocation5 + $0x18] sm:$0xff]  ;;  %v5548_v10 = vld [vmem:[#allocation3] sm:$0xff]  ;;  %v5554_v11 = vld [vmem:[#allocation5 + $0x10] sm:$0xff]  ;;  %v5599_v16 = vshrl.u32 %v208_v15, 7  ;;  %s5362_s5 = smov 32   ;;  %vm317_vm3 = vcmask 261120  }
  0x8b   :  { %4439 = vmatprep.subr.mxu1 %v5359_v0  ;;  %v5563_v13 = vld [vmem:[#allocation5 + $0x8] sm:$0xff]  ;;  %v5569_v14 = vld [vmem:[#allocation5] sm:$0xff]  ;;  %vm518_vm4 = vcmask 254976   ;;  %vm739_vm5 = vcmask 257026   ;;  %vm1184_vm6 = vcmask 261126   ;;  %vm963_vm7 = vcmask 259076  }
  0x8c   :  { %4440 = vmatpush3.msra.mxu1 %v5533_v5  ;;  %v214_v17 = vsub.s32 1, %v5599_v16  ;;  %v206_v18 = vld [vmem:[#allocation7] sm:$0x3]  ;;  %v210_v20 = vsub.s32 0, %v5599_v16  ;;  %vm745_vm8 = vcmask 521476   ;;  %vm524_vm9 = vcmask 523526  }
  0x8d   :  { %4441 = vmatprep.subr.mxu1 %v5359_v0  ;;  %vm969_vm10 = vcmask 519426   ;;  %vm1190_vm11 = vcmask 517376   ;;  %vm2100_vm12 = vcmask 523264   ;;  %s6357_s1 = sld [smem:[#allocation28_spill]]  ;;  %vm4165_vm13 = vcmask 123904  }
  0x8e   :  { %v205_v1 = vld [vmem:[%s6355_s22 + $0x18] sm:$0x1f]  ;;  %v204_v3 = vld [vmem:[%s6355_s22 + $0x10] sm:$0x1f]  ;;  %v203_v4 = vld [vmem:[%s6355_s22 + $0x8] sm:$0xff]  ;;  %4442 = vmatpush3.msra.mxu1 %v5542_v8  ;;  %v215_v19 = vrot.slane %v206_v18, %v214_v17  ;;  %v211_v24 = vrot.slane %v206_v18, %v210_v20  ;;  %s6358_s16 = sld [smem:[#allocation27_spill]] }
  0x8f   :  { %4192 = vmatprep.subr.msk.mxu0 %vm225_vm1, %v205_v1  ;;  %v202_v6 = vld [vmem:[%s6355_s22] sm:$0xff]  ;;  %4443 = vmatprep.subr.mxu1 %v5359_v0  ;;  %v201_v12 = vld [vmem:[%s6356_s29 + $0x8] sm:$0xff] }
  0x90   :  { %4193 = vmatpush1.msk.msra.mxu0 %vm225_vm1, %v204_v3  ;;  %v200_v7 = vld [vmem:[%s6356_s29] sm:$0xff]  ;;  %4444 = vmatpush3.msra.mxu1 %v5548_v10 }
  0x91   :  { %262 = vmatprep.subr.mxu0 %v203_v4  ;;  %4446 = vmatmul.mubr.f32.vlgmr.msra.gmra.mxu1 %v5359_v0 }
  0x92   :  { %263 = vmatpush1.msra.mxu0 %v202_v6  ;;  %4459 = vmatprep.subr.mxu1 %v5359_v0 }
  0x93   :  { %4194 = vmatmul.mubr.msk.f32.vlgmr.msra.gmra.mxu0 %vm218_vm2, %v200_v7  ;;  %4448 = vmatprep.subr.mxu0 %v5359_v0 }
  0x94   :  { %4449 = vmatpush3.msra.mxu0 %v5546_v9  ;;  %302 = vmatprep.mubr.f32.mxu0 %v5359_v0 }
  0x95   :  { %4450 = vmatprep.subr.mxu0 %v5359_v0  ;;  %4460 = vmatpush3.msra.mxu1 %v5524_v2 }
  0x96   :  { %4451 = vmatpush3.msra.mxu0 %v5554_v11  ;;  %4461 = vmatprep.subr.mxu1 %v5359_v0 }
  0x97   :  { %4195 = vmatmul.mubr.msk.f32.gmra.mxu0 %vm218_vm2, %v201_v12  ;;  %4452 = vmatprep.subr.mxu0 %v5359_v0 }
  0x98   :  { %4453 = vmatpush3.msra.mxu0 %v5563_v13  ;;  %4456 = vmatprep.mubr.msk.f32.mxu0 %vm5360_vm0, %v5359_v0 }
  0x99   :  { %4454 = vmatprep.subr.mxu0 %v5359_v0  ;;  %4462 = vmatpush3.msra.mxu1 %v5533_v5 }
  0x9a   :  { %4455 = vmatpush3.msra.mxu0 %v5569_v14  ;;  %4463 = vmatprep.subr.mxu1 %v5359_v0 }
  0x9b   :  { %4457 = vmatmul.mubr.f32.vlgmr.msra.gmra.mxu0 %v5359_v0  ;;  %4470 = vmatprep.subr.mxu0 %v5359_v0 }
  0x9c   :  { %4471 = vmatpush3.msra.mxu0 %v5546_v9  ;;  %4464 = vmatpush3.msra.mxu1 %v5542_v8 }
  0x9d   :  { %4472 = vmatprep.subr.mxu0 %v5359_v0  ;;  %4478 = vmatprep.mubr.msk.f32.mxu0 %vm5360_vm0, %v5359_v0 }
  0x9e   :  { %4473 = vmatpush3.msra.mxu0 %v5554_v11  ;;  %4465 = vmatprep.subr.mxu1 %v5359_v0 }
  0x9f   :  { %4474 = vmatprep.subr.mxu0 %v5359_v0  ;;  %4466 = vmatpush3.msra.mxu1 %v5548_v10 }
  0xa0   :  { %4475 = vmatpush3.msra.mxu0 %v5563_v13  ;;  %4467 = vmatprep.mubr.msk.f32.mxu1 %vm5360_vm0, %v5359_v0 }
  0xa1   :  { %4476 = vmatprep.subr.mxu0 %v5359_v0  ;;  %4481 = vmatprep.subr.mxu1 %v5359_v0 }
  0xa2   :  { %4477 = vmatpush3.msra.mxu0 %v5569_v14 }
  0xa3   :  { %4492 = vmatprep.subr.mxu0 %v5359_v0 }
 0x151   :  { %v387_v25 = vpop.f32.mrf.mxu1 }
 0x153   :  { %v298_v21 = vpop.f32.mrf.mxu0  ;;  %v4447_v28 = vpop.f32.mrf.mxu1 }
 0x154   :  { %v5611_v31 = vadd.f32 %v298_v21, %v211_v24 }
 0x155   :  { %v300_v22 = vpop.f32.mrf.mxu0 }
 0x156   :  { %v5605_v23 = vadd.f32 %v300_v22, %v215_v19  ;;  %v391_v36 = vadd.f32 %v387_v25, %v5611_v31 }
 0x157   :  { %v304_v26 = vpop.f32.mrf.mxu0 }
 0x158   :  { %v5609_v27 = vadd.f32 %v304_v26, %v211_v24  ;;  %v4196_v40 = vmul.f32 -1.442695, %v391_v36 }
 0x159   :  { %v306_v29 = vpop.f32.mrf.mxu0 }
 0x15a   :  { %v5613_v32 = vadd.f32 %v306_v29, %v215_v19 }
 0x15b   :  { %v458_v30 = vpop.f32.mrf.mxu0 }
 0x15c   :  { %v463_v33 = vrot.slane %v458_v30, 2 }
 0x15d   :  { %v4458_v34 = vpop.f32.mrf.mxu0 }
 0x15e   :  { %v465_v35 = vadd.f32 %v463_v33, %v5613_v32 }
 0x160   :  { %4840 = vtanh.f32 %v465_v35  ;;  %v4197_v39 = vmul.f32 -1.442695, %v465_v35 }
 0x161   :  { %4842 = vtanh.f32 %v391_v36 }
 0x162   :  { %4844 = vpow2.f32 %v4197_v39 }
 0x163   :  { %4846 = vpow2.f32 %v4196_v40 }
 0x16d   :  { %v4841_v37 = vpop.eup %4840 }
 0x16e   :  { %499 = vrot.lane.b32.xlu0 %v4841_v37, %s5361_s20  ;;  %v4843_v38 = vpop.eup %4842 }
 0x16f   :  { %v4845_v41 = vpop.eup %4844 }
 0x170   :  { %v493_v42 = vadd.f32 1.0, %v4845_v41  ;;  %v4847_v43 = vpop.eup %4846 }
 0x171   :  { %v469_v44 = vadd.f32 1.0, %v4847_v43 }
 0x172   :  { %475 = vrot.lane.b32.xlu0 %v4843_v38, %s5361_s20  ;;  %4848 = vrcp.f32 %v493_v42 }
 0x173   :  { %4850 = vrcp.f32 %v469_v44 }
 0x17f   :  { %v4849_v45 = vpop.eup %4848 }
 0x180   :  { %v4851_v48 = vpop.eup %4850  ;;  %v497_v51 = vmul.f32 0.0, %v4849_v45 }
 0x181   :  { %v473_v54 = vmul.f32 0.0, %v4851_v48 }
 0x1e0   :  { %v500_v46 = vpop.permute.xlu0 %499 }
 0x1e1   :  { %v502_v47 = vmul.f32 %v4849_v45, %v500_v46 }
 0x1e3   :  { %504 = vrot.lane.b32.xlu1 %v502_v47, %s5362_s5 }
 0x1e4   :  { %v476_v49 = vpop.permute.xlu0 %475 }
 0x1e5   :  { %v478_v50 = vmul.f32 %v4851_v48, %v476_v49 }
 0x1e7   :  { %480 = vrot.lane.b32.xlu1 %v478_v50, %s5362_s5 }
 0x255   :  { %v505_v52 = vpop.permute.xlu1 %504 }
 0x256   :  { %v5621_v53 = vadd.f32 %v505_v52, %v497_v51 }
 0x258   :  { %4852 = vtanh.f32 %v5621_v53  ;;  %v716_v40 = vrot.slane %v5621_v53, 2 }
 0x259   :  { %v481_v55 = vpop.permute.xlu1 %480 }
 0x25a   :  { %v5624_v56 = vadd.f32 %v481_v55, %v473_v54 }
 0x25c   :  { %4854 = vtanh.f32 %v5624_v56  ;;  %v689_v42 = vrot.slane %v5624_v56, 6 }
 0x265   :  { %v4853_v57 = vpop.eup %4852 }
 0x266   :  { %510 = vrot.lane.b32.xlu0 %v4853_v57, %s5361_s20 }
 0x269   :  { %v4855_v58 = vpop.eup %4854 }
 0x26a   :  { %486 = vrot.lane.b32.xlu1 %v4855_v58, %s5361_s20 }
 0x2d8   :  { %v511_v59 = vpop.permute.xlu0 %510 }
 0x2d9   :  { %v5629_v60 = vmul.f32 %v4849_v45, %v511_v59 }
 0x2db   :  { %v602_v61 = vrot.slane %v5629_v60, 6 }
 0x2dc   :  { %v487_v62 = vpop.permute.xlu1 %486 }
 0x2dd   :  { %v489_v63 = vmul.f32 %v4851_v48, %v487_v62  ;;  %603 = vrot.lane.b32.xlu0 %v602_v61, %s5362_s5 }
 0x2df   :  { %515 = vrot.lane.b32.xlu1 %v489_v63, %s5362_s5 }
 0x34f   :  { %v604_v1 = vpop.permute.xlu0 %603 }
 0x350   :  { %4479 = vmatmul.mubr.msk.f32.vlgmr.msra.gmra.mxu0 %vm317_vm3, %v604_v1 }
 0x351   :  { %v516_v3 = vpop.permute.xlu1 %515  ;;  %4493 = vmatpush3.msra.mxu0 %v5546_v9  ;;  %4500 = vmatprep.mubr.msk.f32.mxu0 %vm5360_vm0, %v5359_v0 }
 0x352   :  { %519 = vst.msk [vmem:[#allocation2] sm:$0x3] %vm518_vm4, %v516_v3  ;;  %4468 = vmatmul.mubr.msk.f32.vlgmr.msra.gmra.mxu1 %vm317_vm3, %v516_v3  ;;  %4494 = vmatprep.subr.mxu0 %v5359_v0 }
 0x353   :  { %4482 = vmatpush3.msra.mxu1 %v5524_v2  ;;  %4495 = vmatpush3.msra.mxu0 %v5554_v11 }
 0x354   :  { %4483 = vmatprep.subr.mxu1 %v5359_v0  ;;  %4496 = vmatprep.subr.mxu0 %v5359_v0 }
 0x355   :  { %4484 = vmatpush3.msra.mxu1 %v5533_v5  ;;  %4497 = vmatpush3.msra.mxu0 %v5563_v13 }
 0x356   :  { %4485 = vmatprep.subr.mxu1 %v5359_v0  ;;  %4498 = vmatprep.subr.mxu0 %v5359_v0 }
 0x357   :  { %4499 = vmatpush3.msra.mxu0 %v5569_v14  ;;  %4486 = vmatpush3.msra.mxu1 %v5542_v8 }
 0x358   :  { %4487 = vmatprep.subr.mxu1 %v5359_v0  ;;  %4489 = vmatprep.mubr.msk.f32.mxu1 %vm5360_vm0, %v5359_v0 }
 0x359   :  { %4488 = vmatpush3.msra.mxu1 %v5548_v10  ;;  %4514 = vmatprep.subr.mxu0 %v5359_v0 }
 0x35a   :  { %4503 = vmatprep.subr.mxu1 %v5359_v0 }
 0x410   :  { %v673_v4 = vpop.f32.mrf.mxu0 }
 0x411   :  { %v678_v6 = vrot.slane %v673_v4, 4 }
 0x412   :  { %v594_v7 = vpop.f32.mrf.mxu1  ;;  %v4480_v12 = vpop.f32.mrf.mxu0 }
 0x413   :  { %v680_v15 = vadd.f32 %v678_v6, %v5613_v32  ;;  %v599_v18 = vrot.slane %v594_v7, 6 }
 0x414   :  { %v4469_v19 = vpop.f32.mrf.mxu1 }
 0x415   :  { %4856 = vtanh.f32 %v680_v15  ;;  %v601_v21 = vadd.f32 %v599_v18, %v5611_v31  ;;  %v4201_v25 = vmul.f32 -1.442695, %v680_v15 }
 0x417   :  { %4858 = vtanh.f32 %v601_v21  ;;  %v4200_v26 = vmul.f32 -1.442695, %v601_v21 }
 0x418   :  { %4860 = vpow2.f32 %v4201_v25 }
 0x419   :  { %4862 = vpow2.f32 %v4200_v26 }
 0x422   :  { %v4857_v22 = vpop.eup %4856 }
 0x423   :  { %720 = vrot.lane.b32.xlu0 %v4857_v22, %s5361_s20 }
 0x424   :  { %v4859_v24 = vpop.eup %4858 }
 0x425   :  { %693 = vrot.lane.b32.xlu1 %v4859_v24, %s5361_s20  ;;  %v4861_v28 = vpop.eup %4860 }
 0x426   :  { %v4863_v29 = vpop.eup %4862  ;;  %v711_v30 = vadd.f32 1.0, %v4861_v28 }
 0x427   :  { %v684_v33 = vadd.f32 1.0, %v4863_v29 }
 0x428   :  { %4864 = vrcp.f32 %v711_v30 }
 0x429   :  { %4866 = vrcp.f32 %v684_v33 }
 0x435   :  { %v4865_v34 = vpop.eup %4864 }
 0x436   :  { %v4867_v37 = vpop.eup %4866  ;;  %v718_v41 = vmul.f32 %v4865_v34, %v716_v40 }
 0x437   :  { %v691_v45 = vmul.f32 %v4867_v37, %v689_v42 }
 0x495   :  { %v721_v35 = vpop.permute.xlu0 %720 }
 0x496   :  { %v723_v36 = vmul.f32 %v4865_v34, %v721_v35 }
 0x497   :  { %v694_v38 = vpop.permute.xlu1 %693 }
 0x498   :  { %725 = vrot.lane.b32.xlu0 %v723_v36, %s5362_s5  ;;  %v696_v39 = vmul.f32 %v4867_v37, %v694_v38 }
 0x49a   :  { %698 = vrot.lane.b32.xlu1 %v696_v39, %s5362_s5 }
 0x50a   :  { %v726_v43 = vpop.permute.xlu0 %725 }
 0x50b   :  { %v5665_v44 = vadd.f32 %v726_v43, %v718_v41 }
 0x50c   :  { %v699_v46 = vpop.permute.xlu1 %698 }
 0x50d   :  { %4868 = vtanh.f32 %v5665_v44  ;;  %v5668_v47 = vadd.f32 %v699_v46, %v691_v45  ;;  %v940_v33 = vrot.slane %v5665_v44, 2 }
 0x50f   :  { %4870 = vtanh.f32 %v5668_v47  ;;  %v913_v35 = vrot.slane %v5668_v47, 6 }
 0x51a   :  { %v4869_v48 = vpop.eup %4868 }
 0x51b   :  { %731 = vrot.lane.b32.xlu0 %v4869_v48, %s5361_s20 }
 0x51c   :  { %v4871_v49 = vpop.eup %4870 }
 0x51d   :  { %704 = vrot.lane.b32.xlu1 %v4871_v49, %s5361_s20 }
 0x58d   :  { %v732_v50 = vpop.permute.xlu0 %731 }
 0x58e   :  { %v5673_v51 = vmul.f32 %v4865_v34, %v732_v50 }
 0x58f   :  { %v705_v53 = vpop.permute.xlu1 %704 }
 0x590   :  { %v826_v52 = vrot.slane %v5673_v51, 4  ;;  %v5676_v54 = vmul.f32 %v4867_v37, %v705_v53 }
 0x592   :  { %827 = vrot.lane.b32.xlu0 %v826_v52, %s5362_s5  ;;  %v747_v55 = vrot.slane %v5676_v54, 2 }
 0x594   :  { %748 = vrot.lane.b32.xlu1 %v747_v55, %s5362_s5 }
 0x604   :  { %v828_v56 = vpop.permute.xlu0 %827 }
 0x605   :  { %4501 = vmatmul.mubr.msk.f32.vlgmr.msra.gmra.mxu0 %vm317_vm3, %v828_v56 }
 0x606   :  { %4515 = vmatpush3.msra.mxu0 %v5546_v9  ;;  %4522 = vmatprep.mubr.msk.f32.mxu0 %vm5360_vm0, %v5359_v0  ;;  %v749_v57 = vpop.permute.xlu1 %748 }
 0x607   :  { %4516 = vmatprep.subr.mxu0 %v5359_v0  ;;  %4490 = vmatmul.mubr.msk.f32.vlgmr.msra.gmra.mxu1 %vm317_vm3, %v749_v57 }
 0x608   :  { %4517 = vmatpush3.msra.mxu0 %v5554_v11  ;;  %4504 = vmatpush3.msra.mxu1 %v5524_v2 }
 0x609   :  { %4518 = vmatprep.subr.mxu0 %v5359_v0  ;;  %4505 = vmatprep.subr.mxu1 %v5359_v0 }
 0x60a   :  { %4519 = vmatpush3.msra.mxu0 %v5563_v13  ;;  %4506 = vmatpush3.msra.mxu1 %v5533_v5 }
 0x60b   :  { %4520 = vmatprep.subr.mxu0 %v5359_v0  ;;  %4507 = vmatprep.subr.mxu1 %v5359_v0 }
 0x60c   :  { %4521 = vmatpush3.msra.mxu0 %v5569_v14  ;;  %4508 = vmatpush3.msra.mxu1 %v5542_v8 }
 0x60d   :  { %4511 = vmatprep.mubr.msk.f32.mxu1 %vm5360_vm0, %v5359_v0  ;;  %4509 = vmatprep.subr.mxu1 %v5359_v0 }
 0x60e   :  { %4536 = vmatprep.subr.mxu0 %v5359_v0  ;;  %4510 = vmatpush3.msra.mxu1 %v5548_v10 }
 0x60f   :  { %4525 = vmatprep.subr.mxu1 %v5359_v0 }
 0x6c5   :  { %v897_v58 = vpop.f32.mrf.mxu0 }
 0x6c6   :  { %v902_v59 = vrot.slane %v897_v58, 6 }
 0x6c7   :  { %v4502_v61 = vpop.f32.mrf.mxu0  ;;  %v818_v63 = vpop.f32.mrf.mxu1 }
 0x6c8   :  { %v904_v62 = vadd.f32 %v902_v59, %v5613_v32  ;;  %v823_v1 = vrot.slane %v818_v63, 4 }
 0x6c9   :  { %v4491_v3 = vpop.f32.mrf.mxu1 }
 0x6ca   :  { %4872 = vtanh.f32 %v904_v62  ;;  %v825_v4 = vadd.f32 %v823_v1, %v5611_v31  ;;  %v4205_v12 = vmul.f32 -1.442695, %v904_v62 }
 0x6cc   :  { %4874 = vtanh.f32 %v825_v4  ;;  %v4204_v15 = vmul.f32 -1.442695, %v825_v4 }
 0x6cd   :  { %4876 = vpow2.f32 %v4205_v12 }
 0x6ce   :  { %4878 = vpow2.f32 %v4204_v15 }
 0x6d7   :  { %v4873_v6 = vpop.eup %4872 }
 0x6d8   :  { %944 = vrot.lane.b32.xlu0 %v4873_v6, %s5361_s20 }
 0x6d9   :  { %v4875_v7 = vpop.eup %4874 }
 0x6da   :  { %917 = vrot.lane.b32.xlu1 %v4875_v7, %s5361_s20  ;;  %v4877_v18 = vpop.eup %4876 }
 0x6db   :  { %v4879_v19 = vpop.eup %4878  ;;  %v935_v21 = vadd.f32 1.0, %v4877_v18 }
 0x6dc   :  { %v908_v22 = vadd.f32 1.0, %v4879_v19 }
 0x6dd   :  { %4880 = vrcp.f32 %v935_v21 }
 0x6de   :  { %4882 = vrcp.f32 %v908_v22 }
 0x6ea   :  { %v4881_v24 = vpop.eup %4880 }
 0x6eb   :  { %v4883_v28 = vpop.eup %4882  ;;  %v942_v34 = vmul.f32 %v4881_v24, %v940_v33 }
 0x6ec   :  { %v915_v38 = vmul.f32 %v4883_v28, %v913_v35 }
 0x74a   :  { %v945_v25 = vpop.permute.xlu0 %944 }
 0x74b   :  { %v947_v26 = vmul.f32 %v4881_v24, %v945_v25 }
 0x74c   :  { %v918_v29 = vpop.permute.xlu1 %917 }
 0x74d   :  { %949 = vrot.lane.b32.xlu0 %v947_v26, %s5362_s5  ;;  %v920_v30 = vmul.f32 %v4883_v28, %v918_v29 }
 0x74f   :  { %922 = vrot.lane.b32.xlu1 %v920_v30, %s5362_s5 }
 0x7bf   :  { %v950_v36 = vpop.permute.xlu0 %949 }
 0x7c0   :  { %v5711_v37 = vadd.f32 %v950_v36, %v942_v34 }
 0x7c1   :  { %v923_v39 = vpop.permute.xlu1 %922 }
 0x7c2   :  { %4884 = vtanh.f32 %v5711_v37  ;;  %v5714_v40 = vadd.f32 %v923_v39, %v915_v38  ;;  %v1161_v21 = vrot.slane %v5711_v37, 2 }
 0x7c4   :  { %4886 = vtanh.f32 %v5714_v40  ;;  %v1134_v26 = vrot.slane %v5714_v40, 6 }
 0x7cf   :  { %v4885_v41 = vpop.eup %4884 }
 0x7d0   :  { %955 = vrot.lane.b32.xlu0 %v4885_v41, %s5361_s20 }
 0x7d1   :  { %v4887_v42 = vpop.eup %4886 }
 0x7d2   :  { %928 = vrot.lane.b32.xlu1 %v4887_v42, %s5361_s20 }
 0x842   :  { %v956_v43 = vpop.permute.xlu0 %955 }
 0x843   :  { %v5719_v44 = vmul.f32 %v4881_v24, %v956_v43 }
 0x844   :  { %v929_v46 = vpop.permute.xlu1 %928 }
 0x845   :  { %v1050_v45 = vrot.slane %v5719_v44, 2  ;;  %v5722_v47 = vmul.f32 %v4883_v28, %v929_v46 }
 0x847   :  { %1051 = vrot.lane.b32.xlu0 %v1050_v45, %s5362_s5  ;;  %v971_v48 = vrot.slane %v5722_v47, 4 }
 0x849   :  { %972 = vrot.lane.b32.xlu1 %v971_v48, %s5362_s5 }
 0x8b9   :  { %v1052_v49 = vpop.permute.xlu0 %1051 }
 0x8ba   :  { %4523 = vmatmul.mubr.msk.f32.vlgmr.msra.gmra.mxu0 %vm317_vm3, %v1052_v49 }
 0x8bb   :  { %4537 = vmatpush3.msra.mxu0 %v5546_v9  ;;  %4544 = vmatprep.mubr.msk.f32.mxu0 %vm5360_vm0, %v5359_v0  ;;  %v973_v50 = vpop.permute.xlu1 %972 }
 0x8bc   :  { %4538 = vmatprep.subr.mxu0 %v5359_v0  ;;  %4512 = vmatmul.mubr.msk.f32.vlgmr.msra.gmra.mxu1 %vm317_vm3, %v973_v50 }
 0x8bd   :  { %4539 = vmatpush3.msra.mxu0 %v5554_v11  ;;  %4526 = vmatpush3.msra.mxu1 %v5524_v2 }
 0x8be   :  { %4540 = vmatprep.subr.mxu0 %v5359_v0  ;;  %4527 = vmatprep.subr.mxu1 %v5359_v0 }
 0x8bf   :  { %4541 = vmatpush3.msra.mxu0 %v5563_v13  ;;  %4528 = vmatpush3.msra.mxu1 %v5533_v5 }
 0x8c0   :  { %4542 = vmatprep.subr.mxu0 %v5359_v0  ;;  %4529 = vmatprep.subr.mxu1 %v5359_v0 }
 0x8c1   :  { %4543 = vmatpush3.msra.mxu0 %v5569_v14  ;;  %4530 = vmatpush3.msra.mxu1 %v5542_v8 }
 0x8c2   :  { %4533 = vmatprep.mubr.msk.f32.mxu1 %vm5360_vm0, %v5359_v0  ;;  %4531 = vmatprep.subr.mxu1 %v5359_v0 }
 0x8c3   :  { %4558 = vmatprep.subr.mxu0 %v5359_v0  ;;  %4532 = vmatpush3.msra.mxu1 %v5548_v10 }
 0x8c4   :  { %4547 = vmatprep.subr.mxu1 %v5359_v0 }
 0x97a   :  { %v1121_v52 = vpop.f32.mrf.mxu0 }
 0x97b   :  { %v1125_v53 = vadd.f32 %v1121_v52, %v5613_v32 }
 0x97c   :  { %v4524_v55 = vpop.f32.mrf.mxu0  ;;  %v1042_v56 = vpop.f32.mrf.mxu1 }
 0x97d   :  { %4888 = vtanh.f32 %v1125_v53  ;;  %v1047_v57 = vrot.slane %v1042_v56, 2  ;;  %v4209_v63 = vmul.f32 -1.442695, %v1125_v53 }
 0x97e   :  { %v4513_v58 = vpop.f32.mrf.mxu1 }
 0x97f   :  { %v1049_v59 = vadd.f32 %v1047_v57, %v5611_v31 }
 0x981   :  { %4890 = vtanh.f32 %v1049_v59  ;;  %v4208_v1 = vmul.f32 -1.442695, %v1049_v59 }
 0x982   :  { %4892 = vpow2.f32 %v4209_v63 }
 0x983   :  { %4894 = vpow2.f32 %v4208_v1 }
 0x98a   :  { %v4889_v61 = vpop.eup %4888 }
 0x98b   :  { %1165 = vrot.lane.b32.xlu0 %v4889_v61, %s5361_s20 }
 0x98e   :  { %v4891_v62 = vpop.eup %4890 }
 0x98f   :  { %1138 = vrot.lane.b32.xlu1 %v4891_v62, %s5361_s20  ;;  %v4893_v3 = vpop.eup %4892 }
 0x990   :  { %v1156_v32 = vadd.f32 1.0, %v4893_v3  ;;  %v4895_v4 = vpop.eup %4894 }
 0x991   :  { %v1129_v6 = vadd.f32 1.0, %v4895_v4 }
 0x992   :  { %4896 = vrcp.f32 %v1156_v32 }
 0x993   :  { %4898 = vrcp.f32 %v1129_v6 }
 0x99f   :  { %v4897_v7 = vpop.eup %4896 }
 0x9a0   :  { %v4899_v15 = vpop.eup %4898  ;;  %v1163_v22 = vmul.f32 %v4897_v7, %v1161_v21 }
 0x9a1   :  { %v1136_v28 = vmul.f32 %v4899_v15, %v1134_v26 }
 0x9fd   :  { %v1166_v12 = vpop.permute.xlu0 %1165 }
 0x9fe   :  { %v1168_v31 = vmul.f32 %v4897_v7, %v1166_v12 }
 0xa00   :  { %1170 = vrot.lane.b32.xlu0 %v1168_v31, %s5362_s5 }
 0xa01   :  { %v1139_v18 = vpop.permute.xlu1 %1138 }
 0xa02   :  { %v1141_v19 = vmul.f32 %v4899_v15, %v1139_v18 }
 0xa04   :  { %1143 = vrot.lane.b32.xlu1 %v1141_v19, %s5362_s5 }
 0xa72   :  { %v1171_v24 = vpop.permute.xlu0 %1170 }
 0xa73   :  { %v5756_v25 = vadd.f32 %v1171_v24, %v1163_v22 }
 0xa75   :  { %4900 = vtanh.f32 %v5756_v25  ;;  %v1381_v6 = vrot.slane %v5756_v25, 2 }
 0xa76   :  { %v1144_v29 = vpop.permute.xlu1 %1143 }
 0xa77   :  { %v5760_v30 = vadd.f32 %v1144_v29, %v1136_v28 }
 0xa79   :  { %4902 = vtanh.f32 %v5760_v30 }
 0xa82   :  { %v4901_v33 = vpop.eup %4900 }
 0xa83   :  { %1176 = vrot.lane.b32.xlu0 %v4901_v33, %s5361_s20 }
 0xa86   :  { %v4903_v34 = vpop.eup %4902 }
 0xa87   :  { %1149 = vrot.lane.b32.xlu1 %v4903_v34, %s5361_s20 }
 0xaf5   :  { %v1177_v35 = vpop.permute.xlu0 %1176 }
 0xaf6   :  { %v5765_v36 = vmul.f32 %v4897_v7, %v1177_v35 }
 0xaf8   :  { %1268 = vrot.lane.b32.xlu0 %v5765_v36, %s5362_s5 }
 0xaf9   :  { %v1150_v37 = vpop.permute.xlu1 %1149 }
 0xafa   :  { %v5769_v38 = vmul.f32 %v4899_v15, %v1150_v37  ;;  %v1354_v15 = vrot.slane %v5760_v30, 6 }
 0xafc   :  { %v1192_v39 = vrot.slane %v5769_v38, 6 }
 0xafe   :  { %1193 = vrot.lane.b32.xlu1 %v1192_v39, %s5362_s5 }
 0xb6a   :  { %v1269_v40 = vpop.permute.xlu0 %1268 }
 0xb6b   :  { %4545 = vmatmul.mubr.msk.f32.vlgmr.msra.gmra.mxu0 %vm317_vm3, %v1269_v40 }
 0xb6c   :  { %4559 = vmatpush3.msra.mxu0 %v5546_v9  ;;  %4566 = vmatprep.mubr.msk.f32.mxu0 %vm5360_vm0, %v5359_v0 }
 0xb6d   :  { %4560 = vmatprep.subr.mxu0 %v5359_v0 }
 0xb6e   :  { %4561 = vmatpush3.msra.mxu0 %v5554_v11 }
 0xb6f   :  { %4562 = vmatprep.subr.mxu0 %v5359_v0 }
 0xb70   :  { %4563 = vmatpush3.msra.mxu0 %v5563_v13  ;;  %v1194_v41 = vpop.permute.xlu1 %1193 }
 0xb71   :  { %4564 = vmatprep.subr.mxu0 %v5359_v0  ;;  %4534 = vmatmul.mubr.msk.f32.vlgmr.msra.gmra.mxu1 %vm317_vm3, %v1194_v41 }
 0xb72   :  { %4565 = vmatpush3.msra.mxu0 %v5569_v14  ;;  %4548 = vmatpush3.msra.mxu1 %v5524_v2 }
 0xb73   :  { %4555 = vmatprep.mubr.msk.f32.mxu1 %vm5360_vm0, %v5359_v0  ;;  %4549 = vmatprep.subr.mxu1 %v5359_v0 }
 0xb74   :  { %4580 = vmatprep.subr.mxu0 %v5359_v0  ;;  %4550 = vmatpush3.msra.mxu1 %v5533_v5 }
 0xb75   :  { %4551 = vmatprep.subr.mxu1 %v5359_v0 }
 0xb76   :  { %4552 = vmatpush3.msra.mxu1 %v5542_v8 }
 0xb77   :  { %4553 = vmatprep.subr.mxu1 %v5359_v0 }
 0xb78   :  { %4554 = vmatpush3.msra.mxu1 %v5548_v10 }
 0xb79   :  { %4569 = vmatprep.subr.mxu1 %v5359_v0 }
 0xc2b   :  { %v1338_v42 = vpop.f32.mrf.mxu0 }
 0xc2c   :  { %v1343_v43 = vrot.slane %v1338_v42, 2 }
 0xc2d   :  { %v4546_v45 = vpop.f32.mrf.mxu0 }
 0xc2e   :  { %v1345_v46 = vadd.f32 %v1343_v43, %v5605_v23 }
 0xc30   :  { %4904 = vtanh.f32 %v1345_v46  ;;  %v4213_v55 = vmul.f32 -1.442695, %v1345_v46 }
 0xc31   :  { %v1263_v48 = vpop.f32.mrf.mxu1 }
 0xc32   :  { %v1267_v49 = vadd.f32 %v1263_v48, %v5609_v27 }
 0xc33   :  { %v4535_v50 = vpop.f32.mrf.mxu1 }
 0xc34   :  { %4906 = vtanh.f32 %v1267_v49  ;;  %v4212_v56 = vmul.f32 -1.442695, %v1267_v49 }
 0xc35   :  { %4908 = vpow2.f32 %v4213_v55 }
 0xc36   :  { %4910 = vpow2.f32 %v4212_v56 }
 0xc3d   :  { %v4905_v52 = vpop.eup %4904 }
 0xc3e   :  { %1385 = vrot.lane.b32.xlu0 %v4905_v52, %s5361_s20 }
 0xc41   :  { %v4907_v53 = vpop.eup %4906 }
 0xc42   :  { %1358 = vrot.lane.b32.xlu1 %v4907_v53, %s5361_s20  ;;  %v4909_v57 = vpop.eup %4908 }
 0xc43   :  { %v1376_v58 = vadd.f32 1.0, %v4909_v57  ;;  %v4911_v59 = vpop.eup %4910 }
 0xc44   :  { %v1349_v61 = vadd.f32 1.0, %v4911_v59 }
 0xc45   :  { %4912 = vrcp.f32 %v1376_v58 }
 0xc46   :  { %4914 = vrcp.f32 %v1349_v61 }
 0xc52   :  { %v4913_v62 = vpop.eup %4912 }
 0xc53   :  { %v4915_v3 = vpop.eup %4914  ;;  %v1383_v7 = vmul.f32 %v4913_v62, %v1381_v6 }
 0xc54   :  { %v1356_v18 = vmul.f32 %v4915_v3, %v1354_v15 }
 0xcb0   :  { %v1386_v63 = vpop.permute.xlu0 %1385 }
 0xcb1   :  { %v1388_v1 = vmul.f32 %v4913_v62, %v1386_v63 }
 0xcb3   :  { %1390 = vrot.lane.b32.xlu0 %v1388_v1, %s5362_s5 }
 0xcb4   :  { %v1359_v32 = vpop.permute.xlu1 %1358 }
 0xcb5   :  { %v1361_v4 = vmul.f32 %v4915_v3, %v1359_v32 }
 0xcb7   :  { %1363 = vrot.lane.b32.xlu1 %v1361_v4, %s5362_s5 }
 0xd25   :  { %v1391_v12 = vpop.permute.xlu0 %1390 }
 0xd26   :  { %v5802_v31 = vadd.f32 %v1391_v12, %v1383_v7 }
 0xd28   :  { %4916 = vtanh.f32 %v5802_v31 }
 0xd29   :  { %v1364_v19 = vpop.permute.xlu1 %1363 }
 0xd2a   :  { %v5806_v21 = vadd.f32 %v1364_v19, %v1356_v18 }
 0xd2c   :  { %4918 = vtanh.f32 %v5806_v21  ;;  %v1573_v1 = vrot.slane %v5806_v21, 6 }
 0xd35   :  { %v4917_v22 = vpop.eup %4916 }
 0xd36   :  { %1396 = vrot.lane.b32.xlu0 %v4917_v22, %s5361_s20 }
 0xd39   :  { %v4919_v24 = vpop.eup %4918 }
 0xd3a   :  { %1369 = vrot.lane.b32.xlu1 %v4919_v24, %s5361_s20 }
 0xda8   :  { %v1397_v25 = vpop.permute.xlu0 %1396 }
 0xda9   :  { %v5811_v26 = vmul.f32 %v4913_v62, %v1397_v25  ;;  %v1600_v62 = vrot.slane %v5802_v31, 2 }
 0xdab   :  { %v1486_v28 = vrot.slane %v5811_v26, 6 }
 0xdac   :  { %v1370_v29 = vpop.permute.xlu1 %1369 }
 0xdad   :  { %1487 = vrot.lane.b32.xlu0 %v1486_v28, %s5362_s5  ;;  %v1372_v30 = vmul.f32 %v4915_v3, %v1370_v29  ;;  %v5102_v29 = vld [vmem:[#allocation3 + $0x18] sm:$0xff] }
 0xdaf   :  { %1401 = vrot.lane.b32.xlu1 %v1372_v30, %s5362_s5  ;;  %v5103_v30 = vld [vmem:[#allocation3 + $0x10] sm:$0xff] }
 0xe1f   :  { %v1488_v33 = vpop.permute.xlu0 %1487 }
 0xe20   :  { %4567 = vmatmul.mubr.msk.f32.vlgmr.msra.gmra.mxu0 %vm317_vm3, %v1488_v33 }
 0xe21   :  { %4581 = vmatpush3.msra.mxu0 %v5546_v9  ;;  %4588 = vmatprep.mubr.msk.f32.mxu0 %vm5360_vm0, %v5359_v0  ;;  %v5820_v34 = vpop.permute.xlu1 %1401 }
 0xe22   :  { %4582 = vmatprep.subr.mxu0 %v5359_v0  ;;  %4556 = vmatmul.mubr.msk.f32.vlgmr.msra.gmra.mxu1 %vm317_vm3, %v5820_v34 }
 0xe23   :  { %4583 = vmatpush3.msra.mxu0 %v5554_v11  ;;  %4570 = vmatpush3.msra.mxu1 %v5524_v2 }
 0xe24   :  { %4584 = vmatprep.subr.mxu0 %v5359_v0  ;;  %4571 = vmatprep.subr.mxu1 %v5359_v0 }
 0xe25   :  { %4585 = vmatpush3.msra.mxu0 %v5563_v13  ;;  %4572 = vmatpush3.msra.mxu1 %v5533_v5 }
 0xe26   :  { %4586 = vmatprep.subr.mxu0 %v5359_v0  ;;  %4573 = vmatprep.subr.mxu1 %v5359_v0 }
 0xe27   :  { %4587 = vmatpush3.msra.mxu0 %v5569_v14  ;;  %4574 = vmatpush3.msra.mxu1 %v5542_v8 }
 0xe28   :  { %4577 = vmatprep.mubr.msk.f32.mxu1 %vm5360_vm0, %v5359_v0  ;;  %4575 = vmatprep.subr.mxu1 %v5359_v0 }
 0xe29   :  { %4602 = vmatprep.subr.mxu0 %v5359_v0  ;;  %4576 = vmatpush3.msra.mxu1 %v5548_v10 }
 0xe2a   :  { %4591 = vmatprep.subr.mxu1 %v5359_v0 }
 0xee0   :  { %v1557_v2 = vpop.f32.mrf.mxu0 }
 0xee1   :  { %v1562_v5 = vrot.slane %v1557_v2, 4 }
 0xee2   :  { %v4568_v35 = vpop.f32.mrf.mxu0  ;;  %v1478_v39 = vpop.f32.mrf.mxu1 }
 0xee3   :  { %v1564_v37 = vadd.f32 %v1562_v5, %v5605_v23  ;;  %v1483_v40 = vrot.slane %v1478_v39, 6 }
 0xee4   :  { %v4557_v41 = vpop.f32.mrf.mxu1 }
 0xee5   :  { %4920 = vtanh.f32 %v1564_v37  ;;  %v1485_v42 = vadd.f32 %v1483_v40, %v5609_v27  ;;  %v4217_v46 = vmul.f32 -1.442695, %v1564_v37 }
 0xee7   :  { %4922 = vtanh.f32 %v1485_v42  ;;  %v4216_v48 = vmul.f32 -1.442695, %v1485_v42 }
 0xee8   :  { %4924 = vpow2.f32 %v4217_v46 }
 0xee9   :  { %4926 = vpow2.f32 %v4216_v48 }
 0xef2   :  { %v4921_v43 = vpop.eup %4920 }
 0xef3   :  { %1604 = vrot.lane.b32.xlu0 %v4921_v43, %s5361_s20 }
 0xef4   :  { %v4923_v45 = vpop.eup %4922 }
 0xef5   :  { %1577 = vrot.lane.b32.xlu1 %v4923_v45, %s5361_s20  ;;  %v4925_v49 = vpop.eup %4924 }
 0xef6   :  { %v4927_v50 = vpop.eup %4926  ;;  %v1595_v52 = vadd.f32 1.0, %v4925_v49 }
 0xef7   :  { %v1568_v53 = vadd.f32 1.0, %v4927_v50 }
 0xef8   :  { %4928 = vrcp.f32 %v1595_v52 }
 0xef9   :  { %4930 = vrcp.f32 %v1568_v53 }
 0xf05   :  { %v4929_v55 = vpop.eup %4928 }
 0xf06   :  { %v4931_v58 = vpop.eup %4930  ;;  %v1602_v63 = vmul.f32 %v4929_v55, %v1600_v62 }
 0xf07   :  { %v1575_v4 = vmul.f32 %v4931_v58, %v1573_v1 }
 0xf65   :  { %v1605_v56 = vpop.permute.xlu0 %1604 }
 0xf66   :  { %v1607_v57 = vmul.f32 %v4929_v55, %v1605_v56 }
 0xf67   :  { %v1578_v59 = vpop.permute.xlu1 %1577 }
 0xf68   :  { %1609 = vrot.lane.b32.xlu0 %v1607_v57, %s5362_s5  ;;  %v1580_v61 = vmul.f32 %v4931_v58, %v1578_v59 }
 0xf6a   :  { %1582 = vrot.lane.b32.xlu1 %v1580_v61, %s5362_s5 }
 0xfda   :  { %v1610_v3 = vpop.permute.xlu0 %1609 }
 0xfdb   :  { %v5849_v32 = vadd.f32 %v1610_v3, %v1602_v63 }
 0xfdc   :  { %v1583_v6 = vpop.permute.xlu1 %1582 }
 0xfdd   :  { %4932 = vtanh.f32 %v5849_v32  ;;  %v5852_v7 = vadd.f32 %v1583_v6, %v1575_v4  ;;  %v1822_v53 = vrot.slane %v5849_v32, 2 }
 0xfdf   :  { %4934 = vtanh.f32 %v5852_v7  ;;  %v1795_v56 = vrot.slane %v5852_v7, 6 }
 0xfea   :  { %v4933_v12 = vpop.eup %4932 }
 0xfeb   :  { %1615 = vrot.lane.b32.xlu0 %v4933_v12, %s5361_s20 }
 0xfec   :  { %v4935_v15 = vpop.eup %4934 }
 0xfed   :  { %1588 = vrot.lane.b32.xlu1 %v4935_v15, %s5361_s20 }
0x105d   :  { %v1616_v31 = vpop.permute.xlu0 %1615 }
0x105e   :  { %v5857_v18 = vmul.f32 %v4929_v55, %v1616_v31 }
0x105f   :  { %v1589_v21 = vpop.permute.xlu1 %1588 }
0x1060   :  { %v1708_v19 = vrot.slane %v5857_v18, 4  ;;  %v5860_v22 = vmul.f32 %v4931_v58, %v1589_v21 }
0x1062   :  { %1709 = vrot.lane.b32.xlu0 %v1708_v19, %s5362_s5  ;;  %v1629_v24 = vrot.slane %v5860_v22, 2 }
0x1064   :  { %1630 = vrot.lane.b32.xlu1 %v1629_v24, %s5362_s5 }
0x10d4   :  { %v1710_v25 = vpop.permute.xlu0 %1709 }
0x10d5   :  { %4589 = vmatmul.mubr.msk.f32.vlgmr.msra.gmra.mxu0 %vm317_vm3, %v1710_v25 }
0x10d6   :  { %4603 = vmatpush3.msra.mxu0 %v5546_v9  ;;  %4610 = vmatprep.mubr.msk.f32.mxu0 %vm5360_vm0, %v5359_v0  ;;  %v1631_v28 = vpop.permute.xlu1 %1630 }
0x10d7   :  { %4604 = vmatprep.subr.mxu0 %v5359_v0  ;;  %4578 = vmatmul.mubr.msk.f32.vlgmr.msra.gmra.mxu1 %vm317_vm3, %v1631_v28 }
0x10d8   :  { %4605 = vmatpush3.msra.mxu0 %v5554_v11  ;;  %4592 = vmatpush3.msra.mxu1 %v5102_v29 }
0x10d9   :  { %4606 = vmatprep.subr.mxu0 %v5359_v0  ;;  %4593 = vmatprep.subr.mxu1 %v5359_v0 }
0x10da   :  { %4607 = vmatpush3.msra.mxu0 %v5563_v13  ;;  %4594 = vmatpush3.msra.mxu1 %v5103_v30 }
0x10db   :  { %4608 = vmatprep.subr.mxu0 %v5359_v0  ;;  %4595 = vmatprep.subr.mxu1 %v5359_v0 }
0x10dc   :  { %4609 = vmatpush3.msra.mxu0 %v5569_v14  ;;  %4596 = vmatpush3.msra.mxu1 %v5542_v8 }
0x10dd   :  { %4599 = vmatprep.mubr.msk.f32.mxu1 %vm5360_vm0, %v5359_v0  ;;  %4597 = vmatprep.subr.mxu1 %v5359_v0 }
0x10de   :  { %4613 = vmatprep.subr.mxu0 %v5359_v0  ;;  %4598 = vmatpush3.msra.mxu1 %v5548_v10 }
0x1195   :  { %v1779_v9 = vpop.f32.mrf.mxu0 }
0x1196   :  { %v1784_v11 = vrot.slane %v1779_v9, 6 }
0x1197   :  { %v4590_v13 = vpop.f32.mrf.mxu0  ;;  %v1700_v2 = vpop.f32.mrf.mxu1 }
0x1198   :  { %v1786_v33 = vadd.f32 %v1784_v11, %v5605_v23  ;;  %v1705_v5 = vrot.slane %v1700_v2, 4 }
0x1199   :  { %v4579_v14 = vpop.f32.mrf.mxu1 }
0x119a   :  { %4936 = vtanh.f32 %v1786_v33  ;;  %v1707_v8 = vadd.f32 %v1705_v5, %v5609_v27  ;;  %v4221_v39 = vmul.f32 -1.442695, %v1786_v33 }
0x119c   :  { %4938 = vtanh.f32 %v1707_v8  ;;  %v4220_v10 = vmul.f32 -1.442695, %v1707_v8 }
0x119d   :  { %4940 = vpow2.f32 %v4221_v39 }
0x119e   :  { %4942 = vpow2.f32 %v4220_v10 }
0x11a7   :  { %v4937_v35 = vpop.eup %4936 }
0x11a8   :  { %1826 = vrot.lane.b32.xlu0 %v4937_v35, %s5361_s20 }
0x11a9   :  { %v4939_v37 = vpop.eup %4938 }
0x11aa   :  { %1799 = vrot.lane.b32.xlu1 %v4939_v37, %s5361_s20  ;;  %v4941_v40 = vpop.eup %4940 }
0x11ab   :  { %v4943_v41 = vpop.eup %4942  ;;  %v1817_v42 = vadd.f32 1.0, %v4941_v40 }
0x11ac   :  { %v1790_v43 = vadd.f32 1.0, %v4943_v41 }
0x11ad   :  { %4944 = vrcp.f32 %v1817_v42 }
0x11ae   :  { %4946 = vrcp.f32 %v1790_v43 }
0x11ba   :  { %v4945_v45 = vpop.eup %4944 }
0x11bb   :  { %v4947_v49 = vpop.eup %4946  ;;  %v1824_v55 = vmul.f32 %v4945_v45, %v1822_v53  ;;  %v2087_v53 = vld [vmem:[#allocation8 + $0x78] sm:$0xff] }
0x11bc   :  { %v1797_v59 = vmul.f32 %v4947_v49, %v1795_v56  ;;  %2123 = vmatprep.subr.mxu1 %v2087_v53  ;;  %v2083_v56 = vld [vmem:[#allocation8 + $0x58] sm:$0xff] }
0x121a   :  { %v1827_v46 = vpop.permute.xlu0 %1826 }
0x121b   :  { %v1829_v48 = vmul.f32 %v4945_v45, %v1827_v46 }
0x121c   :  { %v1800_v50 = vpop.permute.xlu1 %1799 }
0x121d   :  { %1831 = vrot.lane.b32.xlu0 %v1829_v48, %s5362_s5  ;;  %v1802_v52 = vmul.f32 %v4947_v49, %v1800_v50 }
0x121f   :  { %1804 = vrot.lane.b32.xlu1 %v1802_v52, %s5362_s5 }
0x128f   :  { %v1832_v57 = vpop.permute.xlu0 %1831 }
0x1290   :  { %v1834_v58 = vadd.f32 %v1832_v57, %v1824_v55  ;;  %v2086_v55 = vld [vmem:[#allocation8 + $0x70] sm:$0xff] }
0x1291   :  { %v1805_v61 = vpop.permute.xlu1 %1804  ;;  %v5949_v57 = vld [vmem:[#allocation10 + $0x10] sm:$0xff] }
0x1292   :  { %4948 = vtanh.f32 %v1834_v58  ;;  %v1807_v62 = vadd.f32 %v1805_v61, %v1797_v59  ;;  %v2041_v40 = vrot.slane %v1834_v58, 2  ;;  %v2078_v58 = vld [vmem:[#allocation8 + $0x30] sm:$0xff]  ;;  %v5953_v59 = vld [vmem:[#allocation10 + $0x8] sm:$0xff]  ;;  %v2075_v61 = vld [vmem:[#allocation8 + $0x18] sm:$0xff] }
0x1294   :  { %4950 = vtanh.f32 %v1807_v62 }
0x129f   :  { %v4949_v63 = vpop.eup %4948 }
0x12a0   :  { %1837 = vrot.lane.b32.xlu0 %v4949_v63, %s5361_s20  ;;  %v2073_v63 = vld [vmem:[#allocation8 + $0x8] sm:$0xff] }
0x12a1   :  { %v4951_v1 = vpop.eup %4950 }
0x12a2   :  { %1810 = vrot.lane.b32.xlu1 %v4951_v1, %s5361_s20  ;;  %v5961_v1 = vld [vmem:[#allocation11 + $0x18] sm:$0xff] }
0x1312   :  { %v1838_v3 = vpop.permute.xlu0 %1837 }
0x1313   :  { %v5894_v4 = vmul.f32 %v4945_v45, %v1838_v3  ;;  %v2014_v45 = vrot.slane %v1807_v62, 6  ;;  %v2074_v62 = vld [vmem:[#allocation8 + $0x10] sm:$0xff]  ;;  %v2072_v3 = vld [vmem:[#allocation8] sm:$0xff] }
0x1314   :  { %v1811_v6 = vpop.permute.xlu1 %1810 }
0x1315   :  { %v1930_v32 = vrot.slane %v5894_v4, 2  ;;  %v5897_v7 = vmul.f32 %v4947_v49, %v1811_v6 }
0x1317   :  { %1931 = vrot.lane.b32.xlu0 %v1930_v32, %s5362_s5  ;;  %v1851_v12 = vrot.slane %v5897_v7, 4  ;;  %v5968_v32 = vld [vmem:[#allocation11 + $0x8] sm:$0xff] }
0x1319   :  { %1852 = vrot.lane.b32.xlu1 %v1851_v12, %s5362_s5 }
0x1389   :  { %v1932_v15 = vpop.permute.xlu0 %1931 }
0x138a   :  { %4611 = vmatmul.mubr.msk.f32.vlgmr.msra.gmra.mxu0 %vm317_vm3, %v1932_v15  ;;  %v5977_v15 = vld [vmem:[#allocation11] sm:$0xff] }
0x138b   :  { %4621 = vmatprep.mubr.msk.f32.mxu0 %vm5360_vm0, %v5359_v0  ;;  %v1853_v31 = vpop.permute.xlu1 %1852 }
0x138c   :  { %4600 = vmatmul.mubr.msk.f32.vlgmr.msra.gmra.mxu1 %vm317_vm3, %v1853_v31 }
0x138d   :  { %2171 = vmatprep.mubr.f32.mxu1 %v5359_v0  ;;  %2124 = vmatpush1.msra.mxu1 %v2086_v55 }
0x144a   :  { %v2001_v19 = vpop.f32.mrf.mxu0 }
0x144b   :  { %v2005_v21 = vadd.f32 %v2001_v19, %v5605_v23 }
0x144c   :  { %v4612_v24 = vpop.f32.mrf.mxu0  ;;  %v1922_v25 = vpop.f32.mrf.mxu1 }
0x144d   :  { %4952 = vtanh.f32 %v2005_v21  ;;  %v1927_v28 = vrot.slane %v1922_v25, 2  ;;  %v4225_v13 = vmul.f32 -1.442695, %v2005_v21 }
0x144e   :  { %v4601_v29 = vpop.f32.mrf.mxu1 }
0x144f   :  { %v1929_v30 = vadd.f32 %v1927_v28, %v5609_v27 }
0x1451   :  { %4954 = vtanh.f32 %v1929_v30  ;;  %v4224_v33 = vmul.f32 -1.442695, %v1929_v30 }
0x1452   :  { %4956 = vpow2.f32 %v4225_v13 }
0x1453   :  { %4958 = vpow2.f32 %v4224_v33 }
0x145a   :  { %v4953_v9 = vpop.eup %4952 }
0x145b   :  { %2045 = vrot.lane.b32.xlu0 %v4953_v9, %s5361_s20 }
0x145e   :  { %v4955_v11 = vpop.eup %4954 }
0x145f   :  { %2018 = vrot.lane.b32.xlu1 %v4955_v11, %s5361_s20  ;;  %v4957_v2 = vpop.eup %4956 }
0x1460   :  { %v2036_v23 = vadd.f32 1.0, %v4957_v2  ;;  %v4959_v5 = vpop.eup %4958 }
0x1461   :  { %v2009_v14 = vadd.f32 1.0, %v4959_v5 }
0x1462   :  { %4960 = vrcp.f32 %v2036_v23 }
0x1463   :  { %4962 = vrcp.f32 %v2009_v14 }
0x146f   :  { %v5911_v8 = vpop.eup %4960 }
0x1470   :  { %v5915_v37 = vpop.eup %4962  ;;  %v2043_v41 = vmul.f32 %v5911_v8, %v2041_v40 }
0x1471   :  { %v2016_v46 = vmul.f32 %v5915_v37, %v2014_v45 }
0x14cd   :  { %v2046_v27 = vpop.permute.xlu0 %2045 }
0x14ce   :  { %v2048_v35 = vmul.f32 %v5911_v8, %v2046_v27 }
0x14d0   :  { %2050 = vrot.lane.b32.xlu0 %v2048_v35, %s5362_s5 }
0x14d1   :  { %v2019_v39 = vpop.permute.xlu1 %2018 }
0x14d2   :  { %v2021_v10 = vmul.f32 %v5915_v37, %v2019_v39  ;;  %v2088_v39 = vld [vmem:[#allocation13] sm:$0x3] }
0x14d3   :  { %v2097_v40 = vrot.slane %v2088_v39, %v214_v17 }
0x14d4   :  { %2023 = vrot.lane.b32.xlu1 %v2021_v10, %s5362_s5  ;;  %v2093_v10 = vrot.slane %v2088_v39, %v210_v20 }
0x1542   :  { %v2051_v42 = vpop.permute.xlu0 %2050 }
0x1543   :  { %v2053_v43 = vadd.f32 %v2051_v42, %v2043_v41 }
0x1545   :  { %4964 = vtanh.f32 %v2053_v43 }
0x1546   :  { %v2024_v48 = vpop.permute.xlu1 %2023 }
0x1547   :  { %v2026_v49 = vadd.f32 %v2024_v48, %v2016_v46 }
0x1549   :  { %4966 = vtanh.f32 %v2026_v49 }
0x1552   :  { %v4965_v50 = vpop.eup %4964 }
0x1553   :  { %2056 = vrot.lane.b32.xlu0 %v4965_v50, %s5361_s20 }
0x1556   :  { %v4967_v52 = vpop.eup %4966 }
0x1557   :  { %736 = vrot.lane.b32.xlu0 %v5676_v54, %s5362_s5  ;;  %2029 = vrot.lane.b32.xlu1 %v4967_v52, %s5361_s20  ;;  %v2085_v54 = vld [vmem:[#allocation8 + $0x68] sm:$0xff] }
0x1558   :  { %2125 = vmatprep.subr.mxu1 %v2085_v54 }
0x155b   :  { %1181 = vrot.lane.b32.xlu0 %v5769_v38, %s5362_s5  ;;  %960 = vrot.lane.b32.xlu1 %v5722_v47, %s5362_s5  ;;  %v2084_v38 = vld [vmem:[#allocation8 + $0x60] sm:$0xff]  ;;  %v5937_v47 = vld [vmem:[#allocation10 + $0x18] sm:$0xff] }
0x155c   :  { %4614 = vmatpush3.msra.mxu0 %v5937_v47  ;;  %2126 = vmatpush1.msra.mxu1 %v2084_v38 }
0x155d   :  { %2127 = vmatprep.subr.mxu1 %v2083_v56  ;;  %4615 = vmatprep.subr.mxu0 %v5359_v0 }
0x155e   :  { %4616 = vmatpush3.msra.mxu0 %v5949_v57 }
0x155f   :  { %1625 = vrot.lane.b32.xlu0 %v5857_v18, %s5361_s20  ;;  %1406 = vrot.lane.b32.xlu1 %v5811_v26, %s5361_s20  ;;  %v2082_v18 = vld [vmem:[#allocation8 + $0x50] sm:$0xff]  ;;  %v2080_v26 = vld [vmem:[#allocation8 + $0x40] sm:$0xff] }
0x1560   :  { %2128 = vmatpush1.msra.mxu1 %v2082_v18  ;;  %4617 = vmatprep.subr.mxu0 %v5359_v0 }
0x1561   :  { %4618 = vmatpush3.msra.mxu0 %v5953_v59 }
0x1562   :  { %4619 = vmatprep.subr.mxu0 %v5359_v0 }
0x1563   :  { %742 = vrot.lane.b32.xlu0 %v5673_v51, %s5361_s20  ;;  %1847 = vrot.lane.b32.xlu1 %v5894_v4, %s5361_s20  ;;  %v2081_v51 = vld [vmem:[#allocation8 + $0x48] sm:$0xff]  ;;  %v5965_v4 = vld [vmem:[#allocation11 + $0x10] sm:$0xff] }
0x1564   :  { %2129 = vmatprep.subr.mxu1 %v2081_v51 }
0x1565   :  { %2130 = vmatpush1.msra.mxu1 %v2080_v26 }
0x1567   :  { %1187 = vrot.lane.b32.xlu0 %v5765_v36, %s5361_s20  ;;  %521 = vrot.lane.b32.xlu1 %v5629_v60, %s5361_s20  ;;  %v2079_v36 = vld [vmem:[#allocation8 + $0x38] sm:$0xff]  ;;  %v2077_v60 = vld [vmem:[#allocation8 + $0x28] sm:$0xff] }
0x1568   :  { %2131 = vmatprep.subr.mxu1 %v2079_v36 }
0x1569   :  { %2132 = vmatpush1.msra.mxu1 %v2078_v58 }
0x156a   :  { %2133 = vmatprep.subr.mxu1 %v2077_v60 }
0x156b   :  { %966 = vrot.lane.b32.xlu1 %v5719_v44, %s5361_s20  ;;  %v2076_v44 = vld [vmem:[#allocation8 + $0x20] sm:$0xff] }
0x156c   :  { %2134 = vmatpush1.msra.mxu1 %v2076_v44 }
0x156d   :  { %2135 = vmatprep.subr.mxu1 %v2075_v61 }
0x156e   :  { %2136 = vmatpush1.msra.mxu1 %v2074_v62 }
0x156f   :  { %1620 = vrot.lane.b32.xlu1 %v5860_v22, %s5362_s5  ;;  %v5957_v22 = vld [vmem:[#allocation10] sm:$0xff]  ;;  %2137 = vmatprep.subr.mxu1 %v2073_v63 }
0x1570   :  { %4620 = vmatpush3.msra.mxu0 %v5957_v22  ;;  %2138 = vmatpush1.msra.mxu1 %v2072_v3 }
0x1571   :  { %4624 = vmatprep.subr.mxu0 %v5359_v0  ;;  %4622 = vmatmul.mubr.f32.vlgmr.msra.gmra.mxu0 %v5359_v0 }
0x1572   :  { %4625 = vmatpush3.msra.mxu0 %v5961_v1  ;;  %4632 = vmatprep.mubr.msk.f32.mxu0 %vm5360_vm0, %v5359_v0 }
0x1573   :  { %4626 = vmatprep.subr.mxu0 %v5359_v0  ;;  %4635 = vmatprep.subr.mxu1 %v5359_v0 }
0x1574   :  { %4627 = vmatpush3.msra.mxu0 %v5965_v4 }
0x1575   :  { %4628 = vmatprep.subr.mxu0 %v5359_v0 }
0x1576   :  { %4629 = vmatpush3.msra.mxu0 %v5968_v32 }
0x1577   :  { %4630 = vmatprep.subr.mxu0 %v5359_v0 }
0x1578   :  { %4631 = vmatpush3.msra.mxu0 %v5977_v15 }
0x1579   :  { %4633 = vmatmul.mubr.f32.vlgmr.msra.gmra.mxu0 %v5359_v0  ;;  %4646 = vmatprep.subr.mxu0 %v5359_v0 }
0x157a   :  { %4647 = vmatpush3.msra.mxu0 %v5961_v1  ;;  %4654 = vmatprep.mubr.msk.f32.mxu0 %vm5360_vm0, %v5359_v0 }
0x157b   :  { %4648 = vmatprep.subr.mxu0 %v5359_v0 }
0x157c   :  { %4649 = vmatpush3.msra.mxu0 %v5965_v4 }
0x157d   :  { %4650 = vmatprep.subr.mxu0 %v5359_v0 }
0x157e   :  { %4651 = vmatpush3.msra.mxu0 %v5968_v32 }
0x157f   :  { %4652 = vmatprep.subr.mxu0 %v5359_v0 }
0x1580   :  { %4653 = vmatpush3.msra.mxu0 %v5977_v15 }
0x1581   :  { %4668 = vmatprep.subr.mxu0 %v5359_v0 }
0x15c5   :  { %v2057_v6 = vpop.permute.xlu0 %2056 }
0x15c6   :  { %v2059_v12 = vmul.f32 %v5911_v8, %v2057_v6 }
0x15c8   :  { %2066 = vrot.lane.b32.xlu0 %v2059_v12, %s5361_s20 }
0x15c9   :  { %v737_v31 = vpop.permute.xlu0 %736  ;;  %v2030_v19 = vpop.permute.xlu1 %2029 }
0x15ca   :  { %740 = vst.msk [vmem:[#allocation2] sm:$0xc] %vm739_vm5, %v737_v31  ;;  %v2032_v21 = vmul.f32 %v5915_v37, %v2030_v19 }
0x15cc   :  { %1842 = vrot.lane.b32.xlu0 %v5897_v7, %s5362_s5  ;;  %2061 = vrot.lane.b32.xlu1 %v2032_v21, %s5362_s5 }
0x15cd   :  { %v1182_v24 = vpop.permute.xlu0 %1181  ;;  %v961_v25 = vpop.permute.xlu1 %960 }
0x15ce   :  { %1185 = vst.msk [vmem:[#allocation2] sm:$0xc0] %vm1184_vm6, %v1182_v24 }
0x15cf   :  { %964 = vst.msk [vmem:[#allocation2] sm:$0x30] %vm963_vm7, %v961_v25 }
0x15d1   :  { %v1626_v7 = vpop.permute.xlu0 %1625  ;;  %v1407_v28 = vpop.permute.xlu1 %1406 }
0x15d2   :  { %1628 = vst.msk [vmem:[#allocation2] sm:$0x30] %vm745_vm8, %v1626_v7 }
0x15d3   :  { %1409 = vst.msk [vmem:[#allocation2] sm:$0xc0] %vm524_vm9, %v1407_v28 }
0x15d5   :  { %v743_v29 = vpop.permute.xlu0 %742  ;;  %v1848_v30 = vpop.permute.xlu1 %1847 }
0x15d6   :  { %746 = vst.msk [vmem:[#allocation2 + $0x8] sm:$0x30] %vm745_vm8, %v743_v29 }
0x15d7   :  { %1850 = vst.msk [vmem:[#allocation2] sm:$0xc] %vm969_vm10, %v1848_v30 }
0x15d9   :  { %v1188_v9 = vpop.permute.xlu0 %1187  ;;  %v522_v11 = vpop.permute.xlu1 %521 }
0x15da   :  { %1191 = vst.msk [vmem:[#allocation2 + $0x8] sm:$0x3] %vm1190_vm11, %v1188_v9 }
0x15db   :  { %1404 = vst.msk [vmem:[#allocation2 + $0x8] sm:$0x3] %vm518_vm4, %v5820_v34 }
0x15dc   :  { %525 = vst.msk [vmem:[#allocation2 + $0x8] sm:$0xc0] %vm524_vm9, %v522_v11 }
0x15dd   :  { %v967_v13 = vpop.permute.xlu1 %966 }
0x15de   :  { %970 = vst.msk [vmem:[#allocation2 + $0x8] sm:$0xc] %vm969_vm10, %v967_v13 }
0x15e1   :  { %v1621_v33 = vpop.permute.xlu1 %1620 }
0x15e2   :  { %1623 = vst.msk [vmem:[#allocation2 + $0x8] sm:$0xc] %vm739_vm5, %v1621_v33 }
0x1631   :  { %v2258_v8 = vpop.f32.mrf.mxu0 }
0x1633   :  { %v4623_v27 = vpop.f32.mrf.mxu0 }
0x1639   :  { %v2329_v35 = vpop.f32.mrf.mxu0 }
0x163a   :  { %v2067_v2 = vpop.permute.xlu0 %2066  ;;  %v2334_v50 = vrot.slane %v2329_v35, 2 }
0x163b   :  { %2069 = vst.msk [vmem:[#allocation2] sm:$0x3] %vm1190_vm11, %v2067_v2  ;;  %v4634_v37 = vpop.f32.mrf.mxu0 }
0x163e   :  { %v1843_v23 = vpop.permute.xlu0 %1842  ;;  %v2062_v5 = vpop.permute.xlu1 %2061 }
0x163f   :  { %1845 = vst.msk [vmem:[#allocation2 + $0x8] sm:$0x30] %vm963_vm7, %v1843_v23 }
0x1640   :  { %2064 = vst.msk [vmem:[#allocation2 + $0x8] sm:$0xc0] %vm1184_vm6, %v2062_v5 }
0x1642   :  { %v2070_v14 = vld [vmem:[#allocation2] sm:$0xff] }
0x1643   :  { %4226 = vmatmul.mubr.msk.f32.vlgmr.msra.gmra.mxu1 %vm2100_vm12, %v2070_v14 }
0x1644   :  { %2177 = vmatprep.mubr.f32.mxu1 %v5359_v0  ;;  %4636 = vmatpush3.msra.mxu1 %v5937_v47 }
0x1645   :  { %4637 = vmatprep.subr.mxu1 %v5359_v0 }
0x1646   :  { %4638 = vmatpush3.msra.mxu1 %v5949_v57 }
0x1647   :  { %v2071_v34 = vld [vmem:[#allocation2 + $0x8] sm:$0xff]  ;;  %4639 = vmatprep.subr.mxu1 %v5359_v0 }
0x1648   :  { %4227 = vmatmul.mubr.msk.f32.gmra.mxu1 %vm2100_vm12, %v2071_v34 }
0x1649   :  { %4640 = vmatpush3.msra.mxu1 %v5953_v59  ;;  %4643 = vmatprep.mubr.msk.f32.mxu1 %vm5360_vm0, %v5359_v0 }
0x164a   :  { %4641 = vmatprep.subr.mxu1 %v5359_v0 }
0x164b   :  { %4642 = vmatpush3.msra.mxu1 %v5957_v22 }
0x164c   :  { %4657 = vmatprep.subr.mxu1 %v5359_v0 }
0x1703   :  { %v2173_v41 = vpop.f32.mrf.mxu1 }
0x1704   :  { %v6023_v42 = vadd.f32 %v2173_v41, %v2093_v10 }
0x1705   :  { %v2175_v43 = vpop.f32.mrf.mxu1 }
0x1706   :  { %v2262_v45 = vadd.f32 %v2258_v8, %v6023_v42  ;;  %v6026_v46 = vadd.f32 %v2175_v43, %v2097_v40 }
0x1708   :  { %4968 = vtanh.f32 %v2262_v45  ;;  %v2179_v48 = vpop.f32.mrf.mxu1  ;;  %v4228_v55 = vmul.f32 -1.442695, %v2262_v45 }
0x1709   :  { %v6028_v49 = vadd.f32 %v2179_v48, %v2093_v10 }
0x170a   :  { %v2181_v52 = vpop.f32.mrf.mxu1 }
0x170b   :  { %v6030_v53 = vadd.f32 %v2181_v52, %v2097_v40 }
0x170d   :  { %v2336_v20 = vadd.f32 %v2334_v50, %v6030_v53 }
0x170f   :  { %4970 = vtanh.f32 %v2336_v20  ;;  %v4229_v54 = vmul.f32 -1.442695, %v2336_v20 }
0x1710   :  { %4972 = vpow2.f32 %v4228_v55 }
0x1711   :  { %4974 = vpow2.f32 %v4229_v54 }
0x1715   :  { %v4969_v16 = vpop.eup %4968 }
0x1716   :  { %2346 = vrot.lane.b32.xlu0 %v4969_v16, %s5361_s20 }
0x171c   :  { %v4971_v17 = vpop.eup %4970 }
0x171d   :  { %2370 = vrot.lane.b32.xlu1 %v4971_v17, %s5361_s20  ;;  %v4973_v38 = vpop.eup %4972 }
0x171e   :  { %v2340_v56 = vadd.f32 1.0, %v4973_v38  ;;  %v4975_v18 = vpop.eup %4974 }
0x171f   :  { %v2364_v51 = vadd.f32 1.0, %v4975_v18 }
0x1720   :  { %4976 = vrcp.f32 %v2340_v56 }
0x1721   :  { %4978 = vrcp.f32 %v2364_v51 }
0x172d   :  { %v4977_v26 = vpop.eup %4976 }
0x172e   :  { %v4979_v60 = vpop.eup %4978  ;;  %v2344_v62 = vmul.f32 0.0, %v4977_v26 }
0x172f   :  { %v2368_v6 = vmul.f32 0.0, %v4979_v60 }
0x1788   :  { %v2347_v36 = vpop.permute.xlu0 %2346 }
0x1789   :  { %v2349_v58 = vmul.f32 %v4977_v26, %v2347_v36 }
0x178b   :  { %2351 = vrot.lane.b32.xlu0 %v2349_v58, %s5362_s5 }
0x178f   :  { %v2371_v44 = vpop.permute.xlu1 %2370 }
0x1790   :  { %v2373_v61 = vmul.f32 %v4979_v60, %v2371_v44 }
0x1792   :  { %2375 = vrot.lane.b32.xlu1 %v2373_v61, %s5362_s5 }
0x17fd   :  { %v2352_v63 = vpop.permute.xlu0 %2351 }
0x17fe   :  { %v6037_v3 = vadd.f32 %v2352_v63, %v2344_v62 }
0x1800   :  { %4980 = vtanh.f32 %v6037_v3  ;;  %v2552_v16 = vrot.slane %v6037_v3, 6 }
0x1804   :  { %v2376_v12 = vpop.permute.xlu1 %2375 }
0x1805   :  { %v6040_v31 = vadd.f32 %v2376_v12, %v2368_v6 }
0x1807   :  { %4982 = vtanh.f32 %v6040_v31  ;;  %v2579_v38 = vrot.slane %v6040_v31, 2 }
0x180d   :  { %v4981_v19 = vpop.eup %4980 }
0x180e   :  { %2357 = vrot.lane.b32.xlu0 %v4981_v19, %s5361_s20 }
0x1814   :  { %v4983_v21 = vpop.eup %4982 }
0x1815   :  { %2381 = vrot.lane.b32.xlu1 %v4983_v21, %s5361_s20 }
0x1880   :  { %v2358_v24 = vpop.permute.xlu0 %2357 }
0x1881   :  { %v2360_v25 = vmul.f32 %v4977_v26, %v2358_v24 }
0x1883   :  { %2386 = vrot.lane.b32.xlu0 %v2360_v25, %s5362_s5 }
0x1887   :  { %v2382_v7 = vpop.permute.xlu1 %2381 }
0x1888   :  { %v2384_v28 = vmul.f32 %v4979_v60, %v2382_v7 }
0x188a   :  { %v2465_v29 = vrot.slane %v2384_v28, 6 }
0x188c   :  { %2466 = vrot.lane.b32.xlu1 %v2465_v29, %s5362_s5 }
0x18f5   :  { %v2387_v30 = vpop.permute.xlu0 %2386 }
0x18f6   :  { %4644 = vmatmul.mubr.msk.f32.vlgmr.msra.gmra.mxu1 %vm317_vm3, %v2387_v30 }
0x18f7   :  { %4658 = vmatpush3.msra.mxu1 %v5937_v47  ;;  %4665 = vmatprep.mubr.msk.f32.mxu1 %vm5360_vm0, %v5359_v0 }
0x18f8   :  { %4659 = vmatprep.subr.mxu1 %v5359_v0 }
0x18f9   :  { %4660 = vmatpush3.msra.mxu1 %v5949_v57 }
0x18fa   :  { %4661 = vmatprep.subr.mxu1 %v5359_v0 }
0x18fb   :  { %4662 = vmatpush3.msra.mxu1 %v5953_v59 }
0x18fc   :  { %4663 = vmatprep.subr.mxu1 %v5359_v0 }
0x18fd   :  { %4664 = vmatpush3.msra.mxu1 %v5957_v22 }
0x18fe   :  { %v2467_v9 = vpop.permute.xlu1 %2466  ;;  %4679 = vmatprep.subr.mxu1 %v5359_v0 }
0x18ff   :  { %4655 = vmatmul.mubr.msk.f32.vlgmr.msra.gmra.mxu0 %vm317_vm3, %v2467_v9 }
0x1900   :  { %4669 = vmatpush3.msra.mxu0 %v5961_v1  ;;  %4676 = vmatprep.mubr.msk.f32.mxu0 %vm5360_vm0, %v5359_v0 }
0x1901   :  { %4670 = vmatprep.subr.mxu0 %v5359_v0 }
0x1902   :  { %4671 = vmatpush3.msra.mxu0 %v5965_v4 }
0x1903   :  { %4672 = vmatprep.subr.mxu0 %v5359_v0 }
0x1904   :  { %4673 = vmatpush3.msra.mxu0 %v5968_v32 }
0x1905   :  { %4674 = vmatprep.subr.mxu0 %v5359_v0 }
0x1906   :  { %4675 = vmatpush3.msra.mxu0 %v5977_v15 }
0x1907   :  { %4690 = vmatprep.subr.mxu0 %v5359_v0 }
0x19b6   :  { %v2456_v11 = vpop.f32.mrf.mxu1 }
0x19b7   :  { %v2461_v13 = vrot.slane %v2456_v11, 6 }
0x19b8   :  { %v4645_v33 = vpop.f32.mrf.mxu1 }
0x19b9   :  { %v2463_v2 = vadd.f32 %v2461_v13, %v6023_v42 }
0x19bb   :  { %4984 = vtanh.f32 %v2463_v2  ;;  %v4232_v35 = vmul.f32 -1.442695, %v2463_v2 }
0x19bf   :  { %v2536_v23 = vpop.f32.mrf.mxu0 }
0x19c0   :  { %v2541_v5 = vrot.slane %v2536_v23, 4 }
0x19c1   :  { %v4656_v14 = vpop.f32.mrf.mxu0 }
0x19c2   :  { %v2543_v34 = vadd.f32 %v2541_v5, %v6030_v53 }
0x19c4   :  { %4986 = vtanh.f32 %v2543_v34  ;;  %v4233_v37 = vmul.f32 -1.442695, %v2543_v34 }
0x19c5   :  { %4988 = vpow2.f32 %v4232_v35 }
0x19c6   :  { %4990 = vpow2.f32 %v4233_v37 }
0x19c8   :  { %v4985_v8 = vpop.eup %4984 }
0x19c9   :  { %2556 = vrot.lane.b32.xlu0 %v4985_v8, %s5361_s20 }
0x19d1   :  { %v4987_v27 = vpop.eup %4986 }
0x19d2   :  { %2583 = vrot.lane.b32.xlu1 %v4987_v27, %s5361_s20  ;;  %v4989_v39 = vpop.eup %4988 }
0x19d3   :  { %v2547_v10 = vadd.f32 1.0, %v4989_v39  ;;  %v4991_v40 = vpop.eup %4990 }
0x19d4   :  { %v2574_v41 = vadd.f32 1.0, %v4991_v40 }
0x19d5   :  { %4992 = vrcp.f32 %v2547_v10 }
0x19d6   :  { %4994 = vrcp.f32 %v2574_v41 }
0x19e2   :  { %v4993_v43 = vpop.eup %4992 }
0x19e3   :  { %v4995_v50 = vpop.eup %4994  ;;  %v2554_v17 = vmul.f32 %v4993_v43, %v2552_v16 }
0x19e4   :  { %v2581_v56 = vmul.f32 %v4995_v50, %v2579_v38 }
0x1a3b   :  { %v2557_v45 = vpop.permute.xlu0 %2556 }
0x1a3c   :  { %v2559_v48 = vmul.f32 %v4993_v43, %v2557_v45 }
0x1a3e   :  { %2561 = vrot.lane.b32.xlu0 %v2559_v48, %s5362_s5 }
0x1a44   :  { %v2584_v52 = vpop.permute.xlu1 %2583 }
0x1a45   :  { %v2586_v20 = vmul.f32 %v4995_v50, %v2584_v52 }
0x1a47   :  { %2588 = vrot.lane.b32.xlu1 %v2586_v20, %s5362_s5 }
0x1ab0   :  { %v2562_v55 = vpop.permute.xlu0 %2561 }
0x1ab1   :  { %v6076_v54 = vadd.f32 %v2562_v55, %v2554_v17 }
0x1ab3   :  { %4996 = vtanh.f32 %v6076_v54  ;;  %v2766_v37 = vrot.slane %v6076_v54, 6 }
0x1ab9   :  { %v2589_v18 = vpop.permute.xlu1 %2588 }
0x1aba   :  { %v6080_v51 = vadd.f32 %v2589_v18, %v2581_v56 }
0x1abc   :  { %4998 = vtanh.f32 %v6080_v51  ;;  %v2793_v41 = vrot.slane %v6080_v51, 2 }
0x1ac0   :  { %v4997_v26 = vpop.eup %4996 }
0x1ac1   :  { %2567 = vrot.lane.b32.xlu0 %v4997_v26, %s5361_s20 }
0x1ac9   :  { %v4999_v36 = vpop.eup %4998 }
0x1aca   :  { %2594 = vrot.lane.b32.xlu1 %v4999_v36, %s5361_s20 }
0x1b33   :  { %v2568_v58 = vpop.permute.xlu0 %2567 }
0x1b34   :  { %v2570_v60 = vmul.f32 %v4993_v43, %v2568_v58 }
0x1b36   :  { %v2599_v44 = vrot.slane %v2570_v60, 2 }
0x1b38   :  { %2600 = vrot.lane.b32.xlu0 %v2599_v44, %s5362_s5 }
0x1b3c   :  { %v2595_v61 = vpop.permute.xlu1 %2594 }
0x1b3d   :  { %v2597_v62 = vmul.f32 %v4995_v50, %v2595_v61 }
0x1b3f   :  { %v2679_v63 = vrot.slane %v2597_v62, 4 }
0x1b41   :  { %2680 = vrot.lane.b32.xlu1 %v2679_v63, %s5362_s5 }
0x1baa   :  { %v2601_v3 = vpop.permute.xlu0 %2600 }
0x1bab   :  { %4666 = vmatmul.mubr.msk.f32.vlgmr.msra.gmra.mxu1 %vm317_vm3, %v2601_v3 }
0x1bac   :  { %4680 = vmatpush3.msra.mxu1 %v5937_v47  ;;  %4687 = vmatprep.mubr.msk.f32.mxu1 %vm5360_vm0, %v5359_v0 }
0x1bad   :  { %4681 = vmatprep.subr.mxu1 %v5359_v0 }
0x1bae   :  { %4682 = vmatpush3.msra.mxu1 %v5949_v57 }
0x1baf   :  { %4683 = vmatprep.subr.mxu1 %v5359_v0 }
0x1bb0   :  { %4684 = vmatpush3.msra.mxu1 %v5953_v59 }
0x1bb1   :  { %4685 = vmatprep.subr.mxu1 %v5359_v0 }
0x1bb2   :  { %4686 = vmatpush3.msra.mxu1 %v5957_v22 }
0x1bb3   :  { %v2681_v6 = vpop.permute.xlu1 %2680  ;;  %4701 = vmatprep.subr.mxu1 %v5359_v0 }
0x1bb4   :  { %4677 = vmatmul.mubr.msk.f32.vlgmr.msra.gmra.mxu0 %vm317_vm3, %v2681_v6 }
0x1bb5   :  { %4691 = vmatpush3.msra.mxu0 %v5961_v1  ;;  %4698 = vmatprep.mubr.msk.f32.mxu0 %vm5360_vm0, %v5359_v0 }
0x1bb6   :  { %4692 = vmatprep.subr.mxu0 %v5359_v0 }
0x1bb7   :  { %4693 = vmatpush3.msra.mxu0 %v5965_v4 }
0x1bb8   :  { %4694 = vmatprep.subr.mxu0 %v5359_v0 }
0x1bb9   :  { %4695 = vmatpush3.msra.mxu0 %v5968_v32 }
0x1bba   :  { %4696 = vmatprep.subr.mxu0 %v5359_v0 }
0x1bbb   :  { %4697 = vmatpush3.msra.mxu0 %v5977_v15 }
0x1bbc   :  { %4712 = vmatprep.subr.mxu0 %v5359_v0 }
0x1c6b   :  { %v2670_v12 = vpop.f32.mrf.mxu1 }
0x1c6c   :  { %v2675_v31 = vrot.slane %v2670_v12, 4 }
0x1c6d   :  { %v4667_v19 = vpop.f32.mrf.mxu1 }
0x1c6e   :  { %v2677_v21 = vadd.f32 %v2675_v31, %v6023_v42 }
0x1c70   :  { %5000 = vtanh.f32 %v2677_v21  ;;  %v4236_v9 = vmul.f32 -1.442695, %v2677_v21 }
0x1c74   :  { %v2750_v24 = vpop.f32.mrf.mxu0 }
0x1c75   :  { %v2755_v25 = vrot.slane %v2750_v24, 6 }
0x1c76   :  { %v4678_v7 = vpop.f32.mrf.mxu0 }
0x1c77   :  { %v2757_v28 = vadd.f32 %v2755_v25, %v6030_v53 }
0x1c79   :  { %5002 = vtanh.f32 %v2757_v28  ;;  %v4237_v11 = vmul.f32 -1.442695, %v2757_v28 }
0x1c7a   :  { %5004 = vpow2.f32 %v4236_v9 }
0x1c7b   :  { %5006 = vpow2.f32 %v4237_v11 }
0x1c7d   :  { %v5001_v29 = vpop.eup %5000 }
0x1c7e   :  { %2770 = vrot.lane.b32.xlu0 %v5001_v29, %s5361_s20 }
0x1c86   :  { %v5003_v30 = vpop.eup %5002 }
0x1c87   :  { %2797 = vrot.lane.b32.xlu1 %v5003_v30, %s5361_s20  ;;  %v5005_v13 = vpop.eup %5004 }
0x1c88   :  { %v2761_v33 = vadd.f32 1.0, %v5005_v13  ;;  %v5007_v2 = vpop.eup %5006 }
0x1c89   :  { %v2788_v23 = vadd.f32 1.0, %v5007_v2 }
0x1c8a   :  { %5008 = vrcp.f32 %v2761_v33 }
0x1c8b   :  { %5010 = vrcp.f32 %v2788_v23 }
0x1c97   :  { %v5009_v5 = vpop.eup %5008 }
0x1c98   :  { %v5011_v8 = vpop.eup %5010  ;;  %v2768_v39 = vmul.f32 %v5009_v5, %v2766_v37 }
0x1c99   :  { %v2795_v43 = vmul.f32 %v5011_v8, %v2793_v41 }
0x1cf0   :  { %v2771_v14 = vpop.permute.xlu0 %2770 }
0x1cf1   :  { %v2773_v34 = vmul.f32 %v5009_v5, %v2771_v14 }
0x1cf3   :  { %2775 = vrot.lane.b32.xlu0 %v2773_v34, %s5362_s5 }
0x1cf9   :  { %v2798_v27 = vpop.permute.xlu1 %2797 }
0x1cfa   :  { %v2800_v35 = vmul.f32 %v5011_v8, %v2798_v27 }
0x1cfc   :  { %2802 = vrot.lane.b32.xlu1 %v2800_v35, %s5362_s5 }
0x1d65   :  { %v2776_v10 = vpop.permute.xlu0 %2775 }
0x1d66   :  { %v6116_v40 = vadd.f32 %v2776_v10, %v2768_v39 }
0x1d68   :  { %5012 = vtanh.f32 %v6116_v40  ;;  %v2977_v29 = vrot.slane %v6116_v40, 6 }
0x1d6e   :  { %v2803_v45 = vpop.permute.xlu1 %2802 }
0x1d6f   :  { %v6120_v48 = vadd.f32 %v2803_v45, %v2795_v43 }
0x1d71   :  { %5014 = vtanh.f32 %v6120_v48  ;;  %v3004_v13 = vrot.slane %v6120_v48, 2 }
0x1d75   :  { %v5013_v50 = vpop.eup %5012 }
0x1d76   :  { %2781 = vrot.lane.b32.xlu0 %v5013_v50, %s5361_s20 }
0x1d7e   :  { %v5015_v52 = vpop.eup %5014 }
0x1d7f   :  { %2808 = vrot.lane.b32.xlu1 %v5015_v52, %s5361_s20 }
0x1de8   :  { %v2782_v20 = vpop.permute.xlu0 %2781 }
0x1de9   :  { %v2784_v16 = vmul.f32 %v5009_v5, %v2782_v20 }
0x1deb   :  { %v2813_v17 = vrot.slane %v2784_v16, 4 }
0x1ded   :  { %2814 = vrot.lane.b32.xlu0 %v2813_v17, %s5362_s5 }
0x1df1   :  { %v2809_v55 = vpop.permute.xlu1 %2808 }
0x1df2   :  { %v2811_v54 = vmul.f32 %v5011_v8, %v2809_v55 }
0x1df4   :  { %v2893_v38 = vrot.slane %v2811_v54, 2 }
0x1df6   :  { %2894 = vrot.lane.b32.xlu1 %v2893_v38, %s5362_s5 }
0x1e5f   :  { %v2815_v56 = vpop.permute.xlu0 %2814 }
0x1e60   :  { %4688 = vmatmul.mubr.msk.f32.vlgmr.msra.gmra.mxu1 %vm317_vm3, %v2815_v56 }
0x1e61   :  { %4702 = vmatpush3.msra.mxu1 %v5937_v47  ;;  %4709 = vmatprep.mubr.msk.f32.mxu1 %vm5360_vm0, %v5359_v0 }
0x1e62   :  { %4703 = vmatprep.subr.mxu1 %v5359_v0 }
0x1e63   :  { %4704 = vmatpush3.msra.mxu1 %v5949_v57 }
0x1e64   :  { %4705 = vmatprep.subr.mxu1 %v5359_v0 }
0x1e65   :  { %4706 = vmatpush3.msra.mxu1 %v5953_v59 }
0x1e66   :  { %4707 = vmatprep.subr.mxu1 %v5359_v0 }
0x1e67   :  { %4708 = vmatpush3.msra.mxu1 %v5957_v22 }
0x1e68   :  { %v2895_v18 = vpop.permute.xlu1 %2894  ;;  %4723 = vmatprep.subr.mxu1 %v5359_v0 }
0x1e69   :  { %4699 = vmatmul.mubr.msk.f32.vlgmr.msra.gmra.mxu0 %vm317_vm3, %v2895_v18 }
0x1e6a   :  { %4713 = vmatpush3.msra.mxu0 %v5961_v1  ;;  %4720 = vmatprep.mubr.msk.f32.mxu0 %vm5360_vm0, %v5359_v0 }
0x1e6b   :  { %4714 = vmatprep.subr.mxu0 %v5359_v0 }
0x1e6c   :  { %4715 = vmatpush3.msra.mxu0 %v5965_v4 }
0x1e6d   :  { %4716 = vmatprep.subr.mxu0 %v5359_v0 }
0x1e6e   :  { %4717 = vmatpush3.msra.mxu0 %v5968_v32 }
0x1e6f   :  { %4718 = vmatprep.subr.mxu0 %v5359_v0 }
0x1e70   :  { %4719 = vmatpush3.msra.mxu0 %v5977_v15 }
0x1e71   :  { %4734 = vmatprep.subr.mxu0 %v5359_v0 }
0x1f20   :  { %v2884_v51 = vpop.f32.mrf.mxu1 }
0x1f21   :  { %v2889_v26 = vrot.slane %v2884_v51, 2 }
0x1f22   :  { %v4689_v36 = vpop.f32.mrf.mxu1 }
0x1f23   :  { %v2891_v58 = vadd.f32 %v2889_v26, %v6023_v42 }
0x1f25   :  { %5016 = vtanh.f32 %v2891_v58  ;;  %v4240_v3 = vmul.f32 -1.442695, %v2891_v58 }
0x1f29   :  { %v2964_v60 = vpop.f32.mrf.mxu0 }
0x1f2a   :  { %v2968_v44 = vadd.f32 %v2964_v60, %v6030_v53 }
0x1f2b   :  { %v4700_v61 = vpop.f32.mrf.mxu0 }
0x1f2c   :  { %5018 = vtanh.f32 %v2968_v44  ;;  %v4241_v6 = vmul.f32 -1.442695, %v2968_v44 }
0x1f2d   :  { %5020 = vpow2.f32 %v4240_v3 }
0x1f2e   :  { %5022 = vpow2.f32 %v4241_v6 }
0x1f32   :  { %v5017_v62 = vpop.eup %5016 }
0x1f33   :  { %2981 = vrot.lane.b32.xlu0 %v5017_v62, %s5361_s20 }
0x1f39   :  { %v5019_v63 = vpop.eup %5018 }
0x1f3a   :  { %3008 = vrot.lane.b32.xlu1 %v5019_v63, %s5361_s20  ;;  %v5021_v12 = vpop.eup %5020 }
0x1f3b   :  { %v2972_v31 = vadd.f32 1.0, %v5021_v12  ;;  %v5023_v19 = vpop.eup %5022 }
0x1f3c   :  { %v2999_v42 = vadd.f32 1.0, %v5023_v19 }
0x1f3d   :  { %5024 = vrcp.f32 %v2972_v31 }
0x1f3e   :  { %5026 = vrcp.f32 %v2999_v42 }
0x1f4a   :  { %v5025_v21 = vpop.eup %5024 }
0x1f4b   :  { %v5027_v25 = vpop.eup %5026  ;;  %v2979_v30 = vmul.f32 %v5025_v21, %v2977_v29 }
0x1f4c   :  { %v3006_v33 = vmul.f32 %v5027_v25, %v3004_v13 }
0x1fa5   :  { %v2982_v53 = vpop.permute.xlu0 %2981 }
0x1fa6   :  { %v2984_v24 = vmul.f32 %v5025_v21, %v2982_v53 }
0x1fa8   :  { %2986 = vrot.lane.b32.xlu0 %v2984_v24, %s5362_s5 }
0x1fac   :  { %v3009_v7 = vpop.permute.xlu1 %3008 }
0x1fad   :  { %v3011_v28 = vmul.f32 %v5027_v25, %v3009_v7 }
0x1faf   :  { %3013 = vrot.lane.b32.xlu1 %v3011_v28, %s5362_s5 }
0x201a   :  { %v2987_v9 = vpop.permute.xlu0 %2986 }
0x201b   :  { %v6156_v11 = vadd.f32 %v2987_v9, %v2979_v30 }
0x201d   :  { %5028 = vtanh.f32 %v6156_v11  ;;  %v3187_v61 = vrot.slane %v6156_v11, 6 }
0x2021   :  { %v3014_v2 = vpop.permute.xlu1 %3013 }
0x2022   :  { %v6160_v23 = vadd.f32 %v3014_v2, %v3006_v33 }
0x2024   :  { %5030 = vtanh.f32 %v6160_v23  ;;  %v3214_v6 = vrot.slane %v6160_v23, 2 }
0x202a   :  { %v5029_v5 = vpop.eup %5028 }
0x202b   :  { %2992 = vrot.lane.b32.xlu0 %v5029_v5, %s5361_s20 }
0x2031   :  { %v5031_v14 = vpop.eup %5030 }
0x2032   :  { %3019 = vrot.lane.b32.xlu1 %v5031_v14, %s5361_s20 }
0x209d   :  { %v2993_v34 = vpop.permute.xlu0 %2992 }
0x209e   :  { %v2995_v8 = vmul.f32 %v5025_v21, %v2993_v34 }
0x20a0   :  { %v3024_v27 = vrot.slane %v2995_v8, 6 }
0x20a2   :  { %3025 = vrot.lane.b32.xlu0 %v3024_v27, %s5362_s5 }
0x20a4   :  { %v3020_v35 = vpop.permute.xlu1 %3019 }
0x20a5   :  { %v3022_v37 = vmul.f32 %v5027_v25, %v3020_v35 }
0x20a7   :  { %3101 = vrot.lane.b32.xlu1 %v3022_v37, %s5362_s5 }
0x2114   :  { %v3026_v39 = vpop.permute.xlu0 %3025 }
0x2115   :  { %4710 = vmatmul.mubr.msk.f32.vlgmr.msra.gmra.mxu1 %vm317_vm3, %v3026_v39 }
0x2116   :  { %4724 = vmatpush3.msra.mxu1 %v5937_v47  ;;  %4731 = vmatprep.mubr.msk.f32.mxu1 %vm5360_vm0, %v5359_v0 }
0x2117   :  { %4725 = vmatprep.subr.mxu1 %v5359_v0 }
0x2118   :  { %4726 = vmatpush3.msra.mxu1 %v5949_v57 }
0x2119   :  { %v3102_v10 = vpop.permute.xlu1 %3101  ;;  %4727 = vmatprep.subr.mxu1 %v5359_v0 }
0x211a   :  { %4721 = vmatmul.mubr.msk.f32.vlgmr.msra.gmra.mxu0 %vm317_vm3, %v3102_v10  ;;  %4728 = vmatpush3.msra.mxu1 %v5953_v59 }
0x211b   :  { %4729 = vmatprep.subr.mxu1 %v5359_v0  ;;  %4735 = vmatpush3.msra.mxu0 %v5961_v1 }
0x211c   :  { %4730 = vmatpush3.msra.mxu1 %v5957_v22  ;;  %4736 = vmatprep.subr.mxu0 %v5359_v0 }
0x211d   :  { %4737 = vmatpush3.msra.mxu0 %v5965_v4  ;;  %4742 = vmatprep.mubr.msk.f32.mxu0 %vm5360_vm0, %v5359_v0 }
0x211e   :  { %4738 = vmatprep.subr.mxu0 %v5359_v0  ;;  %4745 = vmatprep.subr.mxu1 %v5359_v0 }
0x211f   :  { %4739 = vmatpush3.msra.mxu0 %v5968_v32 }
0x2120   :  { %4740 = vmatprep.subr.mxu0 %v5359_v0 }
0x2121   :  { %4741 = vmatpush3.msra.mxu0 %v5977_v15 }
0x2122   :  { %4756 = vmatprep.subr.mxu0 %v5359_v0 }
0x21d5   :  { %v3095_v40 = vpop.f32.mrf.mxu1 }
0x21d6   :  { %v3099_v41 = vadd.f32 %v3095_v40, %v6028_v49 }
0x21d7   :  { %v4711_v43 = vpop.f32.mrf.mxu1 }
0x21d8   :  { %5032 = vtanh.f32 %v3099_v41  ;;  %v4244_v17 = vmul.f32 -1.442695, %v3099_v41 }
0x21da   :  { %v3171_v45 = vpop.f32.mrf.mxu0 }
0x21db   :  { %v3176_v48 = vrot.slane %v3171_v45, 2 }
0x21dc   :  { %v4722_v50 = vpop.f32.mrf.mxu0 }
0x21dd   :  { %v3178_v52 = vadd.f32 %v3176_v48, %v6026_v46 }
0x21df   :  { %5034 = vtanh.f32 %v3178_v52  ;;  %v4245_v55 = vmul.f32 -1.442695, %v3178_v52 }
0x21e0   :  { %5036 = vpow2.f32 %v4244_v17 }
0x21e1   :  { %5038 = vpow2.f32 %v4245_v55 }
0x21e5   :  { %v5033_v20 = vpop.eup %5032 }
0x21e6   :  { %3191 = vrot.lane.b32.xlu0 %v5033_v20, %s5361_s20 }
0x21ec   :  { %v5035_v16 = vpop.eup %5034 }
0x21ed   :  { %3218 = vrot.lane.b32.xlu1 %v5035_v16, %s5361_s20  ;;  %v5037_v54 = vpop.eup %5036 }
0x21ee   :  { %v3182_v38 = vadd.f32 1.0, %v5037_v54  ;;  %v5039_v56 = vpop.eup %5038 }
0x21ef   :  { %v3209_v18 = vadd.f32 1.0, %v5039_v56 }
0x21f0   :  { %5040 = vrcp.f32 %v3182_v38 }
0x21f1   :  { %5042 = vrcp.f32 %v3209_v18 }
0x21fd   :  { %v5041_v51 = vpop.eup %5040 }
0x21fe   :  { %v5043_v58 = vpop.eup %5042  ;;  %v3189_v62 = vmul.f32 %v5041_v51, %v3187_v61  ;;  %v5108_v61 = vld [vmem:[#allocation11 + $0x18] sm:$0xff] }
0x21ff   :  { %v3216_v12 = vmul.f32 %v5043_v58, %v3214_v6 }
0x2258   :  { %v3192_v26 = vpop.permute.xlu0 %3191 }
0x2259   :  { %v3194_v36 = vmul.f32 %v5041_v51, %v3192_v26  ;;  %v5104_v26 = vld [vmem:[#allocation10 + $0x18] sm:$0xff] }
0x225b   :  { %3196 = vrot.lane.b32.xlu0 %v3194_v36, %s5362_s5  ;;  %v5105_v36 = vld [vmem:[#allocation10 + $0x10] sm:$0xff] }
0x225f   :  { %v3219_v60 = vpop.permute.xlu1 %3218 }
0x2260   :  { %v3221_v44 = vmul.f32 %v5043_v58, %v3219_v60  ;;  %v5107_v60 = vld [vmem:[#allocation10] sm:$0xff] }
0x2262   :  { %3223 = vrot.lane.b32.xlu1 %v3221_v44, %s5362_s5 }
0x22cd   :  { %v3197_v63 = vpop.permute.xlu0 %3196 }
0x22ce   :  { %v6196_v3 = vadd.f32 %v3197_v63, %v3189_v62  ;;  %v5109_v62 = vld [vmem:[#allocation11 + $0x10] sm:$0xff]  ;;  %v5110_v63 = vld [vmem:[#allocation11 + $0x8] sm:$0xff] }
0x22d0   :  { %5044 = vtanh.f32 %v6196_v3  ;;  %v3400_v10 = vrot.slane %v6196_v3, 6  ;;  %v5111_v3 = vld [vmem:[#allocation11] sm:$0xff] }
0x22d4   :  { %v3224_v31 = vpop.permute.xlu1 %3223 }
0x22d5   :  { %v6200_v19 = vadd.f32 %v3224_v31, %v3216_v12 }
0x22d7   :  { %5046 = vtanh.f32 %v6200_v19  ;;  %v3427_v45 = vrot.slane %v6200_v19, 2 }
0x22dd   :  { %v5045_v42 = vpop.eup %5044 }
0x22de   :  { %3202 = vrot.lane.b32.xlu0 %v5045_v42, %s5361_s20 }
0x22e4   :  { %v5047_v21 = vpop.eup %5046 }
0x22e5   :  { %3229 = vrot.lane.b32.xlu1 %v5047_v21, %s5361_s20 }
0x2350   :  { %v3203_v53 = vpop.permute.xlu0 %3202 }
0x2351   :  { %v3205_v24 = vmul.f32 %v5041_v51, %v3203_v53 }
0x2353   :  { %3234 = vrot.lane.b32.xlu0 %v3205_v24, %s5362_s5 }
0x2357   :  { %v3230_v25 = vpop.permute.xlu1 %3229 }
0x2358   :  { %v3232_v7 = vmul.f32 %v5043_v58, %v3230_v25  ;;  %v5106_v58 = vld [vmem:[#allocation10 + $0x8] sm:$0xff] }
0x235a   :  { %v3313_v28 = vrot.slane %v3232_v7, 6 }
0x235c   :  { %3314 = vrot.lane.b32.xlu1 %v3313_v28, %s5362_s5 }
0x23c5   :  { %v3235_v29 = vpop.permute.xlu0 %3234 }
0x23c6   :  { %4732 = vmatmul.mubr.msk.f32.vlgmr.msra.gmra.mxu1 %vm317_vm3, %v3235_v29 }
0x23c7   :  { %4746 = vmatpush3.msra.mxu1 %v5937_v47  ;;  %4753 = vmatprep.mubr.msk.f32.mxu1 %vm5360_vm0, %v5359_v0 }
0x23c8   :  { %4747 = vmatprep.subr.mxu1 %v5359_v0 }
0x23c9   :  { %4748 = vmatpush3.msra.mxu1 %v5949_v57 }
0x23ca   :  { %4749 = vmatprep.subr.mxu1 %v5359_v0 }
0x23cb   :  { %4750 = vmatpush3.msra.mxu1 %v5953_v59 }
0x23cc   :  { %4751 = vmatprep.subr.mxu1 %v5359_v0 }
0x23cd   :  { %4752 = vmatpush3.msra.mxu1 %v5957_v22 }
0x23ce   :  { %v3315_v30 = vpop.permute.xlu1 %3314  ;;  %4767 = vmatprep.subr.mxu1 %v5359_v0 }
0x23cf   :  { %4743 = vmatmul.mubr.msk.f32.vlgmr.msra.gmra.mxu0 %vm317_vm3, %v3315_v30 }
0x23d0   :  { %4757 = vmatpush3.msra.mxu0 %v5961_v1  ;;  %4764 = vmatprep.mubr.msk.f32.mxu0 %vm5360_vm0, %v5359_v0 }
0x23d1   :  { %4758 = vmatprep.subr.mxu0 %v5359_v0 }
0x23d2   :  { %4759 = vmatpush3.msra.mxu0 %v5965_v4 }
0x23d3   :  { %4760 = vmatprep.subr.mxu0 %v5359_v0 }
0x23d4   :  { %4761 = vmatpush3.msra.mxu0 %v5968_v32 }
0x23d5   :  { %4762 = vmatprep.subr.mxu0 %v5359_v0 }
0x23d6   :  { %4763 = vmatpush3.msra.mxu0 %v5977_v15 }
0x23d7   :  { %4778 = vmatprep.subr.mxu0 %v5359_v0 }
0x2486   :  { %v3304_v47 = vpop.f32.mrf.mxu1 }
0x2487   :  { %v3309_v57 = vrot.slane %v3304_v47, 6 }
0x2488   :  { %v4733_v59 = vpop.f32.mrf.mxu1 }
0x2489   :  { %v3311_v22 = vadd.f32 %v3309_v57, %v6028_v49 }
0x248b   :  { %5048 = vtanh.f32 %v3311_v22  ;;  %v4248_v15 = vmul.f32 -1.442695, %v3311_v22 }
0x248f   :  { %v3384_v1 = vpop.f32.mrf.mxu0 }
0x2490   :  { %v3389_v9 = vrot.slane %v3384_v1, 4 }
0x2491   :  { %v4744_v11 = vpop.f32.mrf.mxu0 }
0x2492   :  { %v3391_v4 = vadd.f32 %v3389_v9, %v6026_v46 }
0x2494   :  { %5050 = vtanh.f32 %v3391_v4  ;;  %v4249_v33 = vmul.f32 -1.442695, %v3391_v4 }
0x2495   :  { %5052 = vpow2.f32 %v4248_v15 }
0x2496   :  { %5054 = vpow2.f32 %v4249_v33 }
0x2498   :  { %v5049_v13 = vpop.eup %5048 }
0x2499   :  { %3404 = vrot.lane.b32.xlu0 %v5049_v13, %s5361_s20 }
0x24a1   :  { %v5051_v32 = vpop.eup %5050 }
0x24a2   :  { %3431 = vrot.lane.b32.xlu1 %v5051_v32, %s5361_s20  ;;  %v5053_v2 = vpop.eup %5052 }
0x24a3   :  { %v3395_v23 = vadd.f32 1.0, %v5053_v2  ;;  %v5055_v5 = vpop.eup %5054 }
0x24a4   :  { %v3422_v14 = vadd.f32 1.0, %v5055_v5 }
0x24a5   :  { %5056 = vrcp.f32 %v3395_v23 }
0x24a6   :  { %5058 = vrcp.f32 %v3422_v14 }
0x24b2   :  { %v5057_v34 = vpop.eup %5056 }
0x24b3   :  { %v5059_v35 = vpop.eup %5058  ;;  %v3402_v40 = vmul.f32 %v5057_v34, %v3400_v10 }
0x24b4   :  { %v3429_v48 = vmul.f32 %v5059_v35, %v3427_v45 }
0x250b   :  { %v3405_v8 = vpop.permute.xlu0 %3404 }
0x250c   :  { %v3407_v27 = vmul.f32 %v5057_v34, %v3405_v8 }
0x250e   :  { %3409 = vrot.lane.b32.xlu0 %v3407_v27, %s5362_s5 }
0x2514   :  { %v3432_v37 = vpop.permute.xlu1 %3431 }
0x2515   :  { %v3434_v39 = vmul.f32 %v5059_v35, %v3432_v37 }
0x2517   :  { %3436 = vrot.lane.b32.xlu1 %v3434_v39, %s5362_s5 }
0x2580   :  { %v3410_v41 = vpop.permute.xlu0 %3409 }
0x2581   :  { %v6236_v43 = vadd.f32 %v3410_v41, %v3402_v40 }
0x2583   :  { %5060 = vtanh.f32 %v6236_v43  ;;  %v3614_v32 = vrot.slane %v6236_v43, 6 }
0x2589   :  { %v3437_v50 = vpop.permute.xlu1 %3436 }
0x258a   :  { %v6240_v52 = vadd.f32 %v3437_v50, %v3429_v48 }
0x258c   :  { %5062 = vtanh.f32 %v6240_v52  ;;  %v3641_v23 = vrot.slane %v6240_v52, 2 }
0x2590   :  { %v5061_v20 = vpop.eup %5060 }
0x2591   :  { %3415 = vrot.lane.b32.xlu0 %v5061_v20, %s5361_s20 }
0x2599   :  { %v5063_v16 = vpop.eup %5062 }
0x259a   :  { %3442 = vrot.lane.b32.xlu1 %v5063_v16, %s5361_s20 }
0x2603   :  { %v3416_v17 = vpop.permute.xlu0 %3415 }
0x2604   :  { %v3418_v55 = vmul.f32 %v5057_v34, %v3416_v17 }
0x2606   :  { %v3447_v54 = vrot.slane %v3418_v55, 2 }
0x2608   :  { %3448 = vrot.lane.b32.xlu0 %v3447_v54, %s5362_s5 }
0x260c   :  { %v3443_v38 = vpop.permute.xlu1 %3442 }
0x260d   :  { %v3445_v56 = vmul.f32 %v5059_v35, %v3443_v38 }
0x260f   :  { %v3527_v18 = vrot.slane %v3445_v56, 4 }
0x2611   :  { %3528 = vrot.lane.b32.xlu1 %v3527_v18, %s5362_s5 }
0x267a   :  { %v3449_v51 = vpop.permute.xlu0 %3448 }
0x267b   :  { %4754 = vmatmul.mubr.msk.f32.vlgmr.msra.gmra.mxu1 %vm317_vm3, %v3449_v51 }
0x267c   :  { %4768 = vmatpush3.msra.mxu1 %v5104_v26  ;;  %4775 = vmatprep.mubr.msk.f32.mxu1 %vm5360_vm0, %v5359_v0 }
0x267d   :  { %4769 = vmatprep.subr.mxu1 %v5359_v0 }
0x267e   :  { %4770 = vmatpush3.msra.mxu1 %v5105_v36 }
0x267f   :  { %4771 = vmatprep.subr.mxu1 %v5359_v0 }
0x2680   :  { %4772 = vmatpush3.msra.mxu1 %v5106_v58 }
0x2681   :  { %4773 = vmatprep.subr.mxu1 %v5359_v0 }
0x2682   :  { %4774 = vmatpush3.msra.mxu1 %v5107_v60 }
0x2683   :  { %v3529_v44 = vpop.permute.xlu1 %3528  ;;  %4789 = vmatprep.subr.mxu1 %v5359_v0 }
0x2684   :  { %4765 = vmatmul.mubr.msk.f32.vlgmr.msra.gmra.mxu0 %vm317_vm3, %v3529_v44 }
0x2685   :  { %4779 = vmatpush3.msra.mxu0 %v5108_v61  ;;  %4786 = vmatprep.mubr.msk.f32.mxu0 %vm5360_vm0, %v5359_v0 }
0x2686   :  { %4780 = vmatprep.subr.mxu0 %v5359_v0 }
0x2687   :  { %4781 = vmatpush3.msra.mxu0 %v5109_v62 }
0x2688   :  { %4782 = vmatprep.subr.mxu0 %v5359_v0 }
0x2689   :  { %4783 = vmatpush3.msra.mxu0 %v5110_v63 }
0x268a   :  { %4784 = vmatprep.subr.mxu0 %v5359_v0 }
0x268b   :  { %4785 = vmatpush3.msra.mxu0 %v5111_v3 }
0x268c   :  { %4800 = vmatprep.subr.mxu0 %v5359_v0 }
0x273b   :  { %v3518_v6 = vpop.f32.mrf.mxu1 }
0x273c   :  { %v3523_v12 = vrot.slane %v3518_v6, 4 }
0x273d   :  { %v4755_v31 = vpop.f32.mrf.mxu1 }
0x273e   :  { %v3525_v19 = vadd.f32 %v3523_v12, %v6028_v49 }
0x2740   :  { %5064 = vtanh.f32 %v3525_v19  ;;  %v4252_v28 = vmul.f32 -1.442695, %v3525_v19 }
0x2744   :  { %v3598_v42 = vpop.f32.mrf.mxu0 }
0x2745   :  { %v3603_v21 = vrot.slane %v3598_v42, 6 }
0x2746   :  { %v4766_v53 = vpop.f32.mrf.mxu0 }
0x2747   :  { %v3605_v24 = vadd.f32 %v3603_v21, %v6026_v46  ;;  %v3874_v53 = vld [vmem:[#allocation14 + $0x18] sm:$0xff] }
0x2749   :  { %5066 = vtanh.f32 %v3605_v24  ;;  %v4253_v29 = vmul.f32 -1.442695, %v3605_v24  ;;  %v3873_v24 = vld [vmem:[#allocation14 + $0x10] sm:$0xff] }
0x274a   :  { %5068 = vpow2.f32 %v4252_v28  ;;  %v3872_v28 = vld [vmem:[#allocation14 + $0x8] sm:$0xff] }
0x274b   :  { %5070 = vpow2.f32 %v4253_v29 }
0x274d   :  { %v5065_v25 = vpop.eup %5064 }
0x274e   :  { %3618 = vrot.lane.b32.xlu0 %v5065_v25, %s5361_s20  ;;  %v3878_v25 = vld [vmem:[#allocation16 + $0x18] sm:$0xff] }
0x2756   :  { %v5067_v7 = vpop.eup %5066 }
0x2757   :  { %3645 = vrot.lane.b32.xlu1 %v5067_v7, %s5361_s20  ;;  %v5069_v30 = vpop.eup %5068  ;;  %v3877_v7 = vld [vmem:[#allocation16 + $0x10] sm:$0xff] }
0x2758   :  { %v3609_v47 = vadd.f32 1.0, %v5069_v30  ;;  %v5071_v57 = vpop.eup %5070  ;;  %v3871_v30 = vld [vmem:[#allocation14] sm:$0xff] }
0x2759   :  { %v3636_v59 = vadd.f32 1.0, %v5071_v57  ;;  %v3876_v57 = vld [vmem:[#allocation16 + $0x8] sm:$0xff] }
0x275a   :  { %5072 = vrcp.f32 %v3609_v47 }
0x275b   :  { %5074 = vrcp.f32 %v3636_v59  ;;  %v3875_v59 = vld [vmem:[#allocation16] sm:$0xff] }
0x2767   :  { %v5073_v22 = vpop.eup %5072 }
0x2768   :  { %v5075_v11 = vpop.eup %5074  ;;  %v3616_v15 = vmul.f32 %v5073_v22, %v3614_v32 }
0x2769   :  { %v3643_v5 = vmul.f32 %v5075_v11, %v3641_v23 }
0x27c0   :  { %v3619_v1 = vpop.permute.xlu0 %3618 }
0x27c1   :  { %v3621_v9 = vmul.f32 %v5073_v22, %v3619_v1 }
0x27c3   :  { %3623 = vrot.lane.b32.xlu0 %v3621_v9, %s5362_s5 }
0x27c9   :  { %v3646_v4 = vpop.permute.xlu1 %3645 }
0x27ca   :  { %v3648_v13 = vmul.f32 %v5075_v11, %v3646_v4 }
0x27cc   :  { %3650 = vrot.lane.b32.xlu1 %v3648_v13, %s5362_s5  ;;  %v4056_v13 = vld [vmem:[%s6357_s1] sm:$0x3] }
0x2835   :  { %v3624_v33 = vpop.permute.xlu0 %3623 }
0x2836   :  { %v3626_v2 = vadd.f32 %v3624_v33, %v3616_v15  ;;  %v4068_v33 = vld [vmem:[%s6343_s14 + $0x8] sm:$0xff] }
0x2838   :  { %5076 = vtanh.f32 %v3626_v2  ;;  %v3825_v63 = vrot.slane %v3626_v2, 6 }
0x283e   :  { %v3651_v14 = vpop.permute.xlu1 %3650 }
0x283f   :  { %v3653_v34 = vadd.f32 %v3651_v14, %v3643_v5  ;;  %v4260_v14 = vld [vmem:[#allocation17] ss:$0 sm:$0xff] }
0x2841   :  { %5078 = vtanh.f32 %v3653_v34  ;;  %v3852_v31 = vrot.slane %v3653_v34, 2 }
0x2845   :  { %v5077_v8 = vpop.eup %5076 }
0x2846   :  { %3629 = vrot.lane.b32.xlu0 %v5077_v8, %s5361_s20 }
0x284e   :  { %v5079_v27 = vpop.eup %5078 }
0x284f   :  { %3656 = vrot.lane.b32.xlu1 %v5079_v27, %s5361_s20 }
0x28b8   :  { %v3630_v35 = vpop.permute.xlu0 %3629 }
0x28b9   :  { %v3632_v37 = vmul.f32 %v5073_v22, %v3630_v35 }
0x28bb   :  { %v3661_v39 = vrot.slane %v3632_v37, 4 }
0x28bd   :  { %3662 = vrot.lane.b32.xlu0 %v3661_v39, %s5362_s5 }
0x28c1   :  { %v3657_v10 = vpop.permute.xlu1 %3656 }
0x28c2   :  { %v3659_v40 = vmul.f32 %v5075_v11, %v3657_v10 }
0x28c4   :  { %v3741_v41 = vrot.slane %v3659_v40, 2 }
0x28c6   :  { %3742 = vrot.lane.b32.xlu1 %v3741_v41, %s5362_s5  ;;  %v4067_v41 = vld [vmem:[%s6343_s14] sm:$0xff]  ;;  %s5364_s14 = smov 112  }
0x292f   :  { %v3663_v43 = vpop.permute.xlu0 %3662 }
0x2930   :  { %4776 = vmatmul.mubr.msk.f32.vlgmr.msra.gmra.mxu1 %vm317_vm3, %v3663_v43 }
0x2931   :  { %4797 = vmatprep.mubr.msk.f32.mxu1 %vm5360_vm0, %v5359_v0  ;;  %4790 = vmatpush3.msra.mxu1 %v3878_v25 }
0x2932   :  { %4791 = vmatprep.subr.mxu1 %v5359_v0 }
0x2933   :  { %4792 = vmatpush3.msra.mxu1 %v3877_v7 }
0x2934   :  { %4793 = vmatprep.subr.mxu1 %v5359_v0 }
0x2935   :  { %4794 = vmatpush3.msra.mxu1 %v3876_v57 }
0x2936   :  { %4795 = vmatprep.subr.mxu1 %v5359_v0 }
0x2937   :  { %4796 = vmatpush3.msra.mxu1 %v3875_v59 }
0x2938   :  { %v3743_v45 = vpop.permute.xlu1 %3742  ;;  %4811 = vmatprep.subr.mxu1 %v5359_v0 }
0x2939   :  { %4787 = vmatmul.mubr.msk.f32.vlgmr.msra.gmra.mxu0 %vm317_vm3, %v3743_v45 }
0x293a   :  { %4808 = vmatprep.mubr.msk.f32.mxu0 %vm5360_vm0, %v5359_v0  ;;  %4801 = vmatpush3.msra.mxu0 %v3874_v53 }
0x293b   :  { %4802 = vmatprep.subr.mxu0 %v5359_v0 }
0x293c   :  { %4803 = vmatpush3.msra.mxu0 %v3873_v24 }
0x293d   :  { %4804 = vmatprep.subr.mxu0 %v5359_v0 }
0x293e   :  { %4805 = vmatpush3.msra.mxu0 %v3872_v28 }
0x293f   :  { %4806 = vmatprep.subr.mxu0 %v5359_v0 }
0x2940   :  { %4807 = vmatpush3.msra.mxu0 %v3871_v30 }
0x29f0   :  { %v3732_v48 = vpop.f32.mrf.mxu1 }
0x29f1   :  { %v3737_v50 = vrot.slane %v3732_v48, 2 }
0x29f2   :  { %v4777_v52 = vpop.f32.mrf.mxu1 }
0x29f3   :  { %v3739_v20 = vadd.f32 %v3737_v50, %v6028_v49  ;;  %v4069_v50 = vld [vmem:[%s6358_s16] sm:$0x3] }
0x29f5   :  { %5080 = vtanh.f32 %v3739_v20  ;;  %v4256_v56 = vmul.f32 -1.442695, %v3739_v20 }
0x29f9   :  { %v3812_v16 = vpop.f32.mrf.mxu0 }
0x29fa   :  { %v3816_v17 = vadd.f32 %v3812_v16, %v6026_v46  ;;  %v5363_v16 = vmov 0  }
0x29fb   :  { %v4788_v55 = vpop.f32.mrf.mxu0  ;;  %4839 = vset.pattern.permute.xlu0 %v5363_v16 }
0x29fc   :  { %5082 = vtanh.f32 %v3816_v17  ;;  %v4257_v18 = vmul.f32 -1.442695, %v3816_v17 }
0x29fd   :  { %5084 = vpow2.f32 %v4256_v56 }
0x29fe   :  { %5086 = vpow2.f32 %v4257_v18 }
0x2a02   :  { %v5081_v54 = vpop.eup %5080 }
0x2a03   :  { %3829 = vrot.lane.b32.xlu0 %v5081_v54, %s5361_s20 }
0x2a09   :  { %v5083_v38 = vpop.eup %5082 }
0x2a0a   :  { %3856 = vrot.lane.b32.xlu1 %v5083_v38, %s5361_s20  ;;  %v5085_v51 = vpop.eup %5084 }
0x2a0b   :  { %v3820_v26 = vadd.f32 1.0, %v5085_v51  ;;  %v5087_v36 = vpop.eup %5086 }
0x2a0c   :  { %v3847_v49 = vadd.f32 1.0, %v5087_v36 }
0x2a0d   :  { %5088 = vrcp.f32 %v3820_v26 }
0x2a0e   :  { %5090 = vrcp.f32 %v3847_v49  ;;  %v4261_v49 = vld [vmem:[%s6344_s15] ss:$0 sm:$0xff] }
0x2a1a   :  { %v5089_v58 = vpop.eup %5088 }
0x2a1b   :  { %v5091_v44 = vpop.eup %5090  ;;  %v3827_v3 = vmul.f32 %v5089_v58, %v3825_v63 }
0x2a1c   :  { %v3854_v19 = vmul.f32 %v5091_v44, %v3852_v31 }
0x2a75   :  { %v3830_v46 = vpop.permute.xlu0 %3829 }
0x2a76   :  { %v3832_v60 = vmul.f32 %v5089_v58, %v3830_v46 }
0x2a78   :  { %3834 = vrot.lane.b32.xlu0 %v3832_v60, %s5362_s5 }
0x2a7c   :  { %v3857_v61 = vpop.permute.xlu1 %3856 }
0x2a7d   :  { %v3859_v62 = vmul.f32 %v5091_v44, %v3857_v61 }
0x2a7f   :  { %3861 = vrot.lane.b32.xlu1 %v3859_v62, %s5362_s5 }
0x2aea   :  { %v3835_v6 = vpop.permute.xlu0 %3834 }
0x2aeb   :  { %v3837_v12 = vadd.f32 %v3835_v6, %v3827_v3 }
0x2aed   :  { %5092 = vtanh.f32 %v3837_v12 }
0x2af1   :  { %v3862_v42 = vpop.permute.xlu1 %3861 }
0x2af2   :  { %v3864_v21 = vadd.f32 %v3862_v42, %v3854_v19 }
0x2af4   :  { %5094 = vtanh.f32 %v3864_v21 }
0x2afa   :  { %v5093_v29 = vpop.eup %5092 }
0x2afb   :  { %3840 = vrot.lane.b32.xlu0 %v5093_v29, %s5361_s20 }
0x2b01   :  { %v5095_v47 = vpop.eup %5094 }
0x2b02   :  { %3867 = vrot.lane.b32.xlu1 %v5095_v47, %s5361_s20 }
0x2b6d   :  { %v3841_v22 = vpop.permute.xlu0 %3840 }
0x2b6e   :  { %v3843_v1 = vmul.f32 %v5089_v58, %v3841_v22 }
0x2b70   :  { %v3955_v9 = vrot.slane %v3843_v1, 6 }
0x2b72   :  { %3956 = vrot.lane.b32.xlu1 %v3955_v9, %s5362_s5 }
0x2b74   :  { %v3868_v11 = vpop.permute.xlu1 %3867 }
0x2b75   :  { %v3870_v4 = vmul.f32 %v5091_v44, %v3868_v11  ;;  %v4263_v44 = vld [vmem:[#allocation19] ss:$0 sm:$0xff] }
0x2b77   :  { %3880 = vrot.lane.b32.xlu0 %v3870_v4, %s5362_s5 }
0x2b7b   :  { %4058 = vrot.lane.b32.xlu0 %v4056_v13, %s5349_s26 }
0x2b7f   :  { %4073 = vperm.xlu0 %4839, %v4069_v50  }
0x2be4   :  { %v3957_v32 = vpop.permute.xlu1 %3956 }
0x2be5   :  { %4809 = vmatmul.mubr.msk.f32.vlgmr.msra.gmra.mxu0 %vm317_vm3, %v3957_v32 }
0x2be9   :  { %v3881_v15 = vpop.permute.xlu0 %3880 }
0x2bea   :  { %4798 = vmatmul.mubr.msk.f32.vlgmr.msra.gmra.mxu1 %vm317_vm3, %v3881_v15 }
0x2beb   :  { %4815 = vmatprep.mubr.msk.f32.mxu1 %vm5360_vm0, %v5359_v0  ;;  %4812 = vmatpush3.msra.mxu1 %v4068_v33  ;;  %vm4083_vm0 = vcmask 130048  }
0x2bec   :  { %4813 = vmatprep.subr.mxu1 %v5359_v0 }
0x2bed   :  { %4814 = vmatpush3.msra.mxu1 %v4067_v41  ;;  %v4059_v54 = vpop.permute.xlu0 %4058 }
0x2bfa   :  { %v4074_v58 = vpop.permute.xlu0 %4073 }
0x2bfb   :  { %v4082_v46 = vmul.f32 %v4261_v49, %v4074_v58 }
0x2ca5   :  { %v4026_v2 = vpop.f32.mrf.mxu0 }
0x2ca7   :  { %v4810_v23 = vpop.f32.mrf.mxu0 }
0x2caa   :  { %v3950_v5 = vpop.f32.mrf.mxu1 }
0x2cab   :  { %v4027_v34 = vadd.f32 %v4026_v2, %v3950_v5 }
0x2cac   :  { %v4799_v8 = vpop.f32.mrf.mxu1 }
0x2cad   :  { %v4037_v27 = vadd.f32 %v4260_v14, %v4027_v34 }
0x2caf   :  { %v4041_v35 = vand.u32 2147483647, %v4037_v27  ;;  %4166 = vst.msk [vmem:[%s6346_s17] sm:$0x3] %vm4165_vm13, %v4037_v27  ;;  %v4038_v17 = vmax.f32 %v4037_v27, 0.0  ;;  %vm4039_vm15 = vcmp.ne.f32.partialorder %v4037_v27, %v4037_v27 }
0x2cb1   :  { %v4042_v37 = vsub.f32 0.0, %v4041_v35 }
0x2cb3   :  { %v4043_v39 = vmul.f32 1.442695, %v4042_v37 }
0x2cb5   :  { %5096 = vpow2.f32 %v4043_v39 }
0x2cc2   :  { %v5097_v10 = vpop.eup %5096 }
0x2cc3   :  { %v4045_v40 = vadd.f32 1.0, %v5097_v10  ;;  %v4048_v0 = vmul.f32 -0.5, %v5097_v10  ;;  %v4051_v45 = vand.u32 2147483647, %v5097_v10 }
0x2cc5   :  { %5098 = vlog2.f32 %v4045_v40  ;;  %v4049_v43 = vadd.f32 1.0, %v4048_v0  ;;  %vm4052_vm14 = vcmp.lt.f32.partialorder %v4051_v45, 0.0004427343 }
0x2cc7   :  { %v4050_v20 = vmul.f32 %v5097_v10, %v4049_v43 }
0x2cd2   :  { %v5099_v48 = vpop.eup %5098 }
0x2cd3   :  { %v4047_v52 = vmul.f32 0.6931472, %v5099_v48 }
0x2cd5   :  { %v4053_v55 = vsel %vm4052_vm14, %v4050_v20, %v4047_v52 }
0x2cd6   :  { %v4054_v38 = vadd.f32 %v4053_v55, %v4038_v17 }
0x2cd8   :  { %v4055_v56 = vsel %vm4039_vm15, %v4037_v27, %v4054_v38 }
0x2cd9   :  { %v4061_v18 = vmul.f32 %v4059_v54, %v4055_v56 }
0x2cdb   :  { %4063 = vrot.lane.b32.xlu1 %v4061_v18, %s5364_s14 }
0x2cdf   :  { %4168 = vrot.lane.b32.xlu1 %v4055_v56, %s5364_s14 }
0x2d4d   :  { %v4064_v51 = vpop.permute.xlu1 %4063 }
0x2d4e   :  { %v4066_v26 = vadd.f32 %v4064_v51, %v4037_v27 }
0x2d50   :  { %4816 = vmatmul.mubr.msk.f32.vlgmr.msra.gmra.mxu1 %vm4083_vm0, %v4066_v26 }
0x2d51   :  { %v4169_v36 = vpop.permute.xlu1 %4168 }
0x2d52   :  { %4171 = vst.msk [vmem:[%s6347_s18] sm:$0x3] %vm4165_vm13, %v4169_v36 }
0x2e10   :  { %v4153_v60 = vpop.f32.mrf.mxu1 }
0x2e11   :  { %v4154_v61 = vadd.f32 %v4153_v60, %v4082_v46 }
0x2e12   :  { %v4817_v62 = vpop.f32.mrf.mxu1 }
0x2e13   :  { %v4164_v63 = vadd.f32 %v4263_v44, %v4154_v61 }
0x2e15   :  { %5100 = vtanh.f32 %v4164_v63 }
0x2e22   :  { %v5101_v3 = vpop.eup %5100 }
0x2e23   :  { %4173 = vst.msk [vmem:[%s6348_s19] sm:$0x3] %vm4165_vm13, %v5101_v3 }
0x2e24   :  { %4186 = vsyncpa [#allocation4], 1 }
0x2e25   :  { %4187 = vsyncpa [#allocation6], 1 }
0x2e26   :  { %4188 = vsyncpa [#allocation9], 1 }
0x2e27   :  { %4189 = vsyncpa [#allocation12], 1 }
0x2e28   :  { %4190 = vsyncpa [#allocation15], 1 }
0x2e29   :  { %4191 = vsyncpa [#allocation18], 1 }

</bundles_post_ra>
